<compile_context>
chip_gen: v7x
topology: tpu7x:2x2x1
jax: 0.10.0
libtpu: 0.0.40
codegen_flags: <defaults>
</compile_context>

<pallas_src>
import functools

import jax
import jax.numpy as jnp
from jax.experimental import pallas as pl
from jax.experimental.pallas import tpu as pltpu

FEATURE_SIZE = 2048   # BaseEncoder.feature_size
HIDDEN = 1024         # Linear(2048, 1024)


def _two_head_kernel(x_ref, wa_ref, ba_ref,
                     w1b_ref, w2b_ref, b1b_ref, b2b_ref,
                     out1_ref, out2_ref,
                     acc_ref):
    """Fused two-head MLP.

    Grid axis 0 tiles the 2048-wide reduction (K) of the *fused* first Linear
    of both heads (single [tk, 2*HIDDEN] bf16 weight tile, single (B, 2*HIDDEN)
    f32 accumulator).  Bias + ReLU + per-head second Linear epilogue runs on
    the last K step.
    """
    k = pl.program_id(0)

    @pl.when(k == 0)
    def _():
        acc_ref[...] = jnp.zeros_like(acc_ref)

    # bf16 x bf16 MXU dot, f32 accumulation (weights are bf16 in HBM).
    x_bf = x_ref[...].astype(jnp.bfloat16)
    acc_ref[...] += jnp.dot(x_bf, wa_ref[...],
                            preferred_element_type=jnp.float32)

    @pl.when(k == pl.num_programs(0) - 1)
    def _():
        # bias + ReLU for both heads at once, then split (lane-aligned).
        h = jnp.maximum(acc_ref[...] + ba_ref[...], 0.0)     # (B, 2*HIDDEN) f32
        h_bf = h.astype(jnp.bfloat16)
        h1 = h_bf[:, :HIDDEN]
        h2 = h_bf[:, HIDDEN:]
        out1_ref[...] = (jnp.dot(h1, w1b_ref[...],
                                 preferred_element_type=jnp.float32)
                         + b1b_ref[...]).astype(out1_ref.dtype)
        out2_ref[...] = (jnp.dot(h2, w2b_ref[...],
                                 preferred_element_type=jnp.float32)
                         + b2b_ref[...]).astype(out2_ref.dtype)


def prepare_params(w1a, b1a, w1b, b1b, w2a, b2a, w2b, b2b):
    """One-time parameter preparation (call at load time, NOT per forward).

    Inputs are in PyTorch nn.Linear layout (weight [out, in], bias [out]).
    Returns kernel-layout params:
      wa   : bf16 [2048, 2*HIDDEN]  -- both heads' first-layer weights, [in, out]
      ba   : f32  [1,    2*HIDDEN]  -- both heads' first-layer biases
      w1b_t: bf16 [HIDDEN, O1], w2b_t: bf16 [HIDDEN, O2]
      b1b_r: f32  [1, O1],      b2b_r: f32  [1, O2]
    """
    wa = jnp.concatenate([w1a.T, w2a.T], axis=1).astype(jnp.bfloat16)
    ba = jnp.concatenate([b1a, b2a]).reshape(1, 2 * HIDDEN).astype(jnp.float32)
    w1b_t = w1b.T.astype(jnp.bfloat16)
    w2b_t = w2b.T.astype(jnp.bfloat16)
    b1b_r = b1b.reshape(1, -1).astype(jnp.float32)
    b2b_r = b2b.reshape(1, -1).astype(jnp.float32)
    return (wa, ba, w1b_t, w2b_t, b1b_r, b2b_r)


@functools.partial(jax.jit, static_argnames=("tk",))
def second_head_resnet_forward(features, params, *, tk=2048):
    """features: [B, 2048] float32; params: output of prepare_params."""
    wa, ba, w1b_t, w2b_t, b1b_r, b2b_r = params
    B, F = features.shape
    assert F == FEATURE_SIZE and F % tk == 0
    O1 = w1b_t.shape[1]
    O2 = w2b_t.shape[1]

    n_k = F // tk
    grid = (n_k,)
    const = lambda k: (0, 0)

    # Constant-index operands never change block index -> one buffer is enough.
    single = pl.Buffered(1)
    # Streamed operands only need double-buffering when there is >1 K step.
    stream = pl.Buffered(1) if n_k == 1 else pl.Buffered(2)

    out1, out2 = pl.pallas_call(
        _two_head_kernel,
        out_shape=(jax.ShapeDtypeStruct((B, O1), jnp.float32),
                   jax.ShapeDtypeStruct((B, O2), jnp.float32)),
        grid_spec=pltpu.PrefetchScalarGridSpec(
            num_scalar_prefetch=0,
            grid=grid,
            in_specs=[
                pl.BlockSpec((B, tk), lambda k: (0, k),
                             pipeline_mode=stream),                  # features
                pl.BlockSpec((tk, 2 * HIDDEN), lambda k: (k, 0),
                             pipeline_mode=stream),                  # wa (fused, bf16)
                pl.BlockSpec((1, 2 * HIDDEN), const,
                             pipeline_mode=single),                  # ba (fused)
                pl.BlockSpec((HIDDEN, O1), const,
                             pipeline_mode=single),                  # w1b (bf16)
                pl.BlockSpec((HIDDEN, O2), const,
                             pipeline_mode=single),                  # w2b (bf16)
                pl.BlockSpec((1, O1), const, pipeline_mode=single),  # b1b
                pl.BlockSpec((1, O2), const, pipeline_mode=single),  # b2b
            ],
            out_specs=[
                pl.BlockSpec((B, O1), const),
                pl.BlockSpec((B, O2), const),
            ],
            scratch_shapes=[
                pltpu.VMEM((B, 2 * HIDDEN), jnp.float32),            # fused acc
            ],
        ),
        compiler_params=pltpu.CompilerParams(
            dimension_semantics=("arbitrary",),
            vmem_limit_bytes=32 * 1024 * 1024,
        ),
    )(features, wa, ba, w1b_t, w2b_t, b1b_r, b2b_r)

    # last_op is None for both heads in this instantiation.
    return out1, out2


def _reference_f32(features, w1a, b1a, w1b, b1b, w2a, b2a, w2b, b2b):
    h1 = jnp.maximum(features @ w1a.T + b1a, 0.0)
    o1 = h1 @ w1b.T + b1b
    h2 = jnp.maximum(features @ w2a.T + b2a, 0.0)
    o2 = h2 @ w2b.T + b2b
    return o1, o2


def _reference_bf16(features, params):
    """Same math as the kernel (bf16 weights, f32 accumulation) in plain XLA."""
    wa, ba, w1b_t, w2b_t, b1b_r, b2b_r = params
    h = jnp.dot(features.astype(jnp.bfloat16), wa,
                preferred_element_type=jnp.float32) + ba
    h = jnp.maximum(h, 0.0).astype(jnp.bfloat16)
    o1 = jnp.dot(h[:, :HIDDEN], w1b_t, preferred_element_type=jnp.float32) + b1b_r
    o2 = jnp.dot(h[:, HIDDEN:], w2b_t, preferred_element_type=jnp.float32) + b2b_r
    return o1, o2


if __name__ == "__main__":
    B = 8            # batch
    O1 = 128         # resnet head outsize
    O2 = 256         # second head outsize

    key = jax.random.PRNGKey(0)
    ks = jax.random.split(key, 9)
    scale = 0.02
    features = jax.random.normal(ks[0], (B, FEATURE_SIZE), jnp.float32)

    # PyTorch Linear layout: weight [out, in], bias [out]
    w1a = scale * jax.random.normal(ks[1], (HIDDEN, FEATURE_SIZE), jnp.float32)
    b1a = scale * jax.random.normal(ks[2], (HIDDEN,), jnp.float32)
    w1b = scale * jax.random.normal(ks[3], (O1, HIDDEN), jnp.float32)
    b1b = scale * jax.random.normal(ks[4], (O1,), jnp.float32)

    w2a = scale * jax.random.normal(ks[5], (HIDDEN, FEATURE_SIZE), jnp.float32)
    b2a = scale * jax.random.normal(ks[6], (HIDDEN,), jnp.float32)
    w2b = scale * jax.random.normal(ks[7], (O2, HIDDEN), jnp.float32)
    b2b = scale * jax.random.normal(ks[8], (O2,), jnp.float32)

    # One-time parameter preparation (hoisted out of the per-call path).
    params = prepare_params(w1a, b1a, w1b, b1b, w2a, b2a, w2b, b2b)
    params = jax.tree_util.tree_map(jax.block_until_ready, params)

    out1, out2 = second_head_resnet_forward(features, params)
    out1 = jax.block_until_ready(out1)
    out2 = jax.block_until_ready(out2)

    # 1) Bit-level sanity vs the same bf16-weight math in plain XLA.
    refb1, refb2 = _reference_bf16(features, params)
    assert jnp.allclose(out1, refb1, atol=1e-3, rtol=1e-3)
    assert jnp.allclose(out2, refb2, atol=1e-3, rtol=1e-3)

    # 2) Module-semantics check vs the f32 PyTorch math (tolerance loosened to
    #    cover bf16 weight storage; see perf notes).
    ref1, ref2 = _reference_f32(features, w1a, b1a, w1b, b1b, w2a, b2a, w2b, b2b)
    assert jnp.allclose(out1, ref1, atol=3e-2, rtol=3e-2)
    assert jnp.allclose(out2, ref2, atol=3e-2, rtol=3e-2)

    print("KERNEL_OK")
</pallas_src>

<mosaic_0001>
module attributes {stable_mosaic.version = 11 : i64} {
  func.func @_two_head_kernel(%arg0: i32, %arg1: memref<8x2048xf32, #tpu.memory_space<vmem>>, %arg2: memref<2048x2048xbf16, #tpu.memory_space<vmem>>, %arg3: memref<1x2048xf32, #tpu.memory_space<vmem>>, %arg4: memref<1024x128xbf16, #tpu.memory_space<vmem>>, %arg5: memref<1024x256xbf16, #tpu.memory_space<vmem>>, %arg6: memref<1x128xf32, #tpu.memory_space<vmem>>, %arg7: memref<1x256xf32, #tpu.memory_space<vmem>>, %arg8: memref<8x128xf32, #tpu.memory_space<vmem>>, %arg9: memref<8x256xf32, #tpu.memory_space<vmem>>, %arg10: memref<8x2048xf32, #tpu.memory_space<vmem>>) attributes {dimension_semantics = [#tpu.dimension_semantics<arbitrary>], iteration_bounds = array<i64: 1>, scalar_prefetch = 0 : i64, scratch_operands = 1 : i64, tpu.core_type = #tpu.core_type<tc>, window_params = [{pipeline_mode = #tpu.pipeline_mode<synchronous>, transform_indices = @transform_0, window_bounds = array<i64: 8, 2048>}, {pipeline_mode = #tpu.pipeline_mode<synchronous>, transform_indices = @transform_1, window_bounds = array<i64: 2048, 2048>}, {pipeline_mode = #tpu.pipeline_mode<synchronous>, transform_indices = @transform_2, window_bounds = array<i64: 1, 2048>}, {pipeline_mode = #tpu.pipeline_mode<synchronous>, transform_indices = @transform_3, window_bounds = array<i64: 1024, 128>}, {pipeline_mode = #tpu.pipeline_mode<synchronous>, transform_indices = @transform_4, window_bounds = array<i64: 1024, 256>}, {pipeline_mode = #tpu.pipeline_mode<synchronous>, transform_indices = @transform_5, window_bounds = array<i64: 1, 128>}, {pipeline_mode = #tpu.pipeline_mode<synchronous>, transform_indices = @transform_6, window_bounds = array<i64: 1, 256>}, {pipeline_mode = #tpu.pipeline_mode<synchronous>, transform_indices = @transform_7, window_bounds = array<i64: 8, 128>}, {pipeline_mode = #tpu.pipeline_mode<synchronous>, transform_indices = @transform_8, window_bounds = array<i64: 8, 256>}]} {
    %c0_i32 = arith.constant 0 : i32
    %0 = arith.cmpi eq, %arg0, %c0_i32 : i32
    %1 = arith.extui %0 : i1 to i32
    %c0_i32_0 = arith.constant 0 : i32
    %2 = arith.cmpi ne, %1, %c0_i32_0 : i32
    scf.if %2 {
      %cst_10 = arith.constant 0.000000e+00 : f32
      %13 = vector.broadcast %cst_10 : f32 to vector<8x2048xf32>
      %c0_11 = arith.constant 0 : index
      %c0_12 = arith.constant 0 : index
      %14 = vector.load %arg10[%c0_11, %c0_12] : memref<8x2048xf32, #tpu.memory_space<vmem>>, vector<8x2048xf32>
      tpu.vector_store %arg10[%c0_11, %c0_12], %13 {strides = array<i32>} : memref<8x2048xf32, #tpu.memory_space<vmem>>, vector<8x2048xf32>,
    } else {
    }
    %c0 = arith.constant 0 : index
    %c0_1 = arith.constant 0 : index
    %3 = vector.load %arg1[%c0, %c0_1] : memref<8x2048xf32, #tpu.memory_space<vmem>>, vector<8x2048xf32>
    %4 = arith.truncf %3 : vector<8x2048xf32> to vector<8x2048xbf16>
    %c0_2 = arith.constant 0 : index
    %c0_3 = arith.constant 0 : index
    %5 = vector.load %arg10[%c0_2, %c0_3] : memref<8x2048xf32, #tpu.memory_space<vmem>>, vector<8x2048xf32>
    %c0_4 = arith.constant 0 : index
    %c0_5 = arith.constant 0 : index
    %6 = vector.load %arg2[%c0_4, %c0_5] : memref<2048x2048xbf16, #tpu.memory_space<vmem>>, vector<2048x2048xbf16>
    %cst = arith.constant dense<0.000000e+00> : vector<8x2048xf32>
    %7 = tpu.matmul %4, %6, %cst {dimension_numbers = #tpu.dot_dimension_numbers<[1], [0], [0], [1], [0, 0, 1, 1], [], []>} : vector<8x2048xbf16>, vector<2048x2048xbf16>, vector<8x2048xf32> -> vector<8x2048xf32>
    %8 = arith.addf %5, %7 : vector<8x2048xf32>
    %c0_6 = arith.constant 0 : index
    %c0_7 = arith.constant 0 : index
    %9 = vector.load %arg10[%c0_6, %c0_7] : memref<8x2048xf32, #tpu.memory_space<vmem>>, vector<8x2048xf32>
    tpu.vector_store %arg10[%c0_6, %c0_7], %8 {strides = array<i32>} : memref<8x2048xf32, #tpu.memory_space<vmem>>, vector<8x2048xf32>,
    %c0_i32_8 = arith.constant 0 : i32
    %10 = arith.cmpi eq, %arg0, %c0_i32_8 : i32
    %11 = arith.extui %10 : i1 to i32
    %c0_i32_9 = arith.constant 0 : i32
    %12 = arith.cmpi ne, %11, %c0_i32_9 : i32
    scf.if %12 {
      %c0_10 = arith.constant 0 : index
      %c0_11 = arith.constant 0 : index
      %13 = vector.load %arg10[%c0_10, %c0_11] : memref<8x2048xf32, #tpu.memory_space<vmem>>, vector<8x2048xf32>
      %c0_12 = arith.constant 0 : index
      %c0_13 = arith.constant 0 : index
      %14 = vector.load %arg3[%c0_12, %c0_13] : memref<1x2048xf32, #tpu.memory_space<vmem>>, vector<1x2048xf32>
      %15 = vector.broadcast %14 : vector<1x2048xf32> to vector<8x2048xf32>
      %16 = arith.addf %13, %15 : vector<8x2048xf32>
      %cst_14 = arith.constant 0.000000e+00 : f32
      %17 = vector.broadcast %cst_14 : f32 to vector<8x2048xf32>
      %18 = arith.maximumf %16, %17 : vector<8x2048xf32>
      %19 = arith.truncf %18 : vector<8x2048xf32> to vector<8x2048xbf16>
      %20 = vector.extract_strided_slice %19 {offsets = [0, 0], sizes = [8, 1024], strides = [1, 1]} : vector<8x2048xbf16> to vector<8x1024xbf16>
      %21 = vector.extract_strided_slice %19 {offsets = [0, 1024], sizes = [8, 1024], strides = [1, 1]} : vector<8x2048xbf16> to vector<8x1024xbf16>
      %c0_15 = arith.constant 0 : index
      %c0_16 = arith.constant 0 : index
      %22 = vector.load %arg4[%c0_15, %c0_16] : memref<1024x128xbf16, #tpu.memory_space<vmem>>, vector<1024x128xbf16>
      %cst_17 = arith.constant dense<0.000000e+00> : vector<8x128xf32>
      %23 = tpu.matmul %20, %22, %cst_17 {dimension_numbers = #tpu.dot_dimension_numbers<[1], [0], [0], [1], [0, 0, 1, 1], [], []>} : vector<8x1024xbf16>, vector<1024x128xbf16>, vector<8x128xf32> -> vector<8x128xf32>
      %c0_18 = arith.constant 0 : index
      %c0_19 = arith.constant 0 : index
      %24 = vector.load %arg6[%c0_18, %c0_19] : memref<1x128xf32, #tpu.memory_space<vmem>>, vector<1x128xf32>
      %25 = vector.broadcast %24 : vector<1x128xf32> to vector<8x128xf32>
      %26 = arith.addf %23, %25 : vector<8x128xf32>
      %c0_20 = arith.constant 0 : index
      %c0_21 = arith.constant 0 : index
      %27 = vector.load %arg8[%c0_20, %c0_21] : memref<8x128xf32, #tpu.memory_space<vmem>>, vector<8x128xf32>
      tpu.vector_store %arg8[%c0_20, %c0_21], %26 {strides = array<i32>} : memref<8x128xf32, #tpu.memory_space<vmem>>, vector<8x128xf32>,
      %c0_22 = arith.constant 0 : index
      %c0_23 = arith.constant 0 : index
      %28 = vector.load %arg5[%c0_22, %c0_23] : memref<1024x256xbf16, #tpu.memory_space<vmem>>, vector<1024x256xbf16>
      %cst_24 = arith.constant dense<0.000000e+00> : vector<8x256xf32>
      %29 = tpu.matmul %21, %28, %cst_24 {dimension_numbers = #tpu.dot_dimension_numbers<[1], [0], [0], [1], [0, 0, 1, 1], [], []>} : vector<8x1024xbf16>, vector<1024x256xbf16>, vector<8x256xf32> -> vector<8x256xf32>
      %c0_25 = arith.constant 0 : index
      %c0_26 = arith.constant 0 : index
      %30 = vector.load %arg7[%c0_25, %c0_26] : memref<1x256xf32, #tpu.memory_space<vmem>>, vector<1x256xf32>
      %31 = vector.broadcast %30 : vector<1x256xf32> to vector<8x256xf32>
      %32 = arith.addf %29, %31 : vector<8x256xf32>
      %c0_27 = arith.constant 0 : index
      %c0_28 = arith.constant 0 : index
      %33 = vector.load %arg9[%c0_27, %c0_28] : memref<8x256xf32, #tpu.memory_space<vmem>>, vector<8x256xf32>
      tpu.vector_store %arg9[%c0_27, %c0_28], %32 {strides = array<i32>} : memref<8x256xf32, #tpu.memory_space<vmem>>, vector<8x256xf32>,
    } else {
    }
    return
  }
  func.func @transform_0(%arg0: i32) -> (i32, i32) {
    %c0_i32 = arith.constant 0 : i32
    %c0_i32_0 = arith.constant 0 : i32
    return %c0_i32, %arg0 : i32, i32
  }
  func.func @transform_1(%arg0: i32) -> (i32, i32) {
    %c0_i32 = arith.constant 0 : i32
    %c0_i32_0 = arith.constant 0 : i32
    return %arg0, %c0_i32 : i32, i32
  }
  func.func @transform_2(%arg0: i32) -> (i32, i32) {
    %c0_i32 = arith.constant 0 : i32
    %c0_i32_0 = arith.constant 0 : i32
    %c0_i32_1 = arith.constant 0 : i32
    return %c0_i32, %c0_i32_0 : i32, i32
  }
  func.func @transform_3(%arg0: i32) -> (i32, i32) {
    %c0_i32 = arith.constant 0 : i32
    %c0_i32_0 = arith.constant 0 : i32
    %c0_i32_1 = arith.constant 0 : i32
    return %c0_i32, %c0_i32_0 : i32, i32
  }
  func.func @transform_4(%arg0: i32) -> (i32, i32) {
    %c0_i32 = arith.constant 0 : i32
    %c0_i32_0 = arith.constant 0 : i32
    %c0_i32_1 = arith.constant 0 : i32
    return %c0_i32, %c0_i32_0 : i32, i32
  }
  func.func @transform_5(%arg0: i32) -> (i32, i32) {
    %c0_i32 = arith.constant 0 : i32
    %c0_i32_0 = arith.constant 0 : i32
    %c0_i32_1 = arith.constant 0 : i32
    return %c0_i32, %c0_i32_0 : i32, i32
  }
  func.func @transform_6(%arg0: i32) -> (i32, i32) {
    %c0_i32 = arith.constant 0 : i32
    %c0_i32_0 = arith.constant 0 : i32
    %c0_i32_1 = arith.constant 0 : i32
    return %c0_i32, %c0_i32_0 : i32, i32
  }
  func.func @transform_7(%arg0: i32) -> (i32, i32) {
    %c0_i32 = arith.constant 0 : i32
    %c0_i32_0 = arith.constant 0 : i32
    %c0_i32_1 = arith.constant 0 : i32
    return %c0_i32, %c0_i32_0 : i32, i32
  }
  func.func @transform_8(%arg0: i32) -> (i32, i32) {
    %c0_i32 = arith.constant 0 : i32
    %c0_i32_0 = arith.constant 0 : i32
    %c0_i32_1 = arith.constant 0 : i32
    return %c0_i32, %c0_i32_0 : i32, i32
  }
}

</mosaic_0001>

<bundles_post_ra>
// kernel: second_head_resnet_forward.1
= control target key start
LH: loop header
LB: loop body
LE: loop exit
PB: predicated region body
PF: predicated region fallthrough
CT: control target
= control target key end

     0   :  { %14 = vsyncpa [#allocation4], 0  ;;  %s20528_s0 = inlined_call_operand.hbm [shape: f32[8,2048], index: 0, kind: input, shape index: {}]   ;;  %s20529_s1 = inlined_call_operand.hbm [shape: bf16[2048,2048], index: 1, kind: input, shape index: {}]   ;;  %s20530_s2 = inlined_call_operand.hbm [shape: f32[1,2048], index: 2, kind: input, shape index: {}]   ;;  %s20531_s3 = inlined_call_operand.hbm [shape: bf16[1024,128], index: 3, kind: input, shape index: {}]   ;;  %s20532_s4 = inlined_call_operand.hbm [shape: bf16[1024,256], index: 4, kind: input, shape index: {}]   ;;  %s20533_s5 = inlined_call_operand.hbm [shape: f32[1,128], index: 5, kind: input, shape index: {}]   ;;  %s20534_s6 = inlined_call_operand.hbm [shape: f32[1,256], index: 6, kind: input, shape index: {}]   ;;  %s20535_s7 = inlined_call_operand.hbm [shape: f32[8,128], index: 7, kind: output, shape index: {0}]   ;;  %s20536_s8 = inlined_call_operand.hbm [shape: f32[8,256], index: 8, kind: output, shape index: {1}]  }
   0x1   :  { %15 = vsyncpa [#allocation7], 0 }
   0x2   :  { %16 = vsyncpa [#allocation10], 0 }
   0x3   :  { %17 = vsyncpa [#allocation13], 0 }
   0x4   :  { %18 = vsyncpa [#allocation5], 0 }
   0x5   :  { %19 = vsyncpa [#allocation17], 0  ;;  %s19764_s27 = smov [#allocation6]   ;;  %s19554_s9 = scalar_lea.hbm %s20529_s1, 262144 }
   0x6   :  { %s35_s28 = sshll.u32 %s19764_s27, 4  ;;  %p19555_p0 = scmp.ne.s32.totalorder %s20529_s1, %s19554_s9  ;;  %s36_s28 = int_to_ptr.vmem [resolvable:$true] %s35_s28 }
   0x7   :  { %p19558_p1 = scmp.lt.u32.totalorder %s19554_s9, %s20529_s1 }
   0x9   :  { %p19560_p2 = pnand %p19558_p1, %p19555_p0 }
   0xb   :  { %19563 = shalt.err (!%p19560_p2)
}
   0xc   :  { %s19564_s14 = scalar_lea.vmem %s36_s28, 262144  ;;  %p19569_p4 = scmp.lt.s32.totalorder %s36_s28, %s36_s28 }
   0xd   :  { %p19565_p3 = scmp.ne.s32.totalorder %s36_s28, %s19564_s14  ;;  %p19570_p5 = scmp.lt.s32.totalorder %s19564_s14, %s19564_s14 }
   0xf   :  { %p19571_p6 = por %p19570_p5, %p19569_p4 }
  0x11   :  { %p19572_p7 = pnand %p19571_p6, %p19565_p3 }
  0x13   :  { %19575 = shalt.err (!%p19572_p7)
}
  0x14   :  { %s19765_s15 = smov 1024   ;;  %s19766_s16 = smov 64  }
  0x15   :  { %41 = dma.hbm_to_vmem [thread:$0]  %s20529_s1, 262144, %s36_s28, [#allocation7], %s19765_s15, %s19765_s15, %s19766_s16  }
  0x16   :  { %s19767_s19 = smov [#allocation9]   ;;  %s19576_s23 = scalar_lea.hbm %s20531_s3, 8192 }
  0x17   :  { %s57_s20 = sshll.u32 %s19767_s19, 4  ;;  %p19577_p8 = scmp.ne.s32.totalorder %s20531_s3, %s19576_s23  ;;  %s58_s20 = int_to_ptr.vmem [resolvable:$true] %s57_s20 }
  0x18   :  { %p19580_p9 = scmp.lt.u32.totalorder %s19576_s23, %s20531_s3 }
  0x1a   :  { %p19582_p10 = pnand %p19580_p9, %p19577_p8 }
  0x1c   :  { %19585 = shalt.err (!%p19582_p10)
}
  0x1d   :  { %s19586_s29 = scalar_lea.vmem %s58_s20, 8192  ;;  %p19591_p12 = scmp.lt.s32.totalorder %s58_s20, %s58_s20 }
  0x1e   :  { %p19587_p11 = scmp.ne.s32.totalorder %s58_s20, %s19586_s29  ;;  %p19592_p13 = scmp.lt.s32.totalorder %s19586_s29, %s19586_s29 }
  0x20   :  { %p19593_p0 = por %p19592_p13, %p19591_p12 }
  0x22   :  { %p19594_p1 = pnand %p19593_p0, %p19587_p11 }
  0x24   :  { %19597 = shalt.err (!%p19594_p1)
}
  0x25   :  { %s19768_s1 = smov 4   ;;  %s19769_s9 = smov [#allocation12]  }
  0x26   :  { %63 = dma.hbm_to_vmem [thread:$0]  %s20531_s3, 8192, %s58_s20, [#allocation10], %s19766_s16, %s19766_s16, %s19768_s1  }
  0x27   :  { %s82_s10 = sshll.u32 %s19769_s9, 4  ;;  %s19770_s11 = smov [#allocation3]   ;;  %s83_s10 = int_to_ptr.vmem [resolvable:$true] %s82_s10 }
  0x28   :  { %s26_s12 = sshll.u32 %s19770_s11, 4  ;;  %s19598_s15 = scalar_lea.hbm %s20533_s5, 16  ;;  %s27_s12 = int_to_ptr.vmem [resolvable:$true] %s26_s12 }
  0x29   :  { %p19599_p2 = scmp.ne.s32.totalorder %s20533_s5, %s19598_s15  ;;  %p19602_p3 = scmp.lt.u32.totalorder %s19598_s15, %s20533_s5 }
  0x2b   :  { %p19604_p4 = pnand %p19602_p3, %p19599_p2 }
  0x2d   :  { %19607 = shalt.err (!%p19604_p4)
}
  0x2e   :  { %s19608_s3 = scalar_lea.vmem %s83_s10, 16  ;;  %s19612_s16 = scalar_lea.vmem %s83_s10, 32 }
  0x2f   :  { %p19609_p5 = scmp.ne.s32.totalorder %s83_s10, %s19608_s3  ;;  %p19613_p6 = scmp.lt.s32.totalorder %s83_s10, %s83_s10 }
  0x30   :  { %p19614_p7 = scmp.lt.s32.totalorder %s19612_s16, %s19608_s3 }
  0x32   :  { %p19615_p8 = por %p19614_p7, %p19613_p6 }
  0x34   :  { %p19616_p9 = pnand %p19615_p8, %p19609_p5 }
  0x36   :  { %19619 = shalt.err (!%p19616_p9)
}
  0x37   :  { %85 = dma.hbm_to_vmem [thread:$0]  %s20533_s5, 16, %s83_s10, [#allocation13]  }
  0x38   :  { %s19620_s25 = scalar_lea.hbm %s20528_s0, 2048 }
  0x39   :  { %p19621_p10 = scmp.ne.s32.totalorder %s20528_s0, %s19620_s25  ;;  %p19624_p11 = scmp.lt.u32.totalorder %s19620_s25, %s20528_s0 }
  0x3b   :  { %p19626_p12 = pnand %p19624_p11, %p19621_p10 }
  0x3d   :  { %19629 = shalt.err (!%p19626_p12)
}
  0x3e   :  { %s19630_s28 = scalar_lea.vmem %s27_s12, 2048  ;;  %p19635_p0 = scmp.lt.s32.totalorder %s27_s12, %s27_s12 }
  0x3f   :  { %p19631_p13 = scmp.ne.s32.totalorder %s27_s12, %s19630_s28  ;;  %p19636_p1 = scmp.lt.s32.totalorder %s19630_s28, %s19630_s28 }
  0x41   :  { %p19637_p2 = por %p19636_p1, %p19635_p0 }
  0x43   :  { %p19638_p3 = pnand %p19637_p2, %p19631_p13 }
  0x45   :  { %19641 = shalt.err (!%p19638_p3)
}
  0x46   :  { %29 = dma.hbm_to_vmem [thread:$0]  %s20528_s0, 2048, %s27_s12, [#allocation4]  }
  0x47   :  { %s19771_s9 = smov [#allocation8]   ;;  %s19772_s11 = smov [#allocation11]  }
  0x48   :  { %s48_s10 = sshll.u32 %s19771_s9, 4  ;;  %s69_s13 = sshll.u32 %s19772_s11, 4  ;;  %s49_s10 = int_to_ptr.vmem [resolvable:$true] %s48_s10  ;;  %s70_s13 = int_to_ptr.vmem [resolvable:$true] %s69_s13 }
  0x49   :  { %s19642_s17 = scalar_lea.hbm %s20530_s2, 256 }
  0x4a   :  { %p19643_p4 = scmp.ne.s32.totalorder %s20530_s2, %s19642_s17  ;;  %p19646_p5 = scmp.lt.u32.totalorder %s19642_s17, %s20530_s2 }
  0x4c   :  { %p19648_p6 = pnand %p19646_p5, %p19643_p4 }
  0x4e   :  { %19651 = shalt.err (!%p19648_p6)
}
  0x4f   :  { %s19652_s0 = scalar_lea.vmem %s49_s10, 256  ;;  %p19657_p8 = scmp.lt.s32.totalorder %s49_s10, %s49_s10 }
  0x50   :  { %p19653_p7 = scmp.ne.s32.totalorder %s49_s10, %s19652_s0  ;;  %p19658_p9 = scmp.lt.s32.totalorder %s19652_s0, %s19652_s0 }
  0x52   :  { %p19659_p10 = por %p19658_p9, %p19657_p8 }
  0x54   :  { %p19660_p11 = pnand %p19659_p10, %p19653_p7 }
  0x56   :  { %19663 = shalt.err (!%p19660_p11)
}
  0x57   :  { %51 = dma.hbm_to_vmem [thread:$0]  %s20530_s2, 256, %s49_s10, [#allocation7]  }
  0x58   :  { %s19664_s23 = scalar_lea.hbm %s20532_s4, 16384 }
  0x59   :  { %p19665_p12 = scmp.ne.s32.totalorder %s20532_s4, %s19664_s23  ;;  %p19668_p13 = scmp.lt.u32.totalorder %s19664_s23, %s20532_s4 }
  0x5b   :  { %p19670_p0 = pnand %p19668_p13, %p19665_p12 }
  0x5d   :  { %19673 = shalt.err (!%p19670_p0)
}
  0x5e   :  { %s19674_s29 = scalar_lea.vmem %s70_s13, 16384  ;;  %p19679_p2 = scmp.lt.s32.totalorder %s70_s13, %s70_s13 }
  0x5f   :  { %p19675_p1 = scmp.ne.s32.totalorder %s70_s13, %s19674_s29  ;;  %p19680_p3 = scmp.lt.s32.totalorder %s19674_s29, %s19674_s29 }
  0x61   :  { %p19681_p4 = por %p19680_p3, %p19679_p2 }
  0x63   :  { %p19682_p5 = pnand %p19681_p4, %p19675_p1 }
  0x65   :  { %19685 = shalt.err (!%p19682_p5)
}
  0x66   :  { %s19773_s2 = smov 128   ;;  %s19774_s1 = smov 8  }
  0x67   :  { %75 = dma.hbm_to_vmem [thread:$0]  %s20532_s4, 16384, %s70_s13, [#allocation10], %s19773_s2, %s19773_s2, %s19774_s1  }
  0x68   :  { %s19775_s30 = smov [#allocation14]   ;;  %s19686_s14 = scalar_lea.hbm %s20534_s6, 32 }
  0x69   :  { %s92_s9 = sshll.u32 %s19775_s30, 4  ;;  %p19687_p6 = scmp.ne.s32.totalorder %s20534_s6, %s19686_s14  ;;  %s93_s9 = int_to_ptr.vmem [resolvable:$true] %s92_s9 }
  0x6a   :  { %p19690_p7 = scmp.lt.u32.totalorder %s19686_s14, %s20534_s6 }
  0x6c   :  { %p19692_p8 = pnand %p19690_p7, %p19687_p6 }
  0x6e   :  { %19695 = shalt.err (!%p19692_p8)
}
  0x6f   :  { %s19696_s21 = scalar_lea.vmem %s93_s9, 32  ;;  %p19701_p10 = scmp.lt.s32.totalorder %s93_s9, %s93_s9 }
  0x70   :  { %p19697_p9 = scmp.ne.s32.totalorder %s93_s9, %s19696_s21  ;;  %p19702_p11 = scmp.lt.s32.totalorder %s19696_s21, %s19696_s21 }
  0x72   :  { %p19703_p12 = por %p19702_p11, %p19701_p10 }
  0x74   :  { %p19704_p13 = pnand %p19703_p12, %p19697_p9 }
  0x76   :  { %19707 = shalt.err (!%p19704_p13)
}
  0x77   :  { %95 = dma.hbm_to_vmem [thread:$0]  %s20534_s6, 32, %s93_s9, [#allocation13]  }
  0x78   :  { %19752 = dma.done.wait [#allocation4], 2048  }
  0x79   :  { %19753 = vsyncadd [#allocation4], 4294965248 }
  0x7a   :  { %19754 = dma.done.wait [#allocation7], 262400  }
  0x7b   :  { %19755 = vsyncadd [#allocation7], 4294704896 }
  0x7c   :  { %19756 = dma.done.wait [#allocation10], 24576  }
  0x7d   :  { %19757 = vsyncadd [#allocation10], 4294942720 }
  0x7e   :  { %19758 = dma.done.wait [#allocation13], 48  }
  0x7f   :  { %19759 = vsyncadd [#allocation13], 4294967248  ;;  %v186_v0 = vld [vmem:[#allocation6] sm:$0xff]  ;;  %v139_v53 = vld [vmem:[#allocation3 + $0x8] sm:$0xff]  ;;  %s19776_s6 = smov [#allocation15]  }
  0x80   :  { %v194_v1 = vld [vmem:[#allocation6 + $0x40] sm:$0xff]  ;;  %v19907_v57 = vpack.c.bf16 %v139_v53, %v139_v53  ;;  %v147_v58 = vld [vmem:[#allocation3 + $0x48] sm:$0xff]  ;;  %s16913_s3 = sshll.u32 %s19776_s6, 4  ;;  %s16914_s3 = int_to_ptr.vmem [resolvable:$true] %s16913_s3 }
  0x81   :  { %v1210_v2 = vld [vmem:[#allocation6 + $0x2000] sm:$0xff]  ;;  %v16940_v3 = vcombine.high %v186_v0, %v194_v1  ;;  %v16939_v5 = vcombine.low %v186_v0, %v194_v1  ;;  %v19909_v61 = vpack.c.bf16 %v147_v58, %v147_v58  ;;  %s19708_s0 = scalar_lea.vmem %s16914_s3, 128  ;;  %p19713_p1 = scmp.lt.s32.totalorder %s16914_s3, %s16914_s3 }
  0x82   :  { %v1218_v4 = vld [vmem:[#allocation6 + $0x2040] sm:$0xff]  ;;  %12506 = vmatprep.mubr.bf16.mxu1 %v19907_v57  ;;  %p19709_p0 = scmp.ne.s32.totalorder %s16914_s3, %s19708_s0  ;;  %p19714_p2 = scmp.lt.s32.totalorder %s19708_s0, %s19708_s0 }
  0x83   :  { %v202_v6 = vld [vmem:[#allocation6 + $0x80] sm:$0xff]  ;;  %v17964_v8 = vcombine.high %v1210_v2, %v1218_v4  ;;  %v17963_v9 = vcombine.low %v1210_v2, %v1218_v4  ;;  %12474 = vmatprep.subr.bf16.mxu1 %v16940_v3  ;;  %12670 = vmatprep.mubr.bf16.mxu0 %v19909_v61 }
  0x84   :  { %v210_v7 = vld [vmem:[#allocation6 + $0xc0] sm:$0xff]  ;;  %12475 = vmatpush1.bf16.msra.mxu1 %v16939_v5  ;;  %p19715_p3 = por %p19714_p2, %p19713_p1 }
  0x85   :  { %v16956_v10 = vcombine.high %v202_v6, %v210_v7  ;;  %v1226_v11 = vld [vmem:[#allocation6 + $0x2080] sm:$0xff]  ;;  %12638 = vmatprep.subr.bf16.mxu0 %v17964_v8  ;;  %v16955_v18 = vcombine.low %v202_v6, %v210_v7 }
  0x86   :  { %v1234_v12 = vld [vmem:[#allocation6 + $0x20c0] sm:$0xff]  ;;  %12639 = vmatpush1.bf16.msra.mxu0 %v17963_v9  ;;  %p19716_p4 = pnand %p19715_p3, %p19709_p0 }
  0x87   :  { %v218_v13 = vld [vmem:[#allocation6 + $0x100] sm:$0xff]  ;;  %v17980_v14 = vcombine.high %v1226_v11, %v1234_v12  ;;  %12476 = vmatprep.subr.bf16.mxu1 %v16956_v10  ;;  %v17979_v19 = vcombine.low %v1226_v11, %v1234_v12 }
  0x88   :  { %v226_v15 = vld [vmem:[#allocation6 + $0x140] sm:$0xff]  ;;  %12477 = vmatpush1.bf16.msra.mxu1 %v16955_v18 }
  0x89   :  { %v1242_v16 = vld [vmem:[#allocation6 + $0x2100] sm:$0xff]  ;;  %v16972_v20 = vcombine.high %v218_v13, %v226_v15  ;;  %12640 = vmatprep.subr.bf16.mxu0 %v17980_v14  ;;  %v16971_v26 = vcombine.low %v218_v13, %v226_v15 }
  0x8a   :  { %v1250_v17 = vld [vmem:[#allocation6 + $0x2140] sm:$0xff]  ;;  %12641 = vmatpush1.bf16.msra.mxu0 %v17979_v19 }
  0x8b   :  { %v17996_v21 = vcombine.high %v1242_v16, %v1250_v17  ;;  %v234_v22 = vld [vmem:[#allocation6 + $0x180] sm:$0xff]  ;;  %12478 = vmatprep.subr.bf16.mxu1 %v16972_v20  ;;  %v17995_v27 = vcombine.low %v1242_v16, %v1250_v17 }
  0x8c   :  { %v242_v23 = vld [vmem:[#allocation6 + $0x1c0] sm:$0xff]  ;;  %12479 = vmatpush1.bf16.msra.mxu1 %v16971_v26 }
  0x8d   :  { %v1258_v24 = vld [vmem:[#allocation6 + $0x2180] sm:$0xff]  ;;  %v16988_v28 = vcombine.high %v234_v22, %v242_v23  ;;  %12642 = vmatprep.subr.bf16.mxu0 %v17996_v21  ;;  %v16987_v34 = vcombine.low %v234_v22, %v242_v23 }
  0x8e   :  { %v1266_v25 = vld [vmem:[#allocation6 + $0x21c0] sm:$0xff]  ;;  %12643 = vmatpush1.bf16.msra.mxu0 %v17995_v27 }
  0x8f   :  { %v18012_v29 = vcombine.high %v1258_v24, %v1266_v25  ;;  %v250_v30 = vld [vmem:[#allocation6 + $0x200] sm:$0xff]  ;;  %12480 = vmatprep.subr.bf16.mxu1 %v16988_v28  ;;  %v18011_v35 = vcombine.low %v1258_v24, %v1266_v25 }
  0x90   :  { %v258_v31 = vld [vmem:[#allocation6 + $0x240] sm:$0xff]  ;;  %12481 = vmatpush1.bf16.msra.mxu1 %v16987_v34 }
  0x91   :  { %v1274_v32 = vld [vmem:[#allocation6 + $0x2200] sm:$0xff]  ;;  %v17004_v36 = vcombine.high %v250_v30, %v258_v31  ;;  %12644 = vmatprep.subr.bf16.mxu0 %v18012_v29  ;;  %v17003_v42 = vcombine.low %v250_v30, %v258_v31 }
  0x92   :  { %v1282_v33 = vld [vmem:[#allocation6 + $0x2240] sm:$0xff]  ;;  %12645 = vmatpush1.bf16.msra.mxu0 %v18011_v35 }
  0x93   :  { %v18028_v37 = vcombine.high %v1274_v32, %v1282_v33  ;;  %v266_v38 = vld [vmem:[#allocation6 + $0x280] sm:$0xff]  ;;  %12482 = vmatprep.subr.bf16.mxu1 %v17004_v36  ;;  %v18027_v43 = vcombine.low %v1274_v32, %v1282_v33 }
  0x94   :  { %v274_v39 = vld [vmem:[#allocation6 + $0x2c0] sm:$0xff]  ;;  %12483 = vmatpush1.bf16.msra.mxu1 %v17003_v42 }
  0x95   :  { %v1290_v40 = vld [vmem:[#allocation6 + $0x2280] sm:$0xff]  ;;  %v17020_v44 = vcombine.high %v266_v38, %v274_v39  ;;  %12646 = vmatprep.subr.bf16.mxu0 %v18028_v37  ;;  %v17019_v50 = vcombine.low %v266_v38, %v274_v39 }
  0x96   :  { %v1298_v41 = vld [vmem:[#allocation6 + $0x22c0] sm:$0xff]  ;;  %12647 = vmatpush1.bf16.msra.mxu0 %v18027_v43 }
  0x97   :  { %v18044_v45 = vcombine.high %v1290_v40, %v1298_v41  ;;  %v282_v46 = vld [vmem:[#allocation6 + $0x300] sm:$0xff]  ;;  %12484 = vmatprep.subr.bf16.mxu1 %v17020_v44  ;;  %v18043_v51 = vcombine.low %v1290_v40, %v1298_v41 }
  0x98   :  { %v290_v47 = vld [vmem:[#allocation6 + $0x340] sm:$0xff]  ;;  %12485 = vmatpush1.bf16.msra.mxu1 %v17019_v50 }
  0x99   :  { %v1306_v48 = vld [vmem:[#allocation6 + $0x2300] sm:$0xff]  ;;  %v17036_v52 = vcombine.high %v282_v46, %v290_v47  ;;  %12648 = vmatprep.subr.bf16.mxu0 %v18044_v45  ;;  %v17035_v62 = vcombine.low %v282_v46, %v290_v47 }
  0x9a   :  { %v1314_v49 = vld [vmem:[#allocation6 + $0x2340] sm:$0xff]  ;;  %12649 = vmatpush1.bf16.msra.mxu0 %v18043_v51 }
  0x9b   :  { %v18060_v54 = vcombine.high %v1306_v48, %v1314_v49  ;;  %v298_v55 = vld [vmem:[#allocation6 + $0x380] sm:$0xff]  ;;  %12486 = vmatprep.subr.bf16.mxu1 %v17036_v52  ;;  %v18059_v63 = vcombine.low %v1306_v48, %v1314_v49 }
  0x9c   :  { %v306_v56 = vld [vmem:[#allocation6 + $0x3c0] sm:$0xff]  ;;  %12487 = vmatpush1.bf16.msra.mxu1 %v17035_v62 }
  0x9d   :  { %v1322_v59 = vld [vmem:[#allocation6 + $0x2380] sm:$0xff]  ;;  %v17052_v0 = vcombine.high %v298_v55, %v306_v56  ;;  %12650 = vmatprep.subr.bf16.mxu0 %v18060_v54  ;;  %v17051_v6 = vcombine.low %v298_v55, %v306_v56 }
  0x9e   :  { %v1330_v60 = vld [vmem:[#allocation6 + $0x23c0] sm:$0xff]  ;;  %12651 = vmatpush1.bf16.msra.mxu0 %v18059_v63 }
  0x9f   :  { %v18076_v1 = vcombine.high %v1322_v59, %v1330_v60  ;;  %v314_v2 = vld [vmem:[#allocation6 + $0x400] sm:$0xff]  ;;  %12488 = vmatprep.subr.bf16.mxu1 %v17052_v0  ;;  %v18075_v7 = vcombine.low %v1322_v59, %v1330_v60 }
  0xa0   :  { %v322_v3 = vld [vmem:[#allocation6 + $0x440] sm:$0xff]  ;;  %12489 = vmatpush1.bf16.msra.mxu1 %v17051_v6 }
  0xa1   :  { %v1338_v4 = vld [vmem:[#allocation6 + $0x2400] sm:$0xff]  ;;  %v17068_v8 = vcombine.high %v314_v2, %v322_v3  ;;  %12652 = vmatprep.subr.bf16.mxu0 %v18076_v1  ;;  %v17067_v14 = vcombine.low %v314_v2, %v322_v3 }
  0xa2   :  { %v1346_v5 = vld [vmem:[#allocation6 + $0x2440] sm:$0xff]  ;;  %12653 = vmatpush1.bf16.msra.mxu0 %v18075_v7 }
  0xa3   :  { %v18092_v9 = vcombine.high %v1338_v4, %v1346_v5  ;;  %v330_v10 = vld [vmem:[#allocation6 + $0x480] sm:$0xff]  ;;  %12490 = vmatprep.subr.bf16.mxu1 %v17068_v8  ;;  %v18091_v15 = vcombine.low %v1338_v4, %v1346_v5 }
  0xa4   :  { %v338_v11 = vld [vmem:[#allocation6 + $0x4c0] sm:$0xff]  ;;  %12491 = vmatpush1.bf16.msra.mxu1 %v17067_v14 }
  0xa5   :  { %v1354_v12 = vld [vmem:[#allocation6 + $0x2480] sm:$0xff]  ;;  %v17084_v16 = vcombine.high %v330_v10, %v338_v11  ;;  %12654 = vmatprep.subr.bf16.mxu0 %v18092_v9  ;;  %v17083_v22 = vcombine.low %v330_v10, %v338_v11 }
  0xa6   :  { %v1362_v13 = vld [vmem:[#allocation6 + $0x24c0] sm:$0xff]  ;;  %12655 = vmatpush1.bf16.msra.mxu0 %v18091_v15 }
  0xa7   :  { %v18108_v17 = vcombine.high %v1354_v12, %v1362_v13  ;;  %v346_v18 = vld [vmem:[#allocation6 + $0x500] sm:$0xff]  ;;  %12492 = vmatprep.subr.bf16.mxu1 %v17084_v16  ;;  %v18107_v23 = vcombine.low %v1354_v12, %v1362_v13 }
  0xa8   :  { %v354_v19 = vld [vmem:[#allocation6 + $0x540] sm:$0xff]  ;;  %12493 = vmatpush1.bf16.msra.mxu1 %v17083_v22  ;;  %v151_v22 = vld [vmem:[#allocation3 + $0x68] sm:$0xff] }
  0xa9   :  { %v1370_v20 = vld [vmem:[#allocation6 + $0x2500] sm:$0xff]  ;;  %v17100_v24 = vcombine.high %v346_v18, %v354_v19  ;;  %12656 = vmatprep.subr.bf16.mxu0 %v18108_v17  ;;  %v17099_v30 = vcombine.low %v346_v18, %v354_v19  ;;  %v141_v19 = vld [vmem:[#allocation3 + $0x18] sm:$0xff] }
  0xaa   :  { %v1378_v21 = vld [vmem:[#allocation6 + $0x2540] sm:$0xff]  ;;  %12657 = vmatpush1.bf16.msra.mxu0 %v18107_v23 }
  0xab   :  { %v18124_v25 = vcombine.high %v1370_v20, %v1378_v21  ;;  %v362_v26 = vld [vmem:[#allocation6 + $0x580] sm:$0xff]  ;;  %12494 = vmatprep.subr.bf16.mxu1 %v17100_v24  ;;  %v18123_v31 = vcombine.low %v1370_v20, %v1378_v21 }
  0xac   :  { %v370_v27 = vld [vmem:[#allocation6 + $0x5c0] sm:$0xff]  ;;  %12495 = vmatpush1.bf16.msra.mxu1 %v17099_v30 }
  0xad   :  { %v1386_v28 = vld [vmem:[#allocation6 + $0x2580] sm:$0xff]  ;;  %v17116_v32 = vcombine.high %v362_v26, %v370_v27  ;;  %12658 = vmatprep.subr.bf16.mxu0 %v18124_v25  ;;  %v17115_v38 = vcombine.low %v362_v26, %v370_v27 }
  0xae   :  { %v1394_v29 = vld [vmem:[#allocation6 + $0x25c0] sm:$0xff]  ;;  %12659 = vmatpush1.bf16.msra.mxu0 %v18123_v31  ;;  %v19920_v31 = vpack.c.bf16 %v151_v22, %v151_v22 }
  0xaf   :  { %v18140_v33 = vcombine.high %v1386_v28, %v1394_v29  ;;  %v378_v34 = vld [vmem:[#allocation6 + $0x600] sm:$0xff]  ;;  %12496 = vmatprep.subr.bf16.mxu1 %v17116_v32  ;;  %v18139_v39 = vcombine.low %v1386_v28, %v1394_v29  ;;  %v19917_v28 = vpack.c.bf16 %v141_v19, %v141_v19 }
  0xb0   :  { %v386_v35 = vld [vmem:[#allocation6 + $0x640] sm:$0xff]  ;;  %12497 = vmatpush1.bf16.msra.mxu1 %v17115_v38 }
  0xb1   :  { %v1402_v36 = vld [vmem:[#allocation6 + $0x2600] sm:$0xff]  ;;  %v17132_v40 = vcombine.high %v378_v34, %v386_v35  ;;  %12660 = vmatprep.subr.bf16.mxu0 %v18140_v33  ;;  %v17131_v46 = vcombine.low %v378_v34, %v386_v35 }
  0xb2   :  { %v1410_v37 = vld [vmem:[#allocation6 + $0x2640] sm:$0xff]  ;;  %12661 = vmatpush1.bf16.msra.mxu0 %v18139_v39 }
  0xb3   :  { %v18156_v41 = vcombine.high %v1402_v36, %v1410_v37  ;;  %v394_v42 = vld [vmem:[#allocation6 + $0x680] sm:$0xff]  ;;  %12498 = vmatprep.subr.bf16.mxu1 %v17132_v40  ;;  %v18155_v47 = vcombine.low %v1402_v36, %v1410_v37 }
  0xb4   :  { %v402_v43 = vld [vmem:[#allocation6 + $0x6c0] sm:$0xff]  ;;  %12499 = vmatpush1.bf16.msra.mxu1 %v17131_v46 }
  0xb5   :  { %v1418_v44 = vld [vmem:[#allocation6 + $0x2680] sm:$0xff]  ;;  %v17148_v48 = vcombine.high %v394_v42, %v402_v43  ;;  %12662 = vmatprep.subr.bf16.mxu0 %v18156_v41  ;;  %v17147_v54 = vcombine.low %v394_v42, %v402_v43 }
  0xb6   :  { %v1426_v45 = vld [vmem:[#allocation6 + $0x26c0] sm:$0xff]  ;;  %12663 = vmatpush1.bf16.msra.mxu0 %v18155_v47 }
  0xb7   :  { %v18172_v49 = vcombine.high %v1418_v44, %v1426_v45  ;;  %v410_v50 = vld [vmem:[#allocation6 + $0x700] sm:$0xff]  ;;  %12500 = vmatprep.subr.bf16.mxu1 %v17148_v48  ;;  %v18171_v55 = vcombine.low %v1418_v44, %v1426_v45 }
  0xb8   :  { %v418_v51 = vld [vmem:[#allocation6 + $0x740] sm:$0xff]  ;;  %12501 = vmatpush1.bf16.msra.mxu1 %v17147_v54 }
  0xb9   :  { %v1434_v52 = vld [vmem:[#allocation6 + $0x2700] sm:$0xff]  ;;  %v17164_v56 = vcombine.high %v410_v50, %v418_v51  ;;  %12664 = vmatprep.subr.bf16.mxu0 %v18172_v49  ;;  %v17163_v0 = vcombine.low %v410_v50, %v418_v51 }
  0xba   :  { %v1442_v53 = vld [vmem:[#allocation6 + $0x2740] sm:$0xff]  ;;  %12665 = vmatpush1.bf16.msra.mxu0 %v18171_v55 }
  0xbb   :  { %v18188_v58 = vcombine.high %v1434_v52, %v1442_v53  ;;  %v426_v59 = vld [vmem:[#allocation6 + $0x780] sm:$0xff]  ;;  %12502 = vmatprep.subr.bf16.mxu1 %v17164_v56  ;;  %v18187_v1 = vcombine.low %v1434_v52, %v1442_v53 }
  0xbc   :  { %v434_v60 = vld [vmem:[#allocation6 + $0x7c0] sm:$0xff]  ;;  %12503 = vmatpush1.bf16.msra.mxu1 %v17163_v0 }
  0xbd   :  { %v1450_v62 = vld [vmem:[#allocation6 + $0x2780] sm:$0xff]  ;;  %v17180_v2 = vcombine.high %v426_v59, %v434_v60  ;;  %12666 = vmatprep.subr.bf16.mxu0 %v18188_v58  ;;  %v17179_v8 = vcombine.low %v426_v59, %v434_v60 }
  0xbe   :  { %v1458_v63 = vld [vmem:[#allocation6 + $0x27c0] sm:$0xff]  ;;  %12667 = vmatpush1.bf16.msra.mxu0 %v18187_v1 }
  0xbf   :  { %v18204_v3 = vcombine.high %v1450_v62, %v1458_v63  ;;  %v442_v4 = vld [vmem:[#allocation6 + $0x800] sm:$0xff]  ;;  %12504 = vmatprep.subr.bf16.mxu1 %v17180_v2  ;;  %v18203_v10 = vcombine.low %v1450_v62, %v1458_v63 }
  0xc0   :  { %v450_v5 = vld [vmem:[#allocation6 + $0x840] sm:$0xff]  ;;  %12505 = vmatpush1.bf16.msra.mxu1 %v17179_v8 }
  0xc1   :  { %v1722_v6 = vld [vmem:[#allocation6 + $0x3000] sm:$0xff]  ;;  %v17196_v11 = vcombine.high %v442_v4, %v450_v5  ;;  %12668 = vmatprep.subr.bf16.mxu0 %v18204_v3  ;;  %v17195_v20 = vcombine.low %v442_v4, %v450_v5 }
  0xc2   :  { %v1730_v7 = vld [vmem:[#allocation6 + $0x3040] sm:$0xff]  ;;  %12669 = vmatpush1.bf16.msra.mxu0 %v18203_v10 }
  0xc3   :  { %v138_v9 = vld [vmem:[#allocation3] sm:$0xff]  ;;  %v18476_v13 = vcombine.high %v1722_v6, %v1730_v7  ;;  %12515 = vmatprep.subr.bf16.mxu1 %v17196_v11  ;;  %v18475_v23 = vcombine.low %v1722_v6, %v1730_v7 }
  0xc4   :  { %v146_v12 = vld [vmem:[#allocation3 + $0x40] sm:$0xff]  ;;  %v19913_v16 = vpack.c.bf16 %v138_v9, %v138_v9 }
  0xc5   :  { %v458_v14 = vld [vmem:[#allocation6 + $0x880] sm:$0xff]  ;;  %v19915_v21 = vpack.c.bf16 %v146_v12, %v146_v12  ;;  %12720 = vmatprep.subr.bf16.mxu0 %v18476_v13 }
  0xc6   :  { %v466_v15 = vld [vmem:[#allocation6 + $0x8c0] sm:$0xff]  ;;  %12507 = vmatmul.mubr.bf16.vlgmr.msra.gmra.mrb[0].mxu1 %v19913_v16 }
  0xc7   :  { %v1738_v17 = vld [vmem:[#allocation6 + $0x3080] sm:$0xff]  ;;  %v17212_v24 = vcombine.high %v458_v14, %v466_v15  ;;  %12516 = vmatpush1.bf16.msra.mxu1 %v17195_v20  ;;  %12671 = vmatmul.mubr.bf16.vlgmr.msra.gmra.mrb[0].mxu0 %v19915_v21  ;;  %v17211_v32 = vcombine.low %v458_v14, %v466_v15 }
  0xc8   :  { %v1746_v18 = vld [vmem:[#allocation6 + $0x30c0] sm:$0xff]  ;;  %12721 = vmatpush1.bf16.msra.mxu0 %v18475_v23  ;;  %12547 = vmatprep.mubr.bf16.mxu1 %v19917_v28 }
  0xc9   :  { %v18492_v25 = vcombine.high %v1738_v17, %v1746_v18  ;;  %v474_v26 = vld [vmem:[#allocation6 + $0x900] sm:$0xff]  ;;  %12517 = vmatprep.subr.bf16.mxu1 %v17212_v24  ;;  %v18491_v33 = vcombine.low %v1738_v17, %v1746_v18  ;;  %12752 = vmatprep.mubr.bf16.mxu0 %v19920_v31 }
  0xca   :  { %v482_v27 = vld [vmem:[#allocation6 + $0x940] sm:$0xff] }
  0xcb   :  { %v1754_v29 = vld [vmem:[#allocation6 + $0x3100] sm:$0xff]  ;;  %v17228_v34 = vcombine.high %v474_v26, %v482_v27  ;;  %12722 = vmatprep.subr.bf16.mxu0 %v18492_v25  ;;  %12518 = vmatpush1.bf16.msra.mxu1 %v17211_v32  ;;  %v17227_v40 = vcombine.low %v474_v26, %v482_v27 }
  0xcc   :  { %v1762_v30 = vld [vmem:[#allocation6 + $0x3140] sm:$0xff]  ;;  %12723 = vmatpush1.bf16.msra.mxu0 %v18491_v33 }
  0xcd   :  { %v490_v35 = vld [vmem:[#allocation6 + $0x980] sm:$0xff]  ;;  %v18508_v38 = vcombine.high %v1754_v29, %v1762_v30  ;;  %12519 = vmatprep.subr.bf16.mxu1 %v17228_v34  ;;  %v18507_v41 = vcombine.low %v1754_v29, %v1762_v30 }
  0xce   :  { %v498_v36 = vld [vmem:[#allocation6 + $0x9c0] sm:$0xff] }
  0xcf   :  { %v1770_v37 = vld [vmem:[#allocation6 + $0x3180] sm:$0xff]  ;;  %v17244_v42 = vcombine.high %v490_v35, %v498_v36  ;;  %12724 = vmatprep.subr.bf16.mxu0 %v18508_v38  ;;  %12520 = vmatpush1.bf16.msra.mxu1 %v17227_v40  ;;  %v17243_v48 = vcombine.low %v490_v35, %v498_v36 }
  0xd0   :  { %v1778_v39 = vld [vmem:[#allocation6 + $0x31c0] sm:$0xff]  ;;  %12725 = vmatpush1.bf16.msra.mxu0 %v18507_v41 }
  0xd1   :  { %v506_v43 = vld [vmem:[#allocation6 + $0xa00] sm:$0xff]  ;;  %v18524_v46 = vcombine.high %v1770_v37, %v1778_v39  ;;  %12521 = vmatprep.subr.bf16.mxu1 %v17244_v42  ;;  %v18523_v49 = vcombine.low %v1770_v37, %v1778_v39 }
  0xd2   :  { %v514_v44 = vld [vmem:[#allocation6 + $0xa40] sm:$0xff] }
  0xd3   :  { %v1786_v45 = vld [vmem:[#allocation6 + $0x3200] sm:$0xff]  ;;  %v17260_v50 = vcombine.high %v506_v43, %v514_v44  ;;  %12726 = vmatprep.subr.bf16.mxu0 %v18524_v46  ;;  %12522 = vmatpush1.bf16.msra.mxu1 %v17243_v48  ;;  %v17259_v56 = vcombine.low %v506_v43, %v514_v44 }
  0xd4   :  { %v1794_v47 = vld [vmem:[#allocation6 + $0x3240] sm:$0xff]  ;;  %12727 = vmatpush1.bf16.msra.mxu0 %v18523_v49 }
  0xd5   :  { %v522_v51 = vld [vmem:[#allocation6 + $0xa80] sm:$0xff]  ;;  %v18540_v54 = vcombine.high %v1786_v45, %v1794_v47  ;;  %12523 = vmatprep.subr.bf16.mxu1 %v17260_v50  ;;  %v18539_v58 = vcombine.low %v1786_v45, %v1794_v47 }
  0xd6   :  { %v530_v52 = vld [vmem:[#allocation6 + $0xac0] sm:$0xff] }
  0xd7   :  { %v1802_v53 = vld [vmem:[#allocation6 + $0x3280] sm:$0xff]  ;;  %v17276_v59 = vcombine.high %v522_v51, %v530_v52  ;;  %12728 = vmatprep.subr.bf16.mxu0 %v18540_v54  ;;  %12524 = vmatpush1.bf16.msra.mxu1 %v17259_v56  ;;  %v17275_v2 = vcombine.low %v522_v51, %v530_v52 }
  0xd8   :  { %v1810_v55 = vld [vmem:[#allocation6 + $0x32c0] sm:$0xff]  ;;  %12729 = vmatpush1.bf16.msra.mxu0 %v18539_v58 }
  0xd9   :  { %v538_v60 = vld [vmem:[#allocation6 + $0xb00] sm:$0xff]  ;;  %v18556_v0 = vcombine.high %v1802_v53, %v1810_v55  ;;  %12525 = vmatprep.subr.bf16.mxu1 %v17276_v59  ;;  %v18555_v3 = vcombine.low %v1802_v53, %v1810_v55 }
  0xda   :  { %v546_v62 = vld [vmem:[#allocation6 + $0xb40] sm:$0xff] }
  0xdb   :  { %v1818_v63 = vld [vmem:[#allocation6 + $0x3300] sm:$0xff]  ;;  %v17292_v4 = vcombine.high %v538_v60, %v546_v62  ;;  %12730 = vmatprep.subr.bf16.mxu0 %v18556_v0  ;;  %12526 = vmatpush1.bf16.msra.mxu1 %v17275_v2  ;;  %v17291_v10 = vcombine.low %v538_v60, %v546_v62 }
  0xdc   :  { %v1826_v1 = vld [vmem:[#allocation6 + $0x3340] sm:$0xff]  ;;  %12731 = vmatpush1.bf16.msra.mxu0 %v18555_v3 }
  0xdd   :  { %v554_v5 = vld [vmem:[#allocation6 + $0xb80] sm:$0xff]  ;;  %v18572_v8 = vcombine.high %v1818_v63, %v1826_v1  ;;  %12527 = vmatprep.subr.bf16.mxu1 %v17292_v4  ;;  %v18571_v11 = vcombine.low %v1818_v63, %v1826_v1 }
  0xde   :  { %v562_v6 = vld [vmem:[#allocation6 + $0xbc0] sm:$0xff] }
  0xdf   :  { %v1834_v7 = vld [vmem:[#allocation6 + $0x3380] sm:$0xff]  ;;  %v17308_v12 = vcombine.high %v554_v5, %v562_v6  ;;  %12732 = vmatprep.subr.bf16.mxu0 %v18572_v8  ;;  %12528 = vmatpush1.bf16.msra.mxu1 %v17291_v10  ;;  %v17307_v19 = vcombine.low %v554_v5, %v562_v6 }
  0xe0   :  { %v1842_v9 = vld [vmem:[#allocation6 + $0x33c0] sm:$0xff]  ;;  %12733 = vmatpush1.bf16.msra.mxu0 %v18571_v11 }
  0xe1   :  { %v570_v13 = vld [vmem:[#allocation6 + $0xc00] sm:$0xff]  ;;  %v18588_v17 = vcombine.high %v1834_v7, %v1842_v9  ;;  %12529 = vmatprep.subr.bf16.mxu1 %v17308_v12  ;;  %v18587_v20 = vcombine.low %v1834_v7, %v1842_v9 }
  0xe2   :  { %v578_v14 = vld [vmem:[#allocation6 + $0xc40] sm:$0xff] }
  0xe3   :  { %v1850_v15 = vld [vmem:[#allocation6 + $0x3400] sm:$0xff]  ;;  %v17324_v22 = vcombine.high %v570_v13, %v578_v14  ;;  %12734 = vmatprep.subr.bf16.mxu0 %v18588_v17  ;;  %12530 = vmatpush1.bf16.msra.mxu1 %v17307_v19  ;;  %v17323_v29 = vcombine.low %v570_v13, %v578_v14 }
  0xe4   :  { %v1858_v18 = vld [vmem:[#allocation6 + $0x3440] sm:$0xff]  ;;  %12735 = vmatpush1.bf16.msra.mxu0 %v18587_v20 }
  0xe5   :  { %v586_v23 = vld [vmem:[#allocation6 + $0xc80] sm:$0xff]  ;;  %v18604_v26 = vcombine.high %v1850_v15, %v1858_v18  ;;  %12531 = vmatprep.subr.bf16.mxu1 %v17324_v22  ;;  %v18603_v30 = vcombine.low %v1850_v15, %v1858_v18 }
  0xe6   :  { %v594_v24 = vld [vmem:[#allocation6 + $0xcc0] sm:$0xff] }
  0xe7   :  { %v1866_v25 = vld [vmem:[#allocation6 + $0x3480] sm:$0xff]  ;;  %v17340_v32 = vcombine.high %v586_v23, %v594_v24  ;;  %12736 = vmatprep.subr.bf16.mxu0 %v18604_v26  ;;  %12532 = vmatpush1.bf16.msra.mxu1 %v17323_v29  ;;  %v17339_v38 = vcombine.low %v586_v23, %v594_v24  ;;  %v187_v23 = vld [vmem:[#allocation6 + $0x8] sm:$0xff] }
  0xe8   :  { %v1874_v27 = vld [vmem:[#allocation6 + $0x34c0] sm:$0xff]  ;;  %12737 = vmatpush1.bf16.msra.mxu0 %v18603_v30  ;;  %v195_v26 = vld [vmem:[#allocation6 + $0x48] sm:$0xff] }
  0xe9   :  { %v602_v33 = vld [vmem:[#allocation6 + $0xd00] sm:$0xff]  ;;  %v18620_v36 = vcombine.high %v1866_v25, %v1874_v27  ;;  %12533 = vmatprep.subr.bf16.mxu1 %v17340_v32  ;;  %v18619_v39 = vcombine.low %v1866_v25, %v1874_v27  ;;  %v140_v25 = vld [vmem:[#allocation3 + $0x10] sm:$0xff] }
  0xea   :  { %v610_v34 = vld [vmem:[#allocation6 + $0xd40] sm:$0xff] }
  0xeb   :  { %v1882_v35 = vld [vmem:[#allocation6 + $0x3500] sm:$0xff]  ;;  %v17356_v40 = vcombine.high %v602_v33, %v610_v34  ;;  %12738 = vmatprep.subr.bf16.mxu0 %v18620_v36  ;;  %12534 = vmatpush1.bf16.msra.mxu1 %v17339_v38  ;;  %v17355_v46 = vcombine.low %v602_v33, %v610_v34  ;;  %v211_v36 = vld [vmem:[#allocation6 + $0xc8] sm:$0xff] }
  0xec   :  { %v1890_v37 = vld [vmem:[#allocation6 + $0x3540] sm:$0xff]  ;;  %12739 = vmatpush1.bf16.msra.mxu0 %v18619_v39  ;;  %v143_v38 = vld [vmem:[#allocation3 + $0x28] sm:$0xff]  ;;  %v19925_v39 = vpack.c.bf16 %v140_v25, %v140_v25 }
  0xed   :  { %v618_v41 = vld [vmem:[#allocation6 + $0xd80] sm:$0xff]  ;;  %v18636_v44 = vcombine.high %v1882_v35, %v1890_v37  ;;  %12535 = vmatprep.subr.bf16.mxu1 %v17356_v40  ;;  %v18635_v47 = vcombine.low %v1882_v35, %v1890_v37  ;;  %v203_v35 = vld [vmem:[#allocation6 + $0x88] sm:$0xff]  ;;  %v16942_v37 = vcombine.high %v187_v23, %v195_v26 }
  0xee   :  { %v626_v42 = vld [vmem:[#allocation6 + $0xdc0] sm:$0xff] }
  0xef   :  { %v1898_v43 = vld [vmem:[#allocation6 + $0x3580] sm:$0xff]  ;;  %v17372_v48 = vcombine.high %v618_v41, %v626_v42  ;;  %12740 = vmatprep.subr.bf16.mxu0 %v18636_v44  ;;  %12536 = vmatpush1.bf16.msra.mxu1 %v17355_v46  ;;  %v17371_v54 = vcombine.low %v618_v41, %v626_v42  ;;  %v16941_v42 = vcombine.low %v187_v23, %v195_v26 }
  0xf0   :  { %v1906_v45 = vld [vmem:[#allocation6 + $0x35c0] sm:$0xff]  ;;  %12741 = vmatpush1.bf16.msra.mxu0 %v18635_v47  ;;  %v16958_v46 = vcombine.high %v203_v35, %v211_v36  ;;  %v219_v47 = vld [vmem:[#allocation6 + $0x108] sm:$0xff] }
  0xf1   :  { %v634_v49 = vld [vmem:[#allocation6 + $0xe00] sm:$0xff]  ;;  %v18652_v52 = vcombine.high %v1898_v43, %v1906_v45  ;;  %12537 = vmatprep.subr.bf16.mxu1 %v17372_v48  ;;  %v18651_v55 = vcombine.low %v1898_v43, %v1906_v45  ;;  %v227_v48 = vld [vmem:[#allocation6 + $0x148] sm:$0xff] }
  0xf2   :  { %v642_v50 = vld [vmem:[#allocation6 + $0xe40] sm:$0xff] }
  0xf3   :  { %v1914_v51 = vld [vmem:[#allocation6 + $0x3600] sm:$0xff]  ;;  %v17388_v56 = vcombine.high %v634_v49, %v642_v50  ;;  %12742 = vmatprep.subr.bf16.mxu0 %v18652_v52  ;;  %12538 = vmatpush1.bf16.msra.mxu1 %v17371_v54  ;;  %v17387_v0 = vcombine.low %v634_v49, %v642_v50  ;;  %v19929_v49 = vpack.c.bf16 %v143_v38, %v143_v38 }
  0xf4   :  { %v1922_v53 = vld [vmem:[#allocation6 + $0x3640] sm:$0xff]  ;;  %12743 = vmatpush1.bf16.msra.mxu0 %v18651_v55  ;;  %v235_v55 = vld [vmem:[#allocation6 + $0x188] sm:$0xff] }
  0xf5   :  { %v650_v58 = vld [vmem:[#allocation6 + $0xe80] sm:$0xff]  ;;  %v18668_v62 = vcombine.high %v1914_v51, %v1922_v53  ;;  %12539 = vmatprep.subr.bf16.mxu1 %v17388_v56  ;;  %v18667_v1 = vcombine.low %v1914_v51, %v1922_v53  ;;  %v16957_v51 = vcombine.low %v203_v35, %v211_v36  ;;  %v16974_v56 = vcombine.high %v219_v47, %v227_v48 }
  0xf6   :  { %v658_v59 = vld [vmem:[#allocation6 + $0xec0] sm:$0xff] }
  0xf7   :  { %v1930_v60 = vld [vmem:[#allocation6 + $0x3680] sm:$0xff]  ;;  %v17404_v2 = vcombine.high %v650_v58, %v658_v59  ;;  %12744 = vmatprep.subr.bf16.mxu0 %v18668_v62  ;;  %12540 = vmatpush1.bf16.msra.mxu1 %v17387_v0  ;;  %v17403_v8 = vcombine.low %v650_v58, %v658_v59  ;;  %v243_v58 = vld [vmem:[#allocation6 + $0x1c8] sm:$0xff] }
  0xf8   :  { %v1938_v63 = vld [vmem:[#allocation6 + $0x36c0] sm:$0xff]  ;;  %12745 = vmatpush1.bf16.msra.mxu0 %v18667_v1  ;;  %v251_v1 = vld [vmem:[#allocation6 + $0x208] sm:$0xff] }
  0xf9   :  { %v666_v3 = vld [vmem:[#allocation6 + $0xf00] sm:$0xff]  ;;  %v18684_v6 = vcombine.high %v1930_v60, %v1938_v63  ;;  %12541 = vmatprep.subr.bf16.mxu1 %v17404_v2  ;;  %v18683_v9 = vcombine.low %v1930_v60, %v1938_v63  ;;  %v16973_v60 = vcombine.low %v219_v47, %v227_v48  ;;  %v16990_v2 = vcombine.high %v235_v55, %v243_v58  ;;  %v331_v47 = vld [vmem:[#allocation6 + $0x488] sm:$0xff] }
  0xfa   :  { %v674_v4 = vld [vmem:[#allocation6 + $0xf40] sm:$0xff] }
  0xfb   :  { %v1946_v5 = vld [vmem:[#allocation6 + $0x3700] sm:$0xff]  ;;  %v17420_v10 = vcombine.high %v666_v3, %v674_v4  ;;  %12746 = vmatprep.subr.bf16.mxu0 %v18684_v6  ;;  %12542 = vmatpush1.bf16.msra.mxu1 %v17403_v8  ;;  %v17419_v17 = vcombine.low %v666_v3, %v674_v4  ;;  %v259_v3 = vld [vmem:[#allocation6 + $0x248] sm:$0xff] }
  0xfc   :  { %v1954_v7 = vld [vmem:[#allocation6 + $0x3740] sm:$0xff]  ;;  %12747 = vmatpush1.bf16.msra.mxu0 %v18683_v9  ;;  %v267_v9 = vld [vmem:[#allocation6 + $0x288] sm:$0xff] }
  0xfd   :  { %v682_v11 = vld [vmem:[#allocation6 + $0xf80] sm:$0xff]  ;;  %v18700_v14 = vcombine.high %v1946_v5, %v1954_v7  ;;  %12543 = vmatprep.subr.bf16.mxu1 %v17420_v10  ;;  %v18699_v18 = vcombine.low %v1946_v5, %v1954_v7  ;;  %v16989_v5 = vcombine.low %v235_v55, %v243_v58  ;;  %v17006_v10 = vcombine.high %v251_v1, %v259_v3 }
  0xfe   :  { %v690_v12 = vld [vmem:[#allocation6 + $0xfc0] sm:$0xff] }
  0xff   :  { %v1962_v13 = vld [vmem:[#allocation6 + $0x3780] sm:$0xff]  ;;  %v17436_v19 = vcombine.high %v682_v11, %v690_v12  ;;  %12748 = vmatprep.subr.bf16.mxu0 %v18700_v14  ;;  %12544 = vmatpush1.bf16.msra.mxu1 %v17419_v17  ;;  %v17435_v29 = vcombine.low %v682_v11, %v690_v12  ;;  %v275_v11 = vld [vmem:[#allocation6 + $0x2c8] sm:$0xff] }
 0x100   :  { %v1970_v15 = vld [vmem:[#allocation6 + $0x37c0] sm:$0xff]  ;;  %12749 = vmatpush1.bf16.msra.mxu0 %v18699_v18  ;;  %v283_v18 = vld [vmem:[#allocation6 + $0x308] sm:$0xff]  ;;  %v17021_v23 = vcombine.low %v267_v9, %v275_v11 }
 0x101   :  { %v698_v20 = vld [vmem:[#allocation6 + $0x1000] sm:$0xff]  ;;  %v18716_v24 = vcombine.high %v1962_v13, %v1970_v15  ;;  %12545 = vmatprep.subr.bf16.mxu1 %v17436_v19  ;;  %v18715_v32 = vcombine.low %v1962_v13, %v1970_v15  ;;  %v17005_v13 = vcombine.low %v251_v1, %v259_v3  ;;  %v17022_v19 = vcombine.high %v267_v9, %v275_v11 }
 0x102   :  { %v706_v22 = vld [vmem:[#allocation6 + $0x1040] sm:$0xff] }
 0x103   :  { %v150_v27 = vld [vmem:[#allocation3 + $0x60] sm:$0xff]  ;;  %v17452_v33 = vcombine.high %v698_v20, %v706_v22  ;;  %12750 = vmatprep.subr.bf16.mxu0 %v18716_v24  ;;  %12546 = vmatpush1.bf16.msra.mxu1 %v17435_v29  ;;  %v17451_v40 = vcombine.low %v698_v20, %v706_v22  ;;  %v291_v20 = vld [vmem:[#allocation6 + $0x348] sm:$0xff] }
 0x104   :  { %v714_v30 = vld [vmem:[#allocation6 + $0x1080] sm:$0xff]  ;;  %v19927_v41 = vpack.c.bf16 %v150_v27, %v150_v27  ;;  %12751 = vmatpush1.bf16.msra.mxu0 %v18715_v32  ;;  %v299_v27 = vld [vmem:[#allocation6 + $0x388] sm:$0xff]  ;;  %v17038_v29 = vcombine.high %v283_v18, %v291_v20 }
 0x105   :  { %v722_v34 = vld [vmem:[#allocation6 + $0x10c0] sm:$0xff]  ;;  %12556 = vmatprep.subr.bf16.mxu1 %v17452_v33  ;;  %12802 = vmatprep.subr.bf16.mxu0 %v16942_v37  ;;  %v17037_v33 = vcombine.low %v283_v18, %v291_v20  ;;  %v315_v37 = vld [vmem:[#allocation6 + $0x408] sm:$0xff] }
 0x106   :  { %v17468_v43 = vcombine.high %v714_v30, %v722_v34  ;;  %v730_v44 = vld [vmem:[#allocation6 + $0x1100] sm:$0xff]  ;;  %12548 = vmatmul.mubr.bf16.vlgmr.msra.gmra.mrb[4].mxu1 %v19925_v39  ;;  %v17467_v50 = vcombine.low %v714_v30, %v722_v34  ;;  %v307_v30 = vld [vmem:[#allocation6 + $0x3c8] sm:$0xff] }
 0x107   :  { %v738_v45 = vld [vmem:[#allocation6 + $0x1140] sm:$0xff]  ;;  %12557 = vmatpush1.bf16.msra.mxu1 %v17451_v40  ;;  %12753 = vmatmul.mubr.bf16.vlgmr.msra.gmra.mrb[4].mxu0 %v19927_v41  ;;  %v17054_v38 = vcombine.high %v299_v27, %v307_v30  ;;  %v323_v40 = vld [vmem:[#allocation6 + $0x448] sm:$0xff] }
 0x108   :  { %12803 = vmatpush1.bf16.msra.mxu0 %v16941_v42  ;;  %12558 = vmatprep.subr.bf16.mxu1 %v17468_v43  ;;  %v17484_v52 = vcombine.high %v730_v44, %v738_v45  ;;  %v746_v53 = vld [vmem:[#allocation6 + $0x1180] sm:$0xff]  ;;  %v17483_v59 = vcombine.low %v730_v44, %v738_v45  ;;  %v17053_v43 = vcombine.low %v299_v27, %v307_v30 }
 0x109   :  { %v754_v54 = vld [vmem:[#allocation6 + $0x11c0] sm:$0xff]  ;;  %12804 = vmatprep.subr.bf16.mxu0 %v16958_v46  ;;  %12588 = vmatprep.mubr.bf16.mxu1 %v19929_v49  ;;  %v17070_v48 = vcombine.high %v315_v37, %v323_v40 }
 0x10a   :  { %12834 = vmatprep.mubr.bf16.mxu0 %v19907_v57  ;;  %v17500_v62 = vcombine.high %v746_v53, %v754_v54  ;;  %v762_v63 = vld [vmem:[#allocation6 + $0x1200] sm:$0xff]  ;;  %v17499_v4 = vcombine.low %v746_v53, %v754_v54 }
 0x10b   :  { %12559 = vmatpush1.bf16.msra.mxu1 %v17467_v50  ;;  %v770_v0 = vld [vmem:[#allocation6 + $0x1240] sm:$0xff]  ;;  %v339_v50 = vld [vmem:[#allocation6 + $0x4c8] sm:$0xff] }
 0x10c   :  { %12805 = vmatpush1.bf16.msra.mxu0 %v16957_v51  ;;  %12560 = vmatprep.subr.bf16.mxu1 %v17484_v52  ;;  %v17516_v6 = vcombine.high %v762_v63, %v770_v0  ;;  %v778_v7 = vld [vmem:[#allocation6 + $0x1280] sm:$0xff]  ;;  %v17515_v12 = vcombine.low %v762_v63, %v770_v0  ;;  %v17069_v52 = vcombine.low %v315_v37, %v323_v40 }
 0x10d   :  { %12806 = vmatprep.subr.bf16.mxu0 %v16974_v56  ;;  %v786_v8 = vld [vmem:[#allocation6 + $0x12c0] sm:$0xff]  ;;  %v347_v56 = vld [vmem:[#allocation6 + $0x508] sm:$0xff]  ;;  %v17086_v58 = vcombine.high %v331_v47, %v339_v50 }
 0x10e   :  { %v17532_v14 = vcombine.high %v778_v7, %v786_v8  ;;  %v794_v15 = vld [vmem:[#allocation6 + $0x1300] sm:$0xff]  ;;  %v17531_v22 = vcombine.low %v778_v7, %v786_v8 }
 0x10f   :  { %12561 = vmatpush1.bf16.msra.mxu1 %v17483_v59  ;;  %v802_v17 = vld [vmem:[#allocation6 + $0x1340] sm:$0xff]  ;;  %v355_v59 = vld [vmem:[#allocation6 + $0x548] sm:$0xff] }
 0x110   :  { %12807 = vmatpush1.bf16.msra.mxu0 %v16973_v60  ;;  %12562 = vmatprep.subr.bf16.mxu1 %v17500_v62  ;;  %v17548_v24 = vcombine.high %v794_v15, %v802_v17  ;;  %v810_v25 = vld [vmem:[#allocation6 + $0x1380] sm:$0xff]  ;;  %v17547_v32 = vcombine.low %v794_v15, %v802_v17  ;;  %v17085_v62 = vcombine.low %v331_v47, %v339_v50 }
 0x111   :  { %12808 = vmatprep.subr.bf16.mxu0 %v16990_v2  ;;  %v818_v26 = vld [vmem:[#allocation6 + $0x13c0] sm:$0xff]  ;;  %v363_v2 = vld [vmem:[#allocation6 + $0x588] sm:$0xff]  ;;  %v17102_v3 = vcombine.high %v347_v56, %v355_v59 }
 0x112   :  { %v17564_v34 = vcombine.high %v810_v25, %v818_v26  ;;  %v826_v35 = vld [vmem:[#allocation6 + $0x1400] sm:$0xff]  ;;  %v17563_v42 = vcombine.low %v810_v25, %v818_v26 }
 0x113   :  { %12563 = vmatpush1.bf16.msra.mxu1 %v17499_v4  ;;  %v834_v36 = vld [vmem:[#allocation6 + $0x1440] sm:$0xff]  ;;  %v371_v4 = vld [vmem:[#allocation6 + $0x5c8] sm:$0xff] }
 0x114   :  { %12809 = vmatpush1.bf16.msra.mxu0 %v16989_v5  ;;  %12564 = vmatprep.subr.bf16.mxu1 %v17516_v6  ;;  %v17580_v44 = vcombine.high %v826_v35, %v834_v36  ;;  %v842_v45 = vld [vmem:[#allocation6 + $0x1480] sm:$0xff]  ;;  %v17579_v51 = vcombine.low %v826_v35, %v834_v36  ;;  %v17101_v6 = vcombine.low %v347_v56, %v355_v59  ;;  %v715_v59 = vld [vmem:[#allocation6 + $0x1088] sm:$0xff] }
 0x115   :  { %12810 = vmatprep.subr.bf16.mxu0 %v17006_v10  ;;  %v850_v46 = vld [vmem:[#allocation6 + $0x14c0] sm:$0xff]  ;;  %v379_v10 = vld [vmem:[#allocation6 + $0x608] sm:$0xff]  ;;  %v17118_v11 = vcombine.high %v363_v2, %v371_v4 }
 0x116   :  { %v17596_v53 = vcombine.high %v842_v45, %v850_v46  ;;  %v858_v54 = vld [vmem:[#allocation6 + $0x1500] sm:$0xff]  ;;  %v17595_v60 = vcombine.low %v842_v45, %v850_v46 }
 0x117   :  { %12565 = vmatpush1.bf16.msra.mxu1 %v17515_v12  ;;  %v866_v55 = vld [vmem:[#allocation6 + $0x1540] sm:$0xff]  ;;  %v387_v12 = vld [vmem:[#allocation6 + $0x648] sm:$0xff] }
 0x118   :  { %12811 = vmatpush1.bf16.msra.mxu0 %v17005_v13  ;;  %12566 = vmatprep.subr.bf16.mxu1 %v17532_v14  ;;  %v17612_v63 = vcombine.high %v858_v54, %v866_v55  ;;  %v874_v0 = vld [vmem:[#allocation6 + $0x1580] sm:$0xff]  ;;  %v17611_v5 = vcombine.low %v858_v54, %v866_v55  ;;  %v17117_v14 = vcombine.low %v363_v2, %v371_v4 }
 0x119   :  { %12812 = vmatprep.subr.bf16.mxu0 %v17022_v19  ;;  %v882_v1 = vld [vmem:[#allocation6 + $0x15c0] sm:$0xff]  ;;  %v395_v19 = vld [vmem:[#allocation6 + $0x688] sm:$0xff]  ;;  %v17134_v20 = vcombine.high %v379_v10, %v387_v12 }
 0x11a   :  { %v17628_v7 = vcombine.high %v874_v0, %v882_v1  ;;  %v890_v8 = vld [vmem:[#allocation6 + $0x1600] sm:$0xff]  ;;  %v17627_v13 = vcombine.low %v874_v0, %v882_v1 }
 0x11b   :  { %12567 = vmatpush1.bf16.msra.mxu1 %v17531_v22  ;;  %v898_v9 = vld [vmem:[#allocation6 + $0x1640] sm:$0xff]  ;;  %v403_v22 = vld [vmem:[#allocation6 + $0x6c8] sm:$0xff] }
 0x11c   :  { %12813 = vmatpush1.bf16.msra.mxu0 %v17021_v23  ;;  %12568 = vmatprep.subr.bf16.mxu1 %v17548_v24  ;;  %v17644_v15 = vcombine.high %v890_v8, %v898_v9  ;;  %v906_v17 = vld [vmem:[#allocation6 + $0x1680] sm:$0xff]  ;;  %v17643_v23 = vcombine.low %v890_v8, %v898_v9  ;;  %v17133_v24 = vcombine.low %v379_v10, %v387_v12  ;;  %v739_v8 = vld [vmem:[#allocation6 + $0x1148] sm:$0xff] }
 0x11d   :  { %12814 = vmatprep.subr.bf16.mxu0 %v17038_v29  ;;  %v914_v18 = vld [vmem:[#allocation6 + $0x16c0] sm:$0xff]  ;;  %v411_v29 = vld [vmem:[#allocation6 + $0x708] sm:$0xff]  ;;  %v17150_v30 = vcombine.high %v395_v19, %v403_v22 }
 0x11e   :  { %v17660_v25 = vcombine.high %v906_v17, %v914_v18  ;;  %v922_v26 = vld [vmem:[#allocation6 + $0x1700] sm:$0xff] }
 0x11f   :  { %12569 = vmatpush1.bf16.msra.mxu1 %v17547_v32  ;;  %v930_v27 = vld [vmem:[#allocation6 + $0x1740] sm:$0xff]  ;;  %v419_v32 = vld [vmem:[#allocation6 + $0x748] sm:$0xff] }
 0x120   :  { %12815 = vmatpush1.bf16.msra.mxu0 %v17037_v33  ;;  %12570 = vmatprep.subr.bf16.mxu1 %v17564_v34  ;;  %v17659_v33 = vcombine.low %v906_v17, %v914_v18  ;;  %v17149_v34 = vcombine.low %v395_v19, %v403_v22  ;;  %v17676_v35 = vcombine.high %v922_v26, %v930_v27  ;;  %v938_v36 = vld [vmem:[#allocation6 + $0x1780] sm:$0xff]  ;;  %v747_v17 = vld [vmem:[#allocation6 + $0x1188] sm:$0xff] }
 0x121   :  { %12816 = vmatprep.subr.bf16.mxu0 %v17054_v38  ;;  %v946_v37 = vld [vmem:[#allocation6 + $0x17c0] sm:$0xff]  ;;  %v427_v38 = vld [vmem:[#allocation6 + $0x788] sm:$0xff]  ;;  %v17166_v40 = vcombine.high %v411_v29, %v419_v32 }
 0x122   :  { %v17692_v45 = vcombine.high %v938_v36, %v946_v37  ;;  %v954_v46 = vld [vmem:[#allocation6 + $0x1800] sm:$0xff]  ;;  %v755_v18 = vld [vmem:[#allocation6 + $0x11c8] sm:$0xff] }
 0x123   :  { %12571 = vmatpush1.bf16.msra.mxu1 %v17563_v42  ;;  %v435_v42 = vld [vmem:[#allocation6 + $0x7c8] sm:$0xff]  ;;  %v962_v47 = vld [vmem:[#allocation6 + $0x1840] sm:$0xff] }
 0x124   :  { %12817 = vmatpush1.bf16.msra.mxu0 %v17053_v43  ;;  %12572 = vmatprep.subr.bf16.mxu1 %v17580_v44  ;;  %v17675_v43 = vcombine.low %v922_v26, %v930_v27  ;;  %v17165_v44 = vcombine.low %v411_v29, %v419_v32  ;;  %v17182_v50 = vcombine.high %v427_v38, %v435_v42  ;;  %v970_v54 = vld [vmem:[#allocation6 + $0x1880] sm:$0xff]  ;;  %v763_v26 = vld [vmem:[#allocation6 + $0x1208] sm:$0xff] }
 0x125   :  { %12818 = vmatprep.subr.bf16.mxu0 %v17070_v48  ;;  %v699_v48 = vld [vmem:[#allocation6 + $0x1008] sm:$0xff]  ;;  %v17181_v55 = vcombine.low %v427_v38, %v435_v42  ;;  %v17708_v56 = vcombine.high %v954_v46, %v962_v47  ;;  %v17707_v1 = vcombine.low %v954_v46, %v962_v47  ;;  %v986_v4 = vld [vmem:[#allocation6 + $0x1900] sm:$0xff] }
 0x126   :  { %v771_v27 = vld [vmem:[#allocation6 + $0x1248] sm:$0xff] }
 0x127   :  { %12573 = vmatpush1.bf16.msra.mxu1 %v17579_v51  ;;  %v142_v51 = vld [vmem:[#allocation3 + $0x20] sm:$0xff]  ;;  %v795_v46 = vld [vmem:[#allocation6 + $0x1308] sm:$0xff] }
 0x128   :  { %12819 = vmatpush1.bf16.msra.mxu0 %v17069_v52  ;;  %12574 = vmatprep.subr.bf16.mxu1 %v17596_v53  ;;  %v707_v52 = vld [vmem:[#allocation6 + $0x1048] sm:$0xff]  ;;  %v17691_v53 = vcombine.low %v938_v36, %v946_v37  ;;  %v19935_v0 = vpack.c.bf16 %v142_v51, %v142_v51 }
 0x129   :  { %12820 = vmatprep.subr.bf16.mxu0 %v17086_v58  ;;  %v978_v58 = vld [vmem:[#allocation6 + $0x18c0] sm:$0xff]  ;;  %v17453_v2 = vcombine.low %v699_v48, %v707_v52  ;;  %v779_v36 = vld [vmem:[#allocation6 + $0x1288] sm:$0xff] }
 0x12a   :  { %v17723_v10 = vcombine.low %v970_v54, %v978_v58  ;;  %v787_v37 = vld [vmem:[#allocation6 + $0x12c8] sm:$0xff] }
 0x12b   :  { %12575 = vmatpush1.bf16.msra.mxu1 %v17595_v60  ;;  %v723_v60 = vld [vmem:[#allocation6 + $0x10c8] sm:$0xff] }
 0x12c   :  { %12821 = vmatpush1.bf16.msra.mxu0 %v17085_v62  ;;  %12576 = vmatprep.subr.bf16.mxu1 %v17612_v63  ;;  %v17454_v62 = vcombine.high %v699_v48, %v707_v52  ;;  %v145_v63 = vld [vmem:[#allocation3 + $0x38] sm:$0xff]  ;;  %v803_v47 = vld [vmem:[#allocation6 + $0x1348] sm:$0xff] }
 0x12d   :  { %12822 = vmatprep.subr.bf16.mxu0 %v17102_v3  ;;  %v17724_v3 = vcombine.high %v970_v54, %v978_v58  ;;  %v19937_v9 = vpack.c.bf16 %v145_v63, %v145_v63  ;;  %v17550_v52 = vcombine.high %v795_v46, %v803_v47  ;;  %v1074_v54 = vld [vmem:[#allocation6 + $0x1bc0] sm:$0xff] }
 0x12e   :  { %v1082_v63 = vld [vmem:[#allocation6 + $0x1c00] sm:$0xff] }
 0x12f   :  { %12577 = vmatpush1.bf16.msra.mxu1 %v17611_v5  ;;  %v994_v5 = vld [vmem:[#allocation6 + $0x1940] sm:$0xff] }
 0x130   :  { %12823 = vmatpush1.bf16.msra.mxu0 %v17101_v6  ;;  %12578 = vmatprep.subr.bf16.mxu1 %v17628_v7  ;;  %v17470_v6 = vcombine.high %v715_v59, %v723_v60  ;;  %v731_v7 = vld [vmem:[#allocation6 + $0x1108] sm:$0xff]  ;;  %v17740_v12 = vcombine.high %v986_v4, %v994_v5  ;;  %v17739_v19 = vcombine.low %v986_v4, %v994_v5 }
 0x131   :  { %12824 = vmatprep.subr.bf16.mxu0 %v17118_v11  ;;  %v17469_v11 = vcombine.low %v715_v59, %v723_v60  ;;  %v17549_v59 = vcombine.low %v795_v46, %v803_v47  ;;  %v1162_v47 = vld [vmem:[#allocation6 + $0x1e80] sm:$0xff] }
 0x133   :  { %12579 = vmatpush1.bf16.msra.mxu1 %v17627_v13  ;;  %v1002_v13 = vld [vmem:[#allocation6 + $0x1980] sm:$0xff] }
 0x134   :  { %12825 = vmatpush1.bf16.msra.mxu0 %v17117_v14  ;;  %12580 = vmatprep.subr.bf16.mxu1 %v17644_v15  ;;  %v17486_v14 = vcombine.high %v731_v7, %v739_v8  ;;  %v1010_v15 = vld [vmem:[#allocation6 + $0x19c0] sm:$0xff] }
 0x135   :  { %12826 = vmatprep.subr.bf16.mxu0 %v17134_v20  ;;  %v17485_v20 = vcombine.low %v731_v7, %v739_v8  ;;  %v17756_v22 = vcombine.high %v1002_v13, %v1010_v15  ;;  %v17755_v29 = vcombine.low %v1002_v13, %v1010_v15  ;;  %v1098_v8 = vld [vmem:[#allocation6 + $0x1c80] sm:$0xff] }
 0x137   :  { %12581 = vmatpush1.bf16.msra.mxu1 %v17643_v23  ;;  %v17502_v23 = vcombine.high %v747_v17, %v755_v18 }
 0x138   :  { %12827 = vmatpush1.bf16.msra.mxu0 %v17133_v24  ;;  %12582 = vmatprep.subr.bf16.mxu1 %v17660_v25  ;;  %v1018_v24 = vld [vmem:[#allocation6 + $0x1a00] sm:$0xff] }
 0x139   :  { %12828 = vmatprep.subr.bf16.mxu0 %v17150_v30  ;;  %v1026_v25 = vld [vmem:[#allocation6 + $0x1a40] sm:$0xff]  ;;  %v17501_v30 = vcombine.low %v747_v17, %v755_v18 }
 0x13a   :  { %v17772_v32 = vcombine.high %v1018_v24, %v1026_v25  ;;  %v17771_v38 = vcombine.low %v1018_v24, %v1026_v25  ;;  %v1114_v18 = vld [vmem:[#allocation6 + $0x1d00] sm:$0xff] }
 0x13b   :  { %12583 = vmatpush1.bf16.msra.mxu1 %v17659_v33  ;;  %v17518_v33 = vcombine.high %v763_v26, %v771_v27 }
 0x13c   :  { %12829 = vmatpush1.bf16.msra.mxu0 %v17149_v34  ;;  %12584 = vmatprep.subr.bf16.mxu1 %v17676_v35  ;;  %v1034_v34 = vld [vmem:[#allocation6 + $0x1a80] sm:$0xff] }
 0x13d   :  { %12830 = vmatprep.subr.bf16.mxu0 %v17166_v40  ;;  %v1042_v35 = vld [vmem:[#allocation6 + $0x1ac0] sm:$0xff]  ;;  %v17517_v40 = vcombine.low %v763_v26, %v771_v27 }
 0x13e   :  { %v17788_v42 = vcombine.high %v1034_v34, %v1042_v35  ;;  %v17787_v48 = vcombine.low %v1034_v34, %v1042_v35  ;;  %v1130_v27 = vld [vmem:[#allocation6 + $0x1d80] sm:$0xff] }
 0x13f   :  { %12585 = vmatpush1.bf16.msra.mxu1 %v17675_v43  ;;  %v17534_v43 = vcombine.high %v779_v36, %v787_v37 }
 0x140   :  { %12831 = vmatpush1.bf16.msra.mxu0 %v17165_v44  ;;  %12586 = vmatprep.subr.bf16.mxu1 %v17692_v45  ;;  %v1050_v44 = vld [vmem:[#allocation6 + $0x1b00] sm:$0xff] }
 0x141   :  { %12832 = vmatprep.subr.bf16.mxu0 %v17182_v50  ;;  %v1058_v45 = vld [vmem:[#allocation6 + $0x1b40] sm:$0xff]  ;;  %v17533_v50 = vcombine.low %v779_v36, %v787_v37 }
 0x142   :  { %v17804_v51 = vcombine.high %v1050_v44, %v1058_v45  ;;  %v17803_v58 = vcombine.low %v1050_v44, %v1058_v45  ;;  %v1146_v37 = vld [vmem:[#allocation6 + $0x1e00] sm:$0xff] }
 0x143   :  { %12587 = vmatpush1.bf16.msra.mxu1 %v17691_v53  ;;  %v1066_v53 = vld [vmem:[#allocation6 + $0x1b80] sm:$0xff] }
 0x144   :  { %12833 = vmatpush1.bf16.msra.mxu0 %v17181_v55  ;;  %12597 = vmatprep.subr.bf16.mxu1 %v17708_v56  ;;  %v811_v55 = vld [vmem:[#allocation6 + $0x1388] sm:$0xff]  ;;  %v17820_v60 = vcombine.high %v1066_v53, %v1074_v54  ;;  %v17819_v4 = vcombine.low %v1066_v53, %v1074_v54 }
 0x145   :  { %12884 = vmatprep.subr.bf16.mxu0 %v17454_v62  ;;  %v819_v56 = vld [vmem:[#allocation6 + $0x13c8] sm:$0xff] }
 0x146   :  { %12589 = vmatmul.mubr.bf16.vlgmr.msra.gmra.mrb[8].mxu1 %v19935_v0  ;;  %v17566_v62 = vcombine.high %v811_v55, %v819_v56  ;;  %v17565_v5 = vcombine.low %v811_v55, %v819_v56  ;;  %v1178_v56 = vld [vmem:[#allocation6 + $0x1f00] sm:$0xff] }
 0x147   :  { %12598 = vmatpush1.bf16.msra.mxu1 %v17707_v1  ;;  %12835 = vmatmul.mubr.bf16.vlgmr.msra.gmra.mrb[8].mxu0 %v19913_v16  ;;  %v1090_v1 = vld [vmem:[#allocation6 + $0x1c40] sm:$0xff] }
 0x148   :  { %12885 = vmatpush1.bf16.msra.mxu0 %v17453_v2  ;;  %12599 = vmatprep.subr.bf16.mxu1 %v17724_v3  ;;  %v827_v2 = vld [vmem:[#allocation6 + $0x1408] sm:$0xff]  ;;  %v17835_v13 = vcombine.low %v1082_v63, %v1090_v1 }
 0x149   :  { %12886 = vmatprep.subr.bf16.mxu0 %v17470_v6  ;;  %12629 = vmatprep.mubr.bf16.mxu1 %v19937_v9  ;;  %v835_v3 = vld [vmem:[#allocation6 + $0x1448] sm:$0xff]  ;;  %v17836_v6 = vcombine.high %v1082_v63, %v1090_v1 }
 0x14a   :  { %12916 = vmatprep.mubr.bf16.mxu0 %v19929_v49  ;;  %v17582_v7 = vcombine.high %v827_v2, %v835_v3 }
 0x14b   :  { %12600 = vmatpush1.bf16.msra.mxu1 %v17723_v10  ;;  %v1106_v10 = vld [vmem:[#allocation6 + $0x1cc0] sm:$0xff] }
 0x14c   :  { %12887 = vmatpush1.bf16.msra.mxu0 %v17469_v11  ;;  %12601 = vmatprep.subr.bf16.mxu1 %v17740_v12  ;;  %v843_v11 = vld [vmem:[#allocation6 + $0x1488] sm:$0xff]  ;;  %v17852_v15 = vcombine.high %v1098_v8, %v1106_v10 }
 0x14d   :  { %12888 = vmatprep.subr.bf16.mxu0 %v17486_v14  ;;  %v851_v12 = vld [vmem:[#allocation6 + $0x14c8] sm:$0xff]  ;;  %v17581_v14 = vcombine.low %v827_v2, %v835_v3  ;;  %v1194_v3 = vld [vmem:[#allocation6 + $0x1f80] sm:$0xff] }
 0x14e   :  { %v17598_v17 = vcombine.high %v843_v11, %v851_v12  ;;  %v17597_v24 = vcombine.low %v843_v11, %v851_v12  ;;  %v1466_v12 = vld [vmem:[#allocation6 + $0x2800] sm:$0xff] }
 0x14f   :  { %12602 = vmatpush1.bf16.msra.mxu1 %v17739_v19  ;;  %v1122_v19 = vld [vmem:[#allocation6 + $0x1d40] sm:$0xff] }
 0x150   :  { %12889 = vmatpush1.bf16.msra.mxu0 %v17485_v20  ;;  %12603 = vmatprep.subr.bf16.mxu1 %v17756_v22  ;;  %v859_v20 = vld [vmem:[#allocation6 + $0x1508] sm:$0xff]  ;;  %v17868_v25 = vcombine.high %v1114_v18, %v1122_v19 }
 0x151   :  { %12890 = vmatprep.subr.bf16.mxu0 %v17502_v23  ;;  %v867_v22 = vld [vmem:[#allocation6 + $0x1548] sm:$0xff]  ;;  %v17851_v23 = vcombine.low %v1098_v8, %v1106_v10 }
 0x152   :  { %v17614_v26 = vcombine.high %v859_v20, %v867_v22  ;;  %v17613_v34 = vcombine.low %v859_v20, %v867_v22 }
 0x153   :  { %12604 = vmatpush1.bf16.msra.mxu1 %v17755_v29  ;;  %v1138_v29 = vld [vmem:[#allocation6 + $0x1dc0] sm:$0xff] }
 0x154   :  { %12891 = vmatpush1.bf16.msra.mxu0 %v17501_v30  ;;  %12605 = vmatprep.subr.bf16.mxu1 %v17772_v32  ;;  %v875_v30 = vld [vmem:[#allocation6 + $0x1588] sm:$0xff]  ;;  %v17884_v35 = vcombine.high %v1130_v27, %v1138_v29 }
 0x155   :  { %12892 = vmatprep.subr.bf16.mxu0 %v17518_v33  ;;  %v883_v32 = vld [vmem:[#allocation6 + $0x15c8] sm:$0xff]  ;;  %v17867_v33 = vcombine.low %v1114_v18, %v1122_v19  ;;  %v144_v18 = vld [vmem:[#allocation3 + $0x30] sm:$0xff] }
 0x156   :  { %v17630_v36 = vcombine.high %v875_v30, %v883_v32  ;;  %v17629_v44 = vcombine.low %v875_v30, %v883_v32 }
 0x157   :  { %12606 = vmatpush1.bf16.msra.mxu1 %v17771_v38  ;;  %v1154_v38 = vld [vmem:[#allocation6 + $0x1e40] sm:$0xff] }
 0x158   :  { %12893 = vmatpush1.bf16.msra.mxu0 %v17517_v40  ;;  %12607 = vmatprep.subr.bf16.mxu1 %v17788_v42  ;;  %v891_v40 = vld [vmem:[#allocation6 + $0x1608] sm:$0xff]  ;;  %v17900_v45 = vcombine.high %v1146_v37, %v1154_v38 }
 0x159   :  { %12894 = vmatprep.subr.bf16.mxu0 %v17534_v43  ;;  %v899_v42 = vld [vmem:[#allocation6 + $0x1648] sm:$0xff]  ;;  %v17883_v43 = vcombine.low %v1130_v27, %v1138_v29  ;;  %v149_v29 = vld [vmem:[#allocation3 + $0x58] sm:$0xff] }
 0x15a   :  { %v17646_v46 = vcombine.high %v891_v40, %v899_v42  ;;  %v17645_v53 = vcombine.low %v891_v40, %v899_v42  ;;  %v1235_v27 = vld [vmem:[#allocation6 + $0x20c8] sm:$0xff] }
 0x15b   :  { %12608 = vmatpush1.bf16.msra.mxu1 %v17787_v48  ;;  %v1170_v48 = vld [vmem:[#allocation6 + $0x1ec0] sm:$0xff]  ;;  %v1251_v40 = vld [vmem:[#allocation6 + $0x2148] sm:$0xff] }
 0x15c   :  { %12895 = vmatpush1.bf16.msra.mxu0 %v17533_v50  ;;  %12609 = vmatprep.subr.bf16.mxu1 %v17804_v51  ;;  %v907_v50 = vld [vmem:[#allocation6 + $0x1688] sm:$0xff]  ;;  %v17916_v54 = vcombine.high %v1162_v47, %v1170_v48 }
 0x15d   :  { %12896 = vmatprep.subr.bf16.mxu0 %v17550_v52  ;;  %v915_v51 = vld [vmem:[#allocation6 + $0x16c8] sm:$0xff]  ;;  %v17899_v52 = vcombine.low %v1146_v37, %v1154_v38  ;;  %v19945_v37 = vpack.c.bf16 %v149_v29, %v149_v29 }
 0x15e   :  { %v17662_v55 = vcombine.high %v907_v50, %v915_v51  ;;  %v17661_v63 = vcombine.low %v907_v50, %v915_v51  ;;  %v1243_v38 = vld [vmem:[#allocation6 + $0x2108] sm:$0xff] }
 0x15f   :  { %12610 = vmatpush1.bf16.msra.mxu1 %v17803_v58  ;;  %v1186_v58 = vld [vmem:[#allocation6 + $0x1f40] sm:$0xff]  ;;  %v1267_v50 = vld [vmem:[#allocation6 + $0x21c8] sm:$0xff] }
 0x160   :  { %12897 = vmatpush1.bf16.msra.mxu0 %v17549_v59  ;;  %12611 = vmatprep.subr.bf16.mxu1 %v17820_v60  ;;  %v923_v59 = vld [vmem:[#allocation6 + $0x1708] sm:$0xff]  ;;  %v17932_v1 = vcombine.high %v1178_v56, %v1186_v58 }
 0x161   :  { %12898 = vmatprep.subr.bf16.mxu0 %v17566_v62  ;;  %v931_v60 = vld [vmem:[#allocation6 + $0x1748] sm:$0xff]  ;;  %v17915_v62 = vcombine.low %v1162_v47, %v1170_v48  ;;  %v1522_v47 = vld [vmem:[#allocation6 + $0x29c0] sm:$0xff] }
 0x162   :  { %v17678_v2 = vcombine.high %v923_v59, %v931_v60  ;;  %v17677_v8 = vcombine.low %v923_v59, %v931_v60  ;;  %v1259_v48 = vld [vmem:[#allocation6 + $0x2188] sm:$0xff] }
 0x163   :  { %12612 = vmatpush1.bf16.msra.mxu1 %v17819_v4  ;;  %v1202_v4 = vld [vmem:[#allocation6 + $0x1fc0] sm:$0xff]  ;;  %v1283_v59 = vld [vmem:[#allocation6 + $0x2248] sm:$0xff] }
 0x164   :  { %12899 = vmatpush1.bf16.msra.mxu0 %v17565_v5  ;;  %12613 = vmatprep.subr.bf16.mxu1 %v17836_v6  ;;  %v939_v5 = vld [vmem:[#allocation6 + $0x1788] sm:$0xff]  ;;  %v17948_v10 = vcombine.high %v1194_v3, %v1202_v4 }
 0x165   :  { %12900 = vmatprep.subr.bf16.mxu0 %v17582_v7  ;;  %v947_v6 = vld [vmem:[#allocation6 + $0x17c8] sm:$0xff]  ;;  %v17931_v7 = vcombine.low %v1178_v56, %v1186_v58  ;;  %v1538_v56 = vld [vmem:[#allocation6 + $0x2a40] sm:$0xff] }
 0x166   :  { %v17694_v11 = vcombine.high %v939_v5, %v947_v6  ;;  %v17693_v19 = vcombine.low %v939_v5, %v947_v6  ;;  %v1275_v58 = vld [vmem:[#allocation6 + $0x2208] sm:$0xff] }
 0x167   :  { %12614 = vmatpush1.bf16.msra.mxu1 %v17835_v13  ;;  %v1474_v13 = vld [vmem:[#allocation6 + $0x2840] sm:$0xff]  ;;  %v1299_v5 = vld [vmem:[#allocation6 + $0x22c8] sm:$0xff] }
 0x168   :  { %12901 = vmatpush1.bf16.msra.mxu0 %v17581_v14  ;;  %12615 = vmatprep.subr.bf16.mxu1 %v17852_v15  ;;  %v1211_v14 = vld [vmem:[#allocation6 + $0x2008] sm:$0xff]  ;;  %v18220_v20 = vcombine.high %v1466_v12, %v1474_v13  ;;  %v18219_v30 = vcombine.low %v1466_v12, %v1474_v13  ;;  %v1570_v12 = vld [vmem:[#allocation6 + $0x2b40] sm:$0xff] }
 0x169   :  { %12902 = vmatprep.subr.bf16.mxu0 %v17598_v17  ;;  %v1219_v15 = vld [vmem:[#allocation6 + $0x2048] sm:$0xff]  ;;  %v17947_v17 = vcombine.low %v1194_v3, %v1202_v4  ;;  %v1554_v3 = vld [vmem:[#allocation6 + $0x2ac0] sm:$0xff] }
 0x16a   :  { %v17966_v22 = vcombine.high %v1211_v14, %v1219_v15  ;;  %v17965_v32 = vcombine.low %v1211_v14, %v1219_v15  ;;  %v1291_v4 = vld [vmem:[#allocation6 + $0x2288] sm:$0xff] }
 0x16b   :  { %12616 = vmatpush1.bf16.msra.mxu1 %v17851_v23  ;;  %v1482_v23 = vld [vmem:[#allocation6 + $0x2880] sm:$0xff]  ;;  %v1307_v13 = vld [vmem:[#allocation6 + $0x2308] sm:$0xff] }
 0x16c   :  { %12903 = vmatpush1.bf16.msra.mxu0 %v17597_v24  ;;  %12617 = vmatprep.subr.bf16.mxu1 %v17868_v25  ;;  %v1490_v24 = vld [vmem:[#allocation6 + $0x28c0] sm:$0xff]  ;;  %v19943_v25 = vpack.c.bf16 %v144_v18, %v144_v18  ;;  %v1315_v14 = vld [vmem:[#allocation6 + $0x2348] sm:$0xff] }
 0x16d   :  { %12904 = vmatprep.subr.bf16.mxu0 %v17614_v26  ;;  %v1227_v26 = vld [vmem:[#allocation6 + $0x2088] sm:$0xff]  ;;  %v18235_v42 = vcombine.low %v1482_v23, %v1490_v24 }
 0x16f   :  { %12618 = vmatpush1.bf16.msra.mxu1 %v17867_v33  ;;  %v18236_v33 = vcombine.high %v1482_v23, %v1490_v24  ;;  %v1586_v23 = vld [vmem:[#allocation6 + $0x2bc0] sm:$0xff] }
 0x170   :  { %12905 = vmatpush1.bf16.msra.mxu0 %v17613_v34  ;;  %12619 = vmatprep.subr.bf16.mxu1 %v17884_v35  ;;  %v17982_v34 = vcombine.high %v1227_v26, %v1235_v27  ;;  %v1498_v35 = vld [vmem:[#allocation6 + $0x2900] sm:$0xff] }
 0x171   :  { %12906 = vmatprep.subr.bf16.mxu0 %v17630_v36  ;;  %v1506_v36 = vld [vmem:[#allocation6 + $0x2940] sm:$0xff] }
 0x172   :  { %v18251_v51 = vcombine.low %v1498_v35, %v1506_v36 }
 0x173   :  { %12620 = vmatpush1.bf16.msra.mxu1 %v17883_v43  ;;  %v17981_v43 = vcombine.low %v1227_v26, %v1235_v27  ;;  %v1323_v26 = vld [vmem:[#allocation6 + $0x2388] sm:$0xff] }
 0x174   :  { %12907 = vmatpush1.bf16.msra.mxu0 %v17629_v44  ;;  %12621 = vmatprep.subr.bf16.mxu1 %v17900_v45  ;;  %v18252_v44 = vcombine.high %v1498_v35, %v1506_v36  ;;  %v17998_v45 = vcombine.high %v1243_v38, %v1251_v40  ;;  %v1331_v27 = vld [vmem:[#allocation6 + $0x23c8] sm:$0xff]  ;;  %v1594_v36 = vld [vmem:[#allocation6 + $0x2c00] sm:$0xff] }
 0x175   :  { %12908 = vmatprep.subr.bf16.mxu0 %v17646_v46  ;;  %v1514_v46 = vld [vmem:[#allocation6 + $0x2980] sm:$0xff]  ;;  %v18078_v35 = vcombine.high %v1323_v26, %v1331_v27 }
 0x176   :  { %v18267_v60 = vcombine.low %v1514_v46, %v1522_v47 }
 0x177   :  { %12622 = vmatpush1.bf16.msra.mxu1 %v17899_v52  ;;  %v17997_v52 = vcombine.low %v1243_v38, %v1251_v40  ;;  %v1602_v38 = vld [vmem:[#allocation6 + $0x2c40] sm:$0xff]  ;;  %v1339_v40 = vld [vmem:[#allocation6 + $0x2408] sm:$0xff] }
 0x178   :  { %12909 = vmatpush1.bf16.msra.mxu0 %v17645_v53  ;;  %12623 = vmatprep.subr.bf16.mxu1 %v17916_v54  ;;  %v18268_v53 = vcombine.high %v1514_v46, %v1522_v47  ;;  %v18014_v54 = vcombine.high %v1259_v48, %v1267_v50  ;;  %v1610_v47 = vld [vmem:[#allocation6 + $0x2c80] sm:$0xff] }
 0x179   :  { %12910 = vmatprep.subr.bf16.mxu0 %v17662_v55  ;;  %v1530_v55 = vld [vmem:[#allocation6 + $0x2a00] sm:$0xff] }
 0x17a   :  { %v18283_v6 = vcombine.low %v1530_v55, %v1538_v56 }
 0x17b   :  { %12624 = vmatpush1.bf16.msra.mxu1 %v17915_v62  ;;  %v18013_v62 = vcombine.low %v1259_v48, %v1267_v50  ;;  %v1618_v48 = vld [vmem:[#allocation6 + $0x2cc0] sm:$0xff]  ;;  %v1355_v50 = vld [vmem:[#allocation6 + $0x2488] sm:$0xff] }
 0x17c   :  { %12911 = vmatpush1.bf16.msra.mxu0 %v17661_v63  ;;  %12625 = vmatprep.subr.bf16.mxu1 %v17932_v1  ;;  %v18284_v63 = vcombine.high %v1530_v55, %v1538_v56  ;;  %v18030_v1 = vcombine.high %v1275_v58, %v1283_v59  ;;  %v1626_v56 = vld [vmem:[#allocation6 + $0x2d00] sm:$0xff] }
 0x17d   :  { %12912 = vmatprep.subr.bf16.mxu0 %v17678_v2  ;;  %v1546_v2 = vld [vmem:[#allocation6 + $0x2a80] sm:$0xff] }
 0x17e   :  { %v18299_v15 = vcombine.low %v1546_v2, %v1554_v3 }
 0x17f   :  { %12626 = vmatpush1.bf16.msra.mxu1 %v17931_v7  ;;  %v18029_v7 = vcombine.low %v1275_v58, %v1283_v59  ;;  %v1634_v58 = vld [vmem:[#allocation6 + $0x2d40] sm:$0xff]  ;;  %v1371_v59 = vld [vmem:[#allocation6 + $0x2508] sm:$0xff] }
 0x180   :  { %12913 = vmatpush1.bf16.msra.mxu0 %v17677_v8  ;;  %12627 = vmatprep.subr.bf16.mxu1 %v17948_v10  ;;  %v18300_v8 = vcombine.high %v1546_v2, %v1554_v3  ;;  %v18046_v10 = vcombine.high %v1291_v4, %v1299_v5  ;;  %v1642_v3 = vld [vmem:[#allocation6 + $0x2d80] sm:$0xff] }
 0x181   :  { %12914 = vmatprep.subr.bf16.mxu0 %v17694_v11  ;;  %v1562_v11 = vld [vmem:[#allocation6 + $0x2b00] sm:$0xff] }
 0x182   :  { %v18316_v18 = vcombine.high %v1562_v11, %v1570_v12 }
 0x183   :  { %12628 = vmatpush1.bf16.msra.mxu1 %v17947_v17  ;;  %v18045_v17 = vcombine.low %v1291_v4, %v1299_v5  ;;  %v1650_v4 = vld [vmem:[#allocation6 + $0x2dc0] sm:$0xff]  ;;  %v1387_v5 = vld [vmem:[#allocation6 + $0x2588] sm:$0xff] }
 0x184   :  { %12915 = vmatpush1.bf16.msra.mxu0 %v17693_v19  ;;  %12679 = vmatprep.subr.bf16.mxu1 %v18220_v20  ;;  %v18062_v20 = vcombine.high %v1307_v13, %v1315_v14 }
 0x185   :  { %12966 = vmatprep.subr.bf16.mxu0 %v17966_v22  ;;  %v1578_v22 = vld [vmem:[#allocation6 + $0x2b80] sm:$0xff] }
 0x186   :  { %12630 = vmatmul.mubr.bf16.vlgmr.msra.gmra.mrb[12].mxu1 %v19943_v25 }
 0x187   :  { %12680 = vmatpush1.bf16.msra.mxu1 %v18219_v30  ;;  %12917 = vmatmul.mubr.bf16.vlgmr.msra.gmra.mrb[12].mxu0 %v19935_v0  ;;  %v18315_v30 = vcombine.low %v1562_v11, %v1570_v12  ;;  %v1658_v12 = vld [vmem:[#allocation6 + $0x2e00] sm:$0xff] }
 0x188   :  { %12967 = vmatpush1.bf16.msra.mxu0 %v17965_v32  ;;  %12681 = vmatprep.subr.bf16.mxu1 %v18236_v33  ;;  %v18061_v33 = vcombine.low %v1307_v13, %v1315_v14  ;;  %v1666_v13 = vld [vmem:[#allocation6 + $0x2e40] sm:$0xff]  ;;  %v1403_v14 = vld [vmem:[#allocation6 + $0x2608] sm:$0xff] }
 0x189   :  { %12968 = vmatprep.subr.bf16.mxu0 %v17982_v34  ;;  %12711 = vmatprep.mubr.bf16.mxu1 %v19945_v37  ;;  %v18332_v34 = vcombine.high %v1578_v22, %v1586_v23 }
 0x18a   :  { %12998 = vmatprep.mubr.bf16.mxu0 %v19909_v61 }
 0x18b   :  { %12682 = vmatpush1.bf16.msra.mxu1 %v18235_v42  ;;  %v1347_v42 = vld [vmem:[#allocation6 + $0x2448] sm:$0xff] }
 0x18c   :  { %12969 = vmatpush1.bf16.msra.mxu0 %v17981_v43  ;;  %12683 = vmatprep.subr.bf16.mxu1 %v18252_v44  ;;  %v18331_v43 = vcombine.low %v1578_v22, %v1586_v23  ;;  %v18077_v44 = vcombine.low %v1323_v26, %v1331_v27  ;;  %v18094_v46 = vcombine.high %v1339_v40, %v1347_v42  ;;  %v1674_v23 = vld [vmem:[#allocation6 + $0x2e80] sm:$0xff]  ;;  %v1419_v27 = vld [vmem:[#allocation6 + $0x2688] sm:$0xff] }
 0x18d   :  { %12970 = vmatprep.subr.bf16.mxu0 %v17998_v45  ;;  %v18348_v45 = vcombine.high %v1594_v36, %v1602_v38  ;;  %v1682_v26 = vld [vmem:[#allocation6 + $0x2ec0] sm:$0xff] }
 0x18f   :  { %12684 = vmatpush1.bf16.msra.mxu1 %v18251_v51  ;;  %v1363_v51 = vld [vmem:[#allocation6 + $0x24c8] sm:$0xff] }
 0x190   :  { %12971 = vmatpush1.bf16.msra.mxu0 %v17997_v52  ;;  %12685 = vmatprep.subr.bf16.mxu1 %v18268_v53  ;;  %v18347_v52 = vcombine.low %v1594_v36, %v1602_v38  ;;  %v18093_v53 = vcombine.low %v1339_v40, %v1347_v42  ;;  %v18110_v55 = vcombine.high %v1355_v50, %v1363_v51  ;;  %v1690_v36 = vld [vmem:[#allocation6 + $0x2f00] sm:$0xff]  ;;  %v1435_v42 = vld [vmem:[#allocation6 + $0x2708] sm:$0xff] }
 0x191   :  { %12972 = vmatprep.subr.bf16.mxu0 %v18014_v54  ;;  %v18364_v54 = vcombine.high %v1610_v47, %v1618_v48  ;;  %v1698_v38 = vld [vmem:[#allocation6 + $0x2f40] sm:$0xff] }
 0x193   :  { %12686 = vmatpush1.bf16.msra.mxu1 %v18267_v60  ;;  %v1379_v60 = vld [vmem:[#allocation6 + $0x2548] sm:$0xff] }
 0x194   :  { %12973 = vmatpush1.bf16.msra.mxu0 %v18013_v62  ;;  %12687 = vmatprep.subr.bf16.mxu1 %v18284_v63  ;;  %v18363_v62 = vcombine.low %v1610_v47, %v1618_v48  ;;  %v18109_v63 = vcombine.low %v1355_v50, %v1363_v51  ;;  %v18126_v2 = vcombine.high %v1371_v59, %v1379_v60  ;;  %v1706_v51 = vld [vmem:[#allocation6 + $0x2f80] sm:$0xff] }
 0x195   :  { %12974 = vmatprep.subr.bf16.mxu0 %v18030_v1  ;;  %v18380_v1 = vcombine.high %v1626_v56, %v1634_v58  ;;  %v18444_v48 = vcombine.high %v1690_v36, %v1698_v38 }
 0x197   :  { %12688 = vmatpush1.bf16.msra.mxu1 %v18283_v6  ;;  %v1395_v6 = vld [vmem:[#allocation6 + $0x25c8] sm:$0xff] }
 0x198   :  { %12975 = vmatpush1.bf16.msra.mxu0 %v18029_v7  ;;  %12689 = vmatprep.subr.bf16.mxu1 %v18300_v8  ;;  %v18379_v7 = vcombine.low %v1626_v56, %v1634_v58  ;;  %v18125_v8 = vcombine.low %v1371_v59, %v1379_v60  ;;  %v18142_v11 = vcombine.high %v1387_v5, %v1395_v6  ;;  %v1978_v60 = vld [vmem:[#allocation6 + $0x3800] sm:$0xff] }
 0x199   :  { %v19951_v19 = vpop.f32.mrb[0].mxu1  ;;  %12976 = vmatprep.subr.bf16.mxu0 %v18046_v10  ;;  %v18396_v10 = vcombine.high %v1642_v3, %v1650_v4 }
 0x19a   :  { %v19953_v24 = vpop.f32.mrb[1].mxu1 }
 0x19b   :  { %v12512_v29 = vpop.f32.mrb[2].mxu1  ;;  %12690 = vmatpush1.bf16.msra.mxu1 %v18299_v15  ;;  %v1411_v15 = vld [vmem:[#allocation6 + $0x2648] sm:$0xff] }
 0x19c   :  { %12977 = vmatpush1.bf16.msra.mxu0 %v18045_v17  ;;  %v12513_v32 = vpop.f32.mrb[3].mxu1  ;;  %12691 = vmatprep.subr.bf16.mxu1 %v18316_v18  ;;  %v18395_v17 = vcombine.low %v1642_v3, %v1650_v4  ;;  %v18141_v18 = vcombine.low %v1387_v5, %v1395_v6  ;;  %v18158_v22 = vcombine.high %v1403_v14, %v1411_v15  ;;  %v1427_v29 = vld [vmem:[#allocation6 + $0x26c8] sm:$0xff]  ;;  %v148_v3 = vld [vmem:[#allocation3 + $0x50] sm:$0xff] }
 0x19d   :  { %12978 = vmatprep.subr.bf16.mxu0 %v18062_v20  ;;  %v18412_v20 = vcombine.high %v1658_v12, %v1666_v13  ;;  %v18157_v32 = vcombine.low %v1403_v14, %v1411_v15  ;;  %v18173_v47 = vcombine.low %v1419_v27, %v1427_v29 }
 0x19f   :  { %12692 = vmatpush1.bf16.msra.mxu1 %v18315_v30  ;;  %v18411_v30 = vcombine.low %v1658_v12, %v1666_v13  ;;  %v1747_v12 = vld [vmem:[#allocation6 + $0x30c8] sm:$0xff]  ;;  %v153_v13 = vld [vmem:[#allocation3 + $0x78] sm:$0xff] }
 0x1a0   :  { %12979 = vmatpush1.bf16.msra.mxu0 %v18061_v33  ;;  %12693 = vmatprep.subr.bf16.mxu1 %v18332_v34  ;;  %v18428_v33 = vcombine.high %v1674_v23, %v1682_v26  ;;  %v19955_v34 = vpop.f32.mrb[0].mxu0 }
 0x1a1   :  { %12980 = vmatprep.subr.bf16.mxu0 %v18078_v35  ;;  %v18174_v35 = vcombine.high %v1419_v27, %v1427_v29  ;;  %v19957_v40 = vpop.f32.mrb[1].mxu0  ;;  %v1763_v27 = vld [vmem:[#allocation6 + $0x3148] sm:$0xff] }
 0x1a3   :  { %12694 = vmatpush1.bf16.msra.mxu1 %v18331_v43  ;;  %v1443_v43 = vld [vmem:[#allocation6 + $0x2748] sm:$0xff] }
 0x1a4   :  { %12981 = vmatpush1.bf16.msra.mxu0 %v18077_v44  ;;  %12695 = vmatprep.subr.bf16.mxu1 %v18348_v45  ;;  %v12676_v44 = vpop.f32.mrb[2].mxu0  ;;  %v18427_v45 = vcombine.low %v1674_v23, %v1682_v26  ;;  %v18190_v50 = vcombine.high %v1435_v42, %v1443_v43  ;;  %v18189_v56 = vcombine.low %v1435_v42, %v1443_v43  ;;  %v1755_v26 = vld [vmem:[#allocation6 + $0x3108] sm:$0xff] }
 0x1a5   :  { %12982 = vmatprep.subr.bf16.mxu0 %v18094_v46  ;;  %v12677_v46 = vpop.f32.mrb[3].mxu0  ;;  %v19961_v23 = vpack.c.bf16 %v153_v13, %v153_v13  ;;  %v1779_v42 = vld [vmem:[#allocation6 + $0x31c8] sm:$0xff]  ;;  %v18509_v44 = vcombine.low %v1755_v26, %v1763_v27 }
 0x1a7   :  { %12696 = vmatpush1.bf16.msra.mxu1 %v18347_v52  ;;  %v1714_v52 = vld [vmem:[#allocation6 + $0x2fc0] sm:$0xff] }
 0x1a8   :  { %12983 = vmatpush1.bf16.msra.mxu0 %v18093_v53  ;;  %12697 = vmatprep.subr.bf16.mxu1 %v18364_v54  ;;  %v1451_v53 = vld [vmem:[#allocation6 + $0x2788] sm:$0xff]  ;;  %v18460_v58 = vcombine.high %v1706_v51, %v1714_v52 }
 0x1a9   :  { %12984 = vmatprep.subr.bf16.mxu0 %v18110_v55  ;;  %v1459_v54 = vld [vmem:[#allocation6 + $0x27c8] sm:$0xff]  ;;  %v18443_v55 = vcombine.low %v1690_v36, %v1698_v38  ;;  %v2034_v36 = vld [vmem:[#allocation6 + $0x39c0] sm:$0xff] }
 0x1aa   :  { %v18206_v59 = vcombine.high %v1451_v53, %v1459_v54  ;;  %v18205_v4 = vcombine.low %v1451_v53, %v1459_v54  ;;  %v1771_v38 = vld [vmem:[#allocation6 + $0x3188] sm:$0xff] }
 0x1ab   :  { %12698 = vmatpush1.bf16.msra.mxu1 %v18363_v62  ;;  %v1986_v62 = vld [vmem:[#allocation6 + $0x3840] sm:$0xff]  ;;  %v18526_v46 = vcombine.high %v1771_v38, %v1779_v42  ;;  %v18525_v53 = vcombine.low %v1771_v38, %v1779_v42  ;;  %v1859_v42 = vld [vmem:[#allocation6 + $0x3448] sm:$0xff] }
 0x1ac   :  { %12985 = vmatpush1.bf16.msra.mxu0 %v18109_v63  ;;  %12699 = vmatprep.subr.bf16.mxu1 %v18380_v1  ;;  %v1723_v63 = vld [vmem:[#allocation6 + $0x3008] sm:$0xff]  ;;  %v18732_v5 = vcombine.high %v1978_v60, %v1986_v62  ;;  %v18731_v14 = vcombine.low %v1978_v60, %v1986_v62  ;;  %v2114_v38 = vld [vmem:[#allocation6 + $0x3c40] sm:$0xff] }
 0x1ad   :  { %12986 = vmatprep.subr.bf16.mxu0 %v18126_v2  ;;  %v1731_v1 = vld [vmem:[#allocation6 + $0x3048] sm:$0xff]  ;;  %v18459_v2 = vcombine.low %v1706_v51, %v1714_v52 }
 0x1ae   :  { %v18478_v6 = vcombine.high %v1723_v63, %v1731_v1  ;;  %v18477_v15 = vcombine.low %v1723_v63, %v1731_v1  ;;  %v1795_v51 = vld [vmem:[#allocation6 + $0x3248] sm:$0xff] }
 0x1af   :  { %12700 = vmatpush1.bf16.msra.mxu1 %v18379_v7  ;;  %v1994_v7 = vld [vmem:[#allocation6 + $0x3880] sm:$0xff]  ;;  %v1811_v60 = vld [vmem:[#allocation6 + $0x32c8] sm:$0xff] }
 0x1b0   :  { %12987 = vmatpush1.bf16.msra.mxu0 %v18125_v8  ;;  %12701 = vmatprep.subr.bf16.mxu1 %v18396_v10  ;;  %v2002_v8 = vld [vmem:[#allocation6 + $0x38c0] sm:$0xff]  ;;  %v19959_v10 = vpack.c.bf16 %v148_v3, %v148_v3 }
 0x1b1   :  { %12988 = vmatprep.subr.bf16.mxu0 %v18142_v11  ;;  %v1739_v11 = vld [vmem:[#allocation6 + $0x3088] sm:$0xff]  ;;  %v18747_v29 = vcombine.low %v1994_v7, %v2002_v8  ;;  %v2074_v3 = vld [vmem:[#allocation6 + $0x3b00] sm:$0xff] }
 0x1b3   :  { %12702 = vmatpush1.bf16.msra.mxu1 %v18395_v17  ;;  %v18748_v17 = vcombine.high %v1994_v7, %v2002_v8 }
 0x1b4   :  { %12989 = vmatpush1.bf16.msra.mxu0 %v18141_v18  ;;  %12703 = vmatprep.subr.bf16.mxu1 %v18412_v20  ;;  %v18494_v18 = vcombine.high %v1739_v11, %v1747_v12  ;;  %v2010_v20 = vld [vmem:[#allocation6 + $0x3900] sm:$0xff] }
 0x1b5   :  { %12990 = vmatprep.subr.bf16.mxu0 %v18158_v22  ;;  %v2018_v22 = vld [vmem:[#allocation6 + $0x3940] sm:$0xff] }
 0x1b6   :  { %v18763_v43 = vcombine.low %v2010_v20, %v2018_v22 }
 0x1b7   :  { %12704 = vmatpush1.bf16.msra.mxu1 %v18411_v30  ;;  %v18493_v30 = vcombine.low %v1739_v11, %v1747_v12 }
 0x1b8   :  { %12991 = vmatpush1.bf16.msra.mxu0 %v18157_v32  ;;  %12705 = vmatprep.subr.bf16.mxu1 %v18428_v33  ;;  %v18764_v32 = vcombine.high %v2010_v20, %v2018_v22  ;;  %v18510_v33 = vcombine.high %v1755_v26, %v1763_v27  ;;  %v1835_v20 = vld [vmem:[#allocation6 + $0x3388] sm:$0xff] }
 0x1b9   :  { %12992 = vmatprep.subr.bf16.mxu0 %v18174_v35  ;;  %v2026_v35 = vld [vmem:[#allocation6 + $0x3980] sm:$0xff]  ;;  %v1843_v22 = vld [vmem:[#allocation6 + $0x33c8] sm:$0xff] }
 0x1ba   :  { %v18779_v52 = vcombine.low %v2026_v35, %v2034_v36 }
 0x1bb   :  { %12706 = vmatpush1.bf16.msra.mxu1 %v18427_v45  ;;  %v18780_v45 = vcombine.high %v2026_v35, %v2034_v36  ;;  %v18590_v35 = vcombine.high %v1835_v20, %v1843_v22  ;;  %v2106_v36 = vld [vmem:[#allocation6 + $0x3c00] sm:$0xff] }
 0x1bc   :  { %12993 = vmatpush1.bf16.msra.mxu0 %v18173_v47  ;;  %12707 = vmatprep.subr.bf16.mxu1 %v18444_v48  ;;  %v2042_v47 = vld [vmem:[#allocation6 + $0x3a00] sm:$0xff] }
 0x1bd   :  { %12994 = vmatprep.subr.bf16.mxu0 %v18190_v50  ;;  %v2050_v48 = vld [vmem:[#allocation6 + $0x3a40] sm:$0xff]  ;;  %v1787_v50 = vld [vmem:[#allocation6 + $0x3208] sm:$0xff] }
 0x1be   :  { %v18796_v54 = vcombine.high %v2042_v47, %v2050_v48  ;;  %v18795_v62 = vcombine.low %v2042_v47, %v2050_v48  ;;  %v18541_v63 = vcombine.low %v1787_v50, %v1795_v51  ;;  %v2130_v47 = vld [vmem:[#allocation6 + $0x3cc0] sm:$0xff]  ;;  %v1867_v48 = vld [vmem:[#allocation6 + $0x3488] sm:$0xff] }
 0x1bf   :  { %12708 = vmatpush1.bf16.msra.mxu1 %v18443_v55  ;;  %v18542_v55 = vcombine.high %v1787_v50, %v1795_v51  ;;  %v1875_v50 = vld [vmem:[#allocation6 + $0x34c8] sm:$0xff]  ;;  %v18859_v51 = vcombine.low %v2106_v36, %v2114_v38 }
 0x1c0   :  { %12995 = vmatpush1.bf16.msra.mxu0 %v18189_v56  ;;  %12709 = vmatprep.subr.bf16.mxu1 %v18460_v58  ;;  %v2058_v56 = vld [vmem:[#allocation6 + $0x3a80] sm:$0xff] }
 0x1c1   :  { %12996 = vmatprep.subr.bf16.mxu0 %v18206_v59  ;;  %v2066_v58 = vld [vmem:[#allocation6 + $0x3ac0] sm:$0xff]  ;;  %v1803_v59 = vld [vmem:[#allocation6 + $0x3288] sm:$0xff] }
 0x1c2   :  { %v18812_v1 = vcombine.high %v2058_v56, %v2066_v58  ;;  %v18811_v7 = vcombine.low %v2058_v56, %v2066_v58  ;;  %v18557_v8 = vcombine.low %v1803_v59, %v1811_v60  ;;  %v2146_v56 = vld [vmem:[#allocation6 + $0x3d40] sm:$0xff]  ;;  %v1883_v58 = vld [vmem:[#allocation6 + $0x3508] sm:$0xff] }
 0x1c3   :  { %12710 = vmatpush1.bf16.msra.mxu1 %v18459_v2  ;;  %v18558_v2 = vcombine.high %v1803_v59, %v1811_v60  ;;  %v1891_v59 = vld [vmem:[#allocation6 + $0x3548] sm:$0xff] }
 0x1c4   :  { %12997 = vmatpush1.bf16.msra.mxu0 %v18205_v4  ;;  %12761 = vmatprep.subr.bf16.mxu1 %v18732_v5  ;;  %v2082_v4 = vld [vmem:[#allocation6 + $0x3b40] sm:$0xff]  ;;  %v1819_v5 = vld [vmem:[#allocation6 + $0x3308] sm:$0xff] }
 0x1c5   :  { %13048 = vmatprep.subr.bf16.mxu0 %v18478_v6  ;;  %v1827_v6 = vld [vmem:[#allocation6 + $0x3348] sm:$0xff]  ;;  %v18828_v11 = vcombine.high %v2074_v3, %v2082_v4 }
 0x1c6   :  { %12712 = vmatmul.mubr.bf16.vlgmr.msra.gmra.mrb[16].mxu1 %v19959_v10  ;;  %v18574_v13 = vcombine.high %v1819_v5, %v1827_v6 }
 0x1c7   :  { %12762 = vmatpush1.bf16.msra.mxu1 %v18731_v14  ;;  %12999 = vmatmul.mubr.bf16.vlgmr.msra.gmra.mrb[16].mxu0 %v19915_v21  ;;  %v2090_v14 = vld [vmem:[#allocation6 + $0x3b80] sm:$0xff] }
 0x1c8   :  { %13049 = vmatpush1.bf16.msra.mxu0 %v18477_v15  ;;  %12763 = vmatprep.subr.bf16.mxu1 %v18748_v17  ;;  %v2098_v15 = vld [vmem:[#allocation6 + $0x3bc0] sm:$0xff] }
 0x1c9   :  { %13050 = vmatprep.subr.bf16.mxu0 %v18494_v18  ;;  %12793 = vmatprep.mubr.bf16.mxu1 %v19961_v23 }
 0x1ca   :  { %13080 = vmatprep.mubr.bf16.mxu0 %v19920_v31 }
 0x1cb   :  { %12764 = vmatpush1.bf16.msra.mxu1 %v18747_v29  ;;  %v18827_v29 = vcombine.low %v2074_v3, %v2082_v4  ;;  %v2162_v3 = vld [vmem:[#allocation6 + $0x3dc0] sm:$0xff]  ;;  %v1899_v4 = vld [vmem:[#allocation6 + $0x3588] sm:$0xff] }
 0x1cc   :  { %13051 = vmatpush1.bf16.msra.mxu0 %v18493_v30  ;;  %12765 = vmatprep.subr.bf16.mxu1 %v18764_v32  ;;  %v18573_v32 = vcombine.low %v1819_v5, %v1827_v6  ;;  %v1907_v5 = vld [vmem:[#allocation6 + $0x35c8] sm:$0xff] }
 0x1cd   :  { %13052 = vmatprep.subr.bf16.mxu0 %v18510_v33  ;;  %v18844_v33 = vcombine.high %v2090_v14, %v2098_v15 }
 0x1cf   :  { %12766 = vmatpush1.bf16.msra.mxu1 %v18763_v43  ;;  %v18843_v43 = vcombine.low %v2090_v14, %v2098_v15  ;;  %v1915_v14 = vld [vmem:[#allocation6 + $0x3608] sm:$0xff] }
 0x1d0   :  { %13053 = vmatpush1.bf16.msra.mxu0 %v18509_v44  ;;  %12767 = vmatprep.subr.bf16.mxu1 %v18780_v45  ;;  %v18860_v44 = vcombine.high %v2106_v36, %v2114_v38  ;;  %v1923_v15 = vld [vmem:[#allocation6 + $0x3648] sm:$0xff] }
 0x1d1   :  { %13054 = vmatprep.subr.bf16.mxu0 %v18526_v46  ;;  %v2122_v46 = vld [vmem:[#allocation6 + $0x3c80] sm:$0xff]  ;;  %v18669_v36 = vcombine.low %v1915_v14, %v1923_v15 }
 0x1d2   :  { %v18875_v60 = vcombine.low %v2122_v46, %v2130_v47 }
 0x1d3   :  { %12768 = vmatpush1.bf16.msra.mxu1 %v18779_v52 }
 0x1d4   :  { %13055 = vmatpush1.bf16.msra.mxu0 %v18525_v53  ;;  %12769 = vmatprep.subr.bf16.mxu1 %v18796_v54  ;;  %v18876_v53 = vcombine.high %v2122_v46, %v2130_v47  ;;  %v18622_v54 = vcombine.high %v1867_v48, %v1875_v50  ;;  %v1955_v46 = vld [vmem:[#allocation6 + $0x3748] sm:$0xff] }
 0x1d5   :  { %13056 = vmatprep.subr.bf16.mxu0 %v18542_v55  ;;  %v2138_v55 = vld [vmem:[#allocation6 + $0x3d00] sm:$0xff] }
 0x1d6   :  { %v18891_v6 = vcombine.low %v2138_v55, %v2146_v56 }
 0x1d7   :  { %12770 = vmatpush1.bf16.msra.mxu1 %v18795_v62  ;;  %v18621_v62 = vcombine.low %v1867_v48, %v1875_v50 }
 0x1d8   :  { %13057 = vmatpush1.bf16.msra.mxu0 %v18541_v63  ;;  %12771 = vmatprep.subr.bf16.mxu1 %v18812_v1  ;;  %v18892_v63 = vcombine.high %v2138_v55, %v2146_v56  ;;  %v18638_v1 = vcombine.high %v1883_v58, %v1891_v59  ;;  %v2226_v55 = vld [vmem:[#allocation6 + $0x3fc0] sm:$0xff]  ;;  %v1963_v56 = vld [vmem:[#allocation6 + $0x3788] sm:$0xff] }
 0x1d9   :  { %v12549_v12 = vpop.f32.mrb[4].mxu1  ;;  %13058 = vmatprep.subr.bf16.mxu0 %v18558_v2  ;;  %v2154_v2 = vld [vmem:[#allocation6 + $0x3d80] sm:$0xff] }
 0x1da   :  { %v19968_v17 = vadd.f32 %v12549_v12, %v19951_v19  ;;  %v12551_v18 = vpop.f32.mrb[5].mxu1  ;;  %v1851_v19 = vld [vmem:[#allocation6 + $0x3408] sm:$0xff]  ;;  %v2170_v12 = vld [vmem:[#allocation6 + $0x3e00] sm:$0xff] }
 0x1db   :  { %v19971_v26 = vadd.f32 %v12551_v18, %v19953_v24  ;;  %v12553_v27 = vpop.f32.mrb[6].mxu1  ;;  %12772 = vmatpush1.bf16.msra.mxu1 %v18811_v7  ;;  %v18589_v24 = vcombine.low %v1835_v20, %v1843_v22  ;;  %v18606_v45 = vcombine.high %v1851_v19, %v1859_v42  ;;  %v18605_v52 = vcombine.low %v1851_v19, %v1859_v42  ;;  %v19973_v19 = vpop.f32.mrb[4].mxu0 }
 0x1dc   :  { %13059 = vmatpush1.bf16.msra.mxu0 %v18557_v8  ;;  %v12554_v30 = vpop.f32.mrb[7].mxu1  ;;  %12773 = vmatprep.subr.bf16.mxu1 %v18828_v11  ;;  %v18637_v7 = vcombine.low %v1883_v58, %v1891_v59  ;;  %v18908_v8 = vcombine.high %v2154_v2, %v2162_v3  ;;  %v18654_v11 = vcombine.high %v1899_v4, %v1907_v5  ;;  %v1971_v58 = vld [vmem:[#allocation6 + $0x37c8] sm:$0xff] }
 0x1dd   :  { %13060 = vmatprep.subr.bf16.mxu0 %v18574_v13  ;;  %v2178_v13 = vld [vmem:[#allocation6 + $0x3e40] sm:$0xff]  ;;  %v18907_v18 = vcombine.low %v2154_v2, %v2162_v3  ;;  %v18653_v20 = vcombine.low %v1899_v4, %v1907_v5  ;;  %v18670_v27 = vcombine.high %v1915_v14, %v1923_v15  ;;  %v451_v2 = vld [vmem:[#allocation6 + $0x848] sm:$0xff]  ;;  %v188_v3 = vld [vmem:[#allocation6 + $0x10] sm:$0xff] }
 0x1de   :  { %v18924_v22 = vcombine.high %v2170_v12, %v2178_v13  ;;  %v2194_v30 = vld [vmem:[#allocation6 + $0x3ec0] sm:$0xff]  ;;  %v196_v4 = vld [vmem:[#allocation6 + $0x50] sm:$0xff] }
 0x1df   :  { %12774 = vmatpush1.bf16.msra.mxu1 %v18827_v29  ;;  %v2186_v29 = vld [vmem:[#allocation6 + $0x3e80] sm:$0xff]  ;;  %v204_v15 = vld [vmem:[#allocation6 + $0x90] sm:$0xff] }
 0x1e0   :  { %13061 = vmatpush1.bf16.msra.mxu0 %v18573_v32  ;;  %12775 = vmatprep.subr.bf16.mxu1 %v18844_v33  ;;  %v1931_v32 = vld [vmem:[#allocation6 + $0x3688] sm:$0xff]  ;;  %v18940_v38 = vcombine.high %v2186_v29, %v2194_v30  ;;  %v18939_v48 = vcombine.low %v2186_v29, %v2194_v30 }
 0x1e1   :  { %13062 = vmatprep.subr.bf16.mxu0 %v18590_v35  ;;  %v1939_v33 = vld [vmem:[#allocation6 + $0x36c8] sm:$0xff]  ;;  %v18923_v35 = vcombine.low %v2170_v12, %v2178_v13 }
 0x1e2   :  { %v18686_v42 = vcombine.high %v1931_v32, %v1939_v33  ;;  %v459_v12 = vld [vmem:[#allocation6 + $0x888] sm:$0xff] }
 0x1e3   :  { %12776 = vmatpush1.bf16.msra.mxu1 %v18843_v43  ;;  %v2202_v43 = vld [vmem:[#allocation6 + $0x3f00] sm:$0xff]  ;;  %v467_v13 = vld [vmem:[#allocation6 + $0x8c8] sm:$0xff] }
 0x1e4   :  { %13063 = vmatpush1.bf16.msra.mxu0 %v18589_v24  ;;  %12777 = vmatprep.subr.bf16.mxu1 %v18860_v44  ;;  %v2210_v24 = vld [vmem:[#allocation6 + $0x3f40] sm:$0xff]  ;;  %v19975_v44 = vpop.f32.mrb[5].mxu0  ;;  %v475_v30 = vld [vmem:[#allocation6 + $0x908] sm:$0xff] }
 0x1e5   :  { %13064 = vmatprep.subr.bf16.mxu0 %v18606_v45  ;;  %v1947_v45 = vld [vmem:[#allocation6 + $0x3708] sm:$0xff]  ;;  %v12758_v47 = vpop.f32.mrb[6].mxu0  ;;  %v18955_v59 = vcombine.low %v2202_v43, %v2210_v24 }
 0x1e6   :  { %v12759_v50 = vpop.f32.mrb[7].mxu0  ;;  %v244_v47 = vld [vmem:[#allocation6 + $0x1d0] sm:$0xff] }
 0x1e7   :  { %12778 = vmatpush1.bf16.msra.mxu1 %v18859_v51  ;;  %v18685_v51 = vcombine.low %v1931_v32, %v1939_v33  ;;  %v483_v32 = vld [vmem:[#allocation6 + $0x948] sm:$0xff]  ;;  %v220_v33 = vld [vmem:[#allocation6 + $0x110] sm:$0xff] }
 0x1e8   :  { %13065 = vmatpush1.bf16.msra.mxu0 %v18605_v52  ;;  %12779 = vmatprep.subr.bf16.mxu1 %v18876_v53  ;;  %v18956_v52 = vcombine.high %v2202_v43, %v2210_v24  ;;  %v18702_v53 = vcombine.high %v1947_v45, %v1955_v46  ;;  %v491_v24 = vld [vmem:[#allocation6 + $0x988] sm:$0xff] }
 0x1e9   :  { %13066 = vmatprep.subr.bf16.mxu0 %v18622_v54  ;;  %v2218_v54 = vld [vmem:[#allocation6 + $0x3f80] sm:$0xff] }
 0x1ea   :  { %v18971_v5 = vcombine.low %v2218_v54, %v2226_v55 }
 0x1eb   :  { %12780 = vmatpush1.bf16.msra.mxu1 %v18875_v60  ;;  %v18701_v60 = vcombine.low %v1947_v45, %v1955_v46  ;;  %v499_v45 = vld [vmem:[#allocation6 + $0x9c8] sm:$0xff]  ;;  %v236_v46 = vld [vmem:[#allocation6 + $0x190] sm:$0xff] }
 0x1ec   :  { %13067 = vmatpush1.bf16.msra.mxu0 %v18621_v62  ;;  %12781 = vmatprep.subr.bf16.mxu1 %v18892_v63  ;;  %v18972_v62 = vcombine.high %v2218_v54, %v2226_v55  ;;  %v18718_v63 = vcombine.high %v1963_v56, %v1971_v58  ;;  %v515_v54 = vld [vmem:[#allocation6 + $0xa48] sm:$0xff]  ;;  %v252_v55 = vld [vmem:[#allocation6 + $0x210] sm:$0xff] }
 0x1ed   :  { %13068 = vmatprep.subr.bf16.mxu0 %v18638_v1  ;;  %v443_v1 = vld [vmem:[#allocation6 + $0x808] sm:$0xff] }
 0x1ef   :  { %12782 = vmatpush1.bf16.msra.mxu1 %v18891_v6  ;;  %v152_v6 = vld [vmem:[#allocation3 + $0x70] sm:$0xff] }
 0x1f0   :  { %13069 = vmatpush1.bf16.msra.mxu0 %v18637_v7  ;;  %12783 = vmatprep.subr.bf16.mxu1 %v18908_v8  ;;  %v18717_v7 = vcombine.low %v1963_v56, %v1971_v58  ;;  %v17198_v8 = vcombine.high %v443_v1, %v451_v2  ;;  %v19977_v14 = vpack.c.bf16 %v152_v6, %v152_v6  ;;  %v260_v56 = vld [vmem:[#allocation6 + $0x250] sm:$0xff] }
 0x1f1   :  { %13070 = vmatprep.subr.bf16.mxu0 %v18654_v11  ;;  %v16944_v11 = vcombine.high %v188_v3, %v196_v4  ;;  %v17245_v58 = vcombine.low %v491_v24, %v499_v45 }
 0x1f3   :  { %12784 = vmatpush1.bf16.msra.mxu1 %v18907_v18  ;;  %v212_v18 = vld [vmem:[#allocation6 + $0xd0] sm:$0xff] }
 0x1f4   :  { %13071 = vmatpush1.bf16.msra.mxu0 %v18653_v20  ;;  %12785 = vmatprep.subr.bf16.mxu1 %v18924_v22  ;;  %v17197_v20 = vcombine.low %v443_v1, %v451_v2  ;;  %v16943_v22 = vcombine.low %v188_v3, %v196_v4  ;;  %v16960_v29 = vcombine.high %v204_v15, %v212_v18  ;;  %v531_v1 = vld [vmem:[#allocation6 + $0xac8] sm:$0xff]  ;;  %v268_v2 = vld [vmem:[#allocation6 + $0x290] sm:$0xff] }
 0x1f5   :  { %13072 = vmatprep.subr.bf16.mxu0 %v18670_v27  ;;  %v17214_v27 = vcombine.high %v459_v12, %v467_v13  ;;  %v276_v3 = vld [vmem:[#allocation6 + $0x2d0] sm:$0xff] }
 0x1f7   :  { %12786 = vmatpush1.bf16.msra.mxu1 %v18923_v35  ;;  %v228_v35 = vld [vmem:[#allocation6 + $0x150] sm:$0xff] }
 0x1f8   :  { %13073 = vmatpush1.bf16.msra.mxu0 %v18669_v36  ;;  %12787 = vmatprep.subr.bf16.mxu1 %v18940_v38  ;;  %v17213_v36 = vcombine.low %v459_v12, %v467_v13  ;;  %v16959_v38 = vcombine.low %v204_v15, %v212_v18  ;;  %v16976_v43 = vcombine.high %v220_v33, %v228_v35  ;;  %v284_v12 = vld [vmem:[#allocation6 + $0x310] sm:$0xff] }
 0x1f9   :  { %13074 = vmatprep.subr.bf16.mxu0 %v18686_v42  ;;  %v17230_v42 = vcombine.high %v475_v30, %v483_v32  ;;  %v16975_v50 = vcombine.low %v220_v33, %v228_v35  ;;  %v292_v13 = vld [vmem:[#allocation6 + $0x350] sm:$0xff]  ;;  %v17023_v18 = vcombine.low %v268_v2, %v276_v3 }
 0x1fa   :  { %v300_v35 = vld [vmem:[#allocation6 + $0x390] sm:$0xff] }
 0x1fb   :  { %12788 = vmatpush1.bf16.msra.mxu1 %v18939_v48  ;;  %v17229_v48 = vcombine.low %v475_v30, %v483_v32  ;;  %v563_v30 = vld [vmem:[#allocation6 + $0xbc8] sm:$0xff] }
 0x1fc   :  { %13075 = vmatpush1.bf16.msra.mxu0 %v18685_v51  ;;  %12789 = vmatprep.subr.bf16.mxu1 %v18956_v52  ;;  %v17246_v51 = vcombine.high %v491_v24, %v499_v45  ;;  %v16992_v52 = vcombine.high %v236_v46, %v244_v47  ;;  %v17039_v45 = vcombine.low %v284_v12, %v292_v13 }
 0x1fd   :  { %13076 = vmatprep.subr.bf16.mxu0 %v18702_v53  ;;  %v507_v53 = vld [vmem:[#allocation6 + $0xa08] sm:$0xff] }
 0x1fe   :  { %v17261_v4 = vcombine.low %v507_v53, %v515_v54 }
 0x1ff   :  { %12790 = vmatpush1.bf16.msra.mxu1 %v18955_v59  ;;  %v16991_v59 = vcombine.low %v236_v46, %v244_v47 }
 0x200   :  { %13077 = vmatpush1.bf16.msra.mxu0 %v18701_v60  ;;  %12791 = vmatprep.subr.bf16.mxu1 %v18972_v62  ;;  %v17262_v60 = vcombine.high %v507_v53, %v515_v54  ;;  %v17008_v62 = vcombine.high %v252_v55, %v260_v56 }
 0x201   :  { %13078 = vmatprep.subr.bf16.mxu0 %v18718_v63  ;;  %v523_v63 = vld [vmem:[#allocation6 + $0xa88] sm:$0xff] }
 0x202   :  { %v17278_v6 = vcombine.high %v523_v63, %v531_v1  ;;  %v17277_v15 = vcombine.low %v523_v63, %v531_v1 }
 0x203   :  { %12792 = vmatpush1.bf16.msra.mxu1 %v18971_v5  ;;  %v17007_v5 = vcombine.low %v252_v55, %v260_v56  ;;  %v587_v55 = vld [vmem:[#allocation6 + $0xc88] sm:$0xff] }
 0x204   :  { %13079 = vmatpush1.bf16.msra.mxu0 %v18717_v7  ;;  %12843 = vmatprep.subr.bf16.mxu1 %v17198_v8  ;;  %v17024_v7 = vcombine.high %v268_v2, %v276_v3  ;;  %v539_v8 = vld [vmem:[#allocation6 + $0xb08] sm:$0xff] }
 0x205   :  { %13130 = vmatprep.subr.bf16.mxu0 %v16944_v11  ;;  %v547_v11 = vld [vmem:[#allocation6 + $0xb48] sm:$0xff] }
 0x206   :  { %12794 = vmatmul.mubr.bf16.vlgmr.msra.gmra.mrb[20].mxu1 %v19977_v14  ;;  %v595_v56 = vld [vmem:[#allocation6 + $0xcc8] sm:$0xff] }
 0x207   :  { %12844 = vmatpush1.bf16.msra.mxu1 %v17197_v20  ;;  %13081 = vmatmul.mubr.bf16.vlgmr.msra.gmra.mrb[20].mxu0 %v19927_v41  ;;  %v17294_v20 = vcombine.high %v539_v8, %v547_v11  ;;  %v17342_v63 = vcombine.high %v587_v55, %v595_v56  ;;  %v603_v2 = vld [vmem:[#allocation6 + $0xd08] sm:$0xff] }
 0x208   :  { %13131 = vmatpush1.bf16.msra.mxu0 %v16943_v22  ;;  %12845 = vmatprep.subr.bf16.mxu1 %v17214_v27  ;;  %v17040_v27 = vcombine.high %v284_v12, %v292_v13  ;;  %v611_v3 = vld [vmem:[#allocation6 + $0xd48] sm:$0xff] }
 0x209   :  { %13132 = vmatprep.subr.bf16.mxu0 %v16960_v29  ;;  %12875 = vmatprep.mubr.bf16.mxu1 %v19917_v28  ;;  %v555_v29 = vld [vmem:[#allocation6 + $0xb88] sm:$0xff] }
 0x20a   :  { %13162 = vmatprep.mubr.bf16.mxu0 %v19907_v57  ;;  %v17310_v46 = vcombine.high %v555_v29, %v563_v30  ;;  %v619_v12 = vld [vmem:[#allocation6 + $0xd88] sm:$0xff] }
 0x20b   :  { %12846 = vmatpush1.bf16.msra.mxu1 %v17213_v36  ;;  %v308_v36 = vld [vmem:[#allocation6 + $0x3d0] sm:$0xff]  ;;  %v627_v13 = vld [vmem:[#allocation6 + $0xdc8] sm:$0xff] }
 0x20c   :  { %13133 = vmatpush1.bf16.msra.mxu0 %v16959_v38  ;;  %12847 = vmatprep.subr.bf16.mxu1 %v17230_v42  ;;  %v17056_v47 = vcombine.high %v300_v35, %v308_v36 }
 0x20d   :  { %13134 = vmatprep.subr.bf16.mxu0 %v16976_v43  ;;  %v17293_v43 = vcombine.low %v539_v8, %v547_v11  ;;  %v17358_v8 = vcombine.high %v603_v2, %v611_v3 }
 0x20f   :  { %12848 = vmatpush1.bf16.msra.mxu1 %v17229_v48  ;;  %v571_v48 = vld [vmem:[#allocation6 + $0xc08] sm:$0xff] }
 0x210   :  { %13135 = vmatpush1.bf16.msra.mxu0 %v16975_v50  ;;  %12849 = vmatprep.subr.bf16.mxu1 %v17246_v51  ;;  %v579_v50 = vld [vmem:[#allocation6 + $0xc48] sm:$0xff]  ;;  %v324_v51 = vld [vmem:[#allocation6 + $0x450] sm:$0xff] }
 0x211   :  { %13136 = vmatprep.subr.bf16.mxu0 %v16992_v52  ;;  %v17309_v52 = vcombine.low %v555_v29, %v563_v30  ;;  %v17326_v53 = vcombine.high %v571_v48, %v579_v50  ;;  %v635_v30 = vld [vmem:[#allocation6 + $0xe08] sm:$0xff] }
 0x213   :  { %12850 = vmatpush1.bf16.msra.mxu1 %v17245_v58  ;;  %v332_v58 = vld [vmem:[#allocation6 + $0x490] sm:$0xff] }
 0x214   :  { %13137 = vmatpush1.bf16.msra.mxu0 %v16991_v59  ;;  %12851 = vmatprep.subr.bf16.mxu1 %v17262_v60  ;;  %v340_v59 = vld [vmem:[#allocation6 + $0x4d0] sm:$0xff]  ;;  %v17325_v60 = vcombine.low %v571_v48, %v579_v50 }
 0x215   :  { %13138 = vmatprep.subr.bf16.mxu0 %v17008_v62  ;;  %v17088_v1 = vcombine.high %v332_v58, %v340_v59  ;;  %v396_v48 = vld [vmem:[#allocation6 + $0x690] sm:$0xff] }
 0x216   :  { %v404_v50 = vld [vmem:[#allocation6 + $0x6d0] sm:$0xff] }
 0x217   :  { %12852 = vmatpush1.bf16.msra.mxu1 %v17261_v4  ;;  %v348_v4 = vld [vmem:[#allocation6 + $0x510] sm:$0xff] }
 0x218   :  { %13139 = vmatpush1.bf16.msra.mxu0 %v17007_v5  ;;  %12853 = vmatprep.subr.bf16.mxu1 %v17278_v6  ;;  %v356_v5 = vld [vmem:[#allocation6 + $0x550] sm:$0xff]  ;;  %v17341_v6 = vcombine.low %v587_v55, %v595_v56  ;;  %v675_v55 = vld [vmem:[#allocation6 + $0xf48] sm:$0xff] }
 0x219   :  { %v12590_v22 = vpop.f32.mrb[8].mxu1  ;;  %13140 = vmatprep.subr.bf16.mxu0 %v17024_v7  ;;  %v17087_v7 = vcombine.low %v332_v58, %v340_v59  ;;  %v17104_v11 = vcombine.high %v348_v4, %v356_v5  ;;  %v412_v58 = vld [vmem:[#allocation6 + $0x710] sm:$0xff] }
 0x21a   :  { %v19984_v32 = vadd.f32 %v12590_v22, %v19968_v17  ;;  %v12592_v33 = vpop.f32.mrb[9].mxu1  ;;  %v316_v17 = vld [vmem:[#allocation6 + $0x410] sm:$0xff]  ;;  %v17103_v22 = vcombine.low %v348_v4, %v356_v5  ;;  %v683_v4 = vld [vmem:[#allocation6 + $0xf88] sm:$0xff] }
 0x21b   :  { %v19987_v38 = vadd.f32 %v12592_v33, %v19971_v26  ;;  %v12594_v42 = vpop.f32.mrb[10].mxu1  ;;  %12854 = vmatpush1.bf16.msra.mxu1 %v17277_v15  ;;  %v17055_v26 = vcombine.low %v300_v35, %v308_v36  ;;  %v17072_v54 = vcombine.high %v316_v17, %v324_v51  ;;  %v17071_v62 = vcombine.low %v316_v17, %v324_v51  ;;  %v364_v15 = vld [vmem:[#allocation6 + $0x590] sm:$0xff]  ;;  %v643_v33 = vld [vmem:[#allocation6 + $0xe48] sm:$0xff] }
 0x21c   :  { %13141 = vmatpush1.bf16.msra.mxu0 %v17023_v18  ;;  %v12595_v24 = vpop.f32.mrb[11].mxu1  ;;  %12855 = vmatprep.subr.bf16.mxu1 %v17294_v20  ;;  %v372_v18 = vld [vmem:[#allocation6 + $0x5d0] sm:$0xff]  ;;  %v17357_v20 = vcombine.low %v603_v2, %v611_v3  ;;  %v17373_v42 = vcombine.low %v619_v12, %v627_v13  ;;  %v17389_v17 = vcombine.low %v635_v30, %v643_v33  ;;  %v691_v5 = vld [vmem:[#allocation6 + $0xfc8] sm:$0xff] }
 0x21d   :  { %13142 = vmatprep.subr.bf16.mxu0 %v17040_v27  ;;  %v17374_v27 = vcombine.high %v619_v12, %v627_v13  ;;  %v17120_v29 = vcombine.high %v364_v15, %v372_v18  ;;  %v380_v35 = vld [vmem:[#allocation6 + $0x610] sm:$0xff]  ;;  %v17390_v24 = vcombine.high %v635_v30, %v643_v33  ;;  %v17438_v12 = vcombine.high %v683_v4, %v691_v5 }
 0x21e   :  { %v388_v36 = vld [vmem:[#allocation6 + $0x650] sm:$0xff] }
 0x21f   :  { %12856 = vmatpush1.bf16.msra.mxu1 %v17293_v43  ;;  %v17119_v43 = vcombine.low %v364_v15, %v372_v18  ;;  %v17135_v51 = vcombine.low %v380_v35, %v388_v36  ;;  %v420_v59 = vld [vmem:[#allocation6 + $0x750] sm:$0xff]  ;;  %v955_v15 = vld [vmem:[#allocation6 + $0x1808] sm:$0xff] }
 0x220   :  { %13143 = vmatpush1.bf16.msra.mxu0 %v17039_v45  ;;  %12857 = vmatprep.subr.bf16.mxu1 %v17310_v46  ;;  %v17136_v45 = vcombine.high %v380_v35, %v388_v36  ;;  %v651_v46 = vld [vmem:[#allocation6 + $0xe88] sm:$0xff]  ;;  %v17168_v3 = vcombine.high %v412_v58, %v420_v59 }
 0x221   :  { %13144 = vmatprep.subr.bf16.mxu0 %v17056_v47  ;;  %v659_v47 = vld [vmem:[#allocation6 + $0xec8] sm:$0xff] }
 0x222   :  { %v963_v18 = vld [vmem:[#allocation6 + $0x1848] sm:$0xff] }
 0x223   :  { %12858 = vmatpush1.bf16.msra.mxu1 %v17309_v52  ;;  %v17406_v52 = vcombine.high %v651_v46, %v659_v47  ;;  %v17710_v30 = vcombine.high %v955_v15, %v963_v18  ;;  %v971_v35 = vld [vmem:[#allocation6 + $0x1888] sm:$0xff] }
 0x224   :  { %13145 = vmatpush1.bf16.msra.mxu0 %v17055_v26  ;;  %12859 = vmatprep.subr.bf16.mxu1 %v17326_v53  ;;  %v19989_v26 = vpop.f32.mrb[8].mxu0  ;;  %v17152_v53 = vcombine.high %v396_v48, %v404_v50  ;;  %v979_v36 = vld [vmem:[#allocation6 + $0x18c8] sm:$0xff] }
 0x225   :  { %13146 = vmatprep.subr.bf16.mxu0 %v17072_v54  ;;  %v667_v54 = vld [vmem:[#allocation6 + $0xf08] sm:$0xff]  ;;  %v19991_v56 = vpop.f32.mrb[9].mxu0 }
 0x226   :  { %v17422_v2 = vcombine.high %v667_v54, %v675_v55 }
 0x227   :  { %12860 = vmatpush1.bf16.msra.mxu1 %v17325_v60  ;;  %v12840_v60 = vpop.f32.mrb[10].mxu0 }
 0x228   :  { %13147 = vmatpush1.bf16.msra.mxu0 %v17071_v62  ;;  %12861 = vmatprep.subr.bf16.mxu1 %v17342_v63  ;;  %v17405_v62 = vcombine.low %v651_v46, %v659_v47  ;;  %v12841_v63 = vpop.f32.mrb[11].mxu0  ;;  %v17726_v46 = vcombine.high %v971_v35, %v979_v36  ;;  %v748_v60 = vld [vmem:[#allocation6 + $0x1190] sm:$0xff] }
 0x229   :  { %13148 = vmatprep.subr.bf16.mxu0 %v17088_v1  ;;  %v17151_v1 = vcombine.low %v396_v48, %v404_v50  ;;  %v987_v48 = vld [vmem:[#allocation6 + $0x1908] sm:$0xff] }
 0x22a   :  { %v995_v50 = vld [vmem:[#allocation6 + $0x1948] sm:$0xff] }
 0x22b   :  { %12862 = vmatpush1.bf16.msra.mxu1 %v17341_v6  ;;  %v428_v6 = vld [vmem:[#allocation6 + $0x790] sm:$0xff]  ;;  %v17741_v63 = vcombine.low %v987_v48, %v995_v50 }
 0x22c   :  { %13149 = vmatpush1.bf16.msra.mxu0 %v17087_v7  ;;  %12863 = vmatprep.subr.bf16.mxu1 %v17358_v8  ;;  %v436_v7 = vld [vmem:[#allocation6 + $0x7d0] sm:$0xff]  ;;  %v17421_v8 = vcombine.low %v667_v54, %v675_v55  ;;  %v17742_v54 = vcombine.high %v987_v48, %v995_v50  ;;  %v1067_v50 = vld [vmem:[#allocation6 + $0x1b88] sm:$0xff] }
 0x22d   :  { %13150 = vmatprep.subr.bf16.mxu0 %v17104_v11  ;;  %v17167_v11 = vcombine.low %v412_v58, %v420_v59  ;;  %v17184_v13 = vcombine.high %v428_v6, %v436_v7  ;;  %v1003_v58 = vld [vmem:[#allocation6 + $0x1988] sm:$0xff] }
 0x22e   :  { %v1011_v59 = vld [vmem:[#allocation6 + $0x19c8] sm:$0xff] }
 0x22f   :  { %12864 = vmatpush1.bf16.msra.mxu1 %v17357_v20  ;;  %v700_v20 = vld [vmem:[#allocation6 + $0x1010] sm:$0xff] }
 0x230   :  { %13151 = vmatpush1.bf16.msra.mxu0 %v17103_v22  ;;  %12865 = vmatprep.subr.bf16.mxu1 %v17374_v27  ;;  %v708_v22 = vld [vmem:[#allocation6 + $0x1050] sm:$0xff]  ;;  %v17437_v27 = vcombine.low %v683_v4, %v691_v5  ;;  %v1019_v4 = vld [vmem:[#allocation6 + $0x1a08] sm:$0xff] }
 0x231   :  { %13152 = vmatprep.subr.bf16.mxu0 %v17120_v29  ;;  %v17183_v29 = vcombine.low %v428_v6, %v436_v7  ;;  %v17456_v33 = vcombine.high %v700_v20, %v708_v22  ;;  %v1027_v5 = vld [vmem:[#allocation6 + $0x1a48] sm:$0xff]  ;;  %v764_v6 = vld [vmem:[#allocation6 + $0x1210] sm:$0xff] }
 0x232   :  { %v772_v7 = vld [vmem:[#allocation6 + $0x1250] sm:$0xff] }
 0x233   :  { %12866 = vmatpush1.bf16.msra.mxu1 %v17373_v42  ;;  %v716_v42 = vld [vmem:[#allocation6 + $0x1090] sm:$0xff] }
 0x234   :  { %13153 = vmatpush1.bf16.msra.mxu0 %v17119_v43  ;;  %12867 = vmatprep.subr.bf16.mxu1 %v17390_v24  ;;  %v724_v43 = vld [vmem:[#allocation6 + $0x10d0] sm:$0xff]  ;;  %v17709_v24 = vcombine.low %v955_v15, %v963_v18  ;;  %v1035_v15 = vld [vmem:[#allocation6 + $0x1a88] sm:$0xff] }
 0x235   :  { %13154 = vmatprep.subr.bf16.mxu0 %v17136_v45  ;;  %v17455_v45 = vcombine.low %v700_v20, %v708_v22  ;;  %v17472_v47 = vcombine.high %v716_v42, %v724_v43  ;;  %v1043_v18 = vld [vmem:[#allocation6 + $0x1ac8] sm:$0xff]  ;;  %v780_v20 = vld [vmem:[#allocation6 + $0x1290] sm:$0xff] }
 0x236   :  { %v788_v22 = vld [vmem:[#allocation6 + $0x12d0] sm:$0xff] }
 0x237   :  { %12868 = vmatpush1.bf16.msra.mxu1 %v17389_v17  ;;  %v732_v17 = vld [vmem:[#allocation6 + $0x1110] sm:$0xff] }
 0x238   :  { %13155 = vmatpush1.bf16.msra.mxu0 %v17135_v51  ;;  %12869 = vmatprep.subr.bf16.mxu1 %v17406_v52  ;;  %v740_v51 = vld [vmem:[#allocation6 + $0x1150] sm:$0xff]  ;;  %v17725_v52 = vcombine.low %v971_v35, %v979_v36  ;;  %v1051_v35 = vld [vmem:[#allocation6 + $0x1b08] sm:$0xff] }
 0x239   :  { %13156 = vmatprep.subr.bf16.mxu0 %v17152_v53  ;;  %v17471_v53 = vcombine.low %v716_v42, %v724_v43  ;;  %v17488_v55 = vcombine.high %v732_v17, %v740_v51  ;;  %v1059_v36 = vld [vmem:[#allocation6 + $0x1b48] sm:$0xff]  ;;  %v796_v42 = vld [vmem:[#allocation6 + $0x1310] sm:$0xff] }
 0x23a   :  { %v804_v43 = vld [vmem:[#allocation6 + $0x1350] sm:$0xff] }
 0x23b   :  { %12870 = vmatpush1.bf16.msra.mxu1 %v17405_v62  ;;  %v756_v62 = vld [vmem:[#allocation6 + $0x11d0] sm:$0xff]  ;;  %v17552_v48 = vcombine.high %v796_v42, %v804_v43 }
 0x23c   :  { %13157 = vmatpush1.bf16.msra.mxu0 %v17151_v1  ;;  %12871 = vmatprep.subr.bf16.mxu1 %v17422_v2  ;;  %v17487_v1 = vcombine.low %v732_v17, %v740_v51  ;;  %v17758_v2 = vcombine.high %v1003_v58, %v1011_v59  ;;  %v1075_v17 = vld [vmem:[#allocation6 + $0x1bc8] sm:$0xff] }
 0x23d   :  { %13158 = vmatprep.subr.bf16.mxu0 %v17168_v3  ;;  %v17504_v3 = vcombine.high %v748_v60, %v756_v62 }
 0x23f   :  { %12872 = vmatpush1.bf16.msra.mxu1 %v17421_v8  ;;  %v17757_v8 = vcombine.low %v1003_v58, %v1011_v59  ;;  %v17805_v59 = vcombine.low %v1051_v35, %v1059_v36 }
 0x240   :  { %13159 = vmatpush1.bf16.msra.mxu0 %v17167_v11  ;;  %12873 = vmatprep.subr.bf16.mxu1 %v17438_v12  ;;  %v17503_v11 = vcombine.low %v748_v60, %v756_v62  ;;  %v17774_v12 = vcombine.high %v1019_v4, %v1027_v5  ;;  %v17551_v62 = vcombine.low %v796_v42, %v804_v43 }
 0x241   :  { %13160 = vmatprep.subr.bf16.mxu0 %v17184_v13  ;;  %v17520_v13 = vcombine.high %v764_v6, %v772_v7 }
 0x243   :  { %12874 = vmatpush1.bf16.msra.mxu1 %v17437_v27  ;;  %v17773_v27 = vcombine.low %v1019_v4, %v1027_v5  ;;  %v828_v5 = vld [vmem:[#allocation6 + $0x1410] sm:$0xff] }
 0x244   :  { %13161 = vmatpush1.bf16.msra.mxu0 %v17183_v29  ;;  %12925 = vmatprep.subr.bf16.mxu1 %v17710_v30  ;;  %v17519_v29 = vcombine.low %v764_v6, %v772_v7  ;;  %v17790_v30 = vcombine.high %v1035_v15, %v1043_v18  ;;  %v17821_v6 = vcombine.low %v1067_v50, %v1075_v17 }
 0x245   :  { %13212 = vmatprep.subr.bf16.mxu0 %v17456_v33  ;;  %v17536_v33 = vcombine.high %v780_v20, %v788_v22 }
 0x246   :  { %12876 = vmatmul.mubr.bf16.vlgmr.msra.gmra.mrb[24].mxu1 %v19925_v39 }
 0x247   :  { %12926 = vmatpush1.bf16.msra.mxu1 %v17709_v24  ;;  %13163 = vmatmul.mubr.bf16.vlgmr.msra.gmra.mrb[24].mxu0 %v19913_v16  ;;  %v17789_v24 = vcombine.low %v1035_v15, %v1043_v18  ;;  %v852_v15 = vld [vmem:[#allocation6 + $0x14d0] sm:$0xff] }
 0x248   :  { %13213 = vmatpush1.bf16.msra.mxu0 %v17455_v45  ;;  %12927 = vmatprep.subr.bf16.mxu1 %v17726_v46  ;;  %v17535_v45 = vcombine.low %v780_v20, %v788_v22  ;;  %v17806_v46 = vcombine.high %v1051_v35, %v1059_v36 }
 0x249   :  { %13214 = vmatprep.subr.bf16.mxu0 %v17472_v47  ;;  %12957 = vmatprep.mubr.bf16.mxu1 %v19937_v9 }
 0x24a   :  { %13244 = vmatprep.mubr.bf16.mxu0 %v19929_v49 }
 0x24b   :  { %12928 = vmatpush1.bf16.msra.mxu1 %v17725_v52 }
 0x24c   :  { %13215 = vmatpush1.bf16.msra.mxu0 %v17471_v53  ;;  %12929 = vmatprep.subr.bf16.mxu1 %v17742_v54  ;;  %v812_v53 = vld [vmem:[#allocation6 + $0x1390] sm:$0xff] }
 0x24d   :  { %13216 = vmatprep.subr.bf16.mxu0 %v17488_v55  ;;  %v820_v54 = vld [vmem:[#allocation6 + $0x13d0] sm:$0xff] }
 0x24e   :  { %v17567_v7 = vcombine.low %v812_v53, %v820_v54 }
 0x24f   :  { %12930 = vmatpush1.bf16.msra.mxu1 %v17741_v63  ;;  %v17822_v63 = vcombine.high %v1067_v50, %v1075_v17 }
 0x250   :  { %13217 = vmatpush1.bf16.msra.mxu0 %v17487_v1  ;;  %12931 = vmatprep.subr.bf16.mxu1 %v17758_v2  ;;  %v17568_v2 = vcombine.high %v812_v53, %v820_v54  ;;  %v1155_v53 = vld [vmem:[#allocation6 + $0x1e48] sm:$0xff]  ;;  %v892_v54 = vld [vmem:[#allocation6 + $0x1610] sm:$0xff] }
 0x251   :  { %13218 = vmatprep.subr.bf16.mxu0 %v17504_v3  ;;  %v1083_v3 = vld [vmem:[#allocation6 + $0x1c08] sm:$0xff] }
 0x253   :  { %12932 = vmatpush1.bf16.msra.mxu1 %v17757_v8 }
 0x254   :  { %13219 = vmatpush1.bf16.msra.mxu0 %v17503_v11  ;;  %12933 = vmatprep.subr.bf16.mxu1 %v17774_v12  ;;  %v1099_v12 = vld [vmem:[#allocation6 + $0x1c88] sm:$0xff] }
 0x255   :  { %13220 = vmatprep.subr.bf16.mxu0 %v17520_v13  ;;  %v844_v13 = vld [vmem:[#allocation6 + $0x1490] sm:$0xff] }
 0x256   :  { %v17600_v22 = vcombine.high %v844_v13, %v852_v15  ;;  %v17599_v36 = vcombine.low %v844_v13, %v852_v15  ;;  %v924_v13 = vld [vmem:[#allocation6 + $0x1710] sm:$0xff] }
 0x257   :  { %12934 = vmatpush1.bf16.msra.mxu1 %v17773_v27  ;;  %v1115_v27 = vld [vmem:[#allocation6 + $0x1d08] sm:$0xff]  ;;  %v932_v15 = vld [vmem:[#allocation6 + $0x1750] sm:$0xff] }
 0x258   :  { %13221 = vmatpush1.bf16.msra.mxu0 %v17519_v29  ;;  %12935 = vmatprep.subr.bf16.mxu1 %v17790_v30  ;;  %v1123_v29 = vld [vmem:[#allocation6 + $0x1d48] sm:$0xff]  ;;  %v860_v30 = vld [vmem:[#allocation6 + $0x1510] sm:$0xff] }
 0x259   :  { %v12631_v47 = vpop.f32.mrb[12].mxu1  ;;  %13222 = vmatprep.subr.bf16.mxu0 %v17536_v33  ;;  %v868_v33 = vld [vmem:[#allocation6 + $0x1550] sm:$0xff]  ;;  %v17870_v42 = vcombine.high %v1115_v27, %v1123_v29 }
 0x25a   :  { %v12632_v51 = vadd.f32 %v12631_v47, %v19984_v32  ;;  %v12633_v52 = vpop.f32.mrb[13].mxu1  ;;  %v1091_v32 = vld [vmem:[#allocation6 + $0x1c48] sm:$0xff]  ;;  %v17616_v43 = vcombine.high %v860_v30, %v868_v33  ;;  %v884_v47 = vld [vmem:[#allocation6 + $0x15d0] sm:$0xff]  ;;  %v17615_v50 = vcombine.low %v860_v30, %v868_v33 }
 0x25b   :  { %v12634_v55 = vadd.f32 %v12633_v52, %v19987_v38  ;;  %v12635_v58 = vpop.f32.mrb[14].mxu1  ;;  %12936 = vmatpush1.bf16.msra.mxu1 %v17789_v24  ;;  %v836_v38 = vld [vmem:[#allocation6 + $0x1450] sm:$0xff]  ;;  %v17838_v8 = vcombine.high %v1083_v3, %v1091_v32  ;;  %v17837_v18 = vcombine.low %v1083_v3, %v1091_v32  ;;  %v1131_v24 = vld [vmem:[#allocation6 + $0x1d88] sm:$0xff] }
 0x25c   :  { %13223 = vmatpush1.bf16.msra.mxu0 %v17535_v45  ;;  %v12636_v60 = vpop.f32.mrb[15].mxu1  ;;  %12937 = vmatprep.subr.bf16.mxu1 %v17806_v46  ;;  %v20000_v1 = vadd.f32 %v19955_v34, %v12632_v51  ;;  %v17584_v11 = vcombine.high %v828_v5, %v836_v38  ;;  %v1107_v34 = vld [vmem:[#allocation6 + $0x1cc8] sm:$0xff]  ;;  %v876_v46 = vld [vmem:[#allocation6 + $0x1590] sm:$0xff] }
 0x25d   :  { %13224 = vmatprep.subr.bf16.mxu0 %v17552_v48  ;;  %v20003_v4 = vadd.f32 %v19957_v40, %v12634_v55  ;;  %v17583_v40 = vcombine.low %v828_v5, %v836_v38  ;;  %v17854_v20 = vcombine.high %v1099_v12, %v1107_v34  ;;  %v17853_v35 = vcombine.low %v1099_v12, %v1107_v34  ;;  %v1139_v45 = vld [vmem:[#allocation6 + $0x1dc8] sm:$0xff]  ;;  %v900_v55 = vld [vmem:[#allocation6 + $0x1650] sm:$0xff] }
 0x25e   :  { %v17869_v48 = vcombine.low %v1115_v27, %v1123_v29  ;;  %v17886_v17 = vcombine.high %v1131_v24, %v1139_v45  ;;  %v17632_v51 = vcombine.high %v876_v46, %v884_v47  ;;  %v1147_v52 = vld [vmem:[#allocation6 + $0x1e08] sm:$0xff]  ;;  %v17885_v58 = vcombine.low %v1131_v24, %v1139_v45  ;;  %v908_v3 = vld [vmem:[#allocation6 + $0x1690] sm:$0xff] }
 0x25f   :  { %12938 = vmatpush1.bf16.msra.mxu1 %v17805_v59  ;;  %v17631_v59 = vcombine.low %v876_v46, %v884_v47  ;;  %v17902_v60 = vcombine.high %v1147_v52, %v1155_v53  ;;  %v916_v32 = vld [vmem:[#allocation6 + $0x16d0] sm:$0xff]  ;;  %v17901_v5 = vcombine.low %v1147_v52, %v1155_v53  ;;  %v17647_v38 = vcombine.low %v892_v54, %v900_v55  ;;  %v1187_v12 = vld [vmem:[#allocation6 + $0x1f48] sm:$0xff] }
 0x260   :  { %13225 = vmatpush1.bf16.msra.mxu0 %v17551_v62  ;;  %12939 = vmatprep.subr.bf16.mxu1 %v17822_v63  ;;  %v17648_v62 = vcombine.high %v892_v54, %v900_v55  ;;  %v1163_v63 = vld [vmem:[#allocation6 + $0x1e88] sm:$0xff]  ;;  %v17680_v29 = vcombine.high %v924_v13, %v932_v15 }
 0x261   :  { %13226 = vmatprep.subr.bf16.mxu0 %v17568_v2  ;;  %v1171_v2 = vld [vmem:[#allocation6 + $0x1ec8] sm:$0xff] }
 0x262   :  { %v1195_v30 = vld [vmem:[#allocation6 + $0x1f88] sm:$0xff] }
 0x263   :  { %12940 = vmatpush1.bf16.msra.mxu1 %v17821_v6  ;;  %v17918_v6 = vcombine.high %v1163_v63, %v1171_v2  ;;  %v1203_v33 = vld [vmem:[#allocation6 + $0x1fc8] sm:$0xff] }
 0x264   :  { %13227 = vmatpush1.bf16.msra.mxu0 %v17567_v7  ;;  %12941 = vmatprep.subr.bf16.mxu1 %v17838_v8  ;;  %v20005_v7 = vpop.f32.mrb[12].mxu0  ;;  %v17664_v8 = vcombine.high %v908_v3, %v916_v32  ;;  %v17950_v24 = vcombine.high %v1195_v30, %v1203_v33  ;;  %v1467_v46 = vld [vmem:[#allocation6 + $0x2808] sm:$0xff] }
 0x265   :  { %13228 = vmatprep.subr.bf16.mxu0 %v17584_v11  ;;  %v1179_v11 = vld [vmem:[#allocation6 + $0x1f08] sm:$0xff]  ;;  %v20007_v34 = vpop.f32.mrb[13].mxu0 }
 0x266   :  { %v17934_v27 = vcombine.high %v1179_v11, %v1187_v12  ;;  %v1475_v47 = vld [vmem:[#allocation6 + $0x2848] sm:$0xff] }
 0x267   :  { %12942 = vmatpush1.bf16.msra.mxu1 %v17837_v18  ;;  %v12922_v18 = vpop.f32.mrb[14].mxu0  ;;  %v18222_v52 = vcombine.high %v1467_v46, %v1475_v47  ;;  %v1483_v54 = vld [vmem:[#allocation6 + $0x2888] sm:$0xff] }
 0x268   :  { %13229 = vmatpush1.bf16.msra.mxu0 %v17583_v40  ;;  %12943 = vmatprep.subr.bf16.mxu1 %v17854_v20  ;;  %v17917_v40 = vcombine.low %v1163_v63, %v1171_v2  ;;  %v12923_v20 = vpop.f32.mrb[15].mxu0  ;;  %v1491_v55 = vld [vmem:[#allocation6 + $0x28c8] sm:$0xff]  ;;  %v1260_v18 = vld [vmem:[#allocation6 + $0x2190] sm:$0xff] }
 0x269   :  { %13230 = vmatprep.subr.bf16.mxu0 %v17600_v22  ;;  %v17663_v22 = vcombine.low %v908_v3, %v916_v32  ;;  %v18238_v63 = vcombine.high %v1483_v54, %v1491_v55  ;;  %v1499_v3 = vld [vmem:[#allocation6 + $0x2908] sm:$0xff] }
 0x26a   :  { %v1507_v32 = vld [vmem:[#allocation6 + $0x2948] sm:$0xff] }
 0x26b   :  { %12944 = vmatpush1.bf16.msra.mxu1 %v17853_v35  ;;  %v940_v35 = vld [vmem:[#allocation6 + $0x1790] sm:$0xff]  ;;  %v18253_v20 = vcombine.low %v1499_v3, %v1507_v32 }
 0x26c   :  { %13231 = vmatpush1.bf16.msra.mxu0 %v17599_v36  ;;  %12945 = vmatprep.subr.bf16.mxu1 %v17870_v42  ;;  %v948_v36 = vld [vmem:[#allocation6 + $0x17d0] sm:$0xff]  ;;  %v17933_v42 = vcombine.low %v1179_v11, %v1187_v12  ;;  %v18254_v11 = vcombine.high %v1499_v3, %v1507_v32  ;;  %v1579_v32 = vld [vmem:[#allocation6 + $0x2b88] sm:$0xff] }
 0x26d   :  { %13232 = vmatprep.subr.bf16.mxu0 %v17616_v43  ;;  %v17679_v43 = vcombine.low %v924_v13, %v932_v15  ;;  %v17696_v45 = vcombine.high %v940_v35, %v948_v36  ;;  %v1515_v13 = vld [vmem:[#allocation6 + $0x2988] sm:$0xff] }
 0x26e   :  { %v1523_v15 = vld [vmem:[#allocation6 + $0x29c8] sm:$0xff] }
 0x26f   :  { %12946 = vmatpush1.bf16.msra.mxu1 %v17869_v48  ;;  %v1212_v48 = vld [vmem:[#allocation6 + $0x2010] sm:$0xff] }
 0x270   :  { %13233 = vmatpush1.bf16.msra.mxu0 %v17615_v50  ;;  %12947 = vmatprep.subr.bf16.mxu1 %v17886_v17  ;;  %v1220_v50 = vld [vmem:[#allocation6 + $0x2050] sm:$0xff]  ;;  %v17949_v17 = vcombine.low %v1195_v30, %v1203_v33  ;;  %v1531_v30 = vld [vmem:[#allocation6 + $0x2a08] sm:$0xff] }
 0x271   :  { %13234 = vmatprep.subr.bf16.mxu0 %v17632_v51  ;;  %v17695_v51 = vcombine.low %v940_v35, %v948_v36  ;;  %v17968_v53 = vcombine.high %v1212_v48, %v1220_v50  ;;  %v1539_v33 = vld [vmem:[#allocation6 + $0x2a48] sm:$0xff]  ;;  %v1276_v35 = vld [vmem:[#allocation6 + $0x2210] sm:$0xff] }
 0x272   :  { %v1284_v36 = vld [vmem:[#allocation6 + $0x2250] sm:$0xff] }
 0x273   :  { %12948 = vmatpush1.bf16.msra.mxu1 %v17885_v58  ;;  %v1228_v58 = vld [vmem:[#allocation6 + $0x2090] sm:$0xff] }
 0x274   :  { %13235 = vmatpush1.bf16.msra.mxu0 %v17631_v59  ;;  %12949 = vmatprep.subr.bf16.mxu1 %v17902_v60  ;;  %v1236_v59 = vld [vmem:[#allocation6 + $0x20d0] sm:$0xff]  ;;  %v18221_v60 = vcombine.low %v1467_v46, %v1475_v47  ;;  %v1547_v46 = vld [vmem:[#allocation6 + $0x2a88] sm:$0xff] }
 0x275   :  { %13236 = vmatprep.subr.bf16.mxu0 %v17648_v62  ;;  %v17967_v62 = vcombine.low %v1212_v48, %v1220_v50  ;;  %v17984_v2 = vcombine.high %v1228_v58, %v1236_v59  ;;  %v1555_v47 = vld [vmem:[#allocation6 + $0x2ac8] sm:$0xff]  ;;  %v1292_v48 = vld [vmem:[#allocation6 + $0x2290] sm:$0xff] }
 0x276   :  { %v1300_v50 = vld [vmem:[#allocation6 + $0x22d0] sm:$0xff] }
 0x277   :  { %12950 = vmatpush1.bf16.msra.mxu1 %v17901_v5  ;;  %v1244_v5 = vld [vmem:[#allocation6 + $0x2110] sm:$0xff] }
 0x278   :  { %13237 = vmatpush1.bf16.msra.mxu0 %v17647_v38  ;;  %12951 = vmatprep.subr.bf16.mxu1 %v17918_v6  ;;  %v1252_v38 = vld [vmem:[#allocation6 + $0x2150] sm:$0xff]  ;;  %v18237_v6 = vcombine.low %v1483_v54, %v1491_v55  ;;  %v1563_v54 = vld [vmem:[#allocation6 + $0x2b08] sm:$0xff] }
 0x279   :  { %13238 = vmatprep.subr.bf16.mxu0 %v17664_v8  ;;  %v17983_v8 = vcombine.low %v1228_v58, %v1236_v59  ;;  %v18000_v12 = vcombine.high %v1244_v5, %v1252_v38  ;;  %v1571_v55 = vld [vmem:[#allocation6 + $0x2b48] sm:$0xff]  ;;  %v1308_v58 = vld [vmem:[#allocation6 + $0x2310] sm:$0xff] }
 0x27a   :  { %v1316_v59 = vld [vmem:[#allocation6 + $0x2350] sm:$0xff] }
 0x27b   :  { %12952 = vmatpush1.bf16.msra.mxu1 %v17917_v40  ;;  %v1268_v40 = vld [vmem:[#allocation6 + $0x21d0] sm:$0xff]  ;;  %v18064_v3 = vcombine.high %v1308_v58, %v1316_v59 }
 0x27c   :  { %13239 = vmatpush1.bf16.msra.mxu0 %v17663_v22  ;;  %12953 = vmatprep.subr.bf16.mxu1 %v17934_v27  ;;  %v17999_v22 = vcombine.low %v1244_v5, %v1252_v38  ;;  %v18270_v27 = vcombine.high %v1515_v13, %v1523_v15  ;;  %v1587_v5 = vld [vmem:[#allocation6 + $0x2bc8] sm:$0xff] }
 0x27d   :  { %13240 = vmatprep.subr.bf16.mxu0 %v17680_v29  ;;  %v18016_v29 = vcombine.high %v1260_v18, %v1268_v40 }
 0x27f   :  { %12954 = vmatpush1.bf16.msra.mxu1 %v17933_v42  ;;  %v18269_v42 = vcombine.low %v1515_v13, %v1523_v15  ;;  %v18317_v15 = vcombine.low %v1563_v54, %v1571_v55 }
 0x280   :  { %13241 = vmatpush1.bf16.msra.mxu0 %v17679_v43  ;;  %12955 = vmatprep.subr.bf16.mxu1 %v17950_v24  ;;  %v18015_v43 = vcombine.low %v1260_v18, %v1268_v40  ;;  %v18286_v24 = vcombine.high %v1531_v30, %v1539_v33  ;;  %v18063_v40 = vcombine.low %v1308_v58, %v1316_v59 }
 0x281   :  { %13242 = vmatprep.subr.bf16.mxu0 %v17696_v45  ;;  %v18032_v45 = vcombine.high %v1276_v35, %v1284_v36 }
 0x283   :  { %12956 = vmatpush1.bf16.msra.mxu1 %v17949_v17  ;;  %v18285_v17 = vcombine.low %v1531_v30, %v1539_v33  ;;  %v1340_v33 = vld [vmem:[#allocation6 + $0x2410] sm:$0xff] }
 0x284   :  { %13243 = vmatpush1.bf16.msra.mxu0 %v17695_v51  ;;  %13007 = vmatprep.subr.bf16.mxu1 %v18222_v52  ;;  %v18031_v51 = vcombine.low %v1276_v35, %v1284_v36  ;;  %v18302_v52 = vcombine.high %v1547_v46, %v1555_v47  ;;  %v18333_v35 = vcombine.low %v1579_v32, %v1587_v5 }
 0x285   :  { %13294 = vmatprep.subr.bf16.mxu0 %v17968_v53  ;;  %v18048_v53 = vcombine.high %v1292_v48, %v1300_v50 }
 0x286   :  { %12958 = vmatmul.mubr.bf16.vlgmr.msra.gmra.mrb[28].mxu1 %v19943_v25 }
 0x287   :  { %13008 = vmatpush1.bf16.msra.mxu1 %v18221_v60  ;;  %13245 = vmatmul.mubr.bf16.vlgmr.msra.gmra.mrb[28].mxu0 %v19935_v0  ;;  %v18301_v60 = vcombine.low %v1547_v46, %v1555_v47  ;;  %v1364_v46 = vld [vmem:[#allocation6 + $0x24d0] sm:$0xff] }
 0x288   :  { %13295 = vmatpush1.bf16.msra.mxu0 %v17967_v62  ;;  %13009 = vmatprep.subr.bf16.mxu1 %v18238_v63  ;;  %v18047_v62 = vcombine.low %v1292_v48, %v1300_v50  ;;  %v18318_v63 = vcombine.high %v1563_v54, %v1571_v55 }
 0x289   :  { %13296 = vmatprep.subr.bf16.mxu0 %v17984_v2  ;;  %13039 = vmatprep.mubr.bf16.mxu1 %v19945_v37 }
 0x28a   :  { %13326 = vmatprep.mubr.bf16.mxu0 %v19909_v61 }
 0x28b   :  { %13010 = vmatpush1.bf16.msra.mxu1 %v18237_v6 }
 0x28c   :  { %13297 = vmatpush1.bf16.msra.mxu0 %v17983_v8  ;;  %13011 = vmatprep.subr.bf16.mxu1 %v18254_v11  ;;  %v1324_v8 = vld [vmem:[#allocation6 + $0x2390] sm:$0xff] }
 0x28d   :  { %13298 = vmatprep.subr.bf16.mxu0 %v18000_v12  ;;  %v1332_v11 = vld [vmem:[#allocation6 + $0x23d0] sm:$0xff] }
 0x28e   :  { %v18079_v36 = vcombine.low %v1324_v8, %v1332_v11 }
 0x28f   :  { %13012 = vmatpush1.bf16.msra.mxu1 %v18253_v20  ;;  %v18334_v20 = vcombine.high %v1579_v32, %v1587_v5 }
 0x290   :  { %13299 = vmatpush1.bf16.msra.mxu0 %v17999_v22  ;;  %13013 = vmatprep.subr.bf16.mxu1 %v18270_v27  ;;  %v18080_v27 = vcombine.high %v1324_v8, %v1332_v11  ;;  %v1667_v8 = vld [vmem:[#allocation6 + $0x2e48] sm:$0xff]  ;;  %v1404_v11 = vld [vmem:[#allocation6 + $0x2610] sm:$0xff] }
 0x291   :  { %13300 = vmatprep.subr.bf16.mxu0 %v18016_v29  ;;  %v1595_v29 = vld [vmem:[#allocation6 + $0x2c08] sm:$0xff] }
 0x293   :  { %13014 = vmatpush1.bf16.msra.mxu1 %v18269_v42 }
 0x294   :  { %13301 = vmatpush1.bf16.msra.mxu0 %v18015_v43  ;;  %13015 = vmatprep.subr.bf16.mxu1 %v18286_v24  ;;  %v1611_v24 = vld [vmem:[#allocation6 + $0x2c88] sm:$0xff] }
 0x295   :  { %13302 = vmatprep.subr.bf16.mxu0 %v18032_v45  ;;  %v1356_v45 = vld [vmem:[#allocation6 + $0x2490] sm:$0xff] }
 0x296   :  { %v18112_v50 = vcombine.high %v1356_v45, %v1364_v46  ;;  %v18111_v55 = vcombine.low %v1356_v45, %v1364_v46  ;;  %v1436_v45 = vld [vmem:[#allocation6 + $0x2710] sm:$0xff] }
 0x297   :  { %13016 = vmatpush1.bf16.msra.mxu1 %v18285_v17  ;;  %v1627_v17 = vld [vmem:[#allocation6 + $0x2d08] sm:$0xff]  ;;  %v1444_v46 = vld [vmem:[#allocation6 + $0x2750] sm:$0xff] }
 0x298   :  { %13303 = vmatpush1.bf16.msra.mxu0 %v18031_v51  ;;  %13017 = vmatprep.subr.bf16.mxu1 %v18302_v52  ;;  %v1635_v51 = vld [vmem:[#allocation6 + $0x2d48] sm:$0xff]  ;;  %v1372_v52 = vld [vmem:[#allocation6 + $0x2510] sm:$0xff] }
 0x299   :  { %v12713_v2 = vpop.f32.mrb[16].mxu1  ;;  %13304 = vmatprep.subr.bf16.mxu0 %v18048_v53  ;;  %v1380_v53 = vld [vmem:[#allocation6 + $0x2550] sm:$0xff]  ;;  %v18382_v58 = vcombine.high %v1627_v17, %v1635_v51 }
 0x29a   :  { %v12714_v38 = vadd.f32 %v12713_v2, %v20000_v1  ;;  %v12715_v6 = vpop.f32.mrb[17].mxu1  ;;  %v1603_v1 = vld [vmem:[#allocation6 + $0x2c48] sm:$0xff]  ;;  %v18128_v59 = vcombine.high %v1372_v52, %v1380_v53  ;;  %v1396_v2 = vld [vmem:[#allocation6 + $0x25d0] sm:$0xff]  ;;  %v18127_v32 = vcombine.low %v1372_v52, %v1380_v53 }
 0x29b   :  { %v12716_v12 = vadd.f32 %v12715_v6, %v20003_v4  ;;  %v12717_v13 = vpop.f32.mrb[18].mxu1  ;;  %13018 = vmatpush1.bf16.msra.mxu1 %v18301_v60  ;;  %v1348_v4 = vld [vmem:[#allocation6 + $0x2450] sm:$0xff]  ;;  %v18350_v42 = vcombine.high %v1595_v29, %v1603_v1  ;;  %v18349_v47 = vcombine.low %v1595_v29, %v1603_v1  ;;  %v1643_v60 = vld [vmem:[#allocation6 + $0x2d88] sm:$0xff] }
 0x29c   :  { %13305 = vmatpush1.bf16.msra.mxu0 %v18047_v62  ;;  %v12718_v18 = vpop.f32.mrb[19].mxu1  ;;  %13019 = vmatprep.subr.bf16.mxu1 %v18318_v63  ;;  %v20016_v22 = vadd.f32 %v19973_v19, %v12714_v38  ;;  %v18096_v43 = vcombine.high %v1340_v33, %v1348_v4  ;;  %v1619_v19 = vld [vmem:[#allocation6 + $0x2cc8] sm:$0xff]  ;;  %v1388_v63 = vld [vmem:[#allocation6 + $0x2590] sm:$0xff] }
 0x29d   :  { %13306 = vmatprep.subr.bf16.mxu0 %v18064_v3  ;;  %v20019_v30 = vadd.f32 %v19975_v44, %v12716_v12  ;;  %v18095_v44 = vcombine.low %v1340_v33, %v1348_v4  ;;  %v18366_v48 = vcombine.high %v1611_v24, %v1619_v19  ;;  %v18365_v54 = vcombine.low %v1611_v24, %v1619_v19  ;;  %v1651_v62 = vld [vmem:[#allocation6 + $0x2dc8] sm:$0xff]  ;;  %v1412_v12 = vld [vmem:[#allocation6 + $0x2650] sm:$0xff] }
 0x29e   :  { %v18381_v3 = vcombine.low %v1627_v17, %v1635_v51  ;;  %v18398_v5 = vcombine.high %v1643_v60, %v1651_v62  ;;  %v18144_v38 = vcombine.high %v1388_v63, %v1396_v2  ;;  %v1659_v6 = vld [vmem:[#allocation6 + $0x2e08] sm:$0xff]  ;;  %v18397_v13 = vcombine.low %v1643_v60, %v1651_v62  ;;  %v1420_v29 = vld [vmem:[#allocation6 + $0x2690] sm:$0xff] }
 0x29f   :  { %13020 = vmatpush1.bf16.msra.mxu1 %v18317_v15  ;;  %v18143_v15 = vcombine.low %v1388_v63, %v1396_v2  ;;  %v18414_v18 = vcombine.high %v1659_v6, %v1667_v8  ;;  %v1428_v1 = vld [vmem:[#allocation6 + $0x26d0] sm:$0xff]  ;;  %v18413_v33 = vcombine.low %v1659_v6, %v1667_v8  ;;  %v18159_v4 = vcombine.low %v1404_v11, %v1412_v12  ;;  %v1699_v24 = vld [vmem:[#allocation6 + $0x2f48] sm:$0xff] }
 0x2a0   :  { %13307 = vmatpush1.bf16.msra.mxu0 %v18063_v40  ;;  %13021 = vmatprep.subr.bf16.mxu1 %v18334_v20  ;;  %v18160_v40 = vcombine.high %v1404_v11, %v1412_v12  ;;  %v1675_v20 = vld [vmem:[#allocation6 + $0x2e88] sm:$0xff]  ;;  %v18192_v51 = vcombine.high %v1436_v45, %v1444_v46 }
 0x2a1   :  { %13308 = vmatprep.subr.bf16.mxu0 %v18080_v27  ;;  %v1683_v27 = vld [vmem:[#allocation6 + $0x2ec8] sm:$0xff] }
 0x2a2   :  { %v1707_v52 = vld [vmem:[#allocation6 + $0x2f88] sm:$0xff] }
 0x2a3   :  { %13022 = vmatpush1.bf16.msra.mxu1 %v18333_v35  ;;  %v18430_v35 = vcombine.high %v1675_v20, %v1683_v27  ;;  %v1715_v53 = vld [vmem:[#allocation6 + $0x2fc8] sm:$0xff] }
 0x2a4   :  { %13309 = vmatpush1.bf16.msra.mxu0 %v18079_v36  ;;  %13023 = vmatprep.subr.bf16.mxu1 %v18350_v42  ;;  %v20021_v36 = vpop.f32.mrb[16].mxu0  ;;  %v18176_v42 = vcombine.high %v1420_v29, %v1428_v1  ;;  %v18462_v60 = vcombine.high %v1707_v52, %v1715_v53  ;;  %v1979_v63 = vld [vmem:[#allocation6 + $0x3808] sm:$0xff] }
 0x2a5   :  { %13310 = vmatprep.subr.bf16.mxu0 %v18096_v43  ;;  %v1691_v43 = vld [vmem:[#allocation6 + $0x2f08] sm:$0xff]  ;;  %v20023_v19 = vpop.f32.mrb[17].mxu0 }
 0x2a6   :  { %v18446_v17 = vcombine.high %v1691_v43, %v1699_v24  ;;  %v1987_v2 = vld [vmem:[#allocation6 + $0x3848] sm:$0xff] }
 0x2a7   :  { %13024 = vmatpush1.bf16.msra.mxu1 %v18349_v47  ;;  %v13004_v47 = vpop.f32.mrb[18].mxu0  ;;  %v18734_v6 = vcombine.high %v1979_v63, %v1987_v2  ;;  %v1995_v11 = vld [vmem:[#allocation6 + $0x3888] sm:$0xff] }
 0x2a8   :  { %13311 = vmatpush1.bf16.msra.mxu0 %v18095_v44  ;;  %13025 = vmatprep.subr.bf16.mxu1 %v18366_v48  ;;  %v18429_v44 = vcombine.low %v1675_v20, %v1683_v27  ;;  %v13005_v48 = vpop.f32.mrb[19].mxu0  ;;  %v2003_v12 = vld [vmem:[#allocation6 + $0x38c8] sm:$0xff]  ;;  %v1772_v47 = vld [vmem:[#allocation6 + $0x3190] sm:$0xff] }
 0x2a9   :  { %13312 = vmatprep.subr.bf16.mxu0 %v18112_v50  ;;  %v18175_v50 = vcombine.low %v1420_v29, %v1428_v1  ;;  %v18750_v20 = vcombine.high %v1995_v11, %v2003_v12  ;;  %v2011_v29 = vld [vmem:[#allocation6 + $0x3908] sm:$0xff] }
 0x2aa   :  { %v2019_v1 = vld [vmem:[#allocation6 + $0x3948] sm:$0xff] }
 0x2ab   :  { %13026 = vmatpush1.bf16.msra.mxu1 %v18365_v54  ;;  %v1452_v54 = vld [vmem:[#allocation6 + $0x2790] sm:$0xff]  ;;  %v18765_v48 = vcombine.low %v2011_v29, %v2019_v1 }
 0x2ac   :  { %13313 = vmatpush1.bf16.msra.mxu0 %v18111_v55  ;;  %13027 = vmatprep.subr.bf16.mxu1 %v18382_v58  ;;  %v1460_v55 = vld [vmem:[#allocation6 + $0x27d0] sm:$0xff]  ;;  %v18445_v58 = vcombine.low %v1691_v43, %v1699_v24  ;;  %v18766_v43 = vcombine.high %v2011_v29, %v2019_v1  ;;  %v2091_v1 = vld [vmem:[#allocation6 + $0x3b88] sm:$0xff] }
 0x2ad   :  { %13314 = vmatprep.subr.bf16.mxu0 %v18128_v59  ;;  %v18191_v59 = vcombine.low %v1436_v45, %v1444_v46  ;;  %v18208_v62 = vcombine.high %v1452_v54, %v1460_v55  ;;  %v2027_v45 = vld [vmem:[#allocation6 + $0x3988] sm:$0xff] }
 0x2ae   :  { %v2035_v46 = vld [vmem:[#allocation6 + $0x39c8] sm:$0xff] }
 0x2af   :  { %13028 = vmatpush1.bf16.msra.mxu1 %v18381_v3  ;;  %v1724_v3 = vld [vmem:[#allocation6 + $0x3010] sm:$0xff] }
 0x2b0   :  { %13315 = vmatpush1.bf16.msra.mxu0 %v18127_v32  ;;  %13029 = vmatprep.subr.bf16.mxu1 %v18398_v5  ;;  %v1732_v32 = vld [vmem:[#allocation6 + $0x3050] sm:$0xff]  ;;  %v18461_v5 = vcombine.low %v1707_v52, %v1715_v53  ;;  %v2043_v52 = vld [vmem:[#allocation6 + $0x3a08] sm:$0xff] }
 0x2b1   :  { %13316 = vmatprep.subr.bf16.mxu0 %v18144_v38  ;;  %v18207_v38 = vcombine.low %v1452_v54, %v1460_v55  ;;  %v18480_v8 = vcombine.high %v1724_v3, %v1732_v32  ;;  %v2051_v53 = vld [vmem:[#allocation6 + $0x3a48] sm:$0xff]  ;;  %v1788_v54 = vld [vmem:[#allocation6 + $0x3210] sm:$0xff] }
 0x2b2   :  { %v1796_v55 = vld [vmem:[#allocation6 + $0x3250] sm:$0xff] }
 0x2b3   :  { %13030 = vmatpush1.bf16.msra.mxu1 %v18397_v13  ;;  %v1740_v13 = vld [vmem:[#allocation6 + $0x3090] sm:$0xff] }
 0x2b4   :  { %13317 = vmatpush1.bf16.msra.mxu0 %v18143_v15  ;;  %13031 = vmatprep.subr.bf16.mxu1 %v18414_v18  ;;  %v1748_v15 = vld [vmem:[#allocation6 + $0x30d0] sm:$0xff]  ;;  %v18733_v18 = vcombine.low %v1979_v63, %v1987_v2  ;;  %v2059_v63 = vld [vmem:[#allocation6 + $0x3a88] sm:$0xff] }
 0x2b5   :  { %13318 = vmatprep.subr.bf16.mxu0 %v18160_v40  ;;  %v18479_v40 = vcombine.low %v1724_v3, %v1732_v32  ;;  %v18496_v27 = vcombine.high %v1740_v13, %v1748_v15  ;;  %v2067_v2 = vld [vmem:[#allocation6 + $0x3ac8] sm:$0xff]  ;;  %v1804_v3 = vld [vmem:[#allocation6 + $0x3290] sm:$0xff] }
 0x2b6   :  { %v1812_v32 = vld [vmem:[#allocation6 + $0x32d0] sm:$0xff] }
 0x2b7   :  { %13032 = vmatpush1.bf16.msra.mxu1 %v18413_v33  ;;  %v1756_v33 = vld [vmem:[#allocation6 + $0x3110] sm:$0xff] }
 0x2b8   :  { %13319 = vmatpush1.bf16.msra.mxu0 %v18159_v4  ;;  %13033 = vmatprep.subr.bf16.mxu1 %v18430_v35  ;;  %v1764_v4 = vld [vmem:[#allocation6 + $0x3150] sm:$0xff]  ;;  %v18749_v35 = vcombine.low %v1995_v11, %v2003_v12  ;;  %v2075_v11 = vld [vmem:[#allocation6 + $0x3b08] sm:$0xff] }
 0x2b9   :  { %13320 = vmatprep.subr.bf16.mxu0 %v18176_v42  ;;  %v18495_v42 = vcombine.low %v1740_v13, %v1748_v15  ;;  %v18512_v24 = vcombine.high %v1756_v33, %v1764_v4  ;;  %v2083_v12 = vld [vmem:[#allocation6 + $0x3b48] sm:$0xff]  ;;  %v1820_v13 = vld [vmem:[#allocation6 + $0x3310] sm:$0xff] }
 0x2ba   :  { %v1828_v15 = vld [vmem:[#allocation6 + $0x3350] sm:$0xff] }
 0x2bb   :  { %13034 = vmatpush1.bf16.msra.mxu1 %v18429_v44  ;;  %v1780_v44 = vld [vmem:[#allocation6 + $0x31d0] sm:$0xff]  ;;  %v18576_v29 = vcombine.high %v1820_v13, %v1828_v15 }
 0x2bc   :  { %13321 = vmatpush1.bf16.msra.mxu0 %v18175_v50  ;;  %13035 = vmatprep.subr.bf16.mxu1 %v18446_v17  ;;  %v18511_v50 = vcombine.low %v1756_v33, %v1764_v4  ;;  %v18782_v17 = vcombine.high %v2027_v45, %v2035_v46  ;;  %v2099_v33 = vld [vmem:[#allocation6 + $0x3bc8] sm:$0xff] }
 0x2bd   :  { %13322 = vmatprep.subr.bf16.mxu0 %v18192_v51  ;;  %v18528_v51 = vcombine.high %v1772_v47, %v1780_v44 }
 0x2bf   :  { %13036 = vmatpush1.bf16.msra.mxu1 %v18445_v58  ;;  %v18781_v58 = vcombine.low %v2027_v45, %v2035_v46  ;;  %v18829_v46 = vcombine.low %v2075_v11, %v2083_v12 }
 0x2c0   :  { %13323 = vmatpush1.bf16.msra.mxu0 %v18191_v59  ;;  %13037 = vmatprep.subr.bf16.mxu1 %v18462_v60  ;;  %v18527_v59 = vcombine.low %v1772_v47, %v1780_v44  ;;  %v18798_v60 = vcombine.high %v2043_v52, %v2051_v53  ;;  %v18575_v44 = vcombine.low %v1820_v13, %v1828_v15 }
 0x2c1   :  { %13324 = vmatprep.subr.bf16.mxu0 %v18208_v62  ;;  %v18544_v62 = vcombine.high %v1788_v54, %v1796_v55 }
 0x2c3   :  { %13038 = vmatpush1.bf16.msra.mxu1 %v18461_v5  ;;  %v18797_v5 = vcombine.low %v2043_v52, %v2051_v53  ;;  %v1860_v52 = vld [vmem:[#allocation6 + $0x3450] sm:$0xff]  ;;  %v18845_v53 = vcombine.low %v2091_v1, %v2099_v33 }
 0x2c4   :  { %13325 = vmatpush1.bf16.msra.mxu0 %v18207_v38  ;;  %13089 = vmatprep.subr.bf16.mxu1 %v18734_v6  ;;  %v18543_v38 = vcombine.low %v1788_v54, %v1796_v55  ;;  %v18814_v6 = vcombine.high %v2059_v63, %v2067_v2 }
 0x2c5   :  { %13376 = vmatprep.subr.bf16.mxu0 %v18480_v8  ;;  %v18560_v8 = vcombine.high %v1804_v3, %v1812_v32 }
 0x2c6   :  { %13040 = vmatmul.mubr.bf16.vlgmr.msra.gmra.mrb[32].mxu1 %v19959_v10 }
 0x2c7   :  { %13090 = vmatpush1.bf16.msra.mxu1 %v18733_v18  ;;  %13327 = vmatmul.mubr.bf16.vlgmr.msra.gmra.mrb[32].mxu0 %v19915_v21  ;;  %v18813_v18 = vcombine.low %v2059_v63, %v2067_v2 }
 0x2c8   :  { %13377 = vmatpush1.bf16.msra.mxu0 %v18479_v40  ;;  %13091 = vmatprep.subr.bf16.mxu1 %v18750_v20  ;;  %v18559_v40 = vcombine.low %v1804_v3, %v1812_v32  ;;  %v18830_v20 = vcombine.high %v2075_v11, %v2083_v12 }
 0x2c9   :  { %13378 = vmatprep.subr.bf16.mxu0 %v18496_v27  ;;  %13121 = vmatprep.mubr.bf16.mxu1 %v19961_v23 }
 0x2ca   :  { %13408 = vmatprep.mubr.bf16.mxu0 %v19920_v31 }
 0x2cb   :  { %13092 = vmatpush1.bf16.msra.mxu1 %v18749_v35 }
 0x2cc   :  { %13379 = vmatpush1.bf16.msra.mxu0 %v18495_v42  ;;  %13093 = vmatprep.subr.bf16.mxu1 %v18766_v43  ;;  %v1836_v42 = vld [vmem:[#allocation6 + $0x3390] sm:$0xff] }
 0x2cd   :  { %13380 = vmatprep.subr.bf16.mxu0 %v18512_v24  ;;  %v1844_v43 = vld [vmem:[#allocation6 + $0x33d0] sm:$0xff] }
 0x2cf   :  { %13094 = vmatpush1.bf16.msra.mxu1 %v18765_v48  ;;  %v18846_v48 = vcombine.high %v2091_v1, %v2099_v33 }
 0x2d0   :  { %13381 = vmatpush1.bf16.msra.mxu0 %v18511_v50  ;;  %13095 = vmatprep.subr.bf16.mxu1 %v18782_v17  ;;  %v18592_v50 = vcombine.high %v1836_v42, %v1844_v43  ;;  %v2107_v17 = vld [vmem:[#allocation6 + $0x3c08] sm:$0xff] }
 0x2d1   :  { %13382 = vmatprep.subr.bf16.mxu0 %v18528_v51  ;;  %v2115_v51 = vld [vmem:[#allocation6 + $0x3c48] sm:$0xff] }
 0x2d2   :  { %v18862_v54 = vcombine.high %v2107_v17, %v2115_v51  ;;  %v18861_v63 = vcombine.low %v2107_v17, %v2115_v51  ;;  %v2187_v17 = vld [vmem:[#allocation6 + $0x3e88] sm:$0xff] }
 0x2d3   :  { %13096 = vmatpush1.bf16.msra.mxu1 %v18781_v58  ;;  %v2123_v58 = vld [vmem:[#allocation6 + $0x3c88] sm:$0xff] }
 0x2d4   :  { %13383 = vmatpush1.bf16.msra.mxu0 %v18527_v59  ;;  %13097 = vmatprep.subr.bf16.mxu1 %v18798_v60  ;;  %v2131_v59 = vld [vmem:[#allocation6 + $0x3cc8] sm:$0xff]  ;;  %v1868_v60 = vld [vmem:[#allocation6 + $0x3490] sm:$0xff] }
 0x2d5   :  { %13384 = vmatprep.subr.bf16.mxu0 %v18544_v62  ;;  %v1876_v62 = vld [vmem:[#allocation6 + $0x34d0] sm:$0xff]  ;;  %v18878_v3 = vcombine.high %v2123_v58, %v2131_v59  ;;  %v18877_v11 = vcombine.low %v2123_v58, %v2131_v59  ;;  %v2195_v51 = vld [vmem:[#allocation6 + $0x3ec8] sm:$0xff] }
 0x2d6   :  { %v18624_v32 = vcombine.high %v1868_v60, %v1876_v62  ;;  %v18623_v12 = vcombine.low %v1868_v60, %v1876_v62  ;;  %v2203_v59 = vld [vmem:[#allocation6 + $0x3f08] sm:$0xff] }
 0x2d7   :  { %13098 = vmatpush1.bf16.msra.mxu1 %v18797_v5  ;;  %v2139_v5 = vld [vmem:[#allocation6 + $0x3d08] sm:$0xff] }
 0x2d8   :  { %13385 = vmatpush1.bf16.msra.mxu0 %v18543_v38  ;;  %13099 = vmatprep.subr.bf16.mxu1 %v18814_v6  ;;  %v2147_v38 = vld [vmem:[#allocation6 + $0x3d48] sm:$0xff]  ;;  %v1884_v6 = vld [vmem:[#allocation6 + $0x3510] sm:$0xff] }
 0x2d9   :  { %v12795_v27 = vpop.f32.mrb[20].mxu1  ;;  %13386 = vmatprep.subr.bf16.mxu0 %v18560_v8  ;;  %v1892_v8 = vld [vmem:[#allocation6 + $0x3550] sm:$0xff]  ;;  %v18894_v13 = vcombine.high %v2139_v5, %v2147_v38  ;;  %v2211_v60 = vld [vmem:[#allocation6 + $0x3f48] sm:$0xff] }
 0x2da   :  { %v20030_v4 = vadd.f32 %v12795_v27, %v20016_v22  ;;  %v12797_v35 = vpop.f32.mrb[21].mxu1  ;;  %v1852_v22 = vld [vmem:[#allocation6 + $0x3410] sm:$0xff]  ;;  %v18640_v15 = vcombine.high %v1884_v6, %v1892_v8  ;;  %v18639_v1 = vcombine.low %v1884_v6, %v1892_v8  ;;  %v18958_v6 = vcombine.high %v2203_v59, %v2211_v60 }
 0x2db   :  { %v20033_v24 = vadd.f32 %v12797_v35, %v20019_v30  ;;  %v12799_v45 = vpop.f32.mrb[22].mxu1  ;;  %13100 = vmatpush1.bf16.msra.mxu1 %v18813_v18  ;;  %v18591_v30 = vcombine.low %v1836_v42, %v1844_v43  ;;  %v18608_v55 = vcombine.high %v1852_v22, %v1860_v52  ;;  %v18607_v2 = vcombine.low %v1852_v22, %v1860_v52  ;;  %v2155_v18 = vld [vmem:[#allocation6 + $0x3d88] sm:$0xff]  ;;  %v1908_v27 = vld [vmem:[#allocation6 + $0x35d0] sm:$0xff] }
 0x2dc   :  { %13387 = vmatpush1.bf16.msra.mxu0 %v18559_v40  ;;  %v12800_v47 = vpop.f32.mrb[23].mxu1  ;;  %13101 = vmatprep.subr.bf16.mxu1 %v18830_v20  ;;  %v2163_v40 = vld [vmem:[#allocation6 + $0x3dc8] sm:$0xff]  ;;  %v1900_v20 = vld [vmem:[#allocation6 + $0x3590] sm:$0xff] }
 0x2dd   :  { %13388 = vmatprep.subr.bf16.mxu0 %v18576_v29  ;;  %v18893_v29 = vcombine.low %v2139_v5, %v2147_v38  ;;  %v18910_v33 = vcombine.high %v2155_v18, %v2163_v40  ;;  %v18656_v35 = vcombine.high %v1900_v20, %v1908_v27  ;;  %v2171_v42 = vld [vmem:[#allocation6 + $0x3e08] sm:$0xff]  ;;  %v1916_v45 = vld [vmem:[#allocation6 + $0x3610] sm:$0xff]  ;;  %v18909_v47 = vcombine.low %v2155_v18, %v2163_v40 }
 0x2de   :  { %v2179_v43 = vld [vmem:[#allocation6 + $0x3e48] sm:$0xff]  ;;  %v1932_v22 = vld [vmem:[#allocation6 + $0x3690] sm:$0xff]  ;;  %v18957_v18 = vcombine.low %v2203_v59, %v2211_v60 }
 0x2df   :  { %13102 = vmatpush1.bf16.msra.mxu1 %v18829_v46  ;;  %v1924_v46 = vld [vmem:[#allocation6 + $0x3650] sm:$0xff] }
 0x2e0   :  { %13389 = vmatpush1.bf16.msra.mxu0 %v18575_v44  ;;  %13103 = vmatprep.subr.bf16.mxu1 %v18846_v48  ;;  %v18655_v44 = vcombine.low %v1900_v20, %v1908_v27  ;;  %v18926_v48 = vcombine.high %v2171_v42, %v2179_v43  ;;  %v1940_v52 = vld [vmem:[#allocation6 + $0x36d0] sm:$0xff] }
 0x2e1   :  { %13390 = vmatprep.subr.bf16.mxu0 %v18592_v50  ;;  %v18672_v50 = vcombine.high %v1916_v45, %v1924_v46  ;;  %v18688_v58 = vcombine.high %v1932_v22, %v1940_v52  ;;  %v18687_v38 = vcombine.low %v1932_v22, %v1940_v52 }
 0x2e3   :  { %13104 = vmatpush1.bf16.msra.mxu1 %v18845_v53  ;;  %v18925_v53 = vcombine.low %v2171_v42, %v2179_v43 }
 0x2e4   :  { %13391 = vmatpush1.bf16.msra.mxu0 %v18591_v30  ;;  %13105 = vmatprep.subr.bf16.mxu1 %v18862_v54  ;;  %v18671_v30 = vcombine.low %v1916_v45, %v1924_v46  ;;  %v18942_v54 = vcombine.high %v2187_v17, %v2195_v51 }
 0x2e5   :  { %13392 = vmatprep.subr.bf16.mxu0 %v18608_v55  ;;  %v20035_v55 = vpop.f32.mrb[20].mxu0 }
 0x2e6   :  { %v20037_v62 = vpop.f32.mrb[21].mxu0 }
 0x2e7   :  { %13106 = vmatpush1.bf16.msra.mxu1 %v18861_v63  ;;  %v1948_v63 = vld [vmem:[#allocation6 + $0x3710] sm:$0xff] }
 0x2e8   :  { %13393 = vmatpush1.bf16.msra.mxu0 %v18607_v2  ;;  %13107 = vmatprep.subr.bf16.mxu1 %v18878_v3  ;;  %v1956_v2 = vld [vmem:[#allocation6 + $0x3750] sm:$0xff]  ;;  %v13086_v3 = vpop.f32.mrb[22].mxu0 }
 0x2e9   :  { %13394 = vmatprep.subr.bf16.mxu0 %v18624_v32  ;;  %v18941_v32 = vcombine.low %v2187_v17, %v2195_v51  ;;  %v13087_v5 = vpop.f32.mrb[23].mxu0  ;;  %v18704_v8 = vcombine.high %v1948_v63, %v1956_v2  ;;  %v18703_v40 = vcombine.low %v1948_v63, %v1956_v2  ;;  %v492_v3 = vld [vmem:[#allocation6 + $0x990] sm:$0xff] }
 0x2ea   :  { %v237_v5 = vld [vmem:[#allocation6 + $0x198] sm:$0xff] }
 0x2eb   :  { %13108 = vmatpush1.bf16.msra.mxu1 %v18877_v11  ;;  %v2219_v11 = vld [vmem:[#allocation6 + $0x3f88] sm:$0xff] }
 0x2ec   :  { %13395 = vmatpush1.bf16.msra.mxu0 %v18623_v12  ;;  %13109 = vmatprep.subr.bf16.mxu1 %v18894_v13  ;;  %v2227_v12 = vld [vmem:[#allocation6 + $0x3fc8] sm:$0xff]  ;;  %v1964_v13 = vld [vmem:[#allocation6 + $0x3790] sm:$0xff] }
 0x2ed   :  { %13396 = vmatprep.subr.bf16.mxu0 %v18640_v15  ;;  %v1972_v15 = vld [vmem:[#allocation6 + $0x37d0] sm:$0xff]  ;;  %v18974_v20 = vcombine.high %v2219_v11, %v2227_v12  ;;  %v18973_v42 = vcombine.low %v2219_v11, %v2227_v12 }
 0x2ee   :  { %v18720_v27 = vcombine.high %v1964_v13, %v1972_v15  ;;  %v18719_v43 = vcombine.low %v1964_v13, %v1972_v15  ;;  %v508_v13 = vld [vmem:[#allocation6 + $0xa10] sm:$0xff] }
 0x2ef   :  { %13110 = vmatpush1.bf16.msra.mxu1 %v18893_v29  ;;  %v444_v29 = vld [vmem:[#allocation6 + $0x810] sm:$0xff] }
 0x2f0   :  { %13397 = vmatpush1.bf16.msra.mxu0 %v18639_v1  ;;  %13111 = vmatprep.subr.bf16.mxu1 %v18910_v33  ;;  %v452_v1 = vld [vmem:[#allocation6 + $0x850] sm:$0xff]  ;;  %v189_v33 = vld [vmem:[#allocation6 + $0x18] sm:$0xff] }
 0x2f1   :  { %13398 = vmatprep.subr.bf16.mxu0 %v18656_v35  ;;  %v197_v35 = vld [vmem:[#allocation6 + $0x58] sm:$0xff]  ;;  %v17200_v45 = vcombine.high %v444_v29, %v452_v1  ;;  %v17199_v17 = vcombine.low %v444_v29, %v452_v1  ;;  %v516_v15 = vld [vmem:[#allocation6 + $0xa50] sm:$0xff] }
 0x2f2   :  { %v16946_v46 = vcombine.high %v189_v33, %v197_v35  ;;  %v16945_v51 = vcombine.low %v189_v33, %v197_v35  ;;  %v17264_v29 = vcombine.high %v508_v13, %v516_v15  ;;  %v524_v33 = vld [vmem:[#allocation6 + $0xa90] sm:$0xff] }
 0x2f3   :  { %13112 = vmatpush1.bf16.msra.mxu1 %v18909_v47  ;;  %v460_v47 = vld [vmem:[#allocation6 + $0x890] sm:$0xff] }
 0x2f4   :  { %13399 = vmatpush1.bf16.msra.mxu0 %v18655_v44  ;;  %13113 = vmatprep.subr.bf16.mxu1 %v18926_v48  ;;  %v468_v44 = vld [vmem:[#allocation6 + $0x8d0] sm:$0xff]  ;;  %v205_v48 = vld [vmem:[#allocation6 + $0x98] sm:$0xff] }
 0x2f5   :  { %13400 = vmatprep.subr.bf16.mxu0 %v18672_v50  ;;  %v213_v50 = vld [vmem:[#allocation6 + $0xd8] sm:$0xff]  ;;  %v17216_v22 = vcombine.high %v460_v47, %v468_v44  ;;  %v17215_v59 = vcombine.low %v460_v47, %v468_v44  ;;  %v532_v35 = vld [vmem:[#allocation6 + $0xad0] sm:$0xff] }
 0x2f6   :  { %v16962_v52 = vcombine.high %v205_v48, %v213_v50  ;;  %v16961_v60 = vcombine.low %v205_v48, %v213_v50  ;;  %v17280_v47 = vcombine.high %v524_v33, %v532_v35  ;;  %v540_v48 = vld [vmem:[#allocation6 + $0xb10] sm:$0xff] }
 0x2f7   :  { %13114 = vmatpush1.bf16.msra.mxu1 %v18925_v53  ;;  %v476_v53 = vld [vmem:[#allocation6 + $0x910] sm:$0xff] }
 0x2f8   :  { %13401 = vmatpush1.bf16.msra.mxu0 %v18671_v30  ;;  %13115 = vmatprep.subr.bf16.mxu1 %v18942_v54  ;;  %v484_v30 = vld [vmem:[#allocation6 + $0x950] sm:$0xff]  ;;  %v221_v54 = vld [vmem:[#allocation6 + $0x118] sm:$0xff] }
 0x2f9   :  { %13402 = vmatprep.subr.bf16.mxu0 %v18688_v58  ;;  %v229_v58 = vld [vmem:[#allocation6 + $0x158] sm:$0xff]  ;;  %v17232_v63 = vcombine.high %v476_v53, %v484_v30  ;;  %v548_v50 = vld [vmem:[#allocation6 + $0xb50] sm:$0xff] }
 0x2fa   :  { %v16978_v2 = vcombine.high %v221_v54, %v229_v58 }
 0x2fb   :  { %13116 = vmatpush1.bf16.msra.mxu1 %v18941_v32  ;;  %v500_v32 = vld [vmem:[#allocation6 + $0x9d0] sm:$0xff] }
 0x2fc   :  { %13403 = vmatpush1.bf16.msra.mxu0 %v18687_v38  ;;  %13117 = vmatprep.subr.bf16.mxu1 %v18958_v6  ;;  %v245_v38 = vld [vmem:[#allocation6 + $0x1d8] sm:$0xff]  ;;  %v17231_v6 = vcombine.low %v476_v53, %v484_v30  ;;  %v17248_v11 = vcombine.high %v492_v3, %v500_v32  ;;  %v17296_v53 = vcombine.high %v540_v48, %v548_v50 }
 0x2fd   :  { %13404 = vmatprep.subr.bf16.mxu0 %v18704_v8  ;;  %v16977_v8 = vcombine.low %v221_v54, %v229_v58  ;;  %v16994_v12 = vcombine.high %v237_v5, %v245_v38  ;;  %v556_v58 = vld [vmem:[#allocation6 + $0xb90] sm:$0xff] }
 0x2ff   :  { %13118 = vmatpush1.bf16.msra.mxu1 %v18957_v18  ;;  %v253_v18 = vld [vmem:[#allocation6 + $0x218] sm:$0xff] }
 0x300   :  { %13405 = vmatpush1.bf16.msra.mxu0 %v18703_v40  ;;  %13119 = vmatprep.subr.bf16.mxu1 %v18974_v20  ;;  %v261_v40 = vld [vmem:[#allocation6 + $0x258] sm:$0xff]  ;;  %v17247_v20 = vcombine.low %v492_v3, %v500_v32 }
 0x301   :  { %13406 = vmatprep.subr.bf16.mxu0 %v18720_v27  ;;  %v16993_v27 = vcombine.low %v237_v5, %v245_v38  ;;  %v17010_v1 = vcombine.high %v253_v18, %v261_v40  ;;  %v309_v3 = vld [vmem:[#allocation6 + $0x3d8] sm:$0xff]  ;;  %v17295_v38 = vcombine.low %v540_v48, %v548_v50 }
 0x302   :  { %v349_v48 = vld [vmem:[#allocation6 + $0x518] sm:$0xff] }
 0x303   :  { %13120 = vmatpush1.bf16.msra.mxu1 %v18973_v42  ;;  %v269_v42 = vld [vmem:[#allocation6 + $0x298] sm:$0xff] }
 0x304   :  { %13407 = vmatpush1.bf16.msra.mxu0 %v18719_v43  ;;  %13171 = vmatprep.subr.bf16.mxu1 %v17200_v45  ;;  %v277_v43 = vld [vmem:[#allocation6 + $0x2d8] sm:$0xff]  ;;  %v17263_v45 = vcombine.low %v508_v13, %v516_v15  ;;  %v572_v15 = vld [vmem:[#allocation6 + $0xc10] sm:$0xff] }
 0x305   :  { %13458 = vmatprep.subr.bf16.mxu0 %v16946_v46  ;;  %v17009_v46 = vcombine.low %v253_v18, %v261_v40  ;;  %v17026_v44 = vcombine.high %v269_v42, %v277_v43  ;;  %v317_v40 = vld [vmem:[#allocation6 + $0x418] sm:$0xff] }
 0x306   :  { %13122 = vmatmul.mubr.bf16.vlgmr.msra.gmra.mrb[36].mxu1 %v19977_v14  ;;  %v357_v50 = vld [vmem:[#allocation6 + $0x558] sm:$0xff] }
 0x307   :  { %13172 = vmatpush1.bf16.msra.mxu1 %v17199_v17  ;;  %13409 = vmatmul.mubr.bf16.vlgmr.msra.gmra.mrb[36].mxu0 %v19927_v41  ;;  %v285_v17 = vld [vmem:[#allocation6 + $0x318] sm:$0xff] }
 0x308   :  { %13459 = vmatpush1.bf16.msra.mxu0 %v16945_v51  ;;  %13173 = vmatprep.subr.bf16.mxu1 %v17216_v22  ;;  %v293_v51 = vld [vmem:[#allocation6 + $0x358] sm:$0xff]  ;;  %v17279_v22 = vcombine.low %v524_v33, %v532_v35  ;;  %v588_v33 = vld [vmem:[#allocation6 + $0xc90] sm:$0xff] }
 0x309   :  { %13460 = vmatprep.subr.bf16.mxu0 %v16962_v52  ;;  %13203 = vmatprep.mubr.bf16.mxu1 %v19917_v28  ;;  %v17025_v52 = vcombine.low %v269_v42, %v277_v43  ;;  %v17042_v54 = vcombine.high %v285_v17, %v293_v51  ;;  %v333_v35 = vld [vmem:[#allocation6 + $0x498] sm:$0xff] }
 0x30a   :  { %13490 = vmatprep.mubr.bf16.mxu0 %v19907_v57  ;;  %v341_v42 = vld [vmem:[#allocation6 + $0x4d8] sm:$0xff] }
 0x30b   :  { %13174 = vmatpush1.bf16.msra.mxu1 %v17215_v59  ;;  %v564_v59 = vld [vmem:[#allocation6 + $0xbd0] sm:$0xff] }
 0x30c   :  { %13461 = vmatpush1.bf16.msra.mxu0 %v16961_v60  ;;  %13175 = vmatprep.subr.bf16.mxu1 %v17232_v63 }
 0x30d   :  { %13462 = vmatprep.subr.bf16.mxu0 %v16978_v2  ;;  %v301_v2 = vld [vmem:[#allocation6 + $0x398] sm:$0xff] }
 0x30e   :  { %v17058_v13 = vcombine.high %v301_v2, %v309_v3 }
 0x30f   :  { %13176 = vmatpush1.bf16.msra.mxu1 %v17231_v6 }
 0x310   :  { %13463 = vmatpush1.bf16.msra.mxu0 %v16977_v8  ;;  %13177 = vmatprep.subr.bf16.mxu1 %v17248_v11  ;;  %v17041_v8 = vcombine.low %v285_v17, %v293_v51  ;;  %v17312_v11 = vcombine.high %v556_v58, %v564_v59  ;;  %v17089_v51 = vcombine.low %v333_v35, %v341_v42 }
 0x311   :  { %13464 = vmatprep.subr.bf16.mxu0 %v16994_v12 }
 0x313   :  { %13178 = vmatpush1.bf16.msra.mxu1 %v17247_v20  ;;  %v17311_v20 = vcombine.low %v556_v58, %v564_v59  ;;  %v373_v58 = vld [vmem:[#allocation6 + $0x5d8] sm:$0xff] }
 0x314   :  { %13465 = vmatpush1.bf16.msra.mxu0 %v16993_v27  ;;  %13179 = vmatprep.subr.bf16.mxu1 %v17264_v29  ;;  %v17057_v27 = vcombine.low %v301_v2, %v309_v3  ;;  %v636_v3 = vld [vmem:[#allocation6 + $0xe10] sm:$0xff] }
 0x315   :  { %13466 = vmatprep.subr.bf16.mxu0 %v17010_v1 }
 0x317   :  { %13180 = vmatpush1.bf16.msra.mxu1 %v17263_v45 }
 0x318   :  { %13467 = vmatpush1.bf16.msra.mxu0 %v17009_v46  ;;  %13181 = vmatprep.subr.bf16.mxu1 %v17280_v47  ;;  %v17090_v46 = vcombine.high %v333_v35, %v341_v42  ;;  %v604_v47 = vld [vmem:[#allocation6 + $0xd10] sm:$0xff] }
 0x319   :  { %v12877_v30 = vpop.f32.mrb[24].mxu1  ;;  %13468 = vmatprep.subr.bf16.mxu0 %v17026_v44  ;;  %v612_v44 = vld [vmem:[#allocation6 + $0xd50] sm:$0xff] }
 0x31a   :  { %v12878_v60 = vadd.f32 %v12877_v30, %v19989_v26  ;;  %v12879_v63 = vpop.f32.mrb[25].mxu1  ;;  %v580_v26 = vld [vmem:[#allocation6 + $0xc50] sm:$0xff]  ;;  %v17359_v59 = vcombine.low %v604_v47, %v612_v44 }
 0x31b   :  { %v12880_v32 = vadd.f32 %v12879_v63, %v19991_v56  ;;  %v12881_v5 = vpop.f32.mrb[26].mxu1  ;;  %13182 = vmatpush1.bf16.msra.mxu1 %v17279_v22  ;;  %v325_v56 = vld [vmem:[#allocation6 + $0x458] sm:$0xff]  ;;  %v17328_v29 = vcombine.high %v572_v15, %v580_v26  ;;  %v17327_v43 = vcombine.low %v572_v15, %v580_v26  ;;  %v17360_v22 = vcombine.high %v604_v47, %v612_v44  ;;  %v628_v30 = vld [vmem:[#allocation6 + $0xdd0] sm:$0xff] }
 0x31c   :  { %13469 = vmatpush1.bf16.msra.mxu0 %v17025_v52  ;;  %v12882_v6 = vpop.f32.mrb[27].mxu1  ;;  %13183 = vmatprep.subr.bf16.mxu1 %v17296_v53  ;;  %v20046_v12 = vadd.f32 %v20005_v7, %v12878_v60  ;;  %v17074_v1 = vcombine.high %v317_v40, %v325_v56  ;;  %v596_v7 = vld [vmem:[#allocation6 + $0xcd0] sm:$0xff]  ;;  %v17106_v52 = vcombine.high %v349_v48, %v357_v50  ;;  %v381_v5 = vld [vmem:[#allocation6 + $0x618] sm:$0xff] }
 0x31d   :  { %13470 = vmatprep.subr.bf16.mxu0 %v17042_v54  ;;  %v20049_v18 = vadd.f32 %v20007_v34, %v12880_v32  ;;  %v17073_v34 = vcombine.low %v317_v40, %v325_v56  ;;  %v17344_v45 = vcombine.high %v588_v33, %v596_v7  ;;  %v17343_v17 = vcombine.low %v588_v33, %v596_v7  ;;  %v620_v53 = vld [vmem:[#allocation6 + $0xd90] sm:$0xff]  ;;  %v365_v54 = vld [vmem:[#allocation6 + $0x598] sm:$0xff] }
 0x31e   :  { %v17105_v60 = vcombine.low %v349_v48, %v357_v50  ;;  %v17376_v63 = vcombine.high %v620_v53, %v628_v30  ;;  %v17122_v2 = vcombine.high %v365_v54, %v373_v58  ;;  %v644_v32 = vld [vmem:[#allocation6 + $0xe50] sm:$0xff]  ;;  %v17375_v6 = vcombine.low %v620_v53, %v628_v30  ;;  %v397_v40 = vld [vmem:[#allocation6 + $0x698] sm:$0xff] }
 0x31f   :  { %13184 = vmatpush1.bf16.msra.mxu1 %v17295_v38  ;;  %v389_v38 = vld [vmem:[#allocation6 + $0x658] sm:$0xff]  ;;  %v652_v15 = vld [vmem:[#allocation6 + $0xe90] sm:$0xff] }
 0x320   :  { %13471 = vmatpush1.bf16.msra.mxu0 %v17041_v8  ;;  %13185 = vmatprep.subr.bf16.mxu1 %v17312_v11  ;;  %v17121_v8 = vcombine.low %v365_v54, %v373_v58  ;;  %v17392_v11 = vcombine.high %v636_v3, %v644_v32  ;;  %v660_v26 = vld [vmem:[#allocation6 + $0xed0] sm:$0xff]  ;;  %v405_v56 = vld [vmem:[#allocation6 + $0x6d8] sm:$0xff] }
 0x321   :  { %13472 = vmatprep.subr.bf16.mxu0 %v17058_v13  ;;  %v17138_v13 = vcombine.high %v381_v5, %v389_v38  ;;  %v17154_v33 = vcombine.high %v397_v40, %v405_v56  ;;  %v668_v7 = vld [vmem:[#allocation6 + $0xf10] sm:$0xff]  ;;  %v17153_v44 = vcombine.low %v397_v40, %v405_v56 }
 0x322   :  { %v676_v35 = vld [vmem:[#allocation6 + $0xf50] sm:$0xff] }
 0x323   :  { %13186 = vmatpush1.bf16.msra.mxu1 %v17311_v20  ;;  %v17391_v20 = vcombine.low %v636_v3, %v644_v32  ;;  %v17424_v48 = vcombine.high %v668_v7, %v676_v35  ;;  %v17423_v53 = vcombine.low %v668_v7, %v676_v35 }
 0x324   :  { %13473 = vmatpush1.bf16.msra.mxu0 %v17057_v27  ;;  %13187 = vmatprep.subr.bf16.mxu1 %v17328_v29  ;;  %v17137_v27 = vcombine.low %v381_v5, %v389_v38  ;;  %v17408_v29 = vcombine.high %v652_v15, %v660_v26 }
 0x325   :  { %13474 = vmatprep.subr.bf16.mxu0 %v17074_v1  ;;  %v20051_v1 = vpop.f32.mrb[24].mxu0 }
 0x326   :  { %v20053_v42 = vpop.f32.mrb[25].mxu0 }
 0x327   :  { %13188 = vmatpush1.bf16.msra.mxu1 %v17327_v43  ;;  %v413_v43 = vld [vmem:[#allocation6 + $0x718] sm:$0xff] }
 0x328   :  { %13475 = vmatpush1.bf16.msra.mxu0 %v17073_v34  ;;  %13189 = vmatprep.subr.bf16.mxu1 %v17344_v45  ;;  %v421_v34 = vld [vmem:[#allocation6 + $0x758] sm:$0xff]  ;;  %v13168_v45 = vpop.f32.mrb[26].mxu0 }
 0x329   :  { %13476 = vmatprep.subr.bf16.mxu0 %v17090_v46  ;;  %v17407_v46 = vcombine.low %v652_v15, %v660_v26  ;;  %v13169_v47 = vpop.f32.mrb[27].mxu0  ;;  %v17170_v50 = vcombine.high %v413_v43, %v421_v34  ;;  %v17169_v30 = vcombine.low %v413_v43, %v421_v34  ;;  %v1004_v45 = vld [vmem:[#allocation6 + $0x1990] sm:$0xff] }
 0x32a   :  { %v749_v47 = vld [vmem:[#allocation6 + $0x1198] sm:$0xff] }
 0x32b   :  { %13190 = vmatpush1.bf16.msra.mxu1 %v17343_v17  ;;  %v684_v17 = vld [vmem:[#allocation6 + $0xf90] sm:$0xff] }
 0x32c   :  { %13477 = vmatpush1.bf16.msra.mxu0 %v17089_v51  ;;  %13191 = vmatprep.subr.bf16.mxu1 %v17360_v22  ;;  %v692_v51 = vld [vmem:[#allocation6 + $0xfd0] sm:$0xff]  ;;  %v429_v22 = vld [vmem:[#allocation6 + $0x798] sm:$0xff] }
 0x32d   :  { %13478 = vmatprep.subr.bf16.mxu0 %v17106_v52  ;;  %v437_v52 = vld [vmem:[#allocation6 + $0x7d8] sm:$0xff]  ;;  %v17440_v54 = vcombine.high %v684_v17, %v692_v51  ;;  %v17439_v3 = vcombine.low %v684_v17, %v692_v51 }
 0x32e   :  { %v17186_v58 = vcombine.high %v429_v22, %v437_v52  ;;  %v17185_v32 = vcombine.low %v429_v22, %v437_v52  ;;  %v1020_v22 = vld [vmem:[#allocation6 + $0x1a10] sm:$0xff] }
 0x32f   :  { %13192 = vmatpush1.bf16.msra.mxu1 %v17359_v59  ;;  %v956_v59 = vld [vmem:[#allocation6 + $0x1810] sm:$0xff] }
 0x330   :  { %13479 = vmatpush1.bf16.msra.mxu0 %v17105_v60  ;;  %13193 = vmatprep.subr.bf16.mxu1 %v17376_v63  ;;  %v964_v60 = vld [vmem:[#allocation6 + $0x1850] sm:$0xff]  ;;  %v701_v63 = vld [vmem:[#allocation6 + $0x1018] sm:$0xff] }
 0x331   :  { %13480 = vmatprep.subr.bf16.mxu0 %v17122_v2  ;;  %v709_v2 = vld [vmem:[#allocation6 + $0x1058] sm:$0xff]  ;;  %v17712_v5 = vcombine.high %v956_v59, %v964_v60  ;;  %v17711_v15 = vcombine.low %v956_v59, %v964_v60  ;;  %v1028_v52 = vld [vmem:[#allocation6 + $0x1a50] sm:$0xff] }
 0x332   :  { %v17458_v38 = vcombine.high %v701_v63, %v709_v2  ;;  %v17457_v26 = vcombine.low %v701_v63, %v709_v2  ;;  %v17776_v59 = vcombine.high %v1020_v22, %v1028_v52  ;;  %v1036_v63 = vld [vmem:[#allocation6 + $0x1a90] sm:$0xff] }
 0x333   :  { %13194 = vmatpush1.bf16.msra.mxu1 %v17375_v6  ;;  %v972_v6 = vld [vmem:[#allocation6 + $0x1890] sm:$0xff] }
 0x334   :  { %13481 = vmatpush1.bf16.msra.mxu0 %v17121_v8  ;;  %13195 = vmatprep.subr.bf16.mxu1 %v17392_v11  ;;  %v980_v8 = vld [vmem:[#allocation6 + $0x18d0] sm:$0xff]  ;;  %v717_v11 = vld [vmem:[#allocation6 + $0x1098] sm:$0xff] }
 0x335   :  { %13482 = vmatprep.subr.bf16.mxu0 %v17138_v13  ;;  %v725_v13 = vld [vmem:[#allocation6 + $0x10d8] sm:$0xff]  ;;  %v17728_v40 = vcombine.high %v972_v6, %v980_v8  ;;  %v17727_v7 = vcombine.low %v972_v6, %v980_v8  ;;  %v1044_v2 = vld [vmem:[#allocation6 + $0x1ad0] sm:$0xff] }
 0x336   :  { %v17474_v56 = vcombine.high %v717_v11, %v725_v13  ;;  %v17473_v35 = vcombine.low %v717_v11, %v725_v13  ;;  %v17792_v6 = vcombine.high %v1036_v63, %v1044_v2  ;;  %v1052_v11 = vld [vmem:[#allocation6 + $0x1b10] sm:$0xff] }
 0x337   :  { %13196 = vmatpush1.bf16.msra.mxu1 %v17391_v20  ;;  %v988_v20 = vld [vmem:[#allocation6 + $0x1910] sm:$0xff] }
 0x338   :  { %13483 = vmatpush1.bf16.msra.mxu0 %v17137_v27  ;;  %13197 = vmatprep.subr.bf16.mxu1 %v17408_v29  ;;  %v996_v27 = vld [vmem:[#allocation6 + $0x1950] sm:$0xff]  ;;  %v733_v29 = vld [vmem:[#allocation6 + $0x1118] sm:$0xff] }
 0x339   :  { %13484 = vmatprep.subr.bf16.mxu0 %v17154_v33  ;;  %v741_v33 = vld [vmem:[#allocation6 + $0x1158] sm:$0xff]  ;;  %v17744_v43 = vcombine.high %v988_v20, %v996_v27  ;;  %v1060_v13 = vld [vmem:[#allocation6 + $0x1b50] sm:$0xff] }
 0x33a   :  { %v17490_v34 = vcombine.high %v733_v29, %v741_v33 }
 0x33b   :  { %13198 = vmatpush1.bf16.msra.mxu1 %v17407_v46  ;;  %v1012_v46 = vld [vmem:[#allocation6 + $0x19d0] sm:$0xff] }
 0x33c   :  { %13485 = vmatpush1.bf16.msra.mxu0 %v17153_v44  ;;  %13199 = vmatprep.subr.bf16.mxu1 %v17424_v48  ;;  %v757_v44 = vld [vmem:[#allocation6 + $0x11d8] sm:$0xff]  ;;  %v17743_v48 = vcombine.low %v988_v20, %v996_v27  ;;  %v17760_v17 = vcombine.high %v1004_v45, %v1012_v46  ;;  %v17808_v20 = vcombine.high %v1052_v11, %v1060_v13 }
 0x33d   :  { %13486 = vmatprep.subr.bf16.mxu0 %v17170_v50  ;;  %v17489_v50 = vcombine.low %v733_v29, %v741_v33  ;;  %v17506_v51 = vcombine.high %v749_v47, %v757_v44  ;;  %v1068_v33 = vld [vmem:[#allocation6 + $0x1b90] sm:$0xff] }
 0x33f   :  { %13200 = vmatpush1.bf16.msra.mxu1 %v17423_v53  ;;  %v765_v53 = vld [vmem:[#allocation6 + $0x1218] sm:$0xff] }
 0x340   :  { %13487 = vmatpush1.bf16.msra.mxu0 %v17169_v30  ;;  %13201 = vmatprep.subr.bf16.mxu1 %v17440_v54  ;;  %v773_v30 = vld [vmem:[#allocation6 + $0x1258] sm:$0xff]  ;;  %v17759_v54 = vcombine.low %v1004_v45, %v1012_v46 }
 0x341   :  { %13488 = vmatprep.subr.bf16.mxu0 %v17186_v58  ;;  %v17505_v58 = vcombine.low %v749_v47, %v757_v44  ;;  %v17522_v60 = vcombine.high %v765_v53, %v773_v30  ;;  %v821_v45 = vld [vmem:[#allocation6 + $0x13d8] sm:$0xff]  ;;  %v17807_v44 = vcombine.low %v1052_v11, %v1060_v13 }
 0x342   :  { %v861_v11 = vld [vmem:[#allocation6 + $0x1518] sm:$0xff] }
 0x343   :  { %13202 = vmatpush1.bf16.msra.mxu1 %v17439_v3  ;;  %v781_v3 = vld [vmem:[#allocation6 + $0x1298] sm:$0xff] }
 0x344   :  { %13489 = vmatpush1.bf16.msra.mxu0 %v17185_v32  ;;  %13253 = vmatprep.subr.bf16.mxu1 %v17712_v5  ;;  %v789_v32 = vld [vmem:[#allocation6 + $0x12d8] sm:$0xff]  ;;  %v17775_v5 = vcombine.low %v1020_v22, %v1028_v52  ;;  %v1084_v52 = vld [vmem:[#allocation6 + $0x1c10] sm:$0xff] }
 0x345   :  { %13540 = vmatprep.subr.bf16.mxu0 %v17458_v38  ;;  %v17521_v38 = vcombine.low %v765_v53, %v773_v30  ;;  %v17538_v8 = vcombine.high %v781_v3, %v789_v32  ;;  %v829_v30 = vld [vmem:[#allocation6 + $0x1418] sm:$0xff] }
 0x346   :  { %13204 = vmatmul.mubr.bf16.vlgmr.msra.gmra.mrb[40].mxu1 %v19925_v39  ;;  %v869_v13 = vld [vmem:[#allocation6 + $0x1558] sm:$0xff] }
 0x347   :  { %13254 = vmatpush1.bf16.msra.mxu1 %v17711_v15  ;;  %13491 = vmatmul.mubr.bf16.vlgmr.msra.gmra.mrb[40].mxu0 %v19913_v16  ;;  %v797_v15 = vld [vmem:[#allocation6 + $0x1318] sm:$0xff] }
 0x348   :  { %13541 = vmatpush1.bf16.msra.mxu0 %v17457_v26  ;;  %13255 = vmatprep.subr.bf16.mxu1 %v17728_v40  ;;  %v805_v26 = vld [vmem:[#allocation6 + $0x1358] sm:$0xff]  ;;  %v17791_v40 = vcombine.low %v1036_v63, %v1044_v2  ;;  %v1100_v63 = vld [vmem:[#allocation6 + $0x1c90] sm:$0xff] }
 0x349   :  { %13542 = vmatprep.subr.bf16.mxu0 %v17474_v56  ;;  %13285 = vmatprep.mubr.bf16.mxu1 %v19937_v9  ;;  %v17537_v56 = vcombine.low %v781_v3, %v789_v32  ;;  %v17554_v29 = vcombine.high %v797_v15, %v805_v26  ;;  %v845_v2 = vld [vmem:[#allocation6 + $0x1498] sm:$0xff] }
 0x34a   :  { %13572 = vmatprep.mubr.bf16.mxu0 %v19929_v49  ;;  %v853_v3 = vld [vmem:[#allocation6 + $0x14d8] sm:$0xff] }
 0x34b   :  { %13256 = vmatpush1.bf16.msra.mxu1 %v17727_v7  ;;  %v1076_v7 = vld [vmem:[#allocation6 + $0x1bd0] sm:$0xff] }
 0x34c   :  { %13543 = vmatpush1.bf16.msra.mxu0 %v17473_v35  ;;  %13257 = vmatprep.subr.bf16.mxu1 %v17744_v43 }
 0x34d   :  { %13544 = vmatprep.subr.bf16.mxu0 %v17490_v34  ;;  %v813_v34 = vld [vmem:[#allocation6 + $0x1398] sm:$0xff] }
 0x34e   :  { %v17570_v22 = vcombine.high %v813_v34, %v821_v45 }
 0x34f   :  { %13258 = vmatpush1.bf16.msra.mxu1 %v17743_v48 }
 0x350   :  { %13545 = vmatpush1.bf16.msra.mxu0 %v17489_v50  ;;  %13259 = vmatprep.subr.bf16.mxu1 %v17760_v17  ;;  %v17553_v50 = vcombine.low %v797_v15, %v805_v26  ;;  %v17824_v17 = vcombine.high %v1068_v33, %v1076_v7  ;;  %v17601_v26 = vcombine.low %v845_v2, %v853_v3 }
 0x351   :  { %13546 = vmatprep.subr.bf16.mxu0 %v17506_v51 }
 0x353   :  { %13260 = vmatpush1.bf16.msra.mxu1 %v17759_v54  ;;  %v17823_v54 = vcombine.low %v1068_v33, %v1076_v7  ;;  %v885_v33 = vld [vmem:[#allocation6 + $0x15d8] sm:$0xff] }
 0x354   :  { %13547 = vmatpush1.bf16.msra.mxu0 %v17505_v58  ;;  %13261 = vmatprep.subr.bf16.mxu1 %v17776_v59  ;;  %v17569_v58 = vcombine.low %v813_v34, %v821_v45  ;;  %v1148_v45 = vld [vmem:[#allocation6 + $0x1e10] sm:$0xff] }
 0x355   :  { %13548 = vmatprep.subr.bf16.mxu0 %v17522_v60 }
 0x357   :  { %13262 = vmatpush1.bf16.msra.mxu1 %v17775_v5 }
 0x358   :  { %13549 = vmatpush1.bf16.msra.mxu0 %v17521_v38  ;;  %13263 = vmatprep.subr.bf16.mxu1 %v17792_v6  ;;  %v17602_v38 = vcombine.high %v845_v2, %v853_v3  ;;  %v1116_v6 = vld [vmem:[#allocation6 + $0x1d10] sm:$0xff] }
 0x359   :  { %v12959_v27 = vpop.f32.mrb[28].mxu1  ;;  %13550 = vmatprep.subr.bf16.mxu0 %v17538_v8  ;;  %v1124_v8 = vld [vmem:[#allocation6 + $0x1d50] sm:$0xff] }
 0x35a   :  { %v12960_v35 = vadd.f32 %v12959_v27, %v20046_v12  ;;  %v12961_v43 = vpop.f32.mrb[29].mxu1  ;;  %v1092_v12 = vld [vmem:[#allocation6 + $0x1c50] sm:$0xff]  ;;  %v17871_v7 = vcombine.low %v1116_v6, %v1124_v8 }
 0x35b   :  { %v12962_v46 = vadd.f32 %v12961_v43, %v20049_v18  ;;  %v12963_v47 = vpop.f32.mrb[30].mxu1  ;;  %13264 = vmatpush1.bf16.msra.mxu1 %v17791_v40  ;;  %v837_v18 = vld [vmem:[#allocation6 + $0x1458] sm:$0xff]  ;;  %v17840_v59 = vcombine.high %v1084_v52, %v1092_v12  ;;  %v17839_v32 = vcombine.low %v1084_v52, %v1092_v12  ;;  %v17872_v40 = vcombine.high %v1116_v6, %v1124_v8  ;;  %v1140_v27 = vld [vmem:[#allocation6 + $0x1dd0] sm:$0xff] }
 0x35c   :  { %13551 = vmatpush1.bf16.msra.mxu0 %v17537_v56  ;;  %v12964_v48 = vpop.f32.mrb[31].mxu1  ;;  %13265 = vmatprep.subr.bf16.mxu1 %v17808_v20  ;;  %v20062_v51 = vadd.f32 %v20021_v36, %v12960_v35  ;;  %v17586_v60 = vcombine.high %v829_v30, %v837_v18  ;;  %v1108_v36 = vld [vmem:[#allocation6 + $0x1cd0] sm:$0xff]  ;;  %v17618_v56 = vcombine.high %v861_v11, %v869_v13  ;;  %v893_v47 = vld [vmem:[#allocation6 + $0x1618] sm:$0xff] }
 0x35d   :  { %13552 = vmatprep.subr.bf16.mxu0 %v17554_v29  ;;  %v20065_v53 = vadd.f32 %v20023_v19, %v12962_v46  ;;  %v17585_v19 = vcombine.low %v829_v30, %v837_v18  ;;  %v17856_v5 = vcombine.high %v1100_v63, %v1108_v36  ;;  %v17855_v15 = vcombine.low %v1100_v63, %v1108_v36  ;;  %v1132_v20 = vld [vmem:[#allocation6 + $0x1d90] sm:$0xff]  ;;  %v877_v29 = vld [vmem:[#allocation6 + $0x1598] sm:$0xff] }
 0x35e   :  { %v17617_v35 = vcombine.low %v861_v11, %v869_v13  ;;  %v17888_v43 = vcombine.high %v1132_v20, %v1140_v27  ;;  %v17634_v34 = vcombine.high %v877_v29, %v885_v33  ;;  %v1156_v46 = vld [vmem:[#allocation6 + $0x1e50] sm:$0xff]  ;;  %v17887_v48 = vcombine.low %v1132_v20, %v1140_v27  ;;  %v909_v30 = vld [vmem:[#allocation6 + $0x1698] sm:$0xff] }
 0x35f   :  { %13266 = vmatpush1.bf16.msra.mxu1 %v17807_v44  ;;  %v901_v44 = vld [vmem:[#allocation6 + $0x1658] sm:$0xff]  ;;  %v1164_v52 = vld [vmem:[#allocation6 + $0x1e90] sm:$0xff] }
 0x360   :  { %13553 = vmatpush1.bf16.msra.mxu0 %v17553_v50  ;;  %13267 = vmatprep.subr.bf16.mxu1 %v17824_v17  ;;  %v17633_v50 = vcombine.low %v877_v29, %v885_v33  ;;  %v17904_v17 = vcombine.high %v1148_v45, %v1156_v46  ;;  %v1172_v12 = vld [vmem:[#allocation6 + $0x1ed0] sm:$0xff]  ;;  %v917_v18 = vld [vmem:[#allocation6 + $0x16d8] sm:$0xff] }
 0x361   :  { %13554 = vmatprep.subr.bf16.mxu0 %v17570_v22  ;;  %v17650_v22 = vcombine.high %v893_v47, %v901_v44  ;;  %v17666_v63 = vcombine.high %v909_v30, %v917_v18  ;;  %v1180_v36 = vld [vmem:[#allocation6 + $0x1f10] sm:$0xff]  ;;  %v17665_v8 = vcombine.low %v909_v30, %v917_v18 }
 0x362   :  { %v1188_v2 = vld [vmem:[#allocation6 + $0x1f50] sm:$0xff] }
 0x363   :  { %13268 = vmatpush1.bf16.msra.mxu1 %v17823_v54  ;;  %v17903_v54 = vcombine.low %v1148_v45, %v1156_v46  ;;  %v17936_v11 = vcombine.high %v1180_v36, %v1188_v2  ;;  %v17935_v20 = vcombine.low %v1180_v36, %v1188_v2 }
 0x364   :  { %13555 = vmatpush1.bf16.msra.mxu0 %v17569_v58  ;;  %13269 = vmatprep.subr.bf16.mxu1 %v17840_v59  ;;  %v17649_v58 = vcombine.low %v893_v47, %v901_v44  ;;  %v17920_v59 = vcombine.high %v1164_v52, %v1172_v12 }
 0x365   :  { %13556 = vmatprep.subr.bf16.mxu0 %v17586_v60  ;;  %v20067_v60 = vpop.f32.mrb[28].mxu0 }
 0x366   :  { %v20069_v3 = vpop.f32.mrb[29].mxu0 }
 0x367   :  { %13270 = vmatpush1.bf16.msra.mxu1 %v17839_v32  ;;  %v925_v32 = vld [vmem:[#allocation6 + $0x1718] sm:$0xff] }
 0x368   :  { %13557 = vmatpush1.bf16.msra.mxu0 %v17585_v19  ;;  %13271 = vmatprep.subr.bf16.mxu1 %v17856_v5  ;;  %v933_v19 = vld [vmem:[#allocation6 + $0x1758] sm:$0xff]  ;;  %v13250_v5 = vpop.f32.mrb[30].mxu0 }
 0x369   :  { %13558 = vmatprep.subr.bf16.mxu0 %v17602_v38  ;;  %v17919_v38 = vcombine.low %v1164_v52, %v1172_v12  ;;  %v13251_v6 = vpop.f32.mrb[31].mxu0  ;;  %v17682_v13 = vcombine.high %v925_v32, %v933_v19  ;;  %v17681_v27 = vcombine.low %v925_v32, %v933_v19  ;;  %v1516_v5 = vld [vmem:[#allocation6 + $0x2990] sm:$0xff] }
 0x36a   :  { %v1261_v6 = vld [vmem:[#allocation6 + $0x2198] sm:$0xff] }
 0x36b   :  { %13272 = vmatpush1.bf16.msra.mxu1 %v17855_v15  ;;  %v1196_v15 = vld [vmem:[#allocation6 + $0x1f90] sm:$0xff] }
 0x36c   :  { %13559 = vmatpush1.bf16.msra.mxu0 %v17601_v26  ;;  %13273 = vmatprep.subr.bf16.mxu1 %v17872_v40  ;;  %v1204_v26 = vld [vmem:[#allocation6 + $0x1fd0] sm:$0xff]  ;;  %v941_v40 = vld [vmem:[#allocation6 + $0x1798] sm:$0xff] }
 0x36d   :  { %13560 = vmatprep.subr.bf16.mxu0 %v17618_v56  ;;  %v949_v56 = vld [vmem:[#allocation6 + $0x17d8] sm:$0xff]  ;;  %v17952_v29 = vcombine.high %v1196_v15, %v1204_v26  ;;  %v17951_v45 = vcombine.low %v1196_v15, %v1204_v26 }
 0x36e   :  { %v17698_v33 = vcombine.high %v941_v40, %v949_v56  ;;  %v17697_v46 = vcombine.low %v941_v40, %v949_v56  ;;  %v1532_v40 = vld [vmem:[#allocation6 + $0x2a10] sm:$0xff] }
 0x36f   :  { %13274 = vmatpush1.bf16.msra.mxu1 %v17871_v7  ;;  %v1468_v7 = vld [vmem:[#allocation6 + $0x2810] sm:$0xff] }
 0x370   :  { %13561 = vmatpush1.bf16.msra.mxu0 %v17617_v35  ;;  %13275 = vmatprep.subr.bf16.mxu1 %v17888_v43  ;;  %v1476_v35 = vld [vmem:[#allocation6 + $0x2850] sm:$0xff]  ;;  %v1213_v43 = vld [vmem:[#allocation6 + $0x2018] sm:$0xff] }
 0x371   :  { %13562 = vmatprep.subr.bf16.mxu0 %v17634_v34  ;;  %v1221_v34 = vld [vmem:[#allocation6 + $0x2058] sm:$0xff]  ;;  %v18224_v47 = vcombine.high %v1468_v7, %v1476_v35  ;;  %v18223_v52 = vcombine.low %v1468_v7, %v1476_v35  ;;  %v1540_v56 = vld [vmem:[#allocation6 + $0x2a50] sm:$0xff] }
 0x372   :  { %v17970_v44 = vcombine.high %v1213_v43, %v1221_v34  ;;  %v17969_v12 = vcombine.low %v1213_v43, %v1221_v34  ;;  %v18288_v7 = vcombine.high %v1532_v40, %v1540_v56  ;;  %v1548_v43 = vld [vmem:[#allocation6 + $0x2a90] sm:$0xff] }
 0x373   :  { %13276 = vmatpush1.bf16.msra.mxu1 %v17887_v48  ;;  %v1484_v48 = vld [vmem:[#allocation6 + $0x2890] sm:$0xff] }
 0x374   :  { %13563 = vmatpush1.bf16.msra.mxu0 %v17633_v50  ;;  %13277 = vmatprep.subr.bf16.mxu1 %v17904_v17  ;;  %v1492_v50 = vld [vmem:[#allocation6 + $0x28d0] sm:$0xff]  ;;  %v1229_v17 = vld [vmem:[#allocation6 + $0x2098] sm:$0xff] }
 0x375   :  { %13564 = vmatprep.subr.bf16.mxu0 %v17650_v22  ;;  %v1237_v22 = vld [vmem:[#allocation6 + $0x20d8] sm:$0xff]  ;;  %v18240_v30 = vcombine.high %v1484_v48, %v1492_v50  ;;  %v18239_v36 = vcombine.low %v1484_v48, %v1492_v50  ;;  %v1556_v34 = vld [vmem:[#allocation6 + $0x2ad0] sm:$0xff] }
 0x376   :  { %v17986_v18 = vcombine.high %v1229_v17, %v1237_v22  ;;  %v17985_v2 = vcombine.low %v1229_v17, %v1237_v22  ;;  %v18304_v48 = vcombine.high %v1548_v43, %v1556_v34  ;;  %v1564_v17 = vld [vmem:[#allocation6 + $0x2b10] sm:$0xff] }
 0x377   :  { %13278 = vmatpush1.bf16.msra.mxu1 %v17903_v54  ;;  %v1500_v54 = vld [vmem:[#allocation6 + $0x2910] sm:$0xff] }
 0x378   :  { %13565 = vmatpush1.bf16.msra.mxu0 %v17649_v58  ;;  %13279 = vmatprep.subr.bf16.mxu1 %v17920_v59  ;;  %v1508_v58 = vld [vmem:[#allocation6 + $0x2950] sm:$0xff]  ;;  %v1245_v59 = vld [vmem:[#allocation6 + $0x2118] sm:$0xff] }
 0x379   :  { %13566 = vmatprep.subr.bf16.mxu0 %v17666_v63  ;;  %v1253_v63 = vld [vmem:[#allocation6 + $0x2158] sm:$0xff]  ;;  %v18256_v32 = vcombine.high %v1500_v54, %v1508_v58  ;;  %v1572_v22 = vld [vmem:[#allocation6 + $0x2b50] sm:$0xff] }
 0x37a   :  { %v18002_v19 = vcombine.high %v1245_v59, %v1253_v63 }
 0x37b   :  { %13280 = vmatpush1.bf16.msra.mxu1 %v17919_v38  ;;  %v1524_v38 = vld [vmem:[#allocation6 + $0x29d0] sm:$0xff] }
 0x37c   :  { %13567 = vmatpush1.bf16.msra.mxu0 %v17665_v8  ;;  %13281 = vmatprep.subr.bf16.mxu1 %v17936_v11  ;;  %v1269_v8 = vld [vmem:[#allocation6 + $0x21d8] sm:$0xff]  ;;  %v18255_v11 = vcombine.low %v1500_v54, %v1508_v58  ;;  %v18272_v15 = vcombine.high %v1516_v5, %v1524_v38  ;;  %v18320_v54 = vcombine.high %v1564_v17, %v1572_v22 }
 0x37d   :  { %13568 = vmatprep.subr.bf16.mxu0 %v17682_v13  ;;  %v18001_v13 = vcombine.low %v1245_v59, %v1253_v63  ;;  %v18018_v26 = vcombine.high %v1261_v6, %v1269_v8  ;;  %v1580_v63 = vld [vmem:[#allocation6 + $0x2b90] sm:$0xff] }
 0x37f   :  { %13282 = vmatpush1.bf16.msra.mxu1 %v17935_v20  ;;  %v1277_v20 = vld [vmem:[#allocation6 + $0x2218] sm:$0xff] }
 0x380   :  { %13569 = vmatpush1.bf16.msra.mxu0 %v17681_v27  ;;  %13283 = vmatprep.subr.bf16.mxu1 %v17952_v29  ;;  %v1285_v27 = vld [vmem:[#allocation6 + $0x2258] sm:$0xff]  ;;  %v18271_v29 = vcombine.low %v1516_v5, %v1524_v38 }
 0x381   :  { %13570 = vmatprep.subr.bf16.mxu0 %v17698_v33  ;;  %v18017_v33 = vcombine.low %v1261_v6, %v1269_v8  ;;  %v18034_v35 = vcombine.high %v1277_v20, %v1285_v27  ;;  %v1333_v5 = vld [vmem:[#allocation6 + $0x23d8] sm:$0xff]  ;;  %v18319_v8 = vcombine.low %v1564_v17, %v1572_v22 }
 0x382   :  { %v1373_v17 = vld [vmem:[#allocation6 + $0x2518] sm:$0xff] }
 0x383   :  { %13284 = vmatpush1.bf16.msra.mxu1 %v17951_v45  ;;  %v1293_v45 = vld [vmem:[#allocation6 + $0x2298] sm:$0xff] }
 0x384   :  { %13571 = vmatpush1.bf16.msra.mxu0 %v17697_v46  ;;  %13335 = vmatprep.subr.bf16.mxu1 %v18224_v47  ;;  %v1301_v46 = vld [vmem:[#allocation6 + $0x22d8] sm:$0xff]  ;;  %v18287_v47 = vcombine.low %v1532_v40, %v1540_v56  ;;  %v1596_v56 = vld [vmem:[#allocation6 + $0x2c10] sm:$0xff] }
 0x385   :  { %13622 = vmatprep.subr.bf16.mxu0 %v17970_v44  ;;  %v18033_v44 = vcombine.low %v1277_v20, %v1285_v27  ;;  %v18050_v50 = vcombine.high %v1293_v45, %v1301_v46  ;;  %v1341_v27 = vld [vmem:[#allocation6 + $0x2418] sm:$0xff] }
 0x386   :  { %13286 = vmatmul.mubr.bf16.vlgmr.msra.gmra.mrb[44].mxu1 %v19943_v25  ;;  %v1381_v22 = vld [vmem:[#allocation6 + $0x2558] sm:$0xff] }
 0x387   :  { %13336 = vmatpush1.bf16.msra.mxu1 %v18223_v52  ;;  %13573 = vmatmul.mubr.bf16.vlgmr.msra.gmra.mrb[44].mxu0 %v19935_v0  ;;  %v1309_v52 = vld [vmem:[#allocation6 + $0x2318] sm:$0xff] }
 0x388   :  { %13623 = vmatpush1.bf16.msra.mxu0 %v17969_v12  ;;  %13337 = vmatprep.subr.bf16.mxu1 %v18240_v30  ;;  %v1317_v12 = vld [vmem:[#allocation6 + $0x2358] sm:$0xff]  ;;  %v18303_v30 = vcombine.low %v1548_v43, %v1556_v34  ;;  %v1612_v43 = vld [vmem:[#allocation6 + $0x2c90] sm:$0xff] }
 0x389   :  { %13624 = vmatprep.subr.bf16.mxu0 %v17986_v18  ;;  %13367 = vmatprep.mubr.bf16.mxu1 %v19945_v37  ;;  %v18049_v18 = vcombine.low %v1293_v45, %v1301_v46  ;;  %v18066_v59 = vcombine.high %v1309_v52, %v1317_v12  ;;  %v1357_v34 = vld [vmem:[#allocation6 + $0x2498] sm:$0xff] }
 0x38a   :  { %13654 = vmatprep.mubr.bf16.mxu0 %v19909_v61  ;;  %v1365_v45 = vld [vmem:[#allocation6 + $0x24d8] sm:$0xff] }
 0x38b   :  { %13338 = vmatpush1.bf16.msra.mxu1 %v18239_v36  ;;  %v1588_v36 = vld [vmem:[#allocation6 + $0x2bd0] sm:$0xff] }
 0x38c   :  { %13625 = vmatpush1.bf16.msra.mxu0 %v17985_v2  ;;  %13339 = vmatprep.subr.bf16.mxu1 %v18256_v32 }
 0x38d   :  { %13626 = vmatprep.subr.bf16.mxu0 %v18002_v19  ;;  %v1325_v19 = vld [vmem:[#allocation6 + $0x2398] sm:$0xff] }
 0x38e   :  { %v18082_v40 = vcombine.high %v1325_v19, %v1333_v5 }
 0x38f   :  { %13340 = vmatpush1.bf16.msra.mxu1 %v18255_v11 }
 0x390   :  { %13627 = vmatpush1.bf16.msra.mxu0 %v18001_v13  ;;  %13341 = vmatprep.subr.bf16.mxu1 %v18272_v15  ;;  %v18065_v13 = vcombine.low %v1309_v52, %v1317_v12  ;;  %v18336_v15 = vcombine.high %v1580_v63, %v1588_v36  ;;  %v18113_v12 = vcombine.low %v1357_v34, %v1365_v45 }
 0x391   :  { %13628 = vmatprep.subr.bf16.mxu0 %v18018_v26 }
 0x393   :  { %13342 = vmatpush1.bf16.msra.mxu1 %v18271_v29  ;;  %v18335_v29 = vcombine.low %v1580_v63, %v1588_v36  ;;  %v1397_v63 = vld [vmem:[#allocation6 + $0x25d8] sm:$0xff] }
 0x394   :  { %13629 = vmatpush1.bf16.msra.mxu0 %v18017_v33  ;;  %13343 = vmatprep.subr.bf16.mxu1 %v18288_v7  ;;  %v18081_v33 = vcombine.low %v1325_v19, %v1333_v5  ;;  %v1660_v5 = vld [vmem:[#allocation6 + $0x2e10] sm:$0xff] }
 0x395   :  { %13630 = vmatprep.subr.bf16.mxu0 %v18034_v35 }
 0x397   :  { %13344 = vmatpush1.bf16.msra.mxu1 %v18287_v47 }
 0x398   :  { %13631 = vmatpush1.bf16.msra.mxu0 %v18033_v44  ;;  %13345 = vmatprep.subr.bf16.mxu1 %v18304_v48  ;;  %v18114_v44 = vcombine.high %v1357_v34, %v1365_v45  ;;  %v1628_v48 = vld [vmem:[#allocation6 + $0x2d10] sm:$0xff] }
 0x399   :  { %v13041_v58 = vpop.f32.mrb[32].mxu1  ;;  %13632 = vmatprep.subr.bf16.mxu0 %v18050_v50  ;;  %v1636_v50 = vld [vmem:[#allocation6 + $0x2d50] sm:$0xff] }
 0x39a   :  { %v13042_v2 = vadd.f32 %v13041_v58, %v20062_v51  ;;  %v13043_v32 = vpop.f32.mrb[33].mxu1  ;;  %v1604_v51 = vld [vmem:[#allocation6 + $0x2c50] sm:$0xff]  ;;  %v18383_v36 = vcombine.low %v1628_v48, %v1636_v50 }
 0x39b   :  { %v13044_v38 = vadd.f32 %v13043_v32, %v20065_v53  ;;  %v13045_v6 = vpop.f32.mrb[34].mxu1  ;;  %13346 = vmatpush1.bf16.msra.mxu1 %v18303_v30  ;;  %v1349_v53 = vld [vmem:[#allocation6 + $0x2458] sm:$0xff]  ;;  %v18352_v7 = vcombine.high %v1596_v56, %v1604_v51  ;;  %v18351_v46 = vcombine.low %v1596_v56, %v1604_v51  ;;  %v18384_v30 = vcombine.high %v1628_v48, %v1636_v50  ;;  %v1652_v58 = vld [vmem:[#allocation6 + $0x2dd0] sm:$0xff] }
 0x39c   :  { %13633 = vmatpush1.bf16.msra.mxu0 %v18049_v18  ;;  %v13046_v11 = vpop.f32.mrb[35].mxu1  ;;  %13347 = vmatprep.subr.bf16.mxu1 %v18320_v54  ;;  %v20078_v26 = vadd.f32 %v20035_v55, %v13042_v2  ;;  %v18098_v35 = vcombine.high %v1341_v27, %v1349_v53  ;;  %v1620_v55 = vld [vmem:[#allocation6 + $0x2cd0] sm:$0xff]  ;;  %v18130_v18 = vcombine.high %v1373_v17, %v1381_v22  ;;  %v1405_v6 = vld [vmem:[#allocation6 + $0x2618] sm:$0xff] }
 0x39d   :  { %13634 = vmatprep.subr.bf16.mxu0 %v18066_v59  ;;  %v20081_v20 = vadd.f32 %v20037_v62, %v13044_v38  ;;  %v18097_v62 = vcombine.low %v1341_v27, %v1349_v53  ;;  %v18368_v47 = vcombine.high %v1612_v43, %v1620_v55  ;;  %v18367_v52 = vcombine.low %v1612_v43, %v1620_v55  ;;  %v1644_v54 = vld [vmem:[#allocation6 + $0x2d90] sm:$0xff]  ;;  %v1389_v59 = vld [vmem:[#allocation6 + $0x2598] sm:$0xff] }
 0x39e   :  { %v18129_v2 = vcombine.low %v1373_v17, %v1381_v22  ;;  %v18400_v32 = vcombine.high %v1644_v54, %v1652_v58  ;;  %v18146_v19 = vcombine.high %v1389_v59, %v1397_v63  ;;  %v1668_v38 = vld [vmem:[#allocation6 + $0x2e50] sm:$0xff]  ;;  %v18399_v11 = vcombine.low %v1644_v54, %v1652_v58  ;;  %v1421_v27 = vld [vmem:[#allocation6 + $0x2698] sm:$0xff] }
 0x39f   :  { %13348 = vmatpush1.bf16.msra.mxu1 %v18319_v8  ;;  %v1413_v8 = vld [vmem:[#allocation6 + $0x2658] sm:$0xff]  ;;  %v1676_v56 = vld [vmem:[#allocation6 + $0x2e90] sm:$0xff] }
 0x3a0   :  { %13635 = vmatpush1.bf16.msra.mxu0 %v18065_v13  ;;  %13349 = vmatprep.subr.bf16.mxu1 %v18336_v15  ;;  %v18145_v13 = vcombine.low %v1389_v59, %v1397_v63  ;;  %v18416_v15 = vcombine.high %v1660_v5, %v1668_v38  ;;  %v1684_v51 = vld [vmem:[#allocation6 + $0x2ed0] sm:$0xff]  ;;  %v1429_v53 = vld [vmem:[#allocation6 + $0x26d8] sm:$0xff] }
 0x3a1   :  { %13636 = vmatprep.subr.bf16.mxu0 %v18082_v40  ;;  %v18162_v40 = vcombine.high %v1405_v6, %v1413_v8  ;;  %v18178_v43 = vcombine.high %v1421_v27, %v1429_v53  ;;  %v1692_v55 = vld [vmem:[#allocation6 + $0x2f10] sm:$0xff]  ;;  %v18177_v50 = vcombine.low %v1421_v27, %v1429_v53 }
 0x3a2   :  { %v1700_v34 = vld [vmem:[#allocation6 + $0x2f50] sm:$0xff] }
 0x3a3   :  { %13350 = vmatpush1.bf16.msra.mxu1 %v18335_v29  ;;  %v18415_v29 = vcombine.low %v1660_v5, %v1668_v38  ;;  %v18448_v17 = vcombine.high %v1692_v55, %v1700_v34  ;;  %v18447_v54 = vcombine.low %v1692_v55, %v1700_v34 }
 0x3a4   :  { %13637 = vmatpush1.bf16.msra.mxu0 %v18081_v33  ;;  %13351 = vmatprep.subr.bf16.mxu1 %v18352_v7  ;;  %v18161_v33 = vcombine.low %v1405_v6, %v1413_v8  ;;  %v18432_v7 = vcombine.high %v1676_v56, %v1684_v51 }
 0x3a5   :  { %13638 = vmatprep.subr.bf16.mxu0 %v18098_v35  ;;  %v20083_v35 = vpop.f32.mrb[32].mxu0 }
 0x3a6   :  { %v20085_v45 = vpop.f32.mrb[33].mxu0 }
 0x3a7   :  { %13352 = vmatpush1.bf16.msra.mxu1 %v18351_v46  ;;  %v1437_v46 = vld [vmem:[#allocation6 + $0x2718] sm:$0xff] }
 0x3a8   :  { %13639 = vmatpush1.bf16.msra.mxu0 %v18097_v62  ;;  %13353 = vmatprep.subr.bf16.mxu1 %v18368_v47  ;;  %v1445_v62 = vld [vmem:[#allocation6 + $0x2758] sm:$0xff]  ;;  %v13332_v47 = vpop.f32.mrb[34].mxu0 }
 0x3a9   :  { %13640 = vmatprep.subr.bf16.mxu0 %v18114_v44  ;;  %v18431_v44 = vcombine.low %v1676_v56, %v1684_v51  ;;  %v13333_v48 = vpop.f32.mrb[35].mxu0  ;;  %v18194_v22 = vcombine.high %v1437_v46, %v1445_v62  ;;  %v18193_v58 = vcombine.low %v1437_v46, %v1445_v62  ;;  %v2028_v47 = vld [vmem:[#allocation6 + $0x3990] sm:$0xff] }
 0x3aa   :  { %v1773_v48 = vld [vmem:[#allocation6 + $0x3198] sm:$0xff] }
 0x3ab   :  { %13354 = vmatpush1.bf16.msra.mxu1 %v18367_v52  ;;  %v1708_v52 = vld [vmem:[#allocation6 + $0x2f90] sm:$0xff] }
 0x3ac   :  { %13641 = vmatpush1.bf16.msra.mxu0 %v18113_v12  ;;  %13355 = vmatprep.subr.bf16.mxu1 %v18384_v30  ;;  %v1716_v12 = vld [vmem:[#allocation6 + $0x2fd0] sm:$0xff]  ;;  %v1453_v30 = vld [vmem:[#allocation6 + $0x2798] sm:$0xff] }
 0x3ad   :  { %13642 = vmatprep.subr.bf16.mxu0 %v18130_v18  ;;  %v1461_v18 = vld [vmem:[#allocation6 + $0x27d8] sm:$0xff]  ;;  %v18464_v59 = vcombine.high %v1708_v52, %v1716_v12  ;;  %v18463_v5 = vcombine.low %v1708_v52, %v1716_v12 }
 0x3ae   :  { %v18210_v63 = vcombine.high %v1453_v30, %v1461_v18  ;;  %v18209_v38 = vcombine.low %v1453_v30, %v1461_v18  ;;  %v2044_v30 = vld [vmem:[#allocation6 + $0x3a10] sm:$0xff] }
 0x3af   :  { %13356 = vmatpush1.bf16.msra.mxu1 %v18383_v36  ;;  %v1980_v36 = vld [vmem:[#allocation6 + $0x3810] sm:$0xff] }
 0x3b0   :  { %13643 = vmatpush1.bf16.msra.mxu0 %v18129_v2  ;;  %13357 = vmatprep.subr.bf16.mxu1 %v18400_v32  ;;  %v1988_v2 = vld [vmem:[#allocation6 + $0x3850] sm:$0xff]  ;;  %v1725_v32 = vld [vmem:[#allocation6 + $0x3018] sm:$0xff] }
 0x3b1   :  { %13644 = vmatprep.subr.bf16.mxu0 %v18146_v19  ;;  %v1733_v19 = vld [vmem:[#allocation6 + $0x3058] sm:$0xff]  ;;  %v18736_v6 = vcombine.high %v1980_v36, %v1988_v2  ;;  %v18735_v56 = vcombine.low %v1980_v36, %v1988_v2  ;;  %v2052_v18 = vld [vmem:[#allocation6 + $0x3a50] sm:$0xff] }
 0x3b2   :  { %v18482_v8 = vcombine.high %v1725_v32, %v1733_v19  ;;  %v18481_v51 = vcombine.low %v1725_v32, %v1733_v19  ;;  %v18800_v36 = vcombine.high %v2044_v30, %v2052_v18  ;;  %v2060_v32 = vld [vmem:[#allocation6 + $0x3a90] sm:$0xff] }
 0x3b3   :  { %13358 = vmatpush1.bf16.msra.mxu1 %v18399_v11  ;;  %v1996_v11 = vld [vmem:[#allocation6 + $0x3890] sm:$0xff] }
 0x3b4   :  { %13645 = vmatpush1.bf16.msra.mxu0 %v18145_v13  ;;  %13359 = vmatprep.subr.bf16.mxu1 %v18416_v15  ;;  %v2004_v13 = vld [vmem:[#allocation6 + $0x38d0] sm:$0xff]  ;;  %v1741_v15 = vld [vmem:[#allocation6 + $0x3098] sm:$0xff] }
 0x3b5   :  { %13646 = vmatprep.subr.bf16.mxu0 %v18162_v40  ;;  %v1749_v40 = vld [vmem:[#allocation6 + $0x30d8] sm:$0xff]  ;;  %v18752_v27 = vcombine.high %v1996_v11, %v2004_v13  ;;  %v18751_v55 = vcombine.low %v1996_v11, %v2004_v13  ;;  %v2068_v19 = vld [vmem:[#allocation6 + $0x3ad0] sm:$0xff] }
 0x3b6   :  { %v18498_v53 = vcombine.high %v1741_v15, %v1749_v40  ;;  %v18497_v34 = vcombine.low %v1741_v15, %v1749_v40  ;;  %v18816_v11 = vcombine.high %v2060_v32, %v2068_v19  ;;  %v2076_v15 = vld [vmem:[#allocation6 + $0x3b10] sm:$0xff] }
 0x3b7   :  { %13360 = vmatpush1.bf16.msra.mxu1 %v18415_v29  ;;  %v2012_v29 = vld [vmem:[#allocation6 + $0x3910] sm:$0xff] }
 0x3b8   :  { %13647 = vmatpush1.bf16.msra.mxu0 %v18161_v33  ;;  %13361 = vmatprep.subr.bf16.mxu1 %v18432_v7  ;;  %v2020_v33 = vld [vmem:[#allocation6 + $0x3950] sm:$0xff]  ;;  %v1757_v7 = vld [vmem:[#allocation6 + $0x3118] sm:$0xff] }
 0x3b9   :  { %13648 = vmatprep.subr.bf16.mxu0 %v18178_v43  ;;  %v1765_v43 = vld [vmem:[#allocation6 + $0x3158] sm:$0xff]  ;;  %v18768_v46 = vcombine.high %v2012_v29, %v2020_v33  ;;  %v2084_v40 = vld [vmem:[#allocation6 + $0x3b50] sm:$0xff] }
 0x3ba   :  { %v18514_v62 = vcombine.high %v1757_v7, %v1765_v43 }
 0x3bb   :  { %13362 = vmatpush1.bf16.msra.mxu1 %v18431_v44  ;;  %v2036_v44 = vld [vmem:[#allocation6 + $0x39d0] sm:$0xff] }
 0x3bc   :  { %13649 = vmatpush1.bf16.msra.mxu0 %v18177_v50  ;;  %13363 = vmatprep.subr.bf16.mxu1 %v18448_v17  ;;  %v1781_v50 = vld [vmem:[#allocation6 + $0x31d8] sm:$0xff]  ;;  %v18767_v17 = vcombine.low %v2012_v29, %v2020_v33  ;;  %v18784_v52 = vcombine.high %v2028_v47, %v2036_v44  ;;  %v18832_v29 = vcombine.high %v2076_v15, %v2084_v40 }
 0x3bd   :  { %13650 = vmatprep.subr.bf16.mxu0 %v18194_v22  ;;  %v18513_v22 = vcombine.low %v1757_v7, %v1765_v43  ;;  %v18530_v12 = vcombine.high %v1773_v48, %v1781_v50  ;;  %v2092_v43 = vld [vmem:[#allocation6 + $0x3b90] sm:$0xff] }
 0x3bf   :  { %13364 = vmatpush1.bf16.msra.mxu1 %v18447_v54  ;;  %v1789_v54 = vld [vmem:[#allocation6 + $0x3218] sm:$0xff] }
 0x3c0   :  { %13651 = vmatpush1.bf16.msra.mxu0 %v18193_v58  ;;  %13365 = vmatprep.subr.bf16.mxu1 %v18464_v59  ;;  %v1797_v58 = vld [vmem:[#allocation6 + $0x3258] sm:$0xff]  ;;  %v18783_v59 = vcombine.low %v2028_v47, %v2036_v44 }
 0x3c1   :  { %13652 = vmatprep.subr.bf16.mxu0 %v18210_v63  ;;  %v18529_v63 = vcombine.low %v1773_v48, %v1781_v50  ;;  %v18546_v2 = vcombine.high %v1789_v54, %v1797_v58  ;;  %v1845_v47 = vld [vmem:[#allocation6 + $0x33d8] sm:$0xff]  ;;  %v18831_v50 = vcombine.low %v2076_v15, %v2084_v40 }
 0x3c2   :  { %v1885_v15 = vld [vmem:[#allocation6 + $0x3518] sm:$0xff] }
 0x3c3   :  { %13366 = vmatpush1.bf16.msra.mxu1 %v18463_v5  ;;  %v1805_v5 = vld [vmem:[#allocation6 + $0x3298] sm:$0xff] }
 0x3c4   :  { %13653 = vmatpush1.bf16.msra.mxu0 %v18209_v38  ;;  %13417 = vmatprep.subr.bf16.mxu1 %v18736_v6  ;;  %v1813_v38 = vld [vmem:[#allocation6 + $0x32d8] sm:$0xff]  ;;  %v18799_v6 = vcombine.low %v2044_v30, %v2052_v18  ;;  %v2108_v30 = vld [vmem:[#allocation6 + $0x3c10] sm:$0xff] }
 0x3c5   :  { %13704 = vmatprep.subr.bf16.mxu0 %v18482_v8  ;;  %v18545_v8 = vcombine.low %v1789_v54, %v1797_v58  ;;  %v18562_v13 = vcombine.high %v1805_v5, %v1813_v38  ;;  %v2116_v18 = vld [vmem:[#allocation6 + $0x3c50] sm:$0xff]  ;;  %v1861_v54 = vld [vmem:[#allocation6 + $0x3458] sm:$0xff] }
 0x3c6   :  { %13368 = vmatmul.mubr.bf16.vlgmr.msra.gmra.mrb[48].mxu1 %v19959_v10  ;;  %v1893_v40 = vld [vmem:[#allocation6 + $0x3558] sm:$0xff] }
 0x3c7   :  { %13418 = vmatpush1.bf16.msra.mxu1 %v18735_v56  ;;  %13655 = vmatmul.mubr.bf16.vlgmr.msra.gmra.mrb[48].mxu0 %v19915_v21  ;;  %v1821_v56 = vld [vmem:[#allocation6 + $0x3318] sm:$0xff] }
 0x3c8   :  { %13705 = vmatpush1.bf16.msra.mxu0 %v18481_v51  ;;  %13419 = vmatprep.subr.bf16.mxu1 %v18752_v27  ;;  %v1829_v51 = vld [vmem:[#allocation6 + $0x3358] sm:$0xff]  ;;  %v18815_v27 = vcombine.low %v2060_v32, %v2068_v19 }
 0x3c9   :  { %13706 = vmatprep.subr.bf16.mxu0 %v18498_v53  ;;  %13449 = vmatprep.mubr.bf16.mxu1 %v19961_v23  ;;  %v18561_v53 = vcombine.low %v1805_v5, %v1813_v38  ;;  %v18578_v7 = vcombine.high %v1821_v56, %v1829_v51  ;;  %v1869_v32 = vld [vmem:[#allocation6 + $0x3498] sm:$0xff]  ;;  %v18863_v5 = vcombine.low %v2108_v30, %v2116_v18 }
 0x3ca   :  { %13736 = vmatprep.mubr.bf16.mxu0 %v19920_v31  ;;  %v1877_v19 = vld [vmem:[#allocation6 + $0x34d8] sm:$0xff] }
 0x3cb   :  { %13420 = vmatpush1.bf16.msra.mxu1 %v18751_v55  ;;  %v2100_v55 = vld [vmem:[#allocation6 + $0x3bd0] sm:$0xff] }
 0x3cc   :  { %13707 = vmatpush1.bf16.msra.mxu0 %v18497_v34  ;;  %13421 = vmatprep.subr.bf16.mxu1 %v18768_v46  ;;  %v18847_v58 = vcombine.low %v2092_v43, %v2100_v55 }
 0x3cd   :  { %13708 = vmatprep.subr.bf16.mxu0 %v18514_v62  ;;  %v1837_v62 = vld [vmem:[#allocation6 + $0x3398] sm:$0xff] }
 0x3cf   :  { %13422 = vmatpush1.bf16.msra.mxu1 %v18767_v17 }
 0x3d0   :  { %13709 = vmatpush1.bf16.msra.mxu0 %v18513_v22  ;;  %13423 = vmatprep.subr.bf16.mxu1 %v18784_v52  ;;  %v18577_v22 = vcombine.low %v1821_v56, %v1829_v51  ;;  %v18848_v52 = vcombine.high %v2092_v43, %v2100_v55  ;;  %v18625_v51 = vcombine.low %v1869_v32, %v1877_v19  ;;  %v1909_v43 = vld [vmem:[#allocation6 + $0x35d8] sm:$0xff] }
 0x3d1   :  { %13710 = vmatprep.subr.bf16.mxu0 %v18530_v12  ;;  %v18594_v12 = vcombine.high %v1837_v62, %v1845_v47 }
 0x3d3   :  { %13424 = vmatpush1.bf16.msra.mxu1 %v18783_v59  ;;  %v18864_v59 = vcombine.high %v2108_v30, %v2116_v18 }
 0x3d4   :  { %13711 = vmatpush1.bf16.msra.mxu0 %v18529_v63  ;;  %13425 = vmatprep.subr.bf16.mxu1 %v18800_v36  ;;  %v2124_v36 = vld [vmem:[#allocation6 + $0x3c90] sm:$0xff] }
 0x3d5   :  { %13712 = vmatprep.subr.bf16.mxu0 %v18546_v2  ;;  %v2132_v2 = vld [vmem:[#allocation6 + $0x3cd0] sm:$0xff] }
 0x3d6   :  { %v18879_v56 = vcombine.low %v2124_v36, %v2132_v2 }
 0x3d7   :  { %13426 = vmatpush1.bf16.msra.mxu1 %v18799_v6  ;;  %v18880_v6 = vcombine.high %v2124_v36, %v2132_v2 }
 0x3d8   :  { %13713 = vmatpush1.bf16.msra.mxu0 %v18545_v8  ;;  %13427 = vmatprep.subr.bf16.mxu1 %v18816_v11  ;;  %v18626_v8 = vcombine.high %v1869_v32, %v1877_v19  ;;  %v2140_v11 = vld [vmem:[#allocation6 + $0x3d10] sm:$0xff] }
 0x3d9   :  { %v13123_v33 = vpop.f32.mrb[36].mxu1  ;;  %13714 = vmatprep.subr.bf16.mxu0 %v18562_v13  ;;  %v2148_v13 = vld [vmem:[#allocation6 + $0x3d50] sm:$0xff] }
 0x3da   :  { %v20092_v34 = vadd.f32 %v13123_v33, %v20078_v26  ;;  %v13125_v46 = vpop.f32.mrb[37].mxu1  ;;  %v1853_v26 = vld [vmem:[#allocation6 + $0x3418] sm:$0xff]  ;;  %v2164_v33 = vld [vmem:[#allocation6 + $0x3dd0] sm:$0xff]  ;;  %v18895_v55 = vcombine.low %v2140_v11, %v2148_v13  ;;  %v20097_v2 = vpop.f32.mrb[36].mxu0 }
 0x3db   :  { %v20095_v44 = vadd.f32 %v13125_v46, %v20081_v20  ;;  %v13127_v48 = vpop.f32.mrb[38].mxu1  ;;  %13428 = vmatpush1.bf16.msra.mxu1 %v18815_v27  ;;  %v18593_v20 = vcombine.low %v1837_v62, %v1845_v47  ;;  %v18610_v63 = vcombine.high %v1853_v26, %v1861_v54  ;;  %v18609_v38 = vcombine.low %v1853_v26, %v1861_v54  ;;  %v2188_v26 = vld [vmem:[#allocation6 + $0x3e90] sm:$0xff] }
 0x3dc   :  { %13715 = vmatpush1.bf16.msra.mxu0 %v18561_v53  ;;  %v13128_v17 = vpop.f32.mrb[39].mxu1  ;;  %13429 = vmatprep.subr.bf16.mxu1 %v18832_v29  ;;  %v18896_v27 = vcombine.high %v2140_v11, %v2148_v13  ;;  %v18642_v53 = vcombine.high %v1885_v15, %v1893_v40  ;;  %v2156_v29 = vld [vmem:[#allocation6 + $0x3d90] sm:$0xff]  ;;  %v18641_v46 = vcombine.low %v1885_v15, %v1893_v40 }
 0x3dd   :  { %13716 = vmatprep.subr.bf16.mxu0 %v18578_v7  ;;  %v1901_v7 = vld [vmem:[#allocation6 + $0x3598] sm:$0xff]  ;;  %v18912_v62 = vcombine.high %v2156_v29, %v2164_v33  ;;  %v2172_v48 = vld [vmem:[#allocation6 + $0x3e10] sm:$0xff] }
 0x3de   :  { %v18658_v47 = vcombine.high %v1901_v7, %v1909_v43  ;;  %v1917_v17 = vld [vmem:[#allocation6 + $0x3618] sm:$0xff]  ;;  %v2196_v54 = vld [vmem:[#allocation6 + $0x3ed0] sm:$0xff] }
 0x3df   :  { %13430 = vmatpush1.bf16.msra.mxu1 %v18831_v50  ;;  %v2180_v50 = vld [vmem:[#allocation6 + $0x3e50] sm:$0xff]  ;;  %v18944_v36 = vcombine.high %v2188_v26, %v2196_v54  ;;  %v18943_v13 = vcombine.low %v2188_v26, %v2196_v54  ;;  %v206_v26 = vld [vmem:[#allocation6 + $0xa0] sm:$0xff] }
 0x3e0   :  { %13717 = vmatpush1.bf16.msra.mxu0 %v18577_v22  ;;  %13431 = vmatprep.subr.bf16.mxu1 %v18848_v52  ;;  %v1925_v22 = vld [vmem:[#allocation6 + $0x3658] sm:$0xff]  ;;  %v18911_v52 = vcombine.low %v2156_v29, %v2164_v33  ;;  %v18928_v30 = vcombine.high %v2172_v48, %v2180_v50  ;;  %v2204_v19 = vld [vmem:[#allocation6 + $0x3f10] sm:$0xff]  ;;  %v214_v54 = vld [vmem:[#allocation6 + $0xe0] sm:$0xff] }
 0x3e1   :  { %13718 = vmatprep.subr.bf16.mxu0 %v18594_v12  ;;  %v18657_v12 = vcombine.low %v1901_v7, %v1909_v43  ;;  %v18674_v18 = vcombine.high %v1917_v17, %v1925_v22  ;;  %v1965_v29 = vld [vmem:[#allocation6 + $0x3798] sm:$0xff] }
 0x3e2   :  { %v1973_v33 = vld [vmem:[#allocation6 + $0x37d8] sm:$0xff] }
 0x3e3   :  { %13432 = vmatpush1.bf16.msra.mxu1 %v18847_v58  ;;  %v1933_v58 = vld [vmem:[#allocation6 + $0x3698] sm:$0xff] }
 0x3e4   :  { %13719 = vmatpush1.bf16.msra.mxu0 %v18593_v20  ;;  %13433 = vmatprep.subr.bf16.mxu1 %v18864_v59  ;;  %v1941_v20 = vld [vmem:[#allocation6 + $0x36d8] sm:$0xff]  ;;  %v18927_v59 = vcombine.low %v2172_v48, %v2180_v50  ;;  %v190_v48 = vld [vmem:[#allocation6 + $0x20] sm:$0xff] }
 0x3e5   :  { %13720 = vmatprep.subr.bf16.mxu0 %v18610_v63  ;;  %v18673_v63 = vcombine.low %v1917_v17, %v1925_v22  ;;  %v18690_v32 = vcombine.high %v1933_v58, %v1941_v20  ;;  %v18689_v40 = vcombine.low %v1933_v58, %v1941_v20  ;;  %v198_v50 = vld [vmem:[#allocation6 + $0x60] sm:$0xff]  ;;  %v18721_v22 = vcombine.low %v1965_v29, %v1973_v33 }
 0x3e6   :  { %v16947_v20 = vcombine.low %v190_v48, %v198_v50 }
 0x3e7   :  { %13434 = vmatpush1.bf16.msra.mxu1 %v18863_v5  ;;  %v2212_v5 = vld [vmem:[#allocation6 + $0x3f50] sm:$0xff] }
 0x3e8   :  { %13721 = vmatpush1.bf16.msra.mxu0 %v18609_v38  ;;  %13435 = vmatprep.subr.bf16.mxu1 %v18880_v6  ;;  %v20099_v38 = vpop.f32.mrb[37].mxu0  ;;  %v1949_v6 = vld [vmem:[#allocation6 + $0x3718] sm:$0xff]  ;;  %v18959_v7 = vcombine.low %v2204_v19, %v2212_v5 }
 0x3e9   :  { %13722 = vmatprep.subr.bf16.mxu0 %v18626_v8  ;;  %v1957_v8 = vld [vmem:[#allocation6 + $0x3758] sm:$0xff]  ;;  %v13414_v11 = vpop.f32.mrb[38].mxu0 }
 0x3ea   :  { %v13415_v15 = vpop.f32.mrb[39].mxu0  ;;  %v18705_v43 = vcombine.low %v1949_v6, %v1957_v8 }
 0x3eb   :  { %13436 = vmatpush1.bf16.msra.mxu1 %v18879_v56  ;;  %v18960_v56 = vcombine.high %v2204_v19, %v2212_v5  ;;  %v222_v19 = vld [vmem:[#allocation6 + $0x120] sm:$0xff]  ;;  %v493_v15 = vld [vmem:[#allocation6 + $0x998] sm:$0xff] }
 0x3ec   :  { %13723 = vmatpush1.bf16.msra.mxu0 %v18625_v51  ;;  %13437 = vmatprep.subr.bf16.mxu1 %v18896_v27  ;;  %v18706_v51 = vcombine.high %v1949_v6, %v1957_v8  ;;  %v2220_v27 = vld [vmem:[#allocation6 + $0x3f90] sm:$0xff]  ;;  %v230_v5 = vld [vmem:[#allocation6 + $0x160] sm:$0xff]  ;;  %v16963_v8 = vcombine.low %v206_v26, %v214_v54 }
 0x3ed   :  { %13724 = vmatprep.subr.bf16.mxu0 %v18642_v53  ;;  %v2228_v53 = vld [vmem:[#allocation6 + $0x3fd0] sm:$0xff] }
 0x3ee   :  { %v18975_v17 = vcombine.low %v2220_v27, %v2228_v53 }
 0x3ef   :  { %13438 = vmatpush1.bf16.msra.mxu1 %v18895_v55  ;;  %v18976_v55 = vcombine.high %v2220_v27, %v2228_v53  ;;  %v16979_v53 = vcombine.low %v222_v19, %v230_v5 }
 0x3f0   :  { %13725 = vmatpush1.bf16.msra.mxu0 %v18641_v46  ;;  %13439 = vmatprep.subr.bf16.mxu1 %v18912_v62  ;;  %v18722_v46 = vcombine.high %v1965_v29, %v1973_v33  ;;  %v445_v62 = vld [vmem:[#allocation6 + $0x818] sm:$0xff] }
 0x3f1   :  { %13726 = vmatprep.subr.bf16.mxu0 %v18658_v47  ;;  %v453_v47 = vld [vmem:[#allocation6 + $0x858] sm:$0xff] }
 0x3f2   :  { %v17201_v58 = vcombine.low %v445_v62, %v453_v47 }
 0x3f3   :  { %13440 = vmatpush1.bf16.msra.mxu1 %v18911_v52  ;;  %v17202_v52 = vcombine.high %v445_v62, %v453_v47 }
 0x3f4   :  { %13727 = vmatpush1.bf16.msra.mxu0 %v18657_v12  ;;  %13441 = vmatprep.subr.bf16.mxu1 %v18928_v30  ;;  %v16948_v12 = vcombine.high %v190_v48, %v198_v50  ;;  %v461_v30 = vld [vmem:[#allocation6 + $0x898] sm:$0xff] }
 0x3f5   :  { %13728 = vmatprep.subr.bf16.mxu0 %v18674_v18  ;;  %v469_v18 = vld [vmem:[#allocation6 + $0x8d8] sm:$0xff] }
 0x3f6   :  { %v17217_v6 = vcombine.low %v461_v30, %v469_v18 }
 0x3f7   :  { %13442 = vmatpush1.bf16.msra.mxu1 %v18927_v59  ;;  %v17218_v59 = vcombine.high %v461_v30, %v469_v18 }
 0x3f8   :  { %13729 = vmatpush1.bf16.msra.mxu0 %v18673_v63  ;;  %13443 = vmatprep.subr.bf16.mxu1 %v18944_v36  ;;  %v16964_v63 = vcombine.high %v206_v26, %v214_v54  ;;  %v477_v36 = vld [vmem:[#allocation6 + $0x918] sm:$0xff] }
 0x3f9   :  { %13730 = vmatprep.subr.bf16.mxu0 %v18690_v32  ;;  %v485_v32 = vld [vmem:[#allocation6 + $0x958] sm:$0xff] }
 0x3fa   :  { %v17234_v11 = vcombine.high %v477_v36, %v485_v32  ;;  %v17233_v27 = vcombine.low %v477_v36, %v485_v32 }
 0x3fb   :  { %13444 = vmatpush1.bf16.msra.mxu1 %v18943_v13  ;;  %v16980_v13 = vcombine.high %v222_v19, %v230_v5 }
 0x3fc   :  { %13731 = vmatpush1.bf16.msra.mxu0 %v18689_v40  ;;  %13445 = vmatprep.subr.bf16.mxu1 %v18960_v56  ;;  %v501_v40 = vld [vmem:[#allocation6 + $0x9d8] sm:$0xff]  ;;  %v238_v56 = vld [vmem:[#allocation6 + $0x1a0] sm:$0xff] }
 0x3fd   :  { %13732 = vmatprep.subr.bf16.mxu0 %v18706_v51  ;;  %v246_v51 = vld [vmem:[#allocation6 + $0x1e0] sm:$0xff]  ;;  %v17250_v29 = vcombine.high %v493_v15, %v501_v40  ;;  %v17249_v62 = vcombine.low %v493_v15, %v501_v40 }
 0x3fe   :  { %v16996_v33 = vcombine.high %v238_v56, %v246_v51  ;;  %v16995_v47 = vcombine.low %v238_v56, %v246_v51  ;;  %v302_v40 = vld [vmem:[#allocation6 + $0x3a0] sm:$0xff] }
 0x3ff   :  { %13446 = vmatpush1.bf16.msra.mxu1 %v18959_v7  ;;  %v509_v7 = vld [vmem:[#allocation6 + $0xa18] sm:$0xff]  ;;  %v310_v56 = vld [vmem:[#allocation6 + $0x3e0] sm:$0xff] }
 0x400   :  { %13733 = vmatpush1.bf16.msra.mxu0 %v18705_v43  ;;  %13447 = vmatprep.subr.bf16.mxu1 %v18976_v55  ;;  %v517_v43 = vld [vmem:[#allocation6 + $0xa58] sm:$0xff]  ;;  %v254_v55 = vld [vmem:[#allocation6 + $0x220] sm:$0xff] }
 0x401   :  { %13734 = vmatprep.subr.bf16.mxu0 %v18722_v46  ;;  %v262_v46 = vld [vmem:[#allocation6 + $0x260] sm:$0xff]  ;;  %v17266_v48 = vcombine.high %v509_v7, %v517_v43  ;;  %v17265_v30 = vcombine.low %v509_v7, %v517_v43 }
 0x402   :  { %v17012_v50 = vcombine.high %v254_v55, %v262_v46  ;;  %v17011_v18 = vcombine.low %v254_v55, %v262_v46  ;;  %v17060_v55 = vcombine.high %v302_v40, %v310_v56  ;;  %v573_v46 = vld [vmem:[#allocation6 + $0xc18] sm:$0xff] }
 0x403   :  { %13448 = vmatpush1.bf16.msra.mxu1 %v18975_v17  ;;  %v525_v17 = vld [vmem:[#allocation6 + $0xa98] sm:$0xff] }
 0x404   :  { %13735 = vmatpush1.bf16.msra.mxu0 %v18721_v22  ;;  %13499 = vmatprep.subr.bf16.mxu1 %v17202_v52  ;;  %v533_v22 = vld [vmem:[#allocation6 + $0xad8] sm:$0xff]  ;;  %v270_v52 = vld [vmem:[#allocation6 + $0x2a0] sm:$0xff] }
 0x405   :  { %13786 = vmatprep.subr.bf16.mxu0 %v16948_v12  ;;  %v278_v12 = vld [vmem:[#allocation6 + $0x2e0] sm:$0xff]  ;;  %v17282_v26 = vcombine.high %v525_v17, %v533_v22  ;;  %v17281_v36 = vcombine.low %v525_v17, %v533_v22 }
 0x406   :  { %13450 = vmatmul.mubr.bf16.vlgmr.msra.gmra.mrb[52].mxu1 %v19977_v14  ;;  %v17028_v54 = vcombine.high %v270_v52, %v278_v12  ;;  %v17027_v32 = vcombine.low %v270_v52, %v278_v12  ;;  %v589_v52 = vld [vmem:[#allocation6 + $0xc98] sm:$0xff]  ;;  %v334_v12 = vld [vmem:[#allocation6 + $0x4a0] sm:$0xff] }
 0x407   :  { %13500 = vmatpush1.bf16.msra.mxu1 %v17201_v58  ;;  %13737 = vmatmul.mubr.bf16.vlgmr.msra.gmra.mrb[52].mxu0 %v19927_v41  ;;  %v541_v58 = vld [vmem:[#allocation6 + $0xb18] sm:$0xff] }
 0x408   :  { %13787 = vmatpush1.bf16.msra.mxu0 %v16947_v20  ;;  %13501 = vmatprep.subr.bf16.mxu1 %v17218_v59  ;;  %v549_v20 = vld [vmem:[#allocation6 + $0xb58] sm:$0xff]  ;;  %v286_v59 = vld [vmem:[#allocation6 + $0x320] sm:$0xff] }
 0x409   :  { %13788 = vmatprep.subr.bf16.mxu0 %v16964_v63  ;;  %13531 = vmatprep.mubr.bf16.mxu1 %v19917_v28  ;;  %v294_v63 = vld [vmem:[#allocation6 + $0x360] sm:$0xff]  ;;  %v17298_v19 = vcombine.high %v541_v58, %v549_v20 }
 0x40a   :  { %13818 = vmatprep.mubr.bf16.mxu0 %v19907_v57 }
 0x40b   :  { %13502 = vmatpush1.bf16.msra.mxu1 %v17217_v6  ;;  %v17044_v6 = vcombine.high %v286_v59, %v294_v63 }
 0x40c   :  { %13789 = vmatpush1.bf16.msra.mxu0 %v16963_v8  ;;  %13503 = vmatprep.subr.bf16.mxu1 %v17234_v11  ;;  %v557_v8 = vld [vmem:[#allocation6 + $0xb98] sm:$0xff] }
 0x40d   :  { %13790 = vmatprep.subr.bf16.mxu0 %v16980_v13  ;;  %v565_v11 = vld [vmem:[#allocation6 + $0xbd8] sm:$0xff] }
 0x40e   :  { %v17314_v7 = vcombine.high %v557_v8, %v565_v11 }
 0x40f   :  { %13504 = vmatpush1.bf16.msra.mxu1 %v17233_v27 }
 0x410   :  { %13791 = vmatpush1.bf16.msra.mxu0 %v16979_v53  ;;  %13505 = vmatprep.subr.bf16.mxu1 %v17250_v29  ;;  %v17297_v53 = vcombine.low %v541_v58, %v549_v20  ;;  %v605_v58 = vld [vmem:[#allocation6 + $0xd18] sm:$0xff] }
 0x411   :  { %13792 = vmatprep.subr.bf16.mxu0 %v16996_v33  ;;  %v17043_v33 = vcombine.low %v286_v59, %v294_v63  ;;  %v613_v20 = vld [vmem:[#allocation6 + $0xd58] sm:$0xff]  ;;  %v350_v59 = vld [vmem:[#allocation6 + $0x520] sm:$0xff] }
 0x412   :  { %v358_v63 = vld [vmem:[#allocation6 + $0x560] sm:$0xff] }
 0x413   :  { %13506 = vmatpush1.bf16.msra.mxu1 %v17249_v62 }
 0x414   :  { %13793 = vmatpush1.bf16.msra.mxu0 %v16995_v47  ;;  %13507 = vmatprep.subr.bf16.mxu1 %v17266_v48  ;;  %v318_v47 = vld [vmem:[#allocation6 + $0x420] sm:$0xff]  ;;  %v17313_v48 = vcombine.low %v557_v8, %v565_v11  ;;  %v629_v8 = vld [vmem:[#allocation6 + $0xdd8] sm:$0xff] }
 0x415   :  { %13794 = vmatprep.subr.bf16.mxu0 %v17012_v50  ;;  %v17059_v50 = vcombine.low %v302_v40, %v310_v56  ;;  %v366_v11 = vld [vmem:[#allocation6 + $0x5a0] sm:$0xff]  ;;  %v17107_v40 = vcombine.low %v350_v59, %v358_v63 }
 0x417   :  { %13508 = vmatpush1.bf16.msra.mxu1 %v17265_v30  ;;  %v342_v30 = vld [vmem:[#allocation6 + $0x4e0] sm:$0xff] }
 0x418   :  { %13795 = vmatpush1.bf16.msra.mxu0 %v17011_v18  ;;  %13509 = vmatprep.subr.bf16.mxu1 %v17282_v26 }
 0x419   :  { %v13205_v5 = vpop.f32.mrb[40].mxu1  ;;  %13796 = vmatprep.subr.bf16.mxu0 %v17028_v54  ;;  %v17092_v54 = vcombine.high %v334_v12, %v342_v30 }
 0x41a   :  { %v13206_v13 = vadd.f32 %v13205_v5, %v20051_v1  ;;  %v13207_v15 = vpop.f32.mrb[41].mxu1  ;;  %v581_v1 = vld [vmem:[#allocation6 + $0xc58] sm:$0xff]  ;;  %v17108_v5 = vcombine.high %v350_v59, %v358_v63 }
 0x41b   :  { %v13208_v51 = vadd.f32 %v13207_v15, %v20053_v42  ;;  %v13209_v27 = vpop.f32.mrb[42].mxu1  ;;  %13510 = vmatpush1.bf16.msra.mxu1 %v17281_v36  ;;  %v326_v42 = vld [vmem:[#allocation6 + $0x460] sm:$0xff]  ;;  %v17330_v17 = vcombine.high %v573_v46, %v581_v1  ;;  %v17329_v18 = vcombine.low %v573_v46, %v581_v1  ;;  %v17361_v15 = vcombine.low %v605_v58, %v613_v20 }
 0x41c   :  { %13797 = vmatpush1.bf16.msra.mxu0 %v17027_v32  ;;  %v13210_v29 = vpop.f32.mrb[43].mxu1  ;;  %13511 = vmatprep.subr.bf16.mxu1 %v17298_v19  ;;  %v20108_v43 = vadd.f32 %v20067_v60, %v13206_v13  ;;  %v17076_v22 = vcombine.high %v318_v47, %v326_v42  ;;  %v597_v60 = vld [vmem:[#allocation6 + $0xcd8] sm:$0xff]  ;;  %v17091_v32 = vcombine.low %v334_v12, %v342_v30  ;;  %v374_v13 = vld [vmem:[#allocation6 + $0x5e0] sm:$0xff] }
 0x41d   :  { %13798 = vmatprep.subr.bf16.mxu0 %v17044_v6  ;;  %v20111_v62 = vadd.f32 %v20069_v3, %v13208_v51  ;;  %v17075_v3 = vcombine.low %v318_v47, %v326_v42  ;;  %v17346_v26 = vcombine.high %v589_v52, %v597_v60  ;;  %v17345_v36 = vcombine.low %v589_v52, %v597_v60  ;;  %v621_v6 = vld [vmem:[#allocation6 + $0xd98] sm:$0xff]  ;;  %v382_v29 = vld [vmem:[#allocation6 + $0x620] sm:$0xff]  ;;  %v20113_v60 = vpop.f32.mrb[40].mxu0 }
 0x41e   :  { %v17362_v19 = vcombine.high %v605_v58, %v613_v20  ;;  %v17378_v56 = vcombine.high %v621_v6, %v629_v8  ;;  %v17124_v51 = vcombine.high %v366_v11, %v374_v13  ;;  %v637_v27 = vld [vmem:[#allocation6 + $0xe18] sm:$0xff] }
 0x41f   :  { %13512 = vmatpush1.bf16.msra.mxu1 %v17297_v53  ;;  %v645_v53 = vld [vmem:[#allocation6 + $0xe58] sm:$0xff] }
 0x420   :  { %13799 = vmatpush1.bf16.msra.mxu0 %v17043_v33  ;;  %13513 = vmatprep.subr.bf16.mxu1 %v17314_v7  ;;  %v390_v33 = vld [vmem:[#allocation6 + $0x660] sm:$0xff]  ;;  %v17377_v7 = vcombine.low %v621_v6, %v629_v8  ;;  %v17394_v46 = vcombine.high %v637_v27, %v645_v53  ;;  %v653_v47 = vld [vmem:[#allocation6 + $0xe98] sm:$0xff] }
 0x421   :  { %13800 = vmatprep.subr.bf16.mxu0 %v17060_v55  ;;  %v17123_v55 = vcombine.low %v366_v11, %v374_v13  ;;  %v17140_v1 = vcombine.high %v382_v29, %v390_v33  ;;  %v661_v42 = vld [vmem:[#allocation6 + $0xed8] sm:$0xff]  ;;  %v430_v6 = vld [vmem:[#allocation6 + $0x7a0] sm:$0xff] }
 0x422   :  { %v17410_v52 = vcombine.high %v653_v47, %v661_v42  ;;  %v669_v30 = vld [vmem:[#allocation6 + $0xf18] sm:$0xff]  ;;  %v17409_v20 = vcombine.low %v653_v47, %v661_v42  ;;  %v438_v8 = vld [vmem:[#allocation6 + $0x7e0] sm:$0xff] }
 0x423   :  { %13514 = vmatpush1.bf16.msra.mxu1 %v17313_v48  ;;  %v398_v48 = vld [vmem:[#allocation6 + $0x6a0] sm:$0xff] }
 0x424   :  { %13801 = vmatpush1.bf16.msra.mxu0 %v17059_v50  ;;  %13515 = vmatprep.subr.bf16.mxu1 %v17330_v17  ;;  %v406_v50 = vld [vmem:[#allocation6 + $0x6e0] sm:$0xff]  ;;  %v17393_v17 = vcombine.low %v637_v27, %v645_v53 }
 0x425   :  { %13802 = vmatprep.subr.bf16.mxu0 %v17076_v22  ;;  %v17139_v22 = vcombine.low %v382_v29, %v390_v33  ;;  %v17156_v12 = vcombine.high %v398_v48, %v406_v50  ;;  %v17155_v63 = vcombine.low %v398_v48, %v406_v50  ;;  %v702_v27 = vld [vmem:[#allocation6 + $0x1020] sm:$0xff]  ;;  %v17187_v33 = vcombine.low %v430_v6, %v438_v8 }
 0x426   :  { %v710_v53 = vld [vmem:[#allocation6 + $0x1060] sm:$0xff] }
 0x427   :  { %13516 = vmatpush1.bf16.msra.mxu1 %v17329_v18  ;;  %v677_v18 = vld [vmem:[#allocation6 + $0xf58] sm:$0xff]  ;;  %v718_v47 = vld [vmem:[#allocation6 + $0x10a0] sm:$0xff]  ;;  %v17459_v50 = vcombine.low %v702_v27, %v710_v53 }
 0x428   :  { %13803 = vmatpush1.bf16.msra.mxu0 %v17075_v3  ;;  %13517 = vmatprep.subr.bf16.mxu1 %v17346_v26  ;;  %v20115_v3 = vpop.f32.mrb[41].mxu0  ;;  %v414_v26 = vld [vmem:[#allocation6 + $0x720] sm:$0xff]  ;;  %v17425_v11 = vcombine.low %v669_v30, %v677_v18 }
 0x429   :  { %13804 = vmatprep.subr.bf16.mxu0 %v17092_v54  ;;  %v422_v54 = vld [vmem:[#allocation6 + $0x760] sm:$0xff]  ;;  %v13496_v58 = vpop.f32.mrb[42].mxu0 }
 0x42a   :  { %v13497_v59 = vpop.f32.mrb[43].mxu0  ;;  %v17171_v13 = vcombine.low %v414_v26, %v422_v54  ;;  %v726_v42 = vld [vmem:[#allocation6 + $0x10e0] sm:$0xff] }
 0x42b   :  { %13518 = vmatpush1.bf16.msra.mxu1 %v17345_v36  ;;  %v17426_v36 = vcombine.high %v669_v30, %v677_v18  ;;  %v734_v30 = vld [vmem:[#allocation6 + $0x1120] sm:$0xff]  ;;  %v1005_v59 = vld [vmem:[#allocation6 + $0x1998] sm:$0xff] }
 0x42c   :  { %13805 = vmatpush1.bf16.msra.mxu0 %v17091_v32  ;;  %13519 = vmatprep.subr.bf16.mxu1 %v17362_v19  ;;  %v17172_v32 = vcombine.high %v414_v26, %v422_v54  ;;  %v685_v19 = vld [vmem:[#allocation6 + $0xf98] sm:$0xff]  ;;  %v742_v18 = vld [vmem:[#allocation6 + $0x1160] sm:$0xff]  ;;  %v17475_v54 = vcombine.low %v718_v47, %v726_v42 }
 0x42d   :  { %13806 = vmatprep.subr.bf16.mxu0 %v17108_v5  ;;  %v693_v5 = vld [vmem:[#allocation6 + $0xfd8] sm:$0xff] }
 0x42e   :  { %v17441_v29 = vcombine.low %v685_v19, %v693_v5 }
 0x42f   :  { %13520 = vmatpush1.bf16.msra.mxu1 %v17361_v15  ;;  %v17442_v15 = vcombine.high %v685_v19, %v693_v5  ;;  %v17491_v5 = vcombine.low %v734_v30, %v742_v18 }
 0x430   :  { %13807 = vmatpush1.bf16.msra.mxu0 %v17107_v40  ;;  %13521 = vmatprep.subr.bf16.mxu1 %v17378_v56  ;;  %v17188_v40 = vcombine.high %v430_v6, %v438_v8  ;;  %v957_v56 = vld [vmem:[#allocation6 + $0x1818] sm:$0xff] }
 0x431   :  { %13808 = vmatprep.subr.bf16.mxu0 %v17124_v51  ;;  %v965_v51 = vld [vmem:[#allocation6 + $0x1858] sm:$0xff] }
 0x432   :  { %v17713_v48 = vcombine.low %v957_v56, %v965_v51 }
 0x433   :  { %13522 = vmatpush1.bf16.msra.mxu1 %v17377_v7  ;;  %v17714_v7 = vcombine.high %v957_v56, %v965_v51 }
 0x434   :  { %13809 = vmatpush1.bf16.msra.mxu0 %v17123_v55  ;;  %13523 = vmatprep.subr.bf16.mxu1 %v17394_v46  ;;  %v17460_v55 = vcombine.high %v702_v27, %v710_v53  ;;  %v973_v46 = vld [vmem:[#allocation6 + $0x1898] sm:$0xff] }
 0x435   :  { %13810 = vmatprep.subr.bf16.mxu0 %v17140_v1  ;;  %v981_v1 = vld [vmem:[#allocation6 + $0x18d8] sm:$0xff] }
 0x436   :  { %v17729_v26 = vcombine.low %v973_v46, %v981_v1 }
 0x437   :  { %13524 = vmatpush1.bf16.msra.mxu1 %v17393_v17  ;;  %v17730_v17 = vcombine.high %v973_v46, %v981_v1 }
 0x438   :  { %13811 = vmatpush1.bf16.msra.mxu0 %v17139_v22  ;;  %13525 = vmatprep.subr.bf16.mxu1 %v17410_v52  ;;  %v17476_v22 = vcombine.high %v718_v47, %v726_v42  ;;  %v989_v52 = vld [vmem:[#allocation6 + $0x1918] sm:$0xff] }
 0x439   :  { %13812 = vmatprep.subr.bf16.mxu0 %v17156_v12  ;;  %v997_v12 = vld [vmem:[#allocation6 + $0x1958] sm:$0xff] }
 0x43a   :  { %v17746_v58 = vcombine.high %v989_v52, %v997_v12  ;;  %v17745_v19 = vcombine.low %v989_v52, %v997_v12 }
 0x43b   :  { %13526 = vmatpush1.bf16.msra.mxu1 %v17409_v20  ;;  %v17492_v20 = vcombine.high %v734_v30, %v742_v18 }
 0x43c   :  { %13813 = vmatpush1.bf16.msra.mxu0 %v17155_v63  ;;  %13527 = vmatprep.subr.bf16.mxu1 %v17426_v36  ;;  %v1013_v63 = vld [vmem:[#allocation6 + $0x19d8] sm:$0xff]  ;;  %v750_v36 = vld [vmem:[#allocation6 + $0x11a0] sm:$0xff] }
 0x43d   :  { %13814 = vmatprep.subr.bf16.mxu0 %v17172_v32  ;;  %v758_v32 = vld [vmem:[#allocation6 + $0x11e0] sm:$0xff]  ;;  %v17762_v6 = vcombine.high %v1005_v59, %v1013_v63  ;;  %v17761_v56 = vcombine.low %v1005_v59, %v1013_v63 }
 0x43e   :  { %v17508_v8 = vcombine.high %v750_v36, %v758_v32  ;;  %v17507_v51 = vcombine.low %v750_v36, %v758_v32  ;;  %v814_v63 = vld [vmem:[#allocation6 + $0x13a0] sm:$0xff] }
 0x43f   :  { %13528 = vmatpush1.bf16.msra.mxu1 %v17425_v11  ;;  %v1021_v11 = vld [vmem:[#allocation6 + $0x1a18] sm:$0xff]  ;;  %v822_v36 = vld [vmem:[#allocation6 + $0x13e0] sm:$0xff] }
 0x440   :  { %13815 = vmatpush1.bf16.msra.mxu0 %v17171_v13  ;;  %13529 = vmatprep.subr.bf16.mxu1 %v17442_v15  ;;  %v1029_v13 = vld [vmem:[#allocation6 + $0x1a58] sm:$0xff]  ;;  %v766_v15 = vld [vmem:[#allocation6 + $0x1220] sm:$0xff] }
 0x441   :  { %13816 = vmatprep.subr.bf16.mxu0 %v17188_v40  ;;  %v774_v40 = vld [vmem:[#allocation6 + $0x1260] sm:$0xff]  ;;  %v17778_v27 = vcombine.high %v1021_v11, %v1029_v13  ;;  %v17777_v46 = vcombine.low %v1021_v11, %v1029_v13 }
 0x442   :  { %v17524_v53 = vcombine.high %v766_v15, %v774_v40  ;;  %v17523_v1 = vcombine.low %v766_v15, %v774_v40  ;;  %v17572_v15 = vcombine.high %v814_v63, %v822_v36  ;;  %v1085_v40 = vld [vmem:[#allocation6 + $0x1c18] sm:$0xff] }
 0x443   :  { %13530 = vmatpush1.bf16.msra.mxu1 %v17441_v29  ;;  %v1037_v29 = vld [vmem:[#allocation6 + $0x1a98] sm:$0xff] }
 0x444   :  { %13817 = vmatpush1.bf16.msra.mxu0 %v17187_v33  ;;  %13581 = vmatprep.subr.bf16.mxu1 %v17714_v7  ;;  %v1045_v33 = vld [vmem:[#allocation6 + $0x1ad8] sm:$0xff]  ;;  %v782_v7 = vld [vmem:[#allocation6 + $0x12a0] sm:$0xff] }
 0x445   :  { %13868 = vmatprep.subr.bf16.mxu0 %v17460_v55  ;;  %v790_v55 = vld [vmem:[#allocation6 + $0x12e0] sm:$0xff]  ;;  %v17794_v47 = vcombine.high %v1037_v29, %v1045_v33  ;;  %v17793_v52 = vcombine.low %v1037_v29, %v1045_v33 }
 0x446   :  { %13532 = vmatmul.mubr.bf16.vlgmr.msra.gmra.mrb[56].mxu1 %v19925_v39  ;;  %v17540_v42 = vcombine.high %v782_v7, %v790_v55  ;;  %v17539_v12 = vcombine.low %v782_v7, %v790_v55  ;;  %v1101_v7 = vld [vmem:[#allocation6 + $0x1c98] sm:$0xff]  ;;  %v846_v55 = vld [vmem:[#allocation6 + $0x14a0] sm:$0xff] }
 0x447   :  { %13582 = vmatpush1.bf16.msra.mxu1 %v17713_v48  ;;  %13819 = vmatmul.mubr.bf16.vlgmr.msra.gmra.mrb[56].mxu0 %v19913_v16  ;;  %v1053_v48 = vld [vmem:[#allocation6 + $0x1b18] sm:$0xff] }
 0x448   :  { %13869 = vmatpush1.bf16.msra.mxu0 %v17459_v50  ;;  %13583 = vmatprep.subr.bf16.mxu1 %v17730_v17  ;;  %v1061_v50 = vld [vmem:[#allocation6 + $0x1b58] sm:$0xff]  ;;  %v798_v17 = vld [vmem:[#allocation6 + $0x1320] sm:$0xff] }
 0x449   :  { %13870 = vmatprep.subr.bf16.mxu0 %v17476_v22  ;;  %13613 = vmatprep.mubr.bf16.mxu1 %v19937_v9  ;;  %v806_v22 = vld [vmem:[#allocation6 + $0x1360] sm:$0xff]  ;;  %v17810_v30 = vcombine.high %v1053_v48, %v1061_v50 }
 0x44a   :  { %13900 = vmatprep.mubr.bf16.mxu0 %v19929_v49 }
 0x44b   :  { %13584 = vmatpush1.bf16.msra.mxu1 %v17729_v26  ;;  %v17556_v26 = vcombine.high %v798_v17, %v806_v22 }
 0x44c   :  { %13871 = vmatpush1.bf16.msra.mxu0 %v17475_v54  ;;  %13585 = vmatprep.subr.bf16.mxu1 %v17746_v58  ;;  %v1069_v54 = vld [vmem:[#allocation6 + $0x1b98] sm:$0xff] }
 0x44d   :  { %13872 = vmatprep.subr.bf16.mxu0 %v17492_v20  ;;  %v1077_v58 = vld [vmem:[#allocation6 + $0x1bd8] sm:$0xff] }
 0x44e   :  { %v17826_v11 = vcombine.high %v1069_v54, %v1077_v58 }
 0x44f   :  { %13586 = vmatpush1.bf16.msra.mxu1 %v17745_v19 }
 0x450   :  { %13873 = vmatpush1.bf16.msra.mxu0 %v17491_v5  ;;  %13587 = vmatprep.subr.bf16.mxu1 %v17762_v6  ;;  %v17809_v5 = vcombine.low %v1053_v48, %v1061_v50  ;;  %v1117_v48 = vld [vmem:[#allocation6 + $0x1d18] sm:$0xff] }
 0x451   :  { %13874 = vmatprep.subr.bf16.mxu0 %v17508_v8  ;;  %v17555_v8 = vcombine.low %v798_v17, %v806_v22  ;;  %v1125_v50 = vld [vmem:[#allocation6 + $0x1d58] sm:$0xff]  ;;  %v862_v17 = vld [vmem:[#allocation6 + $0x1520] sm:$0xff] }
 0x452   :  { %v870_v22 = vld [vmem:[#allocation6 + $0x1560] sm:$0xff] }
 0x453   :  { %13588 = vmatpush1.bf16.msra.mxu1 %v17761_v56 }
 0x454   :  { %13875 = vmatpush1.bf16.msra.mxu0 %v17507_v51  ;;  %13589 = vmatprep.subr.bf16.mxu1 %v17778_v27  ;;  %v830_v51 = vld [vmem:[#allocation6 + $0x1420] sm:$0xff]  ;;  %v17825_v27 = vcombine.low %v1069_v54, %v1077_v58  ;;  %v1141_v54 = vld [vmem:[#allocation6 + $0x1dd8] sm:$0xff] }
 0x455   :  { %13876 = vmatprep.subr.bf16.mxu0 %v17524_v53  ;;  %v17571_v53 = vcombine.low %v814_v63, %v822_v36  ;;  %v878_v58 = vld [vmem:[#allocation6 + $0x15a0] sm:$0xff]  ;;  %v17619_v63 = vcombine.low %v862_v17, %v870_v22 }
 0x457   :  { %13590 = vmatpush1.bf16.msra.mxu1 %v17777_v46  ;;  %v854_v46 = vld [vmem:[#allocation6 + $0x14e0] sm:$0xff] }
 0x458   :  { %13877 = vmatpush1.bf16.msra.mxu0 %v17523_v1  ;;  %13591 = vmatprep.subr.bf16.mxu1 %v17794_v47 }
 0x459   :  { %v13287_v18 = vpop.f32.mrb[44].mxu1  ;;  %13878 = vmatprep.subr.bf16.mxu0 %v17540_v42  ;;  %v17604_v42 = vcombine.high %v846_v55, %v854_v46 }
 0x45a   :  { %v13288_v20 = vadd.f32 %v13287_v18, %v20108_v43  ;;  %v13289_v59 = vpop.f32.mrb[45].mxu1  ;;  %v1093_v43 = vld [vmem:[#allocation6 + $0x1c58] sm:$0xff]  ;;  %v17620_v18 = vcombine.high %v862_v17, %v870_v22 }
 0x45b   :  { %v13290_v32 = vadd.f32 %v13289_v59, %v20111_v62  ;;  %v13291_v19 = vpop.f32.mrb[46].mxu1  ;;  %13592 = vmatpush1.bf16.msra.mxu1 %v17793_v52  ;;  %v838_v62 = vld [vmem:[#allocation6 + $0x1460] sm:$0xff]  ;;  %v17842_v29 = vcombine.high %v1085_v40, %v1093_v43  ;;  %v17841_v1 = vcombine.low %v1085_v40, %v1093_v43  ;;  %v17873_v59 = vcombine.low %v1117_v48, %v1125_v50 }
 0x45c   :  { %13879 = vmatpush1.bf16.msra.mxu0 %v17539_v12  ;;  %v13292_v6 = vpop.f32.mrb[47].mxu1  ;;  %13593 = vmatprep.subr.bf16.mxu1 %v17810_v30  ;;  %v20124_v13 = vadd.f32 %v20083_v35, %v13288_v20  ;;  %v17588_v33 = vcombine.high %v830_v51, %v838_v62  ;;  %v1109_v35 = vld [vmem:[#allocation6 + $0x1cd8] sm:$0xff]  ;;  %v17603_v12 = vcombine.low %v846_v55, %v854_v46  ;;  %v886_v20 = vld [vmem:[#allocation6 + $0x15e0] sm:$0xff] }
 0x45d   :  { %13880 = vmatprep.subr.bf16.mxu0 %v17556_v26  ;;  %v20127_v56 = vadd.f32 %v20085_v45, %v13290_v32  ;;  %v17587_v45 = vcombine.low %v830_v51, %v838_v62  ;;  %v17858_v47 = vcombine.high %v1101_v7, %v1109_v35  ;;  %v17857_v52 = vcombine.low %v1101_v7, %v1109_v35  ;;  %v1133_v26 = vld [vmem:[#allocation6 + $0x1d98] sm:$0xff]  ;;  %v894_v6 = vld [vmem:[#allocation6 + $0x1620] sm:$0xff]  ;;  %v20129_v35 = vpop.f32.mrb[44].mxu0 }
 0x45e   :  { %v17874_v30 = vcombine.high %v1117_v48, %v1125_v50  ;;  %v17890_v36 = vcombine.high %v1133_v26, %v1141_v54  ;;  %v17636_v32 = vcombine.high %v878_v58, %v886_v20  ;;  %v1149_v19 = vld [vmem:[#allocation6 + $0x1e18] sm:$0xff] }
 0x45f   :  { %13594 = vmatpush1.bf16.msra.mxu1 %v17809_v5  ;;  %v1157_v5 = vld [vmem:[#allocation6 + $0x1e58] sm:$0xff] }
 0x460   :  { %13881 = vmatpush1.bf16.msra.mxu0 %v17555_v8  ;;  %13595 = vmatprep.subr.bf16.mxu1 %v17826_v11  ;;  %v902_v8 = vld [vmem:[#allocation6 + $0x1660] sm:$0xff]  ;;  %v17889_v11 = vcombine.low %v1133_v26, %v1141_v54  ;;  %v17906_v40 = vcombine.high %v1149_v19, %v1157_v5  ;;  %v1165_v51 = vld [vmem:[#allocation6 + $0x1e98] sm:$0xff] }
 0x461   :  { %13882 = vmatprep.subr.bf16.mxu0 %v17572_v15  ;;  %v17635_v15 = vcombine.low %v878_v58, %v886_v20  ;;  %v17652_v43 = vcombine.high %v894_v6, %v902_v8  ;;  %v1173_v62 = vld [vmem:[#allocation6 + $0x1ed8] sm:$0xff]  ;;  %v942_v26 = vld [vmem:[#allocation6 + $0x17a0] sm:$0xff] }
 0x462   :  { %v17922_v7 = vcombine.high %v1165_v51, %v1173_v62  ;;  %v1181_v46 = vld [vmem:[#allocation6 + $0x1f18] sm:$0xff]  ;;  %v17921_v50 = vcombine.low %v1165_v51, %v1173_v62  ;;  %v950_v54 = vld [vmem:[#allocation6 + $0x17e0] sm:$0xff] }
 0x463   :  { %13596 = vmatpush1.bf16.msra.mxu1 %v17825_v27  ;;  %v910_v27 = vld [vmem:[#allocation6 + $0x16a0] sm:$0xff] }
 0x464   :  { %13883 = vmatpush1.bf16.msra.mxu0 %v17571_v53  ;;  %13597 = vmatprep.subr.bf16.mxu1 %v17842_v29  ;;  %v918_v53 = vld [vmem:[#allocation6 + $0x16e0] sm:$0xff]  ;;  %v17905_v29 = vcombine.low %v1149_v19, %v1157_v5 }
 0x465   :  { %13884 = vmatprep.subr.bf16.mxu0 %v17588_v33  ;;  %v17651_v33 = vcombine.low %v894_v6, %v902_v8  ;;  %v17668_v55 = vcombine.high %v910_v27, %v918_v53  ;;  %v17667_v22 = vcombine.low %v910_v27, %v918_v53  ;;  %v1214_v19 = vld [vmem:[#allocation6 + $0x2020] sm:$0xff]  ;;  %v17699_v8 = vcombine.low %v942_v26, %v950_v54 }
 0x466   :  { %v1222_v5 = vld [vmem:[#allocation6 + $0x2060] sm:$0xff] }
 0x467   :  { %13598 = vmatpush1.bf16.msra.mxu1 %v17841_v1  ;;  %v1189_v1 = vld [vmem:[#allocation6 + $0x1f58] sm:$0xff]  ;;  %v1230_v51 = vld [vmem:[#allocation6 + $0x20a0] sm:$0xff]  ;;  %v17971_v53 = vcombine.low %v1214_v19, %v1222_v5 }
 0x468   :  { %13885 = vmatpush1.bf16.msra.mxu0 %v17587_v45  ;;  %13599 = vmatprep.subr.bf16.mxu1 %v17858_v47  ;;  %v20131_v45 = vpop.f32.mrb[45].mxu0  ;;  %v926_v47 = vld [vmem:[#allocation6 + $0x1720] sm:$0xff]  ;;  %v17937_v58 = vcombine.low %v1181_v46, %v1189_v1 }
 0x469   :  { %13886 = vmatprep.subr.bf16.mxu0 %v17604_v42  ;;  %v934_v42 = vld [vmem:[#allocation6 + $0x1760] sm:$0xff]  ;;  %v13578_v48 = vpop.f32.mrb[46].mxu0 }
 0x46a   :  { %v13579_v17 = vpop.f32.mrb[47].mxu0  ;;  %v17683_v20 = vcombine.low %v926_v47, %v934_v42  ;;  %v1238_v62 = vld [vmem:[#allocation6 + $0x20e0] sm:$0xff] }
 0x46b   :  { %13600 = vmatpush1.bf16.msra.mxu1 %v17857_v52  ;;  %v17938_v52 = vcombine.high %v1181_v46, %v1189_v1  ;;  %v1246_v46 = vld [vmem:[#allocation6 + $0x2120] sm:$0xff]  ;;  %v1517_v17 = vld [vmem:[#allocation6 + $0x2998] sm:$0xff] }
 0x46c   :  { %13887 = vmatpush1.bf16.msra.mxu0 %v17603_v12  ;;  %13601 = vmatprep.subr.bf16.mxu1 %v17874_v30  ;;  %v17684_v12 = vcombine.high %v926_v47, %v934_v42  ;;  %v1197_v30 = vld [vmem:[#allocation6 + $0x1f98] sm:$0xff]  ;;  %v1254_v1 = vld [vmem:[#allocation6 + $0x2160] sm:$0xff]  ;;  %v17987_v42 = vcombine.low %v1230_v51, %v1238_v62 }
 0x46d   :  { %13888 = vmatprep.subr.bf16.mxu0 %v17620_v18  ;;  %v1205_v18 = vld [vmem:[#allocation6 + $0x1fd8] sm:$0xff] }
 0x46e   :  { %v17953_v6 = vcombine.low %v1197_v30, %v1205_v18 }
 0x46f   :  { %13602 = vmatpush1.bf16.msra.mxu1 %v17873_v59  ;;  %v17954_v59 = vcombine.high %v1197_v30, %v1205_v18  ;;  %v18003_v18 = vcombine.low %v1246_v46, %v1254_v1 }
 0x470   :  { %13889 = vmatpush1.bf16.msra.mxu0 %v17619_v63  ;;  %13603 = vmatprep.subr.bf16.mxu1 %v17890_v36  ;;  %v17700_v63 = vcombine.high %v942_v26, %v950_v54  ;;  %v1469_v36 = vld [vmem:[#allocation6 + $0x2818] sm:$0xff] }
 0x471   :  { %13890 = vmatprep.subr.bf16.mxu0 %v17636_v32  ;;  %v1477_v32 = vld [vmem:[#allocation6 + $0x2858] sm:$0xff] }
 0x472   :  { %v18225_v27 = vcombine.low %v1469_v36, %v1477_v32 }
 0x473   :  { %13604 = vmatpush1.bf16.msra.mxu1 %v17889_v11  ;;  %v18226_v11 = vcombine.high %v1469_v36, %v1477_v32 }
 0x474   :  { %13891 = vmatpush1.bf16.msra.mxu0 %v17635_v15  ;;  %13605 = vmatprep.subr.bf16.mxu1 %v17906_v40  ;;  %v17972_v15 = vcombine.high %v1214_v19, %v1222_v5  ;;  %v1485_v40 = vld [vmem:[#allocation6 + $0x2898] sm:$0xff] }
 0x475   :  { %13892 = vmatprep.subr.bf16.mxu0 %v17652_v43  ;;  %v1493_v43 = vld [vmem:[#allocation6 + $0x28d8] sm:$0xff] }
 0x476   :  { %v18241_v47 = vcombine.low %v1485_v40, %v1493_v43 }
 0x477   :  { %13606 = vmatpush1.bf16.msra.mxu1 %v17905_v29  ;;  %v18242_v29 = vcombine.high %v1485_v40, %v1493_v43 }
 0x478   :  { %13893 = vmatpush1.bf16.msra.mxu0 %v17651_v33  ;;  %13607 = vmatprep.subr.bf16.mxu1 %v17922_v7  ;;  %v17988_v33 = vcombine.high %v1230_v51, %v1238_v62  ;;  %v1501_v7 = vld [vmem:[#allocation6 + $0x2918] sm:$0xff] }
 0x479   :  { %13894 = vmatprep.subr.bf16.mxu0 %v17668_v55  ;;  %v1509_v55 = vld [vmem:[#allocation6 + $0x2958] sm:$0xff] }
 0x47a   :  { %v18258_v48 = vcombine.high %v1501_v7, %v1509_v55  ;;  %v18257_v30 = vcombine.low %v1501_v7, %v1509_v55 }
 0x47b   :  { %13608 = vmatpush1.bf16.msra.mxu1 %v17921_v50  ;;  %v18004_v50 = vcombine.high %v1246_v46, %v1254_v1 }
 0x47c   :  { %13895 = vmatpush1.bf16.msra.mxu0 %v17667_v22  ;;  %13609 = vmatprep.subr.bf16.mxu1 %v17938_v52  ;;  %v1525_v22 = vld [vmem:[#allocation6 + $0x29d8] sm:$0xff]  ;;  %v1262_v52 = vld [vmem:[#allocation6 + $0x21a0] sm:$0xff] }
 0x47d   :  { %13896 = vmatprep.subr.bf16.mxu0 %v17684_v12  ;;  %v1270_v12 = vld [vmem:[#allocation6 + $0x21e0] sm:$0xff]  ;;  %v18274_v26 = vcombine.high %v1517_v17, %v1525_v22  ;;  %v18273_v36 = vcombine.low %v1517_v17, %v1525_v22 }
 0x47e   :  { %v18020_v54 = vcombine.high %v1262_v52, %v1270_v12  ;;  %v18019_v32 = vcombine.low %v1262_v52, %v1270_v12  ;;  %v1326_v22 = vld [vmem:[#allocation6 + $0x23a0] sm:$0xff] }
 0x47f   :  { %13610 = vmatpush1.bf16.msra.mxu1 %v17937_v58  ;;  %v1533_v58 = vld [vmem:[#allocation6 + $0x2a18] sm:$0xff]  ;;  %v1334_v52 = vld [vmem:[#allocation6 + $0x23e0] sm:$0xff] }
 0x480   :  { %13897 = vmatpush1.bf16.msra.mxu0 %v17683_v20  ;;  %13611 = vmatprep.subr.bf16.mxu1 %v17954_v59  ;;  %v1541_v20 = vld [vmem:[#allocation6 + $0x2a58] sm:$0xff]  ;;  %v1278_v59 = vld [vmem:[#allocation6 + $0x2220] sm:$0xff] }
 0x481   :  { %13898 = vmatprep.subr.bf16.mxu0 %v17700_v63  ;;  %v1286_v63 = vld [vmem:[#allocation6 + $0x2260] sm:$0xff]  ;;  %v18290_v19 = vcombine.high %v1533_v58, %v1541_v20  ;;  %v18289_v40 = vcombine.low %v1533_v58, %v1541_v20 }
 0x482   :  { %v18036_v5 = vcombine.high %v1278_v59, %v1286_v63  ;;  %v18035_v43 = vcombine.low %v1278_v59, %v1286_v63  ;;  %v18084_v59 = vcombine.high %v1326_v22, %v1334_v52  ;;  %v1597_v63 = vld [vmem:[#allocation6 + $0x2c18] sm:$0xff] }
 0x483   :  { %13612 = vmatpush1.bf16.msra.mxu1 %v17953_v6  ;;  %v1549_v6 = vld [vmem:[#allocation6 + $0x2a98] sm:$0xff] }
 0x484   :  { %13899 = vmatpush1.bf16.msra.mxu0 %v17699_v8  ;;  %13663 = vmatprep.subr.bf16.mxu1 %v18226_v11  ;;  %v1557_v8 = vld [vmem:[#allocation6 + $0x2ad8] sm:$0xff]  ;;  %v1294_v11 = vld [vmem:[#allocation6 + $0x22a0] sm:$0xff] }
 0x485   :  { %13950 = vmatprep.subr.bf16.mxu0 %v17972_v15  ;;  %v1302_v15 = vld [vmem:[#allocation6 + $0x22e0] sm:$0xff]  ;;  %v18306_v51 = vcombine.high %v1549_v6, %v1557_v8  ;;  %v18305_v7 = vcombine.low %v1549_v6, %v1557_v8 }
 0x486   :  { %13614 = vmatmul.mubr.bf16.vlgmr.msra.gmra.mrb[60].mxu1 %v19943_v25  ;;  %v18052_v62 = vcombine.high %v1294_v11, %v1302_v15  ;;  %v18051_v55 = vcombine.low %v1294_v11, %v1302_v15  ;;  %v1613_v11 = vld [vmem:[#allocation6 + $0x2c98] sm:$0xff]  ;;  %v1358_v15 = vld [vmem:[#allocation6 + $0x24a0] sm:$0xff] }
 0x487   :  { %13664 = vmatpush1.bf16.msra.mxu1 %v18225_v27  ;;  %13901 = vmatmul.mubr.bf16.vlgmr.msra.gmra.mrb[60].mxu0 %v19935_v0  ;;  %v1565_v27 = vld [vmem:[#allocation6 + $0x2b18] sm:$0xff] }
 0x488   :  { %13951 = vmatpush1.bf16.msra.mxu0 %v17971_v53  ;;  %13665 = vmatprep.subr.bf16.mxu1 %v18242_v29  ;;  %v1573_v53 = vld [vmem:[#allocation6 + $0x2b58] sm:$0xff]  ;;  %v1310_v29 = vld [vmem:[#allocation6 + $0x2320] sm:$0xff] }
 0x489   :  { %13952 = vmatprep.subr.bf16.mxu0 %v17988_v33  ;;  %13695 = vmatprep.mubr.bf16.mxu1 %v19945_v37  ;;  %v1318_v33 = vld [vmem:[#allocation6 + $0x2360] sm:$0xff]  ;;  %v18322_v46 = vcombine.high %v1565_v27, %v1573_v53 }
 0x48a   :  { %13982 = vmatprep.mubr.bf16.mxu0 %v19909_v61 }
 0x48b   :  { %13666 = vmatpush1.bf16.msra.mxu1 %v18241_v47  ;;  %v18068_v47 = vcombine.high %v1310_v29, %v1318_v33 }
 0x48c   :  { %13953 = vmatpush1.bf16.msra.mxu0 %v17987_v42  ;;  %13667 = vmatprep.subr.bf16.mxu1 %v18258_v48  ;;  %v1581_v42 = vld [vmem:[#allocation6 + $0x2b98] sm:$0xff] }
 0x48d   :  { %13954 = vmatprep.subr.bf16.mxu0 %v18004_v50  ;;  %v1589_v48 = vld [vmem:[#allocation6 + $0x2bd8] sm:$0xff] }
 0x48e   :  { %v18338_v58 = vcombine.high %v1581_v42, %v1589_v48 }
 0x48f   :  { %13668 = vmatpush1.bf16.msra.mxu1 %v18257_v30 }
 0x490   :  { %13955 = vmatpush1.bf16.msra.mxu0 %v18003_v18  ;;  %13669 = vmatprep.subr.bf16.mxu1 %v18274_v26  ;;  %v18321_v18 = vcombine.low %v1565_v27, %v1573_v53  ;;  %v1629_v27 = vld [vmem:[#allocation6 + $0x2d18] sm:$0xff] }
 0x491   :  { %13956 = vmatprep.subr.bf16.mxu0 %v18020_v54  ;;  %v18067_v54 = vcombine.low %v1310_v29, %v1318_v33  ;;  %v1637_v53 = vld [vmem:[#allocation6 + $0x2d58] sm:$0xff]  ;;  %v1374_v29 = vld [vmem:[#allocation6 + $0x2520] sm:$0xff] }
 0x492   :  { %v1382_v33 = vld [vmem:[#allocation6 + $0x2560] sm:$0xff] }
 0x493   :  { %13670 = vmatpush1.bf16.msra.mxu1 %v18273_v36 }
 0x494   :  { %13957 = vmatpush1.bf16.msra.mxu0 %v18019_v32  ;;  %13671 = vmatprep.subr.bf16.mxu1 %v18290_v19  ;;  %v1342_v32 = vld [vmem:[#allocation6 + $0x2420] sm:$0xff]  ;;  %v18337_v19 = vcombine.low %v1581_v42, %v1589_v48  ;;  %v1653_v42 = vld [vmem:[#allocation6 + $0x2dd8] sm:$0xff] }
 0x495   :  { %13958 = vmatprep.subr.bf16.mxu0 %v18036_v5  ;;  %v18083_v5 = vcombine.low %v1326_v22, %v1334_v52  ;;  %v1390_v48 = vld [vmem:[#allocation6 + $0x25a0] sm:$0xff]  ;;  %v18131_v22 = vcombine.low %v1374_v29, %v1382_v33 }
 0x497   :  { %13672 = vmatpush1.bf16.msra.mxu1 %v18289_v40  ;;  %v1366_v40 = vld [vmem:[#allocation6 + $0x24e0] sm:$0xff] }
 0x498   :  { %13959 = vmatpush1.bf16.msra.mxu0 %v18035_v43  ;;  %13673 = vmatprep.subr.bf16.mxu1 %v18306_v51 }
 0x499   :  { %v13369_v1 = vpop.f32.mrb[48].mxu1  ;;  %13960 = vmatprep.subr.bf16.mxu0 %v18052_v62  ;;  %v18116_v62 = vcombine.high %v1358_v15, %v1366_v40 }
 0x49a   :  { %v13370_v50 = vadd.f32 %v13369_v1, %v20124_v13  ;;  %v13371_v17 = vpop.f32.mrb[49].mxu1  ;;  %v1605_v13 = vld [vmem:[#allocation6 + $0x2c58] sm:$0xff]  ;;  %v18132_v1 = vcombine.high %v1374_v29, %v1382_v33 }
 0x49b   :  { %v13372_v12 = vadd.f32 %v13371_v17, %v20127_v56  ;;  %v13373_v30 = vpop.f32.mrb[50].mxu1  ;;  %13674 = vmatpush1.bf16.msra.mxu1 %v18305_v7  ;;  %v1350_v56 = vld [vmem:[#allocation6 + $0x2460] sm:$0xff]  ;;  %v18354_v6 = vcombine.high %v1597_v63, %v1605_v13  ;;  %v18353_v43 = vcombine.low %v1597_v63, %v1605_v13  ;;  %v18385_v17 = vcombine.low %v1629_v27, %v1637_v53 }
 0x49c   :  { %13961 = vmatpush1.bf16.msra.mxu0 %v18051_v55  ;;  %v13374_v26 = vpop.f32.mrb[51].mxu1  ;;  %13675 = vmatprep.subr.bf16.mxu1 %v18322_v46  ;;  %v20140_v20 = vadd.f32 %v20097_v2, %v13370_v50  ;;  %v18100_v8 = vcombine.high %v1342_v32, %v1350_v56  ;;  %v1621_v2 = vld [vmem:[#allocation6 + $0x2cd8] sm:$0xff]  ;;  %v18115_v55 = vcombine.low %v1358_v15, %v1366_v40  ;;  %v1398_v50 = vld [vmem:[#allocation6 + $0x25e0] sm:$0xff] }
 0x49d   :  { %13962 = vmatprep.subr.bf16.mxu0 %v18068_v47  ;;  %v20143_v36 = vadd.f32 %v20099_v38, %v13372_v12  ;;  %v18099_v38 = vcombine.low %v1342_v32, %v1350_v56  ;;  %v18370_v51 = vcombine.high %v1613_v11, %v1621_v2  ;;  %v18369_v7 = vcombine.low %v1613_v11, %v1621_v2  ;;  %v1645_v47 = vld [vmem:[#allocation6 + $0x2d98] sm:$0xff]  ;;  %v1406_v26 = vld [vmem:[#allocation6 + $0x2620] sm:$0xff]  ;;  %v20145_v2 = vpop.f32.mrb[48].mxu0 }
 0x49e   :  { %v18386_v46 = vcombine.high %v1629_v27, %v1637_v53  ;;  %v18402_v52 = vcombine.high %v1645_v47, %v1653_v42  ;;  %v18148_v12 = vcombine.high %v1390_v48, %v1398_v50  ;;  %v1661_v30 = vld [vmem:[#allocation6 + $0x2e18] sm:$0xff] }
 0x49f   :  { %13676 = vmatpush1.bf16.msra.mxu1 %v18321_v18  ;;  %v1669_v18 = vld [vmem:[#allocation6 + $0x2e58] sm:$0xff] }
 0x4a0   :  { %13963 = vmatpush1.bf16.msra.mxu0 %v18067_v54  ;;  %13677 = vmatprep.subr.bf16.mxu1 %v18338_v58  ;;  %v1414_v54 = vld [vmem:[#allocation6 + $0x2660] sm:$0xff]  ;;  %v18401_v58 = vcombine.low %v1645_v47, %v1653_v42  ;;  %v18418_v63 = vcombine.high %v1661_v30, %v1669_v18  ;;  %v1677_v32 = vld [vmem:[#allocation6 + $0x2e98] sm:$0xff] }
 0x4a1   :  { %13964 = vmatprep.subr.bf16.mxu0 %v18084_v59  ;;  %v18147_v59 = vcombine.low %v1390_v48, %v1398_v50  ;;  %v18164_v13 = vcombine.high %v1406_v26, %v1414_v54  ;;  %v1685_v56 = vld [vmem:[#allocation6 + $0x2ed8] sm:$0xff]  ;;  %v1454_v47 = vld [vmem:[#allocation6 + $0x27a0] sm:$0xff] }
 0x4a2   :  { %v18434_v11 = vcombine.high %v1677_v32, %v1685_v56  ;;  %v1693_v40 = vld [vmem:[#allocation6 + $0x2f18] sm:$0xff]  ;;  %v18433_v53 = vcombine.low %v1677_v32, %v1685_v56  ;;  %v1462_v42 = vld [vmem:[#allocation6 + $0x27e0] sm:$0xff] }
 0x4a3   :  { %13678 = vmatpush1.bf16.msra.mxu1 %v18337_v19  ;;  %v1422_v19 = vld [vmem:[#allocation6 + $0x26a0] sm:$0xff] }
 0x4a4   :  { %13965 = vmatpush1.bf16.msra.mxu0 %v18083_v5  ;;  %13679 = vmatprep.subr.bf16.mxu1 %v18354_v6  ;;  %v1430_v5 = vld [vmem:[#allocation6 + $0x26e0] sm:$0xff]  ;;  %v18417_v6 = vcombine.low %v1661_v30, %v1669_v18 }
 0x4a5   :  { %13966 = vmatprep.subr.bf16.mxu0 %v18100_v8  ;;  %v18163_v8 = vcombine.low %v1406_v26, %v1414_v54  ;;  %v18180_v15 = vcombine.high %v1422_v19, %v1430_v5  ;;  %v18179_v33 = vcombine.low %v1422_v19, %v1430_v5  ;;  %v1726_v30 = vld [vmem:[#allocation6 + $0x3020] sm:$0xff]  ;;  %v18211_v54 = vcombine.low %v1454_v47, %v1462_v42 }
 0x4a6   :  { %v1734_v18 = vld [vmem:[#allocation6 + $0x3060] sm:$0xff] }
 0x4a7   :  { %13680 = vmatpush1.bf16.msra.mxu1 %v18353_v43  ;;  %v1701_v43 = vld [vmem:[#allocation6 + $0x2f58] sm:$0xff]  ;;  %v1742_v32 = vld [vmem:[#allocation6 + $0x30a0] sm:$0xff]  ;;  %v18483_v5 = vcombine.low %v1726_v30, %v1734_v18 }
 0x4a8   :  { %13967 = vmatpush1.bf16.msra.mxu0 %v18099_v38  ;;  %13681 = vmatprep.subr.bf16.mxu1 %v18370_v51  ;;  %v20147_v38 = vpop.f32.mrb[49].mxu0  ;;  %v1438_v51 = vld [vmem:[#allocation6 + $0x2720] sm:$0xff]  ;;  %v18449_v48 = vcombine.low %v1693_v40, %v1701_v43 }
 0x4a9   :  { %13968 = vmatprep.subr.bf16.mxu0 %v18116_v62  ;;  %v1446_v62 = vld [vmem:[#allocation6 + $0x2760] sm:$0xff]  ;;  %v13660_v27 = vpop.f32.mrb[50].mxu0 }
 0x4aa   :  { %v13661_v29 = vpop.f32.mrb[51].mxu0  ;;  %v18195_v50 = vcombine.low %v1438_v51, %v1446_v62  ;;  %v1750_v56 = vld [vmem:[#allocation6 + $0x30e0] sm:$0xff] }
 0x4ab   :  { %13682 = vmatpush1.bf16.msra.mxu1 %v18369_v7  ;;  %v18450_v7 = vcombine.high %v1693_v40, %v1701_v43  ;;  %v1758_v40 = vld [vmem:[#allocation6 + $0x3120] sm:$0xff]  ;;  %v2029_v29 = vld [vmem:[#allocation6 + $0x3998] sm:$0xff] }
 0x4ac   :  { %13969 = vmatpush1.bf16.msra.mxu0 %v18115_v55  ;;  %13683 = vmatprep.subr.bf16.mxu1 %v18386_v46  ;;  %v18196_v55 = vcombine.high %v1438_v51, %v1446_v62  ;;  %v1709_v46 = vld [vmem:[#allocation6 + $0x2f98] sm:$0xff]  ;;  %v1766_v43 = vld [vmem:[#allocation6 + $0x3160] sm:$0xff]  ;;  %v18499_v62 = vcombine.low %v1742_v32, %v1750_v56 }
 0x4ad   :  { %13970 = vmatprep.subr.bf16.mxu0 %v18132_v1  ;;  %v1717_v1 = vld [vmem:[#allocation6 + $0x2fd8] sm:$0xff] }
 0x4ae   :  { %v18465_v26 = vcombine.low %v1709_v46, %v1717_v1 }
 0x4af   :  { %13684 = vmatpush1.bf16.msra.mxu1 %v18385_v17  ;;  %v18466_v17 = vcombine.high %v1709_v46, %v1717_v1  ;;  %v18515_v1 = vcombine.low %v1758_v40, %v1766_v43 }
 0x4b0   :  { %13971 = vmatpush1.bf16.msra.mxu0 %v18131_v22  ;;  %13685 = vmatprep.subr.bf16.mxu1 %v18402_v52  ;;  %v18212_v22 = vcombine.high %v1454_v47, %v1462_v42  ;;  %v1981_v52 = vld [vmem:[#allocation6 + $0x3818] sm:$0xff] }
 0x4b1   :  { %13972 = vmatprep.subr.bf16.mxu0 %v18148_v12  ;;  %v1989_v12 = vld [vmem:[#allocation6 + $0x3858] sm:$0xff] }
 0x4b2   :  { %v18737_v19 = vcombine.low %v1981_v52, %v1989_v12 }
 0x4b3   :  { %13686 = vmatpush1.bf16.msra.mxu1 %v18401_v58  ;;  %v18738_v58 = vcombine.high %v1981_v52, %v1989_v12 }
 0x4b4   :  { %13973 = vmatpush1.bf16.msra.mxu0 %v18147_v59  ;;  %13687 = vmatprep.subr.bf16.mxu1 %v18418_v63  ;;  %v18484_v59 = vcombine.high %v1726_v30, %v1734_v18  ;;  %v1997_v63 = vld [vmem:[#allocation6 + $0x3898] sm:$0xff] }
 0x4b5   :  { %13974 = vmatprep.subr.bf16.mxu0 %v18164_v13  ;;  %v2005_v13 = vld [vmem:[#allocation6 + $0x38d8] sm:$0xff] }
 0x4b6   :  { %v18753_v51 = vcombine.low %v1997_v63, %v2005_v13 }
 0x4b7   :  { %13688 = vmatpush1.bf16.msra.mxu1 %v18417_v6  ;;  %v18754_v6 = vcombine.high %v1997_v63, %v2005_v13 }
 0x4b8   :  { %13975 = vmatpush1.bf16.msra.mxu0 %v18163_v8  ;;  %13689 = vmatprep.subr.bf16.mxu1 %v18434_v11  ;;  %v18500_v8 = vcombine.high %v1742_v32, %v1750_v56  ;;  %v2013_v11 = vld [vmem:[#allocation6 + $0x3918] sm:$0xff] }
 0x4b9   :  { %13976 = vmatprep.subr.bf16.mxu0 %v18180_v15  ;;  %v2021_v15 = vld [vmem:[#allocation6 + $0x3958] sm:$0xff] }
 0x4ba   :  { %v18770_v27 = vcombine.high %v2013_v11, %v2021_v15  ;;  %v18769_v46 = vcombine.low %v2013_v11, %v2021_v15 }
 0x4bb   :  { %13690 = vmatpush1.bf16.msra.mxu1 %v18433_v53  ;;  %v18516_v53 = vcombine.high %v1758_v40, %v1766_v43 }
 0x4bc   :  { %13977 = vmatpush1.bf16.msra.mxu0 %v18179_v33  ;;  %13691 = vmatprep.subr.bf16.mxu1 %v18450_v7  ;;  %v2037_v33 = vld [vmem:[#allocation6 + $0x39d8] sm:$0xff]  ;;  %v1774_v7 = vld [vmem:[#allocation6 + $0x31a0] sm:$0xff] }
 0x4bd   :  { %13978 = vmatprep.subr.bf16.mxu0 %v18196_v55  ;;  %v1782_v55 = vld [vmem:[#allocation6 + $0x31e0] sm:$0xff]  ;;  %v18786_v47 = vcombine.high %v2029_v29, %v2037_v33  ;;  %v18785_v52 = vcombine.low %v2029_v29, %v2037_v33 }
 0x4be   :  { %v18532_v42 = vcombine.high %v1774_v7, %v1782_v55  ;;  %v18531_v12 = vcombine.low %v1774_v7, %v1782_v55  ;;  %v1838_v33 = vld [vmem:[#allocation6 + $0x33a0] sm:$0xff] }
 0x4bf   :  { %13692 = vmatpush1.bf16.msra.mxu1 %v18449_v48  ;;  %v2045_v48 = vld [vmem:[#allocation6 + $0x3a18] sm:$0xff]  ;;  %v1846_v7 = vld [vmem:[#allocation6 + $0x33e0] sm:$0xff] }
 0x4c0   :  { %13979 = vmatpush1.bf16.msra.mxu0 %v18195_v50  ;;  %13693 = vmatprep.subr.bf16.mxu1 %v18466_v17  ;;  %v2053_v50 = vld [vmem:[#allocation6 + $0x3a58] sm:$0xff]  ;;  %v1790_v17 = vld [vmem:[#allocation6 + $0x3220] sm:$0xff] }
 0x4c1   :  { %13980 = vmatprep.subr.bf16.mxu0 %v18212_v22  ;;  %v1798_v22 = vld [vmem:[#allocation6 + $0x3260] sm:$0xff]  ;;  %v18802_v30 = vcombine.high %v2045_v48, %v2053_v50  ;;  %v18801_v63 = vcombine.low %v2045_v48, %v2053_v50  ;;  %v18596_v50 = vcombine.high %v1838_v33, %v1846_v7 }
 0x4c2   :  { %v18548_v18 = vcombine.high %v1790_v17, %v1798_v22  ;;  %v18547_v13 = vcombine.low %v1790_v17, %v1798_v22  ;;  %v2109_v17 = vld [vmem:[#allocation6 + $0x3c18] sm:$0xff] }
 0x4c3   :  { %13694 = vmatpush1.bf16.msra.mxu1 %v18465_v26  ;;  %v2061_v26 = vld [vmem:[#allocation6 + $0x3a98] sm:$0xff] }
 0x4c4   :  { %13981 = vmatpush1.bf16.msra.mxu0 %v18211_v54  ;;  %13745 = vmatprep.subr.bf16.mxu1 %v18738_v58  ;;  %v2069_v54 = vld [vmem:[#allocation6 + $0x3ad8] sm:$0xff]  ;;  %v1806_v58 = vld [vmem:[#allocation6 + $0x32a0] sm:$0xff] }
 0x4c5   :  { %14032 = vmatprep.subr.bf16.mxu0 %v18484_v59  ;;  %v1814_v59 = vld [vmem:[#allocation6 + $0x32e0] sm:$0xff]  ;;  %v18818_v32 = vcombine.high %v2061_v26, %v2069_v54  ;;  %v18817_v11 = vcombine.low %v2061_v26, %v2069_v54  ;;  %v2117_v22 = vld [vmem:[#allocation6 + $0x3c58] sm:$0xff] }
 0x4c6   :  { %13696 = vmatmul.mubr.bf16.vlgmr.msra.gmra.mrb[64].mxu1 %v19959_v10  ;;  %v18564_v56 = vcombine.high %v1806_v58, %v1814_v59  ;;  %v18563_v15 = vcombine.low %v1806_v58, %v1814_v59  ;;  %v2125_v26 = vld [vmem:[#allocation6 + $0x3c98] sm:$0xff]  ;;  %v1870_v58 = vld [vmem:[#allocation6 + $0x34a0] sm:$0xff] }
 0x4c7   :  { %13746 = vmatpush1.bf16.msra.mxu1 %v18737_v19  ;;  %13983 = vmatmul.mubr.bf16.vlgmr.msra.gmra.mrb[64].mxu0 %v19915_v21  ;;  %v2077_v19 = vld [vmem:[#allocation6 + $0x3b18] sm:$0xff]  ;;  %v1878_v59 = vld [vmem:[#allocation6 + $0x34e0] sm:$0xff] }
 0x4c8   :  { %14033 = vmatpush1.bf16.msra.mxu0 %v18483_v5  ;;  %13747 = vmatprep.subr.bf16.mxu1 %v18754_v6  ;;  %v2085_v5 = vld [vmem:[#allocation6 + $0x3b58] sm:$0xff]  ;;  %v1822_v6 = vld [vmem:[#allocation6 + $0x3320] sm:$0xff] }
 0x4c9   :  { %14034 = vmatprep.subr.bf16.mxu0 %v18500_v8  ;;  %13777 = vmatprep.mubr.bf16.mxu1 %v19961_v23  ;;  %v1830_v8 = vld [vmem:[#allocation6 + $0x3360] sm:$0xff]  ;;  %v18834_v40 = vcombine.high %v2077_v19, %v2085_v5  ;;  %v2133_v54 = vld [vmem:[#allocation6 + $0x3cd8] sm:$0xff] }
 0x4ca   :  { %14064 = vmatprep.mubr.bf16.mxu0 %v19920_v31 }
 0x4cb   :  { %13748 = vmatpush1.bf16.msra.mxu1 %v18753_v51  ;;  %v18580_v51 = vcombine.high %v1822_v6, %v1830_v8 }
 0x4cc   :  { %14035 = vmatpush1.bf16.msra.mxu0 %v18499_v62  ;;  %13749 = vmatprep.subr.bf16.mxu1 %v18770_v27  ;;  %v2093_v62 = vld [vmem:[#allocation6 + $0x3b98] sm:$0xff] }
 0x4cd   :  { %14036 = vmatprep.subr.bf16.mxu0 %v18516_v53  ;;  %v2101_v27 = vld [vmem:[#allocation6 + $0x3bd8] sm:$0xff] }
 0x4ce   :  { %v18850_v48 = vcombine.high %v2093_v62, %v2101_v27 }
 0x4cf   :  { %13750 = vmatpush1.bf16.msra.mxu1 %v18769_v46 }
 0x4d0   :  { %14037 = vmatpush1.bf16.msra.mxu0 %v18515_v1  ;;  %13751 = vmatprep.subr.bf16.mxu1 %v18786_v47  ;;  %v18833_v1 = vcombine.low %v2077_v19, %v2085_v5  ;;  %v2141_v19 = vld [vmem:[#allocation6 + $0x3d18] sm:$0xff] }
 0x4d1   :  { %14038 = vmatprep.subr.bf16.mxu0 %v18532_v42  ;;  %v18579_v42 = vcombine.low %v1822_v6, %v1830_v8  ;;  %v2149_v5 = vld [vmem:[#allocation6 + $0x3d58] sm:$0xff]  ;;  %v1886_v6 = vld [vmem:[#allocation6 + $0x3520] sm:$0xff] }
 0x4d2   :  { %v1894_v8 = vld [vmem:[#allocation6 + $0x3560] sm:$0xff] }
 0x4d3   :  { %13752 = vmatpush1.bf16.msra.mxu1 %v18785_v52  ;;  %v1862_v52 = vld [vmem:[#allocation6 + $0x3460] sm:$0xff] }
 0x4d4   :  { %14039 = vmatpush1.bf16.msra.mxu0 %v18531_v12  ;;  %13753 = vmatprep.subr.bf16.mxu1 %v18802_v30  ;;  %v18849_v12 = vcombine.low %v2093_v62, %v2101_v27  ;;  %v18866_v30 = vcombine.high %v2109_v17, %v2117_v22  ;;  %v2165_v62 = vld [vmem:[#allocation6 + $0x3dd8] sm:$0xff]  ;;  %v1902_v27 = vld [vmem:[#allocation6 + $0x35a0] sm:$0xff] }
 0x4d5   :  { %14040 = vmatprep.subr.bf16.mxu0 %v18548_v18 }
 0x4d7   :  { %13754 = vmatpush1.bf16.msra.mxu1 %v18801_v63  ;;  %v18865_v63 = vcombine.low %v2109_v17, %v2117_v22 }
 0x4d8   :  { %14041 = vmatpush1.bf16.msra.mxu0 %v18547_v13  ;;  %13755 = vmatprep.subr.bf16.mxu1 %v18818_v32  ;;  %v18882_v32 = vcombine.high %v2125_v26, %v2133_v54 }
 0x4d9   :  { %v13451_v43 = vpop.f32.mrb[52].mxu1  ;;  %14042 = vmatprep.subr.bf16.mxu0 %v18564_v56  ;;  %v18628_v56 = vcombine.high %v1870_v58, %v1878_v59 }
 0x4da   :  { %v20154_v53 = vadd.f32 %v13451_v43, %v20140_v20  ;;  %v13453_v29 = vpop.f32.mrb[53].mxu1  ;;  %v1854_v20 = vld [vmem:[#allocation6 + $0x3420] sm:$0xff]  ;;  %v18644_v43 = vcombine.high %v1886_v6, %v1894_v8 }
 0x4db   :  { %v20157_v55 = vadd.f32 %v13453_v29, %v20143_v36  ;;  %v13455_v46 = vpop.f32.mrb[54].mxu1  ;;  %13756 = vmatpush1.bf16.msra.mxu1 %v18817_v11  ;;  %v18595_v36 = vcombine.low %v1838_v33, %v1846_v7  ;;  %v18612_v18 = vcombine.high %v1854_v20, %v1862_v52  ;;  %v18611_v13 = vcombine.low %v1854_v20, %v1862_v52  ;;  %v1910_v29 = vld [vmem:[#allocation6 + $0x35e0] sm:$0xff] }
 0x4dc   :  { %14043 = vmatpush1.bf16.msra.mxu0 %v18563_v15  ;;  %v13456_v47 = vpop.f32.mrb[55].mxu1  ;;  %13757 = vmatprep.subr.bf16.mxu1 %v18834_v40  ;;  %v18881_v11 = vcombine.low %v2125_v26, %v2133_v54  ;;  %v18627_v15 = vcombine.low %v1870_v58, %v1878_v59  ;;  %v18898_v40 = vcombine.high %v2141_v19, %v2149_v5  ;;  %v20159_v59 = vpop.f32.mrb[52].mxu0 }
 0x4dd   :  { %14044 = vmatprep.subr.bf16.mxu0 %v18580_v51  ;;  %v2157_v51 = vld [vmem:[#allocation6 + $0x3d98] sm:$0xff]  ;;  %v18897_v33 = vcombine.low %v2141_v19, %v2149_v5  ;;  %v18643_v7 = vcombine.low %v1886_v6, %v1894_v8  ;;  %v18659_v22 = vcombine.low %v1902_v27, %v1910_v29  ;;  %v1950_v19 = vld [vmem:[#allocation6 + $0x3720] sm:$0xff] }
 0x4de   :  { %v18914_v46 = vcombine.high %v2157_v51, %v2165_v62  ;;  %v2173_v47 = vld [vmem:[#allocation6 + $0x3e18] sm:$0xff]  ;;  %v18913_v17 = vcombine.low %v2157_v51, %v2165_v62  ;;  %v1958_v5 = vld [vmem:[#allocation6 + $0x3760] sm:$0xff] }
 0x4df   :  { %13758 = vmatpush1.bf16.msra.mxu1 %v18833_v1  ;;  %v18660_v1 = vcombine.high %v1902_v27, %v1910_v29  ;;  %v2221_v51 = vld [vmem:[#allocation6 + $0x3f98] sm:$0xff]  ;;  %v1966_v27 = vld [vmem:[#allocation6 + $0x37a0] sm:$0xff] }
 0x4e0   :  { %14045 = vmatpush1.bf16.msra.mxu0 %v18579_v42  ;;  %13759 = vmatprep.subr.bf16.mxu1 %v18850_v48  ;;  %v2181_v42 = vld [vmem:[#allocation6 + $0x3e58] sm:$0xff]  ;;  %v1918_v48 = vld [vmem:[#allocation6 + $0x3620] sm:$0xff] }
 0x4e1   :  { %14046 = vmatprep.subr.bf16.mxu0 %v18596_v50  ;;  %v1926_v50 = vld [vmem:[#allocation6 + $0x3660] sm:$0xff]  ;;  %v18930_v20 = vcombine.high %v2173_v47, %v2181_v42  ;;  %v18929_v26 = vcombine.low %v2173_v47, %v2181_v42  ;;  %v2229_v62 = vld [vmem:[#allocation6 + $0x3fd8] sm:$0xff] }
 0x4e2   :  { %v18676_v52 = vcombine.high %v1918_v48, %v1926_v50  ;;  %v18675_v54 = vcombine.low %v1918_v48, %v1926_v50  ;;  %v1974_v29 = vld [vmem:[#allocation6 + $0x37e0] sm:$0xff]  ;;  %v191_v48 = vld [vmem:[#allocation6 + $0x28] sm:$0xff] }
 0x4e3   :  { %13760 = vmatpush1.bf16.msra.mxu1 %v18849_v12  ;;  %v2189_v12 = vld [vmem:[#allocation6 + $0x3e98] sm:$0xff]  ;;  %v446_v47 = vld [vmem:[#allocation6 + $0x820] sm:$0xff]  ;;  %v199_v50 = vld [vmem:[#allocation6 + $0x68] sm:$0xff] }
 0x4e4   :  { %14047 = vmatpush1.bf16.msra.mxu0 %v18595_v36  ;;  %13761 = vmatprep.subr.bf16.mxu1 %v18866_v30  ;;  %v2197_v36 = vld [vmem:[#allocation6 + $0x3ed8] sm:$0xff]  ;;  %v1934_v30 = vld [vmem:[#allocation6 + $0x36a0] sm:$0xff] }
 0x4e5   :  { %14048 = vmatprep.subr.bf16.mxu0 %v18612_v18  ;;  %v1942_v18 = vld [vmem:[#allocation6 + $0x36e0] sm:$0xff]  ;;  %v18946_v58 = vcombine.high %v2189_v12, %v2197_v36  ;;  %v18945_v8 = vcombine.low %v2189_v12, %v2197_v36 }
 0x4e6   :  { %v454_v42 = vld [vmem:[#allocation6 + $0x860] sm:$0xff] }
 0x4e7   :  { %13762 = vmatpush1.bf16.msra.mxu1 %v18865_v63  ;;  %v18692_v63 = vcombine.high %v1934_v30, %v1942_v18  ;;  %v462_v12 = vld [vmem:[#allocation6 + $0x8a0] sm:$0xff] }
 0x4e8   :  { %14049 = vmatpush1.bf16.msra.mxu0 %v18611_v13  ;;  %13763 = vmatprep.subr.bf16.mxu1 %v18882_v32  ;;  %v2205_v13 = vld [vmem:[#allocation6 + $0x3f18] sm:$0xff]  ;;  %v470_v36 = vld [vmem:[#allocation6 + $0x8e0] sm:$0xff] }
 0x4e9   :  { %14050 = vmatprep.subr.bf16.mxu0 %v18628_v56  ;;  %v2213_v32 = vld [vmem:[#allocation6 + $0x3f58] sm:$0xff]  ;;  %v20161_v56 = vpop.f32.mrb[53].mxu0 }
 0x4ea   :  { %v13742_v6 = vpop.f32.mrb[54].mxu0 }
 0x4eb   :  { %13764 = vmatpush1.bf16.msra.mxu1 %v18881_v11  ;;  %v13743_v11 = vpop.f32.mrb[55].mxu0  ;;  %v17219_v6 = vcombine.low %v462_v12, %v470_v36 }
 0x4ec   :  { %14051 = vmatpush1.bf16.msra.mxu0 %v18627_v15  ;;  %13765 = vmatprep.subr.bf16.mxu1 %v18898_v40  ;;  %v18691_v15 = vcombine.low %v1934_v30, %v1942_v18  ;;  %v18962_v40 = vcombine.high %v2205_v13, %v2213_v32  ;;  %v207_v30 = vld [vmem:[#allocation6 + $0xa8] sm:$0xff] }
 0x4ed   :  { %14052 = vmatprep.subr.bf16.mxu0 %v18644_v43  ;;  %v18708_v43 = vcombine.high %v1950_v19, %v1958_v5  ;;  %v215_v18 = vld [vmem:[#allocation6 + $0xe8] sm:$0xff] }
 0x4ef   :  { %13766 = vmatpush1.bf16.msra.mxu1 %v18897_v33  ;;  %v18961_v33 = vcombine.low %v2205_v13, %v2213_v32  ;;  %v478_v13 = vld [vmem:[#allocation6 + $0x920] sm:$0xff] }
 0x4f0   :  { %14053 = vmatpush1.bf16.msra.mxu0 %v18643_v7  ;;  %13767 = vmatprep.subr.bf16.mxu1 %v18914_v46  ;;  %v18707_v7 = vcombine.low %v1950_v19, %v1958_v5  ;;  %v18978_v46 = vcombine.high %v2221_v51, %v2229_v62  ;;  %v486_v32 = vld [vmem:[#allocation6 + $0x960] sm:$0xff]  ;;  %v223_v19 = vld [vmem:[#allocation6 + $0x128] sm:$0xff] }
 0x4f1   :  { %14054 = vmatprep.subr.bf16.mxu0 %v18660_v1  ;;  %v18724_v1 = vcombine.high %v1966_v27, %v1974_v29  ;;  %v231_v5 = vld [vmem:[#allocation6 + $0x168] sm:$0xff]  ;;  %v17236_v11 = vcombine.high %v478_v13, %v486_v32 }
 0x4f3   :  { %13768 = vmatpush1.bf16.msra.mxu1 %v18913_v17  ;;  %v18977_v17 = vcombine.low %v2221_v51, %v2229_v62  ;;  %v239_v51 = vld [vmem:[#allocation6 + $0x1a8] sm:$0xff] }
 0x4f4   :  { %14055 = vmatpush1.bf16.msra.mxu0 %v18659_v22  ;;  %13769 = vmatprep.subr.bf16.mxu1 %v18930_v20  ;;  %v18723_v22 = vcombine.low %v1966_v27, %v1974_v29  ;;  %v17204_v20 = vcombine.high %v446_v47, %v454_v42  ;;  %v247_v62 = vld [vmem:[#allocation6 + $0x1e8] sm:$0xff]  ;;  %v17235_v27 = vcombine.low %v478_v13, %v486_v32 }
 0x4f5   :  { %14056 = vmatprep.subr.bf16.mxu0 %v18676_v52  ;;  %v16950_v52 = vcombine.high %v191_v48, %v199_v50  ;;  %v16981_v29 = vcombine.low %v223_v19, %v231_v5  ;;  %v287_v13 = vld [vmem:[#allocation6 + $0x328] sm:$0xff] }
 0x4f6   :  { %v295_v32 = vld [vmem:[#allocation6 + $0x368] sm:$0xff] }
 0x4f7   :  { %13770 = vmatpush1.bf16.msra.mxu1 %v18929_v26  ;;  %v17203_v26 = vcombine.low %v446_v47, %v454_v42  ;;  %v255_v47 = vld [vmem:[#allocation6 + $0x228] sm:$0xff] }
 0x4f8   :  { %14057 = vmatpush1.bf16.msra.mxu0 %v18675_v54  ;;  %13771 = vmatprep.subr.bf16.mxu1 %v18946_v58  ;;  %v16949_v54 = vcombine.low %v191_v48, %v199_v50  ;;  %v17220_v58 = vcombine.high %v462_v12, %v470_v36  ;;  %v263_v42 = vld [vmem:[#allocation6 + $0x268] sm:$0xff]  ;;  %v16997_v50 = vcombine.low %v239_v51, %v247_v62 }
 0x4f9   :  { %14058 = vmatprep.subr.bf16.mxu0 %v18692_v63  ;;  %v16966_v63 = vcombine.high %v207_v30, %v215_v18  ;;  %v271_v12 = vld [vmem:[#allocation6 + $0x2a8] sm:$0xff] }
 0x4fa   :  { %v279_v36 = vld [vmem:[#allocation6 + $0x2e8] sm:$0xff] }
 0x4fb   :  { %13772 = vmatpush1.bf16.msra.mxu1 %v18945_v8  ;;  %v16965_v8 = vcombine.low %v207_v30, %v215_v18  ;;  %v17013_v18 = vcombine.low %v255_v47, %v263_v42 }
 0x4fc   :  { %14059 = vmatpush1.bf16.msra.mxu0 %v18691_v15  ;;  %13773 = vmatprep.subr.bf16.mxu1 %v18962_v40  ;;  %v16982_v15 = vcombine.high %v223_v19, %v231_v5  ;;  %v494_v40 = vld [vmem:[#allocation6 + $0x9a0] sm:$0xff]  ;;  %v17029_v5 = vcombine.low %v271_v12, %v279_v36 }
 0x4fd   :  { %14060 = vmatprep.subr.bf16.mxu0 %v18708_v43  ;;  %v502_v43 = vld [vmem:[#allocation6 + $0x9e0] sm:$0xff] }
 0x4fe   :  { %v17251_v48 = vcombine.low %v494_v40, %v502_v43 }
 0x4ff   :  { %13774 = vmatpush1.bf16.msra.mxu1 %v18961_v33  ;;  %v17252_v33 = vcombine.high %v494_v40, %v502_v43  ;;  %v566_v40 = vld [vmem:[#allocation6 + $0xbe0] sm:$0xff] }
 0x500   :  { %14061 = vmatpush1.bf16.msra.mxu0 %v18707_v7  ;;  %13775 = vmatprep.subr.bf16.mxu1 %v18978_v46  ;;  %v16998_v7 = vcombine.high %v239_v51, %v247_v62  ;;  %v510_v46 = vld [vmem:[#allocation6 + $0xa20] sm:$0xff]  ;;  %v303_v62 = vld [vmem:[#allocation6 + $0x3a8] sm:$0xff] }
 0x501   :  { %14062 = vmatprep.subr.bf16.mxu0 %v18724_v1  ;;  %v518_v1 = vld [vmem:[#allocation6 + $0xa60] sm:$0xff] }
 0x502   :  { %v17267_v30 = vcombine.low %v510_v46, %v518_v1 }
 0x503   :  { %13776 = vmatpush1.bf16.msra.mxu1 %v18977_v17  ;;  %v17268_v17 = vcombine.high %v510_v46, %v518_v1  ;;  %v17045_v1 = vcombine.low %v287_v13, %v295_v32 }
 0x504   :  { %14063 = vmatpush1.bf16.msra.mxu0 %v18723_v22  ;;  %13827 = vmatprep.subr.bf16.mxu1 %v17204_v20  ;;  %v17014_v22 = vcombine.high %v255_v47, %v263_v42  ;;  %v526_v20 = vld [vmem:[#allocation6 + $0xaa0] sm:$0xff] }
 0x505   :  { %14114 = vmatprep.subr.bf16.mxu0 %v16950_v52  ;;  %v534_v52 = vld [vmem:[#allocation6 + $0xae0] sm:$0xff] }
 0x506   :  { %13778 = vmatmul.mubr.bf16.vlgmr.msra.gmra.mrb[68].mxu1 %v19977_v14  ;;  %v17283_v19 = vcombine.low %v526_v20, %v534_v52 }
 0x507   :  { %13828 = vmatpush1.bf16.msra.mxu1 %v17203_v26  ;;  %14065 = vmatmul.mubr.bf16.vlgmr.msra.gmra.mrb[68].mxu0 %v19927_v41  ;;  %v17284_v26 = vcombine.high %v526_v20, %v534_v52 }
 0x508   :  { %14115 = vmatpush1.bf16.msra.mxu0 %v16949_v54  ;;  %13829 = vmatprep.subr.bf16.mxu1 %v17220_v58  ;;  %v17030_v54 = vcombine.high %v271_v12, %v279_v36  ;;  %v542_v58 = vld [vmem:[#allocation6 + $0xb20] sm:$0xff] }
 0x509   :  { %14116 = vmatprep.subr.bf16.mxu0 %v16966_v63  ;;  %13859 = vmatprep.mubr.bf16.mxu1 %v19917_v28  ;;  %v550_v63 = vld [vmem:[#allocation6 + $0xb60] sm:$0xff] }
 0x50a   :  { %14146 = vmatprep.mubr.bf16.mxu0 %v19907_v57 }
 0x50b   :  { %13830 = vmatpush1.bf16.msra.mxu1 %v17219_v6  ;;  %v17300_v6 = vcombine.high %v542_v58, %v550_v63 }
 0x50c   :  { %14117 = vmatpush1.bf16.msra.mxu0 %v16965_v8  ;;  %13831 = vmatprep.subr.bf16.mxu1 %v17236_v11  ;;  %v17046_v11 = vcombine.high %v287_v13, %v295_v32  ;;  %v606_v13 = vld [vmem:[#allocation6 + $0xd20] sm:$0xff] }
 0x50d   :  { %14118 = vmatprep.subr.bf16.mxu0 %v16982_v15  ;;  %v558_v15 = vld [vmem:[#allocation6 + $0xba0] sm:$0xff] }
 0x50e   :  { %v17316_v47 = vcombine.high %v558_v15, %v566_v40  ;;  %v17315_v20 = vcombine.low %v558_v15, %v566_v40  ;;  %v614_v32 = vld [vmem:[#allocation6 + $0xd60] sm:$0xff] }
 0x50f   :  { %13832 = vmatpush1.bf16.msra.mxu1 %v17235_v27  ;;  %v311_v27 = vld [vmem:[#allocation6 + $0x3e8] sm:$0xff]  ;;  %v622_v40 = vld [vmem:[#allocation6 + $0xda0] sm:$0xff] }
 0x510   :  { %14119 = vmatpush1.bf16.msra.mxu0 %v16981_v29  ;;  %13833 = vmatprep.subr.bf16.mxu1 %v17252_v33  ;;  %v17061_v52 = vcombine.low %v303_v62, %v311_v27 }
 0x511   :  { %14120 = vmatprep.subr.bf16.mxu0 %v16998_v7  ;;  %v17299_v7 = vcombine.low %v542_v58, %v550_v63 }
 0x513   :  { %13834 = vmatpush1.bf16.msra.mxu1 %v17251_v48  ;;  %v17062_v48 = vcombine.high %v303_v62, %v311_v27  ;;  %v375_v62 = vld [vmem:[#allocation6 + $0x5e8] sm:$0xff]  ;;  %v17363_v27 = vcombine.low %v606_v13, %v614_v32 }
 0x514   :  { %14121 = vmatpush1.bf16.msra.mxu0 %v16997_v50  ;;  %13835 = vmatprep.subr.bf16.mxu1 %v17268_v17  ;;  %v574_v50 = vld [vmem:[#allocation6 + $0xc20] sm:$0xff] }
 0x515   :  { %14122 = vmatprep.subr.bf16.mxu0 %v17014_v22  ;;  %v319_v22 = vld [vmem:[#allocation6 + $0x428] sm:$0xff] }
 0x517   :  { %13836 = vmatpush1.bf16.msra.mxu1 %v17267_v30  ;;  %v590_v30 = vld [vmem:[#allocation6 + $0xca0] sm:$0xff] }
 0x518   :  { %14123 = vmatpush1.bf16.msra.mxu0 %v17013_v18  ;;  %13837 = vmatprep.subr.bf16.mxu1 %v17284_v26  ;;  %v335_v18 = vld [vmem:[#allocation6 + $0x4a8] sm:$0xff] }
 0x519   :  { %v13533_v8 = vpop.f32.mrb[56].mxu1  ;;  %14124 = vmatprep.subr.bf16.mxu0 %v17030_v54  ;;  %v343_v26 = vld [vmem:[#allocation6 + $0x4e8] sm:$0xff] }
 0x51a   :  { %v13534_v43 = vadd.f32 %v13533_v8, %v20113_v60  ;;  %v13535_v51 = vpop.f32.mrb[57].mxu1  ;;  %v582_v60 = vld [vmem:[#allocation6 + $0xc60] sm:$0xff]  ;;  %v17094_v63 = vcombine.high %v335_v18, %v343_v26  ;;  %v17093_v8 = vcombine.low %v335_v18, %v343_v26  ;;  %v20175_v26 = vpop.f32.mrb[56].mxu0 }
 0x51b   :  { %v13536_v29 = vadd.f32 %v13535_v51, %v20115_v3  ;;  %v13537_v33 = vpop.f32.mrb[58].mxu1  ;;  %13838 = vmatpush1.bf16.msra.mxu1 %v17283_v19  ;;  %v327_v3 = vld [vmem:[#allocation6 + $0x468] sm:$0xff]  ;;  %v17332_v12 = vcombine.high %v574_v50, %v582_v60  ;;  %v17331_v54 = vcombine.low %v574_v50, %v582_v60 }
 0x51c   :  { %14125 = vmatpush1.bf16.msra.mxu0 %v17029_v5  ;;  %v13538_v46 = vpop.f32.mrb[59].mxu1  ;;  %13839 = vmatprep.subr.bf16.mxu1 %v17300_v6  ;;  %v20170_v42 = vadd.f32 %v20129_v35, %v13534_v43  ;;  %v17078_v36 = vcombine.high %v319_v22, %v327_v3  ;;  %v598_v35 = vld [vmem:[#allocation6 + $0xce0] sm:$0xff]  ;;  %v351_v19 = vld [vmem:[#allocation6 + $0x528] sm:$0xff] }
 0x51d   :  { %14126 = vmatprep.subr.bf16.mxu0 %v17046_v11  ;;  %v20173_v17 = vadd.f32 %v20131_v45, %v13536_v29  ;;  %v17077_v45 = vcombine.low %v319_v22, %v327_v3  ;;  %v17348_v58 = vcombine.high %v590_v30, %v598_v35  ;;  %v359_v5 = vld [vmem:[#allocation6 + $0x568] sm:$0xff]  ;;  %v17347_v6 = vcombine.low %v590_v30, %v598_v35  ;;  %v630_v43 = vld [vmem:[#allocation6 + $0xde0] sm:$0xff] }
 0x51e   :  { %v17364_v11 = vcombine.high %v606_v13, %v614_v32  ;;  %v17110_v15 = vcombine.high %v351_v19, %v359_v5  ;;  %v367_v51 = vld [vmem:[#allocation6 + $0x5a8] sm:$0xff]  ;;  %v17109_v29 = vcombine.low %v351_v19, %v359_v5  ;;  %v17380_v33 = vcombine.high %v622_v40, %v630_v43  ;;  %v638_v46 = vld [vmem:[#allocation6 + $0xe20] sm:$0xff] }
 0x51f   :  { %13840 = vmatpush1.bf16.msra.mxu1 %v17299_v7  ;;  %v17126_v7 = vcombine.high %v367_v51, %v375_v62  ;;  %v17379_v50 = vcombine.low %v622_v40, %v630_v43  ;;  %v17125_v60 = vcombine.low %v367_v51, %v375_v62  ;;  %v415_v13 = vld [vmem:[#allocation6 + $0x728] sm:$0xff]  ;;  %v686_v40 = vld [vmem:[#allocation6 + $0xfa0] sm:$0xff] }
 0x520   :  { %14127 = vmatpush1.bf16.msra.mxu0 %v17045_v1  ;;  %13841 = vmatprep.subr.bf16.mxu1 %v17316_v47  ;;  %v646_v1 = vld [vmem:[#allocation6 + $0xe60] sm:$0xff]  ;;  %v383_v47 = vld [vmem:[#allocation6 + $0x628] sm:$0xff] }
 0x521   :  { %14128 = vmatprep.subr.bf16.mxu0 %v17062_v48  ;;  %v391_v48 = vld [vmem:[#allocation6 + $0x668] sm:$0xff]  ;;  %v17396_v22 = vcombine.high %v638_v46, %v646_v1  ;;  %v17395_v30 = vcombine.low %v638_v46, %v646_v1  ;;  %v694_v43 = vld [vmem:[#allocation6 + $0xfe0] sm:$0xff] }
 0x522   :  { %v17142_v3 = vcombine.high %v383_v47, %v391_v48  ;;  %v17141_v35 = vcombine.low %v383_v47, %v391_v48  ;;  %v423_v32 = vld [vmem:[#allocation6 + $0x768] sm:$0xff]  ;;  %v958_v46 = vld [vmem:[#allocation6 + $0x1820] sm:$0xff] }
 0x523   :  { %13842 = vmatpush1.bf16.msra.mxu1 %v17315_v20  ;;  %v654_v20 = vld [vmem:[#allocation6 + $0xea0] sm:$0xff]  ;;  %v431_v51 = vld [vmem:[#allocation6 + $0x7a8] sm:$0xff] }
 0x524   :  { %14129 = vmatpush1.bf16.msra.mxu0 %v17061_v52  ;;  %13843 = vmatprep.subr.bf16.mxu1 %v17332_v12  ;;  %v662_v52 = vld [vmem:[#allocation6 + $0xee0] sm:$0xff]  ;;  %v399_v12 = vld [vmem:[#allocation6 + $0x6a8] sm:$0xff] }
 0x525   :  { %14130 = vmatprep.subr.bf16.mxu0 %v17078_v36  ;;  %v407_v36 = vld [vmem:[#allocation6 + $0x6e8] sm:$0xff]  ;;  %v17412_v18 = vcombine.high %v654_v20, %v662_v52  ;;  %v17411_v5 = vcombine.low %v654_v20, %v662_v52  ;;  %v966_v1 = vld [vmem:[#allocation6 + $0x1860] sm:$0xff] }
 0x526   :  { %v439_v62 = vld [vmem:[#allocation6 + $0x7e8] sm:$0xff]  ;;  %v974_v20 = vld [vmem:[#allocation6 + $0x18a0] sm:$0xff] }
 0x527   :  { %13844 = vmatpush1.bf16.msra.mxu1 %v17331_v54  ;;  %v17158_v54 = vcombine.high %v399_v12, %v407_v36  ;;  %v703_v47 = vld [vmem:[#allocation6 + $0x1028] sm:$0xff]  ;;  %v982_v52 = vld [vmem:[#allocation6 + $0x18e0] sm:$0xff] }
 0x528   :  { %14131 = vmatpush1.bf16.msra.mxu0 %v17077_v45  ;;  %13845 = vmatprep.subr.bf16.mxu1 %v17348_v58  ;;  %v670_v45 = vld [vmem:[#allocation6 + $0xf20] sm:$0xff]  ;;  %v711_v48 = vld [vmem:[#allocation6 + $0x1068] sm:$0xff] }
 0x529   :  { %14132 = vmatprep.subr.bf16.mxu0 %v17094_v63  ;;  %v678_v58 = vld [vmem:[#allocation6 + $0xf60] sm:$0xff]  ;;  %v20177_v63 = vpop.f32.mrb[57].mxu0 }
 0x52a   :  { %v13824_v19 = vpop.f32.mrb[58].mxu0 }
 0x52b   :  { %13846 = vmatpush1.bf16.msra.mxu1 %v17347_v6  ;;  %v13825_v6 = vpop.f32.mrb[59].mxu0  ;;  %v17731_v19 = vcombine.low %v974_v20, %v982_v52 }
 0x52c   :  { %14133 = vmatpush1.bf16.msra.mxu0 %v17093_v8  ;;  %13847 = vmatprep.subr.bf16.mxu1 %v17364_v11  ;;  %v17157_v8 = vcombine.low %v399_v12, %v407_v36  ;;  %v17428_v11 = vcombine.high %v670_v45, %v678_v58  ;;  %v719_v12 = vld [vmem:[#allocation6 + $0x10a8] sm:$0xff] }
 0x52d   :  { %14134 = vmatprep.subr.bf16.mxu0 %v17110_v15  ;;  %v17174_v15 = vcombine.high %v415_v13, %v423_v32  ;;  %v727_v36 = vld [vmem:[#allocation6 + $0x10e8] sm:$0xff] }
 0x52f   :  { %13848 = vmatpush1.bf16.msra.mxu1 %v17363_v27  ;;  %v17427_v27 = vcombine.low %v670_v45, %v678_v58  ;;  %v990_v45 = vld [vmem:[#allocation6 + $0x1920] sm:$0xff] }
 0x530   :  { %14135 = vmatpush1.bf16.msra.mxu0 %v17109_v29  ;;  %13849 = vmatprep.subr.bf16.mxu1 %v17380_v33  ;;  %v17173_v29 = vcombine.low %v415_v13, %v423_v32  ;;  %v17444_v33 = vcombine.high %v686_v40, %v694_v43  ;;  %v998_v58 = vld [vmem:[#allocation6 + $0x1960] sm:$0xff]  ;;  %v735_v13 = vld [vmem:[#allocation6 + $0x1128] sm:$0xff] }
 0x531   :  { %14136 = vmatprep.subr.bf16.mxu0 %v17126_v7  ;;  %v17190_v7 = vcombine.high %v431_v51, %v439_v62  ;;  %v743_v32 = vld [vmem:[#allocation6 + $0x1168] sm:$0xff]  ;;  %v17748_v6 = vcombine.high %v990_v45, %v998_v58 }
 0x533   :  { %13850 = vmatpush1.bf16.msra.mxu1 %v17379_v50  ;;  %v17443_v50 = vcombine.low %v686_v40, %v694_v43  ;;  %v751_v40 = vld [vmem:[#allocation6 + $0x11a8] sm:$0xff] }
 0x534   :  { %14137 = vmatpush1.bf16.msra.mxu0 %v17125_v60  ;;  %13851 = vmatprep.subr.bf16.mxu1 %v17396_v22  ;;  %v17189_v60 = vcombine.low %v431_v51, %v439_v62  ;;  %v17716_v22 = vcombine.high %v958_v46, %v966_v1  ;;  %v759_v43 = vld [vmem:[#allocation6 + $0x11e8] sm:$0xff]  ;;  %v17747_v51 = vcombine.low %v990_v45, %v998_v58 }
 0x535   :  { %14138 = vmatprep.subr.bf16.mxu0 %v17142_v3  ;;  %v17462_v3 = vcombine.high %v703_v47, %v711_v48  ;;  %v17493_v62 = vcombine.low %v735_v13, %v743_v32  ;;  %v799_v45 = vld [vmem:[#allocation6 + $0x1328] sm:$0xff] }
 0x536   :  { %v807_v58 = vld [vmem:[#allocation6 + $0x1368] sm:$0xff] }
 0x537   :  { %13852 = vmatpush1.bf16.msra.mxu1 %v17395_v30  ;;  %v17715_v30 = vcombine.low %v958_v46, %v966_v1  ;;  %v767_v46 = vld [vmem:[#allocation6 + $0x1228] sm:$0xff] }
 0x538   :  { %14139 = vmatpush1.bf16.msra.mxu0 %v17141_v35  ;;  %13853 = vmatprep.subr.bf16.mxu1 %v17412_v18  ;;  %v17461_v35 = vcombine.low %v703_v47, %v711_v48  ;;  %v17732_v18 = vcombine.high %v974_v20, %v982_v52  ;;  %v775_v1 = vld [vmem:[#allocation6 + $0x1268] sm:$0xff]  ;;  %v17509_v48 = vcombine.low %v751_v40, %v759_v43 }
 0x539   :  { %14140 = vmatprep.subr.bf16.mxu0 %v17158_v54  ;;  %v17478_v54 = vcombine.high %v719_v12, %v727_v36  ;;  %v783_v20 = vld [vmem:[#allocation6 + $0x12a8] sm:$0xff] }
 0x53a   :  { %v791_v52 = vld [vmem:[#allocation6 + $0x12e8] sm:$0xff] }
 0x53b   :  { %13854 = vmatpush1.bf16.msra.mxu1 %v17411_v5  ;;  %v17477_v5 = vcombine.low %v719_v12, %v727_v36  ;;  %v17525_v36 = vcombine.low %v767_v46, %v775_v1 }
 0x53c   :  { %14141 = vmatpush1.bf16.msra.mxu0 %v17157_v8  ;;  %13855 = vmatprep.subr.bf16.mxu1 %v17428_v11  ;;  %v17494_v8 = vcombine.high %v735_v13, %v743_v32  ;;  %v1006_v11 = vld [vmem:[#allocation6 + $0x19a0] sm:$0xff]  ;;  %v17541_v32 = vcombine.low %v783_v20, %v791_v52 }
 0x53d   :  { %14142 = vmatprep.subr.bf16.mxu0 %v17174_v15  ;;  %v1014_v15 = vld [vmem:[#allocation6 + $0x19e0] sm:$0xff] }
 0x53e   :  { %v17763_v47 = vcombine.low %v1006_v11, %v1014_v15 }
 0x53f   :  { %13856 = vmatpush1.bf16.msra.mxu1 %v17427_v27  ;;  %v17764_v27 = vcombine.high %v1006_v11, %v1014_v15  ;;  %v1078_v11 = vld [vmem:[#allocation6 + $0x1be0] sm:$0xff] }
 0x540   :  { %14143 = vmatpush1.bf16.msra.mxu0 %v17173_v29  ;;  %13857 = vmatprep.subr.bf16.mxu1 %v17444_v33  ;;  %v17510_v29 = vcombine.high %v751_v40, %v759_v43  ;;  %v1022_v33 = vld [vmem:[#allocation6 + $0x1a20] sm:$0xff]  ;;  %v815_v43 = vld [vmem:[#allocation6 + $0x13a8] sm:$0xff] }
 0x541   :  { %14144 = vmatprep.subr.bf16.mxu0 %v17190_v7  ;;  %v1030_v7 = vld [vmem:[#allocation6 + $0x1a60] sm:$0xff] }
 0x542   :  { %v17779_v12 = vcombine.low %v1022_v33, %v1030_v7 }
 0x543   :  { %13858 = vmatpush1.bf16.msra.mxu1 %v17443_v50  ;;  %v17780_v50 = vcombine.high %v1022_v33, %v1030_v7  ;;  %v17557_v7 = vcombine.low %v799_v45, %v807_v58 }
 0x544   :  { %14145 = vmatpush1.bf16.msra.mxu0 %v17189_v60  ;;  %13909 = vmatprep.subr.bf16.mxu1 %v17716_v22  ;;  %v17526_v60 = vcombine.high %v767_v46, %v775_v1  ;;  %v1038_v22 = vld [vmem:[#allocation6 + $0x1aa0] sm:$0xff] }
 0x545   :  { %14196 = vmatprep.subr.bf16.mxu0 %v17462_v3  ;;  %v1046_v3 = vld [vmem:[#allocation6 + $0x1ae0] sm:$0xff] }
 0x546   :  { %13860 = vmatmul.mubr.bf16.vlgmr.msra.gmra.mrb[72].mxu1 %v19925_v39  ;;  %v17795_v13 = vcombine.low %v1038_v22, %v1046_v3 }
 0x547   :  { %13910 = vmatpush1.bf16.msra.mxu1 %v17715_v30  ;;  %14147 = vmatmul.mubr.bf16.vlgmr.msra.gmra.mrb[72].mxu0 %v19913_v16  ;;  %v17796_v30 = vcombine.high %v1038_v22, %v1046_v3 }
 0x548   :  { %14197 = vmatpush1.bf16.msra.mxu0 %v17461_v35  ;;  %13911 = vmatprep.subr.bf16.mxu1 %v17732_v18  ;;  %v17542_v35 = vcombine.high %v783_v20, %v791_v52  ;;  %v1054_v18 = vld [vmem:[#allocation6 + $0x1b20] sm:$0xff] }
 0x549   :  { %14198 = vmatprep.subr.bf16.mxu0 %v17478_v54  ;;  %13941 = vmatprep.mubr.bf16.mxu1 %v19937_v9  ;;  %v1062_v54 = vld [vmem:[#allocation6 + $0x1b60] sm:$0xff] }
 0x54a   :  { %14228 = vmatprep.mubr.bf16.mxu0 %v19929_v49 }
 0x54b   :  { %13912 = vmatpush1.bf16.msra.mxu1 %v17731_v19  ;;  %v17812_v19 = vcombine.high %v1054_v18, %v1062_v54 }
 0x54c   :  { %14199 = vmatpush1.bf16.msra.mxu0 %v17477_v5  ;;  %13913 = vmatprep.subr.bf16.mxu1 %v17748_v6  ;;  %v17558_v6 = vcombine.high %v799_v45, %v807_v58  ;;  %v1118_v45 = vld [vmem:[#allocation6 + $0x1d20] sm:$0xff] }
 0x54d   :  { %14200 = vmatprep.subr.bf16.mxu0 %v17494_v8  ;;  %v1070_v8 = vld [vmem:[#allocation6 + $0x1ba0] sm:$0xff] }
 0x54e   :  { %v17828_v46 = vcombine.high %v1070_v8, %v1078_v11  ;;  %v17827_v22 = vcombine.low %v1070_v8, %v1078_v11  ;;  %v1126_v58 = vld [vmem:[#allocation6 + $0x1d60] sm:$0xff] }
 0x54f   :  { %13914 = vmatpush1.bf16.msra.mxu1 %v17747_v51  ;;  %v823_v51 = vld [vmem:[#allocation6 + $0x13e8] sm:$0xff]  ;;  %v1134_v11 = vld [vmem:[#allocation6 + $0x1da0] sm:$0xff] }
 0x550   :  { %14201 = vmatpush1.bf16.msra.mxu0 %v17493_v62  ;;  %13915 = vmatprep.subr.bf16.mxu1 %v17764_v27  ;;  %v17573_v3 = vcombine.low %v815_v43, %v823_v51 }
 0x551   :  { %14202 = vmatprep.subr.bf16.mxu0 %v17510_v29  ;;  %v17811_v29 = vcombine.low %v1054_v18, %v1062_v54 }
 0x553   :  { %13916 = vmatpush1.bf16.msra.mxu1 %v17763_v47  ;;  %v17574_v47 = vcombine.high %v815_v43, %v823_v51  ;;  %v887_v43 = vld [vmem:[#allocation6 + $0x15e8] sm:$0xff]  ;;  %v17875_v51 = vcombine.low %v1118_v45, %v1126_v58 }
 0x554   :  { %14203 = vmatpush1.bf16.msra.mxu0 %v17509_v48  ;;  %13917 = vmatprep.subr.bf16.mxu1 %v17780_v50  ;;  %v1086_v48 = vld [vmem:[#allocation6 + $0x1c20] sm:$0xff] }
 0x555   :  { %14204 = vmatprep.subr.bf16.mxu0 %v17526_v60  ;;  %v831_v60 = vld [vmem:[#allocation6 + $0x1428] sm:$0xff] }
 0x557   :  { %13918 = vmatpush1.bf16.msra.mxu1 %v17779_v12  ;;  %v1102_v12 = vld [vmem:[#allocation6 + $0x1ca0] sm:$0xff] }
 0x558   :  { %14205 = vmatpush1.bf16.msra.mxu0 %v17525_v36  ;;  %13919 = vmatprep.subr.bf16.mxu1 %v17796_v30  ;;  %v847_v36 = vld [vmem:[#allocation6 + $0x14a8] sm:$0xff] }
 0x559   :  { %v13615_v5 = vpop.f32.mrb[60].mxu1  ;;  %14206 = vmatprep.subr.bf16.mxu0 %v17542_v35  ;;  %v855_v30 = vld [vmem:[#allocation6 + $0x14e8] sm:$0xff] }
 0x55a   :  { %v13616_v15 = vadd.f32 %v13615_v5, %v20170_v42  ;;  %v13617_v40 = vpop.f32.mrb[61].mxu1  ;;  %v1094_v42 = vld [vmem:[#allocation6 + $0x1c60] sm:$0xff]  ;;  %v17606_v54 = vcombine.high %v847_v36, %v855_v30  ;;  %v17605_v5 = vcombine.low %v847_v36, %v855_v30  ;;  %v20191_v30 = vpop.f32.mrb[60].mxu0 }
 0x55b   :  { %v13618_v62 = vadd.f32 %v13617_v40, %v20173_v17  ;;  %v13619_v27 = vpop.f32.mrb[62].mxu1  ;;  %13920 = vmatpush1.bf16.msra.mxu1 %v17795_v13  ;;  %v839_v17 = vld [vmem:[#allocation6 + $0x1468] sm:$0xff]  ;;  %v17844_v20 = vcombine.high %v1086_v48, %v1094_v42  ;;  %v17843_v35 = vcombine.low %v1086_v48, %v1094_v42 }
 0x55c   :  { %14207 = vmatpush1.bf16.msra.mxu0 %v17541_v32  ;;  %v13620_v33 = vpop.f32.mrb[63].mxu1  ;;  %13921 = vmatprep.subr.bf16.mxu1 %v17812_v19  ;;  %v20186_v1 = vadd.f32 %v20145_v2, %v13616_v15  ;;  %v17590_v52 = vcombine.high %v831_v60, %v839_v17  ;;  %v1110_v2 = vld [vmem:[#allocation6 + $0x1ce0] sm:$0xff]  ;;  %v863_v13 = vld [vmem:[#allocation6 + $0x1528] sm:$0xff] }
 0x55d   :  { %14208 = vmatprep.subr.bf16.mxu0 %v17558_v6  ;;  %v20189_v50 = vadd.f32 %v20147_v38, %v13618_v62  ;;  %v17589_v38 = vcombine.low %v831_v60, %v839_v17  ;;  %v17860_v18 = vcombine.high %v1102_v12, %v1110_v2  ;;  %v871_v32 = vld [vmem:[#allocation6 + $0x1568] sm:$0xff]  ;;  %v17859_v19 = vcombine.low %v1102_v12, %v1110_v2  ;;  %v1142_v15 = vld [vmem:[#allocation6 + $0x1de0] sm:$0xff] }
 0x55e   :  { %v17876_v6 = vcombine.high %v1118_v45, %v1126_v58  ;;  %v17622_v8 = vcombine.high %v863_v13, %v871_v32  ;;  %v879_v40 = vld [vmem:[#allocation6 + $0x15a8] sm:$0xff]  ;;  %v17621_v62 = vcombine.low %v863_v13, %v871_v32  ;;  %v17892_v27 = vcombine.high %v1134_v11, %v1142_v15  ;;  %v1150_v33 = vld [vmem:[#allocation6 + $0x1e20] sm:$0xff] }
 0x55f   :  { %13922 = vmatpush1.bf16.msra.mxu1 %v17811_v29  ;;  %v17638_v29 = vcombine.high %v879_v40, %v887_v43  ;;  %v17891_v48 = vcombine.low %v1134_v11, %v1142_v15  ;;  %v17637_v42 = vcombine.low %v879_v40, %v887_v43  ;;  %v927_v45 = vld [vmem:[#allocation6 + $0x1728] sm:$0xff]  ;;  %v1198_v11 = vld [vmem:[#allocation6 + $0x1fa0] sm:$0xff] }
 0x560   :  { %14209 = vmatpush1.bf16.msra.mxu0 %v17557_v7  ;;  %13923 = vmatprep.subr.bf16.mxu1 %v17828_v46  ;;  %v1158_v7 = vld [vmem:[#allocation6 + $0x1e60] sm:$0xff]  ;;  %v895_v46 = vld [vmem:[#allocation6 + $0x1628] sm:$0xff] }
 0x561   :  { %14210 = vmatprep.subr.bf16.mxu0 %v17574_v47  ;;  %v903_v47 = vld [vmem:[#allocation6 + $0x1668] sm:$0xff]  ;;  %v17908_v60 = vcombine.high %v1150_v33, %v1158_v7  ;;  %v17907_v12 = vcombine.low %v1150_v33, %v1158_v7  ;;  %v1206_v15 = vld [vmem:[#allocation6 + $0x1fe0] sm:$0xff] }
 0x562   :  { %v17654_v17 = vcombine.high %v895_v46, %v903_v47  ;;  %v17653_v2 = vcombine.low %v895_v46, %v903_v47  ;;  %v935_v58 = vld [vmem:[#allocation6 + $0x1768] sm:$0xff]  ;;  %v1470_v33 = vld [vmem:[#allocation6 + $0x2820] sm:$0xff] }
 0x563   :  { %13924 = vmatpush1.bf16.msra.mxu1 %v17827_v22  ;;  %v1166_v22 = vld [vmem:[#allocation6 + $0x1ea0] sm:$0xff]  ;;  %v943_v40 = vld [vmem:[#allocation6 + $0x17a8] sm:$0xff] }
 0x564   :  { %14211 = vmatpush1.bf16.msra.mxu0 %v17573_v3  ;;  %13925 = vmatprep.subr.bf16.mxu1 %v17844_v20  ;;  %v1174_v3 = vld [vmem:[#allocation6 + $0x1ee0] sm:$0xff]  ;;  %v911_v20 = vld [vmem:[#allocation6 + $0x16a8] sm:$0xff] }
 0x565   :  { %14212 = vmatprep.subr.bf16.mxu0 %v17590_v52  ;;  %v919_v52 = vld [vmem:[#allocation6 + $0x16e8] sm:$0xff]  ;;  %v17924_v36 = vcombine.high %v1166_v22, %v1174_v3  ;;  %v17923_v32 = vcombine.low %v1166_v22, %v1174_v3  ;;  %v1478_v7 = vld [vmem:[#allocation6 + $0x2860] sm:$0xff] }
 0x566   :  { %v951_v43 = vld [vmem:[#allocation6 + $0x17e8] sm:$0xff]  ;;  %v1486_v22 = vld [vmem:[#allocation6 + $0x28a0] sm:$0xff] }
 0x567   :  { %13926 = vmatpush1.bf16.msra.mxu1 %v17843_v35  ;;  %v17670_v35 = vcombine.high %v911_v20, %v919_v52  ;;  %v1215_v46 = vld [vmem:[#allocation6 + $0x2028] sm:$0xff]  ;;  %v1494_v3 = vld [vmem:[#allocation6 + $0x28e0] sm:$0xff] }
 0x568   :  { %14213 = vmatpush1.bf16.msra.mxu0 %v17589_v38  ;;  %13927 = vmatprep.subr.bf16.mxu1 %v17860_v18  ;;  %v1182_v38 = vld [vmem:[#allocation6 + $0x1f20] sm:$0xff]  ;;  %v1223_v47 = vld [vmem:[#allocation6 + $0x2068] sm:$0xff] }
 0x569   :  { %14214 = vmatprep.subr.bf16.mxu0 %v17606_v54  ;;  %v1190_v18 = vld [vmem:[#allocation6 + $0x1f60] sm:$0xff]  ;;  %v20193_v54 = vpop.f32.mrb[61].mxu0 }
 0x56a   :  { %v13906_v13 = vpop.f32.mrb[62].mxu0 }
 0x56b   :  { %13928 = vmatpush1.bf16.msra.mxu1 %v17859_v19  ;;  %v13907_v19 = vpop.f32.mrb[63].mxu0  ;;  %v18243_v13 = vcombine.low %v1486_v22, %v1494_v3 }
 0x56c   :  { %14215 = vmatpush1.bf16.msra.mxu0 %v17605_v5  ;;  %13929 = vmatprep.subr.bf16.mxu1 %v17876_v6  ;;  %v17669_v5 = vcombine.low %v911_v20, %v919_v52  ;;  %v17940_v6 = vcombine.high %v1182_v38, %v1190_v18  ;;  %v1231_v20 = vld [vmem:[#allocation6 + $0x20a8] sm:$0xff] }
 0x56d   :  { %14216 = vmatprep.subr.bf16.mxu0 %v17622_v8  ;;  %v17686_v8 = vcombine.high %v927_v45, %v935_v58  ;;  %v1239_v52 = vld [vmem:[#allocation6 + $0x20e8] sm:$0xff] }
 0x56f   :  { %13930 = vmatpush1.bf16.msra.mxu1 %v17875_v51  ;;  %v17939_v51 = vcombine.low %v1182_v38, %v1190_v18  ;;  %v1502_v38 = vld [vmem:[#allocation6 + $0x2920] sm:$0xff] }
 0x570   :  { %14217 = vmatpush1.bf16.msra.mxu0 %v17621_v62  ;;  %13931 = vmatprep.subr.bf16.mxu1 %v17892_v27  ;;  %v17685_v62 = vcombine.low %v927_v45, %v935_v58  ;;  %v17956_v27 = vcombine.high %v1198_v11, %v1206_v15  ;;  %v1510_v18 = vld [vmem:[#allocation6 + $0x2960] sm:$0xff]  ;;  %v1247_v45 = vld [vmem:[#allocation6 + $0x2128] sm:$0xff] }
 0x571   :  { %14218 = vmatprep.subr.bf16.mxu0 %v17638_v29  ;;  %v17702_v29 = vcombine.high %v943_v40, %v951_v43  ;;  %v1255_v58 = vld [vmem:[#allocation6 + $0x2168] sm:$0xff]  ;;  %v18260_v19 = vcombine.high %v1502_v38, %v1510_v18 }
 0x573   :  { %13932 = vmatpush1.bf16.msra.mxu1 %v17891_v48  ;;  %v17955_v48 = vcombine.low %v1198_v11, %v1206_v15  ;;  %v1263_v11 = vld [vmem:[#allocation6 + $0x21a8] sm:$0xff] }
 0x574   :  { %14219 = vmatpush1.bf16.msra.mxu0 %v17637_v42  ;;  %13933 = vmatprep.subr.bf16.mxu1 %v17908_v60  ;;  %v17701_v42 = vcombine.low %v943_v40, %v951_v43  ;;  %v18228_v60 = vcombine.high %v1470_v33, %v1478_v7  ;;  %v1271_v15 = vld [vmem:[#allocation6 + $0x21e8] sm:$0xff]  ;;  %v18259_v40 = vcombine.low %v1502_v38, %v1510_v18 }
 0x575   :  { %14220 = vmatprep.subr.bf16.mxu0 %v17654_v17  ;;  %v17974_v17 = vcombine.high %v1215_v46, %v1223_v47  ;;  %v18005_v43 = vcombine.low %v1247_v45, %v1255_v58  ;;  %v1311_v38 = vld [vmem:[#allocation6 + $0x2328] sm:$0xff] }
 0x576   :  { %v1319_v18 = vld [vmem:[#allocation6 + $0x2368] sm:$0xff] }
 0x577   :  { %13934 = vmatpush1.bf16.msra.mxu1 %v17907_v12  ;;  %v18227_v12 = vcombine.low %v1470_v33, %v1478_v7  ;;  %v1279_v33 = vld [vmem:[#allocation6 + $0x2228] sm:$0xff] }
 0x578   :  { %14221 = vmatpush1.bf16.msra.mxu0 %v17653_v2  ;;  %13935 = vmatprep.subr.bf16.mxu1 %v17924_v36  ;;  %v17973_v2 = vcombine.low %v1215_v46, %v1223_v47  ;;  %v18244_v36 = vcombine.high %v1486_v22, %v1494_v3  ;;  %v1287_v7 = vld [vmem:[#allocation6 + $0x2268] sm:$0xff]  ;;  %v18021_v47 = vcombine.low %v1263_v11, %v1271_v15 }
 0x579   :  { %14222 = vmatprep.subr.bf16.mxu0 %v17670_v35  ;;  %v17990_v35 = vcombine.high %v1231_v20, %v1239_v52  ;;  %v1295_v22 = vld [vmem:[#allocation6 + $0x22a8] sm:$0xff] }
 0x57a   :  { %v1303_v3 = vld [vmem:[#allocation6 + $0x22e8] sm:$0xff] }
 0x57b   :  { %13936 = vmatpush1.bf16.msra.mxu1 %v17923_v32  ;;  %v17989_v32 = vcombine.low %v1231_v20, %v1239_v52  ;;  %v18037_v52 = vcombine.low %v1279_v33, %v1287_v7 }
 0x57c   :  { %14223 = vmatpush1.bf16.msra.mxu0 %v17669_v5  ;;  %13937 = vmatprep.subr.bf16.mxu1 %v17940_v6  ;;  %v18006_v5 = vcombine.high %v1247_v45, %v1255_v58  ;;  %v1518_v6 = vld [vmem:[#allocation6 + $0x29a0] sm:$0xff]  ;;  %v18053_v58 = vcombine.low %v1295_v22, %v1303_v3 }
 0x57d   :  { %14224 = vmatprep.subr.bf16.mxu0 %v17686_v8  ;;  %v1526_v8 = vld [vmem:[#allocation6 + $0x29e0] sm:$0xff] }
 0x57e   :  { %v18275_v46 = vcombine.low %v1518_v6, %v1526_v8 }
 0x57f   :  { %13938 = vmatpush1.bf16.msra.mxu1 %v17939_v51  ;;  %v18276_v51 = vcombine.high %v1518_v6, %v1526_v8  ;;  %v1590_v6 = vld [vmem:[#allocation6 + $0x2be0] sm:$0xff] }
 0x580   :  { %14225 = vmatpush1.bf16.msra.mxu0 %v17685_v62  ;;  %13939 = vmatprep.subr.bf16.mxu1 %v17956_v27  ;;  %v18022_v62 = vcombine.high %v1263_v11, %v1271_v15  ;;  %v1534_v27 = vld [vmem:[#allocation6 + $0x2a20] sm:$0xff]  ;;  %v1327_v15 = vld [vmem:[#allocation6 + $0x23a8] sm:$0xff] }
 0x581   :  { %14226 = vmatprep.subr.bf16.mxu0 %v17702_v29  ;;  %v1542_v29 = vld [vmem:[#allocation6 + $0x2a60] sm:$0xff] }
 0x582   :  { %v18291_v20 = vcombine.low %v1534_v27, %v1542_v29 }
 0x583   :  { %13940 = vmatpush1.bf16.msra.mxu1 %v17955_v48  ;;  %v18292_v48 = vcombine.high %v1534_v27, %v1542_v29  ;;  %v18069_v29 = vcombine.low %v1311_v38, %v1319_v18 }
 0x584   :  { %14227 = vmatpush1.bf16.msra.mxu0 %v17701_v42  ;;  %13991 = vmatprep.subr.bf16.mxu1 %v18228_v60  ;;  %v18038_v42 = vcombine.high %v1279_v33, %v1287_v7  ;;  %v1550_v60 = vld [vmem:[#allocation6 + $0x2aa0] sm:$0xff] }
 0x585   :  { %14278 = vmatprep.subr.bf16.mxu0 %v17974_v17  ;;  %v1558_v17 = vld [vmem:[#allocation6 + $0x2ae0] sm:$0xff] }
 0x586   :  { %13942 = vmatmul.mubr.bf16.vlgmr.msra.gmra.mrb[76].mxu1 %v19943_v25  ;;  %v18307_v45 = vcombine.low %v1550_v60, %v1558_v17 }
 0x587   :  { %13992 = vmatpush1.bf16.msra.mxu1 %v18227_v12  ;;  %14229 = vmatmul.mubr.bf16.vlgmr.msra.gmra.mrb[76].mxu0 %v19935_v0  ;;  %v18308_v12 = vcombine.high %v1550_v60, %v1558_v17 }
 0x588   :  { %14279 = vmatpush1.bf16.msra.mxu0 %v17973_v2  ;;  %13993 = vmatprep.subr.bf16.mxu1 %v18244_v36  ;;  %v18054_v2 = vcombine.high %v1295_v22, %v1303_v3  ;;  %v1566_v36 = vld [vmem:[#allocation6 + $0x2b20] sm:$0xff] }
 0x589   :  { %14280 = vmatprep.subr.bf16.mxu0 %v17990_v35  ;;  %14023 = vmatprep.mubr.bf16.mxu1 %v19945_v37  ;;  %v1574_v35 = vld [vmem:[#allocation6 + $0x2b60] sm:$0xff] }
 0x58a   :  { %14310 = vmatprep.mubr.bf16.mxu0 %v19909_v61 }
 0x58b   :  { %13994 = vmatpush1.bf16.msra.mxu1 %v18243_v13  ;;  %v18324_v13 = vcombine.high %v1566_v36, %v1574_v35 }
 0x58c   :  { %14281 = vmatpush1.bf16.msra.mxu0 %v17989_v32  ;;  %13995 = vmatprep.subr.bf16.mxu1 %v18260_v19  ;;  %v18070_v19 = vcombine.high %v1311_v38, %v1319_v18  ;;  %v1630_v38 = vld [vmem:[#allocation6 + $0x2d20] sm:$0xff] }
 0x58d   :  { %14282 = vmatprep.subr.bf16.mxu0 %v18006_v5  ;;  %v1582_v5 = vld [vmem:[#allocation6 + $0x2ba0] sm:$0xff] }
 0x58e   :  { %v18340_v33 = vcombine.high %v1582_v5, %v1590_v6  ;;  %v18339_v60 = vcombine.low %v1582_v5, %v1590_v6  ;;  %v1638_v18 = vld [vmem:[#allocation6 + $0x2d60] sm:$0xff] }
 0x58f   :  { %13996 = vmatpush1.bf16.msra.mxu1 %v18259_v40  ;;  %v1335_v40 = vld [vmem:[#allocation6 + $0x23e8] sm:$0xff]  ;;  %v1646_v6 = vld [vmem:[#allocation6 + $0x2da0] sm:$0xff] }
 0x590   :  { %14283 = vmatpush1.bf16.msra.mxu0 %v18005_v43  ;;  %13997 = vmatprep.subr.bf16.mxu1 %v18276_v51  ;;  %v18085_v17 = vcombine.low %v1327_v15, %v1335_v40 }
 0x591   :  { %14284 = vmatprep.subr.bf16.mxu0 %v18022_v62  ;;  %v18323_v62 = vcombine.low %v1566_v36, %v1574_v35 }
 0x593   :  { %13998 = vmatpush1.bf16.msra.mxu1 %v18275_v46  ;;  %v18086_v46 = vcombine.high %v1327_v15, %v1335_v40  ;;  %v1399_v15 = vld [vmem:[#allocation6 + $0x25e8] sm:$0xff]  ;;  %v18387_v40 = vcombine.low %v1630_v38, %v1638_v18 }
 0x594   :  { %14285 = vmatpush1.bf16.msra.mxu0 %v18021_v47  ;;  %13999 = vmatprep.subr.bf16.mxu1 %v18292_v48  ;;  %v1598_v47 = vld [vmem:[#allocation6 + $0x2c20] sm:$0xff] }
 0x595   :  { %14286 = vmatprep.subr.bf16.mxu0 %v18038_v42  ;;  %v1343_v42 = vld [vmem:[#allocation6 + $0x2428] sm:$0xff] }
 0x597   :  { %14000 = vmatpush1.bf16.msra.mxu1 %v18291_v20  ;;  %v1614_v20 = vld [vmem:[#allocation6 + $0x2ca0] sm:$0xff] }
 0x598   :  { %14287 = vmatpush1.bf16.msra.mxu0 %v18037_v52  ;;  %14001 = vmatprep.subr.bf16.mxu1 %v18308_v12  ;;  %v1359_v52 = vld [vmem:[#allocation6 + $0x24a8] sm:$0xff] }
 0x599   :  { %v13697_v32 = vpop.f32.mrb[64].mxu1  ;;  %14288 = vmatprep.subr.bf16.mxu0 %v18054_v2  ;;  %v1367_v12 = vld [vmem:[#allocation6 + $0x24e8] sm:$0xff] }
 0x59a   :  { %v13698_v8 = vadd.f32 %v13697_v32, %v20186_v1  ;;  %v13699_v11 = vpop.f32.mrb[65].mxu1  ;;  %v1606_v1 = vld [vmem:[#allocation6 + $0x2c60] sm:$0xff]  ;;  %v18118_v35 = vcombine.high %v1359_v52, %v1367_v12  ;;  %v18117_v32 = vcombine.low %v1359_v52, %v1367_v12  ;;  %v20207_v12 = vpop.f32.mrb[64].mxu0 }
 0x59b   :  { %v13700_v43 = vadd.f32 %v13699_v11, %v20189_v50  ;;  %v13701_v51 = vpop.f32.mrb[66].mxu1  ;;  %14002 = vmatpush1.bf16.msra.mxu1 %v18307_v45  ;;  %v1351_v50 = vld [vmem:[#allocation6 + $0x2468] sm:$0xff]  ;;  %v18356_v22 = vcombine.high %v1598_v47, %v1606_v1  ;;  %v18355_v2 = vcombine.low %v1598_v47, %v1606_v1 }
 0x59c   :  { %14289 = vmatpush1.bf16.msra.mxu0 %v18053_v58  ;;  %v13702_v27 = vpop.f32.mrb[67].mxu1  ;;  %14003 = vmatprep.subr.bf16.mxu1 %v18324_v13  ;;  %v20202_v7 = vadd.f32 %v20159_v59, %v13698_v8  ;;  %v18102_v3 = vcombine.high %v1343_v42, %v1351_v50  ;;  %v1622_v59 = vld [vmem:[#allocation6 + $0x2ce0] sm:$0xff]  ;;  %v1375_v45 = vld [vmem:[#allocation6 + $0x2528] sm:$0xff] }
 0x59d   :  { %14290 = vmatprep.subr.bf16.mxu0 %v18070_v19  ;;  %v20205_v48 = vadd.f32 %v20161_v56, %v13700_v43  ;;  %v18101_v56 = vcombine.low %v1343_v42, %v1351_v50  ;;  %v18372_v36 = vcombine.high %v1614_v20, %v1622_v59  ;;  %v1383_v58 = vld [vmem:[#allocation6 + $0x2568] sm:$0xff]  ;;  %v18371_v13 = vcombine.low %v1614_v20, %v1622_v59  ;;  %v1654_v8 = vld [vmem:[#allocation6 + $0x2de0] sm:$0xff] }
 0x59e   :  { %v18388_v19 = vcombine.high %v1630_v38, %v1638_v18  ;;  %v18134_v5 = vcombine.high %v1375_v45, %v1383_v58  ;;  %v1391_v11 = vld [vmem:[#allocation6 + $0x25a8] sm:$0xff]  ;;  %v18133_v43 = vcombine.low %v1375_v45, %v1383_v58  ;;  %v18404_v51 = vcombine.high %v1646_v6, %v1654_v8  ;;  %v1662_v27 = vld [vmem:[#allocation6 + $0x2e20] sm:$0xff] }
 0x59f   :  { %14004 = vmatpush1.bf16.msra.mxu1 %v18323_v62  ;;  %v18150_v62 = vcombine.high %v1391_v11, %v1399_v15  ;;  %v18403_v47 = vcombine.low %v1646_v6, %v1654_v8  ;;  %v18149_v1 = vcombine.low %v1391_v11, %v1399_v15  ;;  %v1439_v38 = vld [vmem:[#allocation6 + $0x2728] sm:$0xff]  ;;  %v1710_v6 = vld [vmem:[#allocation6 + $0x2fa0] sm:$0xff] }
 0x5a0   :  { %14291 = vmatpush1.bf16.msra.mxu0 %v18069_v29  ;;  %14005 = vmatprep.subr.bf16.mxu1 %v18340_v33  ;;  %v1670_v29 = vld [vmem:[#allocation6 + $0x2e60] sm:$0xff]  ;;  %v1407_v33 = vld [vmem:[#allocation6 + $0x2628] sm:$0xff] }
 0x5a1   :  { %14292 = vmatprep.subr.bf16.mxu0 %v18086_v46  ;;  %v1415_v46 = vld [vmem:[#allocation6 + $0x2668] sm:$0xff]  ;;  %v18420_v42 = vcombine.high %v1662_v27, %v1670_v29  ;;  %v18419_v20 = vcombine.low %v1662_v27, %v1670_v29  ;;  %v1718_v8 = vld [vmem:[#allocation6 + $0x2fe0] sm:$0xff] }
 0x5a2   :  { %v18166_v50 = vcombine.high %v1407_v33, %v1415_v46  ;;  %v18165_v59 = vcombine.low %v1407_v33, %v1415_v46  ;;  %v1447_v18 = vld [vmem:[#allocation6 + $0x2768] sm:$0xff]  ;;  %v1982_v27 = vld [vmem:[#allocation6 + $0x3820] sm:$0xff] }
 0x5a3   :  { %14006 = vmatpush1.bf16.msra.mxu1 %v18339_v60  ;;  %v1678_v60 = vld [vmem:[#allocation6 + $0x2ea0] sm:$0xff]  ;;  %v1455_v11 = vld [vmem:[#allocation6 + $0x27a8] sm:$0xff] }
 0x5a4   :  { %14293 = vmatpush1.bf16.msra.mxu0 %v18085_v17  ;;  %14007 = vmatprep.subr.bf16.mxu1 %v18356_v22  ;;  %v1686_v17 = vld [vmem:[#allocation6 + $0x2ee0] sm:$0xff]  ;;  %v1423_v22 = vld [vmem:[#allocation6 + $0x26a8] sm:$0xff] }
 0x5a5   :  { %14294 = vmatprep.subr.bf16.mxu0 %v18102_v3  ;;  %v1431_v3 = vld [vmem:[#allocation6 + $0x26e8] sm:$0xff]  ;;  %v18436_v52 = vcombine.high %v1678_v60, %v1686_v17  ;;  %v18435_v58 = vcombine.low %v1678_v60, %v1686_v17  ;;  %v1990_v29 = vld [vmem:[#allocation6 + $0x3860] sm:$0xff] }
 0x5a6   :  { %v1463_v15 = vld [vmem:[#allocation6 + $0x27e8] sm:$0xff]  ;;  %v1998_v60 = vld [vmem:[#allocation6 + $0x38a0] sm:$0xff] }
 0x5a7   :  { %14008 = vmatpush1.bf16.msra.mxu1 %v18355_v2  ;;  %v18182_v2 = vcombine.high %v1423_v22, %v1431_v3  ;;  %v1727_v33 = vld [vmem:[#allocation6 + $0x3028] sm:$0xff]  ;;  %v2006_v17 = vld [vmem:[#allocation6 + $0x38e0] sm:$0xff] }
 0x5a8   :  { %14295 = vmatpush1.bf16.msra.mxu0 %v18101_v56  ;;  %14009 = vmatprep.subr.bf16.mxu1 %v18372_v36  ;;  %v1694_v56 = vld [vmem:[#allocation6 + $0x2f20] sm:$0xff]  ;;  %v1735_v46 = vld [vmem:[#allocation6 + $0x3068] sm:$0xff] }
 0x5a9   :  { %14296 = vmatprep.subr.bf16.mxu0 %v18118_v35  ;;  %v1702_v36 = vld [vmem:[#allocation6 + $0x2f60] sm:$0xff]  ;;  %v20209_v35 = vpop.f32.mrb[65].mxu0 }
 0x5aa   :  { %v13988_v45 = vpop.f32.mrb[66].mxu0 }
 0x5ab   :  { %14010 = vmatpush1.bf16.msra.mxu1 %v18371_v13  ;;  %v13989_v13 = vpop.f32.mrb[67].mxu0  ;;  %v18755_v45 = vcombine.low %v1998_v60, %v2006_v17 }
 0x5ac   :  { %14297 = vmatpush1.bf16.msra.mxu0 %v18117_v32  ;;  %14011 = vmatprep.subr.bf16.mxu1 %v18388_v19  ;;  %v18181_v32 = vcombine.low %v1423_v22, %v1431_v3  ;;  %v18452_v19 = vcombine.high %v1694_v56, %v1702_v36  ;;  %v1743_v22 = vld [vmem:[#allocation6 + $0x30a8] sm:$0xff] }
 0x5ad   :  { %14298 = vmatprep.subr.bf16.mxu0 %v18134_v5  ;;  %v18198_v5 = vcombine.high %v1439_v38, %v1447_v18  ;;  %v1751_v3 = vld [vmem:[#allocation6 + $0x30e8] sm:$0xff] }
 0x5af   :  { %14012 = vmatpush1.bf16.msra.mxu1 %v18387_v40  ;;  %v18451_v40 = vcombine.low %v1694_v56, %v1702_v36  ;;  %v2014_v56 = vld [vmem:[#allocation6 + $0x3920] sm:$0xff] }
 0x5b0   :  { %14299 = vmatpush1.bf16.msra.mxu0 %v18133_v43  ;;  %14013 = vmatprep.subr.bf16.mxu1 %v18404_v51  ;;  %v18197_v43 = vcombine.low %v1439_v38, %v1447_v18  ;;  %v18468_v51 = vcombine.high %v1710_v6, %v1718_v8  ;;  %v2022_v36 = vld [vmem:[#allocation6 + $0x3960] sm:$0xff]  ;;  %v1759_v38 = vld [vmem:[#allocation6 + $0x3128] sm:$0xff] }
 0x5b1   :  { %14300 = vmatprep.subr.bf16.mxu0 %v18150_v62  ;;  %v18214_v62 = vcombine.high %v1455_v11, %v1463_v15  ;;  %v1767_v18 = vld [vmem:[#allocation6 + $0x3168] sm:$0xff]  ;;  %v18772_v13 = vcombine.high %v2014_v56, %v2022_v36 }
 0x5b3   :  { %14014 = vmatpush1.bf16.msra.mxu1 %v18403_v47  ;;  %v18467_v47 = vcombine.low %v1710_v6, %v1718_v8  ;;  %v1775_v6 = vld [vmem:[#allocation6 + $0x31a8] sm:$0xff] }
 0x5b4   :  { %14301 = vmatpush1.bf16.msra.mxu0 %v18149_v1  ;;  %14015 = vmatprep.subr.bf16.mxu1 %v18420_v42  ;;  %v18213_v1 = vcombine.low %v1455_v11, %v1463_v15  ;;  %v18740_v42 = vcombine.high %v1982_v27, %v1990_v29  ;;  %v1783_v8 = vld [vmem:[#allocation6 + $0x31e8] sm:$0xff]  ;;  %v18771_v11 = vcombine.low %v2014_v56, %v2022_v36 }
 0x5b5   :  { %14302 = vmatprep.subr.bf16.mxu0 %v18166_v50  ;;  %v18486_v50 = vcombine.high %v1727_v33, %v1735_v46  ;;  %v18517_v15 = vcombine.low %v1759_v38, %v1767_v18  ;;  %v1823_v56 = vld [vmem:[#allocation6 + $0x3328] sm:$0xff] }
 0x5b6   :  { %v1831_v36 = vld [vmem:[#allocation6 + $0x3368] sm:$0xff] }
 0x5b7   :  { %14016 = vmatpush1.bf16.msra.mxu1 %v18419_v20  ;;  %v18739_v20 = vcombine.low %v1982_v27, %v1990_v29  ;;  %v1791_v27 = vld [vmem:[#allocation6 + $0x3228] sm:$0xff] }
 0x5b8   :  { %14303 = vmatpush1.bf16.msra.mxu0 %v18165_v59  ;;  %14017 = vmatprep.subr.bf16.mxu1 %v18436_v52  ;;  %v18485_v59 = vcombine.low %v1727_v33, %v1735_v46  ;;  %v18756_v52 = vcombine.high %v1998_v60, %v2006_v17  ;;  %v1799_v29 = vld [vmem:[#allocation6 + $0x3268] sm:$0xff]  ;;  %v18533_v46 = vcombine.low %v1775_v6, %v1783_v8 }
 0x5b9   :  { %14304 = vmatprep.subr.bf16.mxu0 %v18182_v2  ;;  %v18502_v2 = vcombine.high %v1743_v22, %v1751_v3  ;;  %v1807_v60 = vld [vmem:[#allocation6 + $0x32a8] sm:$0xff] }
 0x5ba   :  { %v1815_v17 = vld [vmem:[#allocation6 + $0x32e8] sm:$0xff] }
 0x5bb   :  { %14018 = vmatpush1.bf16.msra.mxu1 %v18435_v58  ;;  %v18501_v58 = vcombine.low %v1743_v22, %v1751_v3  ;;  %v18549_v3 = vcombine.low %v1791_v27, %v1799_v29 }
 0x5bc   :  { %14305 = vmatpush1.bf16.msra.mxu0 %v18181_v32  ;;  %14019 = vmatprep.subr.bf16.mxu1 %v18452_v19  ;;  %v18518_v32 = vcombine.high %v1759_v38, %v1767_v18  ;;  %v2030_v19 = vld [vmem:[#allocation6 + $0x39a0] sm:$0xff]  ;;  %v18565_v18 = vcombine.low %v1807_v60, %v1815_v17 }
 0x5bd   :  { %14306 = vmatprep.subr.bf16.mxu0 %v18198_v5  ;;  %v2038_v5 = vld [vmem:[#allocation6 + $0x39e0] sm:$0xff] }
 0x5be   :  { %v18787_v33 = vcombine.low %v2030_v19, %v2038_v5 }
 0x5bf   :  { %14020 = vmatpush1.bf16.msra.mxu1 %v18451_v40  ;;  %v18788_v40 = vcombine.high %v2030_v19, %v2038_v5  ;;  %v2102_v19 = vld [vmem:[#allocation6 + $0x3be0] sm:$0xff] }
 0x5c0   :  { %14307 = vmatpush1.bf16.msra.mxu0 %v18197_v43  ;;  %14021 = vmatprep.subr.bf16.mxu1 %v18468_v51  ;;  %v18534_v43 = vcombine.high %v1775_v6, %v1783_v8  ;;  %v2046_v51 = vld [vmem:[#allocation6 + $0x3a20] sm:$0xff]  ;;  %v1839_v8 = vld [vmem:[#allocation6 + $0x33a8] sm:$0xff] }
 0x5c1   :  { %14308 = vmatprep.subr.bf16.mxu0 %v18214_v62  ;;  %v2054_v62 = vld [vmem:[#allocation6 + $0x3a60] sm:$0xff] }
 0x5c2   :  { %v18803_v22 = vcombine.low %v2046_v51, %v2054_v62 }
 0x5c3   :  { %14022 = vmatpush1.bf16.msra.mxu1 %v18467_v47  ;;  %v18804_v47 = vcombine.high %v2046_v51, %v2054_v62  ;;  %v18581_v62 = vcombine.low %v1823_v56, %v1831_v36 }
 0x5c4   :  { %14309 = vmatpush1.bf16.msra.mxu0 %v18213_v1  ;;  %14073 = vmatprep.subr.bf16.mxu1 %v18740_v42  ;;  %v18550_v1 = vcombine.high %v1791_v27, %v1799_v29  ;;  %v2062_v42 = vld [vmem:[#allocation6 + $0x3aa0] sm:$0xff] }
 0x5c5   :  { %14360 = vmatprep.subr.bf16.mxu0 %v18486_v50  ;;  %v2070_v50 = vld [vmem:[#allocation6 + $0x3ae0] sm:$0xff] }
 0x5c6   :  { %14024 = vmatmul.mubr.bf16.vlgmr.msra.gmra.mrb[80].mxu1 %v19959_v10  ;;  %v18819_v38 = vcombine.low %v2062_v42, %v2070_v50 }
 0x5c7   :  { %14074 = vmatpush1.bf16.msra.mxu1 %v18739_v20  ;;  %14311 = vmatmul.mubr.bf16.vlgmr.msra.gmra.mrb[80].mxu0 %v19915_v21  ;;  %v18820_v20 = vcombine.high %v2062_v42, %v2070_v50 }
 0x5c8   :  { %14361 = vmatpush1.bf16.msra.mxu0 %v18485_v59  ;;  %14075 = vmatprep.subr.bf16.mxu1 %v18756_v52  ;;  %v18566_v59 = vcombine.high %v1807_v60, %v1815_v17  ;;  %v2078_v52 = vld [vmem:[#allocation6 + $0x3b20] sm:$0xff] }
 0x5c9   :  { %14362 = vmatprep.subr.bf16.mxu0 %v18502_v2  ;;  %14105 = vmatprep.mubr.bf16.mxu1 %v19961_v23  ;;  %v2086_v2 = vld [vmem:[#allocation6 + $0x3b60] sm:$0xff] }
 0x5ca   :  { %14392 = vmatprep.mubr.bf16.mxu0 %v19920_v31  ;;  %v2126_v60 = vld [vmem:[#allocation6 + $0x3ca0] sm:$0xff] }
 0x5cb   :  { %14076 = vmatpush1.bf16.msra.mxu1 %v18755_v45  ;;  %v18836_v45 = vcombine.high %v2078_v52, %v2086_v2  ;;  %v2134_v17 = vld [vmem:[#allocation6 + $0x3ce0] sm:$0xff] }
 0x5cc   :  { %14363 = vmatpush1.bf16.msra.mxu0 %v18501_v58  ;;  %14077 = vmatprep.subr.bf16.mxu1 %v18772_v13  ;;  %v18582_v13 = vcombine.high %v1823_v56, %v1831_v36  ;;  %v2142_v56 = vld [vmem:[#allocation6 + $0x3d20] sm:$0xff] }
 0x5cd   :  { %14364 = vmatprep.subr.bf16.mxu0 %v18518_v32  ;;  %v2094_v32 = vld [vmem:[#allocation6 + $0x3ba0] sm:$0xff] }
 0x5ce   :  { %v18852_v27 = vcombine.high %v2094_v32, %v2102_v19  ;;  %v2150_v36 = vld [vmem:[#allocation6 + $0x3d60] sm:$0xff] }
 0x5cf   :  { %14078 = vmatpush1.bf16.msra.mxu1 %v18771_v11  ;;  %v1847_v11 = vld [vmem:[#allocation6 + $0x33e8] sm:$0xff] }
 0x5d0   :  { %14365 = vmatpush1.bf16.msra.mxu0 %v18517_v15  ;;  %14079 = vmatprep.subr.bf16.mxu1 %v18788_v40  ;;  %v18598_v29 = vcombine.high %v1839_v8, %v1847_v11 }
 0x5d1   :  { %14366 = vmatprep.subr.bf16.mxu0 %v18534_v43  ;;  %v18835_v43 = vcombine.low %v2078_v52, %v2086_v2  ;;  %v18884_v52 = vcombine.high %v2126_v60, %v2134_v17 }
 0x5d3   :  { %14080 = vmatpush1.bf16.msra.mxu1 %v18787_v33  ;;  %v2110_v33 = vld [vmem:[#allocation6 + $0x3c20] sm:$0xff] }
 0x5d4   :  { %14367 = vmatpush1.bf16.msra.mxu0 %v18533_v46  ;;  %14081 = vmatprep.subr.bf16.mxu1 %v18804_v47  ;;  %v2118_v46 = vld [vmem:[#allocation6 + $0x3c60] sm:$0xff]  ;;  %v1863_v47 = vld [vmem:[#allocation6 + $0x3468] sm:$0xff] }
 0x5d5   :  { %14368 = vmatprep.subr.bf16.mxu0 %v18550_v1  ;;  %v18851_v1 = vcombine.low %v2094_v32, %v2102_v19  ;;  %v18868_v42 = vcombine.high %v2110_v33, %v2118_v46  ;;  %v2158_v19 = vld [vmem:[#allocation6 + $0x3da0] sm:$0xff] }
 0x5d7   :  { %14082 = vmatpush1.bf16.msra.mxu1 %v18803_v22  ;;  %v1871_v22 = vld [vmem:[#allocation6 + $0x34a8] sm:$0xff] }
 0x5d8   :  { %14369 = vmatpush1.bf16.msra.mxu0 %v18549_v3  ;;  %14083 = vmatprep.subr.bf16.mxu1 %v18820_v20  ;;  %v1879_v3 = vld [vmem:[#allocation6 + $0x34e8] sm:$0xff]  ;;  %v18867_v20 = vcombine.low %v2110_v33, %v2118_v46 }
 0x5d9   :  { %v13779_v58 = vpop.f32.mrb[68].mxu1  ;;  %14370 = vmatprep.subr.bf16.mxu0 %v18566_v59  ;;  %v18630_v2 = vcombine.high %v1871_v22, %v1879_v3  ;;  %v1919_v33 = vld [vmem:[#allocation6 + $0x3628] sm:$0xff] }
 0x5da   :  { %v20216_v5 = vadd.f32 %v13779_v58, %v20202_v7  ;;  %v13781_v6 = vpop.f32.mrb[69].mxu1  ;;  %v1855_v7 = vld [vmem:[#allocation6 + $0x3428] sm:$0xff]  ;;  %v18629_v58 = vcombine.low %v1871_v22, %v1879_v3 }
 0x5db   :  { %v20219_v15 = vadd.f32 %v13781_v6, %v20205_v48  ;;  %v13783_v40 = vpop.f32.mrb[70].mxu1  ;;  %14084 = vmatpush1.bf16.msra.mxu1 %v18819_v38  ;;  %v18597_v48 = vcombine.low %v1839_v8, %v1847_v11  ;;  %v18614_v50 = vcombine.high %v1855_v7, %v1863_v47  ;;  %v18613_v59 = vcombine.low %v1855_v7, %v1863_v47  ;;  %v1887_v38 = vld [vmem:[#allocation6 + $0x3528] sm:$0xff]  ;;  %v2166_v6 = vld [vmem:[#allocation6 + $0x3de0] sm:$0xff] }
 0x5dc   :  { %14371 = vmatpush1.bf16.msra.mxu0 %v18565_v18  ;;  %v13784_v51 = vpop.f32.mrb[71].mxu1  ;;  %14085 = vmatprep.subr.bf16.mxu1 %v18836_v45  ;;  %v1895_v18 = vld [vmem:[#allocation6 + $0x3568] sm:$0xff]  ;;  %v18883_v45 = vcombine.low %v2126_v60, %v2134_v17  ;;  %v18899_v40 = vcombine.low %v2142_v56, %v2150_v36  ;;  %v18915_v7 = vcombine.low %v2158_v19, %v2166_v6 }
 0x5dd   :  { %14372 = vmatprep.subr.bf16.mxu0 %v18582_v13  ;;  %v18900_v13 = vcombine.high %v2142_v56, %v2150_v36  ;;  %v18646_v32 = vcombine.high %v1887_v38, %v1895_v18  ;;  %v1903_v8 = vld [vmem:[#allocation6 + $0x35a8] sm:$0xff]  ;;  %v18916_v51 = vcombine.high %v2158_v19, %v2166_v6  ;;  %v2214_v56 = vld [vmem:[#allocation6 + $0x3f60] sm:$0xff] }
 0x5de   :  { %v1911_v11 = vld [vmem:[#allocation6 + $0x35e8] sm:$0xff] }
 0x5df   :  { %14086 = vmatpush1.bf16.msra.mxu1 %v18835_v43  ;;  %v18645_v43 = vcombine.low %v1887_v38, %v1895_v18  ;;  %v1927_v46 = vld [vmem:[#allocation6 + $0x3668] sm:$0xff]  ;;  %v18661_v47 = vcombine.low %v1903_v8, %v1911_v11 }
 0x5e0   :  { %14373 = vmatpush1.bf16.msra.mxu0 %v18581_v62  ;;  %14087 = vmatprep.subr.bf16.mxu1 %v18852_v27  ;;  %v18662_v62 = vcombine.high %v1903_v8, %v1911_v11  ;;  %v2174_v27 = vld [vmem:[#allocation6 + $0x3e20] sm:$0xff]  ;;  %v1935_v60 = vld [vmem:[#allocation6 + $0x36a8] sm:$0xff]  ;;  %v18677_v3 = vcombine.low %v1919_v33, %v1927_v46 }
 0x5e1   :  { %14374 = vmatprep.subr.bf16.mxu0 %v18598_v29  ;;  %v2182_v29 = vld [vmem:[#allocation6 + $0x3e60] sm:$0xff]  ;;  %v1943_v17 = vld [vmem:[#allocation6 + $0x36e8] sm:$0xff] }
 0x5e2   :  { %v18931_v22 = vcombine.low %v2174_v27, %v2182_v29  ;;  %v1951_v38 = vld [vmem:[#allocation6 + $0x3728] sm:$0xff]  ;;  %v2222_v8 = vld [vmem:[#allocation6 + $0x3fa0] sm:$0xff] }
 0x5e3   :  { %14088 = vmatpush1.bf16.msra.mxu1 %v18851_v1  ;;  %v18932_v1 = vcombine.high %v2174_v27, %v2182_v29  ;;  %v1959_v18 = vld [vmem:[#allocation6 + $0x3768] sm:$0xff]  ;;  %v2230_v11 = vld [vmem:[#allocation6 + $0x3fe0] sm:$0xff] }
 0x5e4   :  { %14375 = vmatpush1.bf16.msra.mxu0 %v18597_v48  ;;  %14089 = vmatprep.subr.bf16.mxu1 %v18868_v42  ;;  %v18678_v48 = vcombine.high %v1919_v33, %v1927_v46  ;;  %v2190_v42 = vld [vmem:[#allocation6 + $0x3ea0] sm:$0xff]  ;;  %v18710_v6 = vcombine.high %v1951_v38, %v1959_v18  ;;  %v18980_v27 = vcombine.high %v2222_v8, %v2230_v11  ;;  %v447_v33 = vld [vmem:[#allocation6 + $0x828] sm:$0xff] }
 0x5e5   :  { %14376 = vmatprep.subr.bf16.mxu0 %v18614_v50  ;;  %v2198_v50 = vld [vmem:[#allocation6 + $0x3ee0] sm:$0xff]  ;;  %v455_v46 = vld [vmem:[#allocation6 + $0x868] sm:$0xff] }
 0x5e7   :  { %14090 = vmatpush1.bf16.msra.mxu1 %v18867_v20  ;;  %v18948_v20 = vcombine.high %v2190_v42, %v2198_v50 }
 0x5e8   :  { %14377 = vmatpush1.bf16.msra.mxu0 %v18613_v59  ;;  %14091 = vmatprep.subr.bf16.mxu1 %v18884_v52  ;;  %v20221_v59 = vpop.f32.mrb[68].mxu0  ;;  %v18694_v52 = vcombine.high %v1935_v60, %v1943_v17 }
 0x5e9   :  { %14378 = vmatprep.subr.bf16.mxu0 %v18630_v2  ;;  %v2206_v2 = vld [vmem:[#allocation6 + $0x3f20] sm:$0xff]  ;;  %v20223_v36 = vpop.f32.mrb[69].mxu0 }
 0x5ea   :  { %v18964_v19 = vcombine.high %v2206_v2, %v2214_v56 }
 0x5eb   :  { %14092 = vmatpush1.bf16.msra.mxu1 %v18883_v45  ;;  %v14070_v45 = vpop.f32.mrb[70].mxu0 }
 0x5ec   :  { %14379 = vmatpush1.bf16.msra.mxu0 %v18629_v58  ;;  %14093 = vmatprep.subr.bf16.mxu1 %v18900_v13  ;;  %v18947_v58 = vcombine.low %v2190_v42, %v2198_v50  ;;  %v14071_v13 = vpop.f32.mrb[71].mxu0  ;;  %v17206_v42 = vcombine.high %v447_v33, %v455_v46  ;;  %v224_v45 = vld [vmem:[#allocation6 + $0x130] sm:$0xff] }
 0x5ed   :  { %14380 = vmatprep.subr.bf16.mxu0 %v18646_v32  ;;  %v18693_v32 = vcombine.low %v1935_v60, %v1943_v17  ;;  %v463_v60 = vld [vmem:[#allocation6 + $0x8a8] sm:$0xff] }
 0x5ee   :  { %v471_v17 = vld [vmem:[#allocation6 + $0x8e8] sm:$0xff] }
 0x5ef   :  { %14094 = vmatpush1.bf16.msra.mxu1 %v18899_v40  ;;  %v1967_v40 = vld [vmem:[#allocation6 + $0x37a8] sm:$0xff]  ;;  %v17221_v13 = vcombine.low %v463_v60, %v471_v17 }
 0x5f0   :  { %14381 = vmatpush1.bf16.msra.mxu0 %v18645_v43  ;;  %14095 = vmatprep.subr.bf16.mxu1 %v18916_v51  ;;  %v1975_v43 = vld [vmem:[#allocation6 + $0x37e8] sm:$0xff]  ;;  %v18963_v51 = vcombine.low %v2206_v2, %v2214_v56  ;;  %v17222_v2 = vcombine.high %v463_v60, %v471_v17 }
 0x5f1   :  { %14382 = vmatprep.subr.bf16.mxu0 %v18662_v62  ;;  %v18709_v62 = vcombine.low %v1951_v38, %v1959_v18  ;;  %v18726_v29 = vcombine.high %v1967_v40, %v1975_v43  ;;  %v479_v38 = vld [vmem:[#allocation6 + $0x928] sm:$0xff] }
 0x5f2   :  { %v487_v18 = vld [vmem:[#allocation6 + $0x968] sm:$0xff] }
 0x5f3   :  { %14096 = vmatpush1.bf16.msra.mxu1 %v18915_v7  ;;  %v192_v7 = vld [vmem:[#allocation6 + $0x30] sm:$0xff]  ;;  %v527_v60 = vld [vmem:[#allocation6 + $0xaa8] sm:$0xff] }
 0x5f4   :  { %14383 = vmatpush1.bf16.msra.mxu0 %v18661_v47  ;;  %14097 = vmatprep.subr.bf16.mxu1 %v18932_v1  ;;  %v200_v47 = vld [vmem:[#allocation6 + $0x70] sm:$0xff]  ;;  %v18979_v1 = vcombine.low %v2222_v8, %v2230_v11  ;;  %v495_v8 = vld [vmem:[#allocation6 + $0x9a8] sm:$0xff] }
 0x5f5   :  { %14384 = vmatprep.subr.bf16.mxu0 %v18678_v48  ;;  %v18725_v48 = vcombine.low %v1967_v40, %v1975_v43  ;;  %v16952_v50 = vcombine.high %v192_v7, %v200_v47  ;;  %v503_v11 = vld [vmem:[#allocation6 + $0x9e8] sm:$0xff]  ;;  %v240_v40 = vld [vmem:[#allocation6 + $0x1b0] sm:$0xff] }
 0x5f6   :  { %v248_v43 = vld [vmem:[#allocation6 + $0x1f0] sm:$0xff]  ;;  %v535_v17 = vld [vmem:[#allocation6 + $0xae8] sm:$0xff] }
 0x5f7   :  { %14098 = vmatpush1.bf16.msra.mxu1 %v18931_v22  ;;  %v208_v22 = vld [vmem:[#allocation6 + $0xb0] sm:$0xff] }
 0x5f8   :  { %14385 = vmatpush1.bf16.msra.mxu0 %v18677_v3  ;;  %14099 = vmatprep.subr.bf16.mxu1 %v18948_v20  ;;  %v216_v3 = vld [vmem:[#allocation6 + $0xf0] sm:$0xff]  ;;  %v17205_v20 = vcombine.low %v447_v33, %v455_v46  ;;  %v511_v33 = vld [vmem:[#allocation6 + $0xa28] sm:$0xff] }
 0x5f9   :  { %14386 = vmatprep.subr.bf16.mxu0 %v18694_v52  ;;  %v16951_v52 = vcombine.low %v192_v7, %v200_v47  ;;  %v16968_v56 = vcombine.high %v208_v22, %v216_v3  ;;  %v519_v46 = vld [vmem:[#allocation6 + $0xa68] sm:$0xff]  ;;  %v256_v7 = vld [vmem:[#allocation6 + $0x230] sm:$0xff] }
 0x5fa   :  { %v264_v47 = vld [vmem:[#allocation6 + $0x270] sm:$0xff] }
 0x5fb   :  { %14100 = vmatpush1.bf16.msra.mxu1 %v18947_v58  ;;  %v232_v58 = vld [vmem:[#allocation6 + $0x170] sm:$0xff] }
 0x5fc   :  { %14387 = vmatpush1.bf16.msra.mxu0 %v18693_v32  ;;  %14101 = vmatprep.subr.bf16.mxu1 %v18964_v19  ;;  %v16967_v32 = vcombine.low %v208_v22, %v216_v3  ;;  %v17238_v19 = vcombine.high %v479_v38, %v487_v18  ;;  %v272_v22 = vld [vmem:[#allocation6 + $0x2b0] sm:$0xff] }
 0x5fd   :  { %14388 = vmatprep.subr.bf16.mxu0 %v18710_v6  ;;  %v16984_v6 = vcombine.high %v224_v45, %v232_v58  ;;  %v280_v3 = vld [vmem:[#allocation6 + $0x2f0] sm:$0xff] }
 0x5ff   :  { %14102 = vmatpush1.bf16.msra.mxu1 %v18963_v51  ;;  %v17237_v51 = vcombine.low %v479_v38, %v487_v18  ;;  %v543_v38 = vld [vmem:[#allocation6 + $0xb28] sm:$0xff] }
 0x600   :  { %14389 = vmatpush1.bf16.msra.mxu0 %v18709_v62  ;;  %14103 = vmatprep.subr.bf16.mxu1 %v18980_v27  ;;  %v16983_v62 = vcombine.low %v224_v45, %v232_v58  ;;  %v17254_v27 = vcombine.high %v495_v8, %v503_v11  ;;  %v551_v18 = vld [vmem:[#allocation6 + $0xb68] sm:$0xff]  ;;  %v288_v45 = vld [vmem:[#allocation6 + $0x330] sm:$0xff] }
 0x601   :  { %14390 = vmatprep.subr.bf16.mxu0 %v18726_v29  ;;  %v17000_v29 = vcombine.high %v240_v40, %v248_v43  ;;  %v296_v58 = vld [vmem:[#allocation6 + $0x370] sm:$0xff] }
 0x603   :  { %14104 = vmatpush1.bf16.msra.mxu1 %v18979_v1  ;;  %v17253_v1 = vcombine.low %v495_v8, %v503_v11  ;;  %v17048_v8 = vcombine.high %v288_v45, %v296_v58  ;;  %v559_v11 = vld [vmem:[#allocation6 + $0xba8] sm:$0xff] }
 0x604   :  { %14391 = vmatpush1.bf16.msra.mxu0 %v18725_v48  ;;  %14155 = vmatprep.subr.bf16.mxu1 %v17206_v42  ;;  %v16999_v48 = vcombine.low %v240_v40, %v248_v43  ;;  %v17270_v42 = vcombine.high %v511_v33, %v519_v46  ;;  %v567_v40 = vld [vmem:[#allocation6 + $0xbe8] sm:$0xff] }
 0x605   :  { %14442 = vmatprep.subr.bf16.mxu0 %v16952_v50  ;;  %v17016_v50 = vcombine.high %v256_v7, %v264_v47 }
 0x606   :  { %14106 = vmatmul.mubr.bf16.vlgmr.msra.gmra.mrb[84].mxu1 %v19977_v14 }
 0x607   :  { %14156 = vmatpush1.bf16.msra.mxu1 %v17205_v20  ;;  %14393 = vmatmul.mubr.bf16.vlgmr.msra.gmra.mrb[84].mxu0 %v19927_v41  ;;  %v17269_v20 = vcombine.low %v511_v33, %v519_v46  ;;  %v17301_v46 = vcombine.low %v543_v38, %v551_v18 }
 0x608   :  { %14443 = vmatpush1.bf16.msra.mxu0 %v16951_v52  ;;  %14157 = vmatprep.subr.bf16.mxu1 %v17222_v2  ;;  %v17015_v52 = vcombine.low %v256_v7, %v264_v47  ;;  %v17286_v2 = vcombine.high %v527_v60, %v535_v17  ;;  %v17047_v47 = vcombine.low %v288_v45, %v296_v58 }
 0x609   :  { %14444 = vmatprep.subr.bf16.mxu0 %v16968_v56  ;;  %14187 = vmatprep.mubr.bf16.mxu1 %v19917_v28  ;;  %v17032_v56 = vcombine.high %v272_v22, %v280_v3 }
 0x60a   :  { %14474 = vmatprep.mubr.bf16.mxu0 %v19907_v57 }
 0x60b   :  { %14158 = vmatpush1.bf16.msra.mxu1 %v17221_v13  ;;  %v17285_v13 = vcombine.low %v527_v60, %v535_v17  ;;  %v320_v17 = vld [vmem:[#allocation6 + $0x430] sm:$0xff] }
 0x60c   :  { %14445 = vmatpush1.bf16.msra.mxu0 %v16967_v32  ;;  %14159 = vmatprep.subr.bf16.mxu1 %v17238_v19  ;;  %v17031_v32 = vcombine.low %v272_v22, %v280_v3  ;;  %v17302_v19 = vcombine.high %v543_v38, %v551_v18  ;;  %v17317_v22 = vcombine.low %v559_v11, %v567_v40  ;;  %v344_v38 = vld [vmem:[#allocation6 + $0x4f0] sm:$0xff] }
 0x60d   :  { %14446 = vmatprep.subr.bf16.mxu0 %v16984_v6 }
 0x60f   :  { %14160 = vmatpush1.bf16.msra.mxu1 %v17237_v51 }
 0x610   :  { %14447 = vmatpush1.bf16.msra.mxu0 %v16983_v62  ;;  %14161 = vmatprep.subr.bf16.mxu1 %v17254_v27  ;;  %v304_v62 = vld [vmem:[#allocation6 + $0x3b0] sm:$0xff] }
 0x611   :  { %14448 = vmatprep.subr.bf16.mxu0 %v17000_v29  ;;  %v312_v27 = vld [vmem:[#allocation6 + $0x3f0] sm:$0xff] }
 0x612   :  { %v17063_v3 = vcombine.low %v304_v62, %v312_v27 }
 0x613   :  { %14162 = vmatpush1.bf16.msra.mxu1 %v17253_v1  ;;  %v17318_v1 = vcombine.high %v559_v11, %v567_v40 }
 0x614   :  { %14449 = vmatpush1.bf16.msra.mxu0 %v16999_v48  ;;  %14163 = vmatprep.subr.bf16.mxu1 %v17270_v42  ;;  %v17064_v42 = vcombine.high %v304_v62, %v312_v27  ;;  %v631_v62 = vld [vmem:[#allocation6 + $0xde8] sm:$0xff]  ;;  %v368_v27 = vld [vmem:[#allocation6 + $0x5b0] sm:$0xff] }
 0x615   :  { %14450 = vmatprep.subr.bf16.mxu0 %v17016_v50  ;;  %v575_v50 = vld [vmem:[#allocation6 + $0xc28] sm:$0xff] }
 0x617   :  { %14164 = vmatpush1.bf16.msra.mxu1 %v17269_v20 }
 0x618   :  { %14451 = vmatpush1.bf16.msra.mxu0 %v17015_v52  ;;  %14165 = vmatprep.subr.bf16.mxu1 %v17286_v2  ;;  %v591_v2 = vld [vmem:[#allocation6 + $0xca8] sm:$0xff] }
 0x619   :  { %v13861_v6 = vpop.f32.mrb[72].mxu1  ;;  %14452 = vmatprep.subr.bf16.mxu0 %v17032_v56  ;;  %v336_v56 = vld [vmem:[#allocation6 + $0x4b0] sm:$0xff] }
 0x61a   :  { %v13862_v43 = vadd.f32 %v13861_v6, %v20175_v26  ;;  %v13863_v51 = vpop.f32.mrb[73].mxu1  ;;  %v583_v26 = vld [vmem:[#allocation6 + $0xc68] sm:$0xff]  ;;  %v17096_v58 = vcombine.high %v336_v56, %v344_v38  ;;  %v360_v6 = vld [vmem:[#allocation6 + $0x570] sm:$0xff]  ;;  %v17095_v11 = vcombine.low %v336_v56, %v344_v38 }
 0x61b   :  { %v13864_v29 = vadd.f32 %v13863_v51, %v20177_v63  ;;  %v13865_v33 = vpop.f32.mrb[74].mxu1  ;;  %14166 = vmatpush1.bf16.msra.mxu1 %v17285_v13  ;;  %v328_v63 = vld [vmem:[#allocation6 + $0x470] sm:$0xff]  ;;  %v17334_v20 = vcombine.high %v575_v50, %v583_v26  ;;  %v17333_v18 = vcombine.low %v575_v50, %v583_v26  ;;  %v607_v13 = vld [vmem:[#allocation6 + $0xd28] sm:$0xff] }
 0x61c   :  { %14453 = vmatpush1.bf16.msra.mxu0 %v17031_v32  ;;  %v13866_v7 = vpop.f32.mrb[75].mxu1  ;;  %14167 = vmatprep.subr.bf16.mxu1 %v17302_v19  ;;  %v20232_v48 = vadd.f32 %v20191_v30, %v13862_v43  ;;  %v17080_v52 = vcombine.high %v320_v17, %v328_v63  ;;  %v599_v30 = vld [vmem:[#allocation6 + $0xce8] sm:$0xff]  ;;  %v352_v19 = vld [vmem:[#allocation6 + $0x530] sm:$0xff] }
 0x61d   :  { %14454 = vmatprep.subr.bf16.mxu0 %v17048_v8  ;;  %v20235_v60 = vadd.f32 %v20193_v54, %v13864_v29  ;;  %v17079_v54 = vcombine.low %v320_v17, %v328_v63  ;;  %v17350_v45 = vcombine.high %v591_v2, %v599_v30  ;;  %v615_v32 = vld [vmem:[#allocation6 + $0xd68] sm:$0xff]  ;;  %v17349_v8 = vcombine.low %v591_v2, %v599_v30  ;;  %v376_v29 = vld [vmem:[#allocation6 + $0x5f0] sm:$0xff] }
 0x61e   :  { %v17366_v40 = vcombine.high %v607_v13, %v615_v32  ;;  %v17112_v43 = vcombine.high %v352_v19, %v360_v6  ;;  %v623_v51 = vld [vmem:[#allocation6 + $0xda8] sm:$0xff]  ;;  %v17365_v33 = vcombine.low %v607_v13, %v615_v32  ;;  %v384_v50 = vld [vmem:[#allocation6 + $0x630] sm:$0xff]  ;;  %v17127_v63 = vcombine.low %v368_v27, %v376_v29 }
 0x61f   :  { %14168 = vmatpush1.bf16.msra.mxu1 %v17301_v46  ;;  %v17111_v46 = vcombine.low %v352_v19, %v360_v6  ;;  %v17382_v7 = vcombine.high %v623_v51, %v631_v62  ;;  %v392_v26 = vld [vmem:[#allocation6 + $0x670] sm:$0xff]  ;;  %v17381_v17 = vcombine.low %v623_v51, %v631_v62  ;;  %v679_v13 = vld [vmem:[#allocation6 + $0xf68] sm:$0xff] }
 0x620   :  { %14455 = vmatpush1.bf16.msra.mxu0 %v17047_v47  ;;  %14169 = vmatprep.subr.bf16.mxu1 %v17318_v1  ;;  %v17128_v47 = vcombine.high %v368_v27, %v376_v29  ;;  %v639_v1 = vld [vmem:[#allocation6 + $0xe28] sm:$0xff]  ;;  %v400_v2 = vld [vmem:[#allocation6 + $0x6b0] sm:$0xff]  ;;  %v17143_v38 = vcombine.low %v384_v50, %v392_v26 }
 0x621   :  { %14456 = vmatprep.subr.bf16.mxu0 %v17064_v42  ;;  %v647_v42 = vld [vmem:[#allocation6 + $0xe68] sm:$0xff]  ;;  %v408_v30 = vld [vmem:[#allocation6 + $0x6f0] sm:$0xff] }
 0x622   :  { %v17397_v56 = vcombine.low %v639_v1, %v647_v42  ;;  %v416_v19 = vld [vmem:[#allocation6 + $0x730] sm:$0xff]  ;;  %v687_v27 = vld [vmem:[#allocation6 + $0xfa8] sm:$0xff] }
 0x623   :  { %14170 = vmatpush1.bf16.msra.mxu1 %v17317_v22  ;;  %v17398_v22 = vcombine.high %v639_v1, %v647_v42  ;;  %v424_v6 = vld [vmem:[#allocation6 + $0x770] sm:$0xff]  ;;  %v695_v29 = vld [vmem:[#allocation6 + $0xfe8] sm:$0xff] }
 0x624   :  { %14457 = vmatpush1.bf16.msra.mxu0 %v17063_v3  ;;  %14171 = vmatprep.subr.bf16.mxu1 %v17334_v20  ;;  %v17144_v3 = vcombine.high %v384_v50, %v392_v26  ;;  %v655_v20 = vld [vmem:[#allocation6 + $0xea8] sm:$0xff]  ;;  %v17176_v62 = vcombine.high %v416_v19, %v424_v6  ;;  %v17446_v1 = vcombine.high %v687_v27, %v695_v29 }
 0x625   :  { %14458 = vmatprep.subr.bf16.mxu0 %v17080_v52  ;;  %v663_v52 = vld [vmem:[#allocation6 + $0xee8] sm:$0xff] }
 0x626   :  { %v959_v50 = vld [vmem:[#allocation6 + $0x1828] sm:$0xff] }
 0x627   :  { %14172 = vmatpush1.bf16.msra.mxu1 %v17333_v18  ;;  %v17414_v18 = vcombine.high %v655_v20, %v663_v52  ;;  %v967_v26 = vld [vmem:[#allocation6 + $0x1868] sm:$0xff] }
 0x628   :  { %14459 = vmatpush1.bf16.msra.mxu0 %v17079_v54  ;;  %14173 = vmatprep.subr.bf16.mxu1 %v17350_v45  ;;  %v20237_v54 = vpop.f32.mrb[72].mxu0  ;;  %v17160_v45 = vcombine.high %v400_v2, %v408_v30 }
 0x629   :  { %14460 = vmatprep.subr.bf16.mxu0 %v17096_v58  ;;  %v671_v58 = vld [vmem:[#allocation6 + $0xf28] sm:$0xff]  ;;  %v20239_v32 = vpop.f32.mrb[73].mxu0 }
 0x62a   :  { %v17430_v51 = vcombine.high %v671_v58, %v679_v13 }
 0x62b   :  { %14174 = vmatpush1.bf16.msra.mxu1 %v17349_v8  ;;  %v14152_v8 = vpop.f32.mrb[74].mxu0 }
 0x62c   :  { %14461 = vmatpush1.bf16.msra.mxu0 %v17095_v11  ;;  %14175 = vmatprep.subr.bf16.mxu1 %v17366_v40  ;;  %v17413_v11 = vcombine.low %v655_v20, %v663_v52  ;;  %v14153_v40 = vpop.f32.mrb[75].mxu0  ;;  %v17718_v20 = vcombine.high %v959_v50, %v967_v26  ;;  %v736_v8 = vld [vmem:[#allocation6 + $0x1130] sm:$0xff] }
 0x62d   :  { %14462 = vmatprep.subr.bf16.mxu0 %v17112_v43  ;;  %v17159_v43 = vcombine.low %v400_v2, %v408_v30  ;;  %v975_v2 = vld [vmem:[#allocation6 + $0x18a8] sm:$0xff] }
 0x62e   :  { %v983_v30 = vld [vmem:[#allocation6 + $0x18e8] sm:$0xff] }
 0x62f   :  { %14176 = vmatpush1.bf16.msra.mxu1 %v17365_v33  ;;  %v432_v33 = vld [vmem:[#allocation6 + $0x7b0] sm:$0xff]  ;;  %v17733_v40 = vcombine.low %v975_v2, %v983_v30 }
 0x630   :  { %14463 = vmatpush1.bf16.msra.mxu0 %v17111_v46  ;;  %14177 = vmatprep.subr.bf16.mxu1 %v17382_v7  ;;  %v440_v46 = vld [vmem:[#allocation6 + $0x7f0] sm:$0xff]  ;;  %v17429_v7 = vcombine.low %v671_v58, %v679_v13  ;;  %v17734_v58 = vcombine.high %v975_v2, %v983_v30  ;;  %v1039_v2 = vld [vmem:[#allocation6 + $0x1aa8] sm:$0xff] }
 0x631   :  { %14464 = vmatprep.subr.bf16.mxu0 %v17128_v47  ;;  %v17175_v47 = vcombine.low %v416_v19, %v424_v6  ;;  %v17192_v42 = vcombine.high %v432_v33, %v440_v46  ;;  %v991_v19 = vld [vmem:[#allocation6 + $0x1928] sm:$0xff] }
 0x632   :  { %v999_v6 = vld [vmem:[#allocation6 + $0x1968] sm:$0xff] }
 0x633   :  { %14178 = vmatpush1.bf16.msra.mxu1 %v17381_v17  ;;  %v704_v17 = vld [vmem:[#allocation6 + $0x1030] sm:$0xff]  ;;  %v1047_v30 = vld [vmem:[#allocation6 + $0x1ae8] sm:$0xff] }
 0x634   :  { %14465 = vmatpush1.bf16.msra.mxu0 %v17127_v63  ;;  %14179 = vmatprep.subr.bf16.mxu1 %v17398_v22  ;;  %v712_v63 = vld [vmem:[#allocation6 + $0x1070] sm:$0xff]  ;;  %v17445_v22 = vcombine.low %v687_v27, %v695_v29  ;;  %v1007_v27 = vld [vmem:[#allocation6 + $0x19a8] sm:$0xff] }
 0x635   :  { %14466 = vmatprep.subr.bf16.mxu0 %v17144_v3  ;;  %v17191_v3 = vcombine.low %v432_v33, %v440_v46  ;;  %v17464_v52 = vcombine.high %v704_v17, %v712_v63  ;;  %v1015_v29 = vld [vmem:[#allocation6 + $0x19e8] sm:$0xff]  ;;  %v752_v33 = vld [vmem:[#allocation6 + $0x11b0] sm:$0xff] }
 0x636   :  { %v760_v46 = vld [vmem:[#allocation6 + $0x11f0] sm:$0xff] }
 0x637   :  { %14180 = vmatpush1.bf16.msra.mxu1 %v17397_v56  ;;  %v720_v56 = vld [vmem:[#allocation6 + $0x10b0] sm:$0xff] }
 0x638   :  { %14467 = vmatpush1.bf16.msra.mxu0 %v17143_v38  ;;  %14181 = vmatprep.subr.bf16.mxu1 %v17414_v18  ;;  %v728_v38 = vld [vmem:[#allocation6 + $0x10f0] sm:$0xff]  ;;  %v17717_v18 = vcombine.low %v959_v50, %v967_v26  ;;  %v1023_v50 = vld [vmem:[#allocation6 + $0x1a28] sm:$0xff] }
 0x639   :  { %14468 = vmatprep.subr.bf16.mxu0 %v17160_v45  ;;  %v17463_v45 = vcombine.low %v704_v17, %v712_v63  ;;  %v17480_v13 = vcombine.high %v720_v56, %v728_v38  ;;  %v1031_v26 = vld [vmem:[#allocation6 + $0x1a68] sm:$0xff]  ;;  %v768_v17 = vld [vmem:[#allocation6 + $0x1230] sm:$0xff] }
 0x63a   :  { %v776_v63 = vld [vmem:[#allocation6 + $0x1270] sm:$0xff] }
 0x63b   :  { %14182 = vmatpush1.bf16.msra.mxu1 %v17413_v11  ;;  %v744_v11 = vld [vmem:[#allocation6 + $0x1170] sm:$0xff] }
 0x63c   :  { %14469 = vmatpush1.bf16.msra.mxu0 %v17159_v43  ;;  %14183 = vmatprep.subr.bf16.mxu1 %v17430_v51  ;;  %v17479_v43 = vcombine.low %v720_v56, %v728_v38  ;;  %v17750_v51 = vcombine.high %v991_v19, %v999_v6  ;;  %v784_v56 = vld [vmem:[#allocation6 + $0x12b0] sm:$0xff] }
 0x63d   :  { %14470 = vmatprep.subr.bf16.mxu0 %v17176_v62  ;;  %v17496_v62 = vcombine.high %v736_v8, %v744_v11  ;;  %v792_v38 = vld [vmem:[#allocation6 + $0x12f0] sm:$0xff] }
 0x63f   :  { %14184 = vmatpush1.bf16.msra.mxu1 %v17429_v7  ;;  %v17749_v7 = vcombine.low %v991_v19, %v999_v6  ;;  %v1055_v19 = vld [vmem:[#allocation6 + $0x1b28] sm:$0xff] }
 0x640   :  { %14471 = vmatpush1.bf16.msra.mxu0 %v17175_v47  ;;  %14185 = vmatprep.subr.bf16.mxu1 %v17446_v1  ;;  %v17495_v47 = vcombine.low %v736_v8, %v744_v11  ;;  %v17766_v1 = vcombine.high %v1007_v27, %v1015_v29  ;;  %v1063_v6 = vld [vmem:[#allocation6 + $0x1b68] sm:$0xff]  ;;  %v800_v8 = vld [vmem:[#allocation6 + $0x1330] sm:$0xff] }
 0x641   :  { %14472 = vmatprep.subr.bf16.mxu0 %v17192_v42  ;;  %v17512_v42 = vcombine.high %v752_v33, %v760_v46  ;;  %v808_v11 = vld [vmem:[#allocation6 + $0x1370] sm:$0xff] }
 0x643   :  { %14186 = vmatpush1.bf16.msra.mxu1 %v17445_v22  ;;  %v17765_v22 = vcombine.low %v1007_v27, %v1015_v29  ;;  %v17560_v27 = vcombine.high %v800_v8, %v808_v11  ;;  %v1071_v29 = vld [vmem:[#allocation6 + $0x1ba8] sm:$0xff] }
 0x644   :  { %14473 = vmatpush1.bf16.msra.mxu0 %v17191_v3  ;;  %14237 = vmatprep.subr.bf16.mxu1 %v17718_v20  ;;  %v17511_v3 = vcombine.low %v752_v33, %v760_v46  ;;  %v17782_v20 = vcombine.high %v1023_v50, %v1031_v26  ;;  %v1079_v33 = vld [vmem:[#allocation6 + $0x1be8] sm:$0xff] }
 0x645   :  { %14524 = vmatprep.subr.bf16.mxu0 %v17464_v52  ;;  %v17528_v52 = vcombine.high %v768_v17, %v776_v63 }
 0x646   :  { %14188 = vmatmul.mubr.bf16.vlgmr.msra.gmra.mrb[88].mxu1 %v19925_v39 }
 0x647   :  { %14238 = vmatpush1.bf16.msra.mxu1 %v17717_v18  ;;  %14475 = vmatmul.mubr.bf16.vlgmr.msra.gmra.mrb[88].mxu0 %v19913_v16  ;;  %v17781_v18 = vcombine.low %v1023_v50, %v1031_v26  ;;  %v17813_v26 = vcombine.low %v1055_v19, %v1063_v6 }
 0x648   :  { %14525 = vmatpush1.bf16.msra.mxu0 %v17463_v45  ;;  %14239 = vmatprep.subr.bf16.mxu1 %v17734_v58  ;;  %v17527_v45 = vcombine.low %v768_v17, %v776_v63  ;;  %v17798_v58 = vcombine.high %v1039_v2, %v1047_v30  ;;  %v17559_v63 = vcombine.low %v800_v8, %v808_v11 }
 0x649   :  { %14526 = vmatprep.subr.bf16.mxu0 %v17480_v13  ;;  %14269 = vmatprep.mubr.bf16.mxu1 %v19937_v9  ;;  %v17544_v13 = vcombine.high %v784_v56, %v792_v38 }
 0x64a   :  { %14556 = vmatprep.mubr.bf16.mxu0 %v19929_v49 }
 0x64b   :  { %14240 = vmatpush1.bf16.msra.mxu1 %v17733_v40  ;;  %v17797_v40 = vcombine.low %v1039_v2, %v1047_v30  ;;  %v832_v30 = vld [vmem:[#allocation6 + $0x1430] sm:$0xff] }
 0x64c   :  { %14527 = vmatpush1.bf16.msra.mxu0 %v17479_v43  ;;  %14241 = vmatprep.subr.bf16.mxu1 %v17750_v51  ;;  %v17543_v43 = vcombine.low %v784_v56, %v792_v38  ;;  %v17814_v51 = vcombine.high %v1055_v19, %v1063_v6  ;;  %v17829_v56 = vcombine.low %v1071_v29, %v1079_v33  ;;  %v856_v19 = vld [vmem:[#allocation6 + $0x14f0] sm:$0xff] }
 0x64d   :  { %14528 = vmatprep.subr.bf16.mxu0 %v17496_v62 }
 0x64f   :  { %14242 = vmatpush1.bf16.msra.mxu1 %v17749_v7 }
 0x650   :  { %14529 = vmatpush1.bf16.msra.mxu0 %v17495_v47  ;;  %14243 = vmatprep.subr.bf16.mxu1 %v17766_v1  ;;  %v816_v47 = vld [vmem:[#allocation6 + $0x13b0] sm:$0xff] }
 0x651   :  { %14530 = vmatprep.subr.bf16.mxu0 %v17512_v42  ;;  %v824_v1 = vld [vmem:[#allocation6 + $0x13f0] sm:$0xff] }
 0x652   :  { %v17575_v38 = vcombine.low %v816_v47, %v824_v1 }
 0x653   :  { %14244 = vmatpush1.bf16.msra.mxu1 %v17765_v22  ;;  %v17830_v22 = vcombine.high %v1071_v29, %v1079_v33 }
 0x654   :  { %14531 = vmatpush1.bf16.msra.mxu0 %v17511_v3  ;;  %14245 = vmatprep.subr.bf16.mxu1 %v17782_v20  ;;  %v17576_v20 = vcombine.high %v816_v47, %v824_v1  ;;  %v1143_v47 = vld [vmem:[#allocation6 + $0x1de8] sm:$0xff]  ;;  %v880_v1 = vld [vmem:[#allocation6 + $0x15b0] sm:$0xff] }
 0x655   :  { %14532 = vmatprep.subr.bf16.mxu0 %v17528_v52  ;;  %v1087_v52 = vld [vmem:[#allocation6 + $0x1c28] sm:$0xff] }
 0x657   :  { %14246 = vmatpush1.bf16.msra.mxu1 %v17781_v18 }
 0x658   :  { %14533 = vmatpush1.bf16.msra.mxu0 %v17527_v45  ;;  %14247 = vmatprep.subr.bf16.mxu1 %v17798_v58  ;;  %v1103_v58 = vld [vmem:[#allocation6 + $0x1ca8] sm:$0xff] }
 0x659   :  { %v13943_v62 = vpop.f32.mrb[76].mxu1  ;;  %14534 = vmatprep.subr.bf16.mxu0 %v17544_v13  ;;  %v848_v13 = vld [vmem:[#allocation6 + $0x14b0] sm:$0xff] }
 0x65a   :  { %v13944_v46 = vadd.f32 %v13943_v62, %v20232_v48  ;;  %v13945_v7 = vpop.f32.mrb[77].mxu1  ;;  %v1095_v48 = vld [vmem:[#allocation6 + $0x1c68] sm:$0xff]  ;;  %v17608_v11 = vcombine.high %v848_v13, %v856_v19  ;;  %v872_v62 = vld [vmem:[#allocation6 + $0x1570] sm:$0xff]  ;;  %v17607_v29 = vcombine.low %v848_v13, %v856_v19 }
 0x65b   :  { %v13946_v42 = vadd.f32 %v13945_v7, %v20235_v60  ;;  %v13947_v50 = vpop.f32.mrb[78].mxu1  ;;  %14248 = vmatpush1.bf16.msra.mxu1 %v17797_v40  ;;  %v840_v60 = vld [vmem:[#allocation6 + $0x1470] sm:$0xff]  ;;  %v17846_v18 = vcombine.high %v1087_v52, %v1095_v48  ;;  %v17845_v6 = vcombine.low %v1087_v52, %v1095_v48  ;;  %v1119_v40 = vld [vmem:[#allocation6 + $0x1d28] sm:$0xff] }
 0x65c   :  { %14535 = vmatpush1.bf16.msra.mxu0 %v17543_v43  ;;  %v13948_v17 = vpop.f32.mrb[79].mxu1  ;;  %14249 = vmatprep.subr.bf16.mxu1 %v17814_v51  ;;  %v20248_v3 = vadd.f32 %v20207_v12, %v13944_v46  ;;  %v17592_v45 = vcombine.high %v832_v30, %v840_v60  ;;  %v1111_v12 = vld [vmem:[#allocation6 + $0x1ce8] sm:$0xff]  ;;  %v864_v51 = vld [vmem:[#allocation6 + $0x1530] sm:$0xff] }
 0x65d   :  { %14536 = vmatprep.subr.bf16.mxu0 %v17560_v27  ;;  %v20251_v2 = vadd.f32 %v20209_v35, %v13946_v42  ;;  %v17591_v35 = vcombine.low %v832_v30, %v840_v60  ;;  %v17862_v8 = vcombine.high %v1103_v58, %v1111_v12  ;;  %v1127_v43 = vld [vmem:[#allocation6 + $0x1d68] sm:$0xff]  ;;  %v17861_v27 = vcombine.low %v1103_v58, %v1111_v12  ;;  %v888_v42 = vld [vmem:[#allocation6 + $0x15f0] sm:$0xff] }
 0x65e   :  { %v17878_v33 = vcombine.high %v1119_v40, %v1127_v43  ;;  %v17624_v46 = vcombine.high %v864_v51, %v872_v62  ;;  %v1135_v7 = vld [vmem:[#allocation6 + $0x1da8] sm:$0xff]  ;;  %v17877_v50 = vcombine.low %v1119_v40, %v1127_v43  ;;  %v896_v52 = vld [vmem:[#allocation6 + $0x1630] sm:$0xff]  ;;  %v17639_v60 = vcombine.low %v880_v1, %v888_v42 }
 0x65f   :  { %14250 = vmatpush1.bf16.msra.mxu1 %v17813_v26  ;;  %v17623_v26 = vcombine.low %v864_v51, %v872_v62  ;;  %v17894_v17 = vcombine.high %v1135_v7, %v1143_v47  ;;  %v904_v48 = vld [vmem:[#allocation6 + $0x1670] sm:$0xff]  ;;  %v17893_v30 = vcombine.low %v1135_v7, %v1143_v47  ;;  %v1191_v40 = vld [vmem:[#allocation6 + $0x1f68] sm:$0xff] }
 0x660   :  { %14537 = vmatpush1.bf16.msra.mxu0 %v17559_v63  ;;  %14251 = vmatprep.subr.bf16.mxu1 %v17830_v22  ;;  %v17640_v63 = vcombine.high %v880_v1, %v888_v42  ;;  %v1151_v22 = vld [vmem:[#allocation6 + $0x1e28] sm:$0xff]  ;;  %v912_v58 = vld [vmem:[#allocation6 + $0x16b0] sm:$0xff]  ;;  %v17655_v19 = vcombine.low %v896_v52, %v904_v48 }
 0x661   :  { %14538 = vmatprep.subr.bf16.mxu0 %v17576_v20  ;;  %v1159_v20 = vld [vmem:[#allocation6 + $0x1e68] sm:$0xff]  ;;  %v920_v12 = vld [vmem:[#allocation6 + $0x16f0] sm:$0xff] }
 0x662   :  { %v17909_v13 = vcombine.low %v1151_v22, %v1159_v20  ;;  %v928_v51 = vld [vmem:[#allocation6 + $0x1730] sm:$0xff]  ;;  %v1199_v1 = vld [vmem:[#allocation6 + $0x1fa8] sm:$0xff] }
 0x663   :  { %14252 = vmatpush1.bf16.msra.mxu1 %v17829_v56  ;;  %v17910_v56 = vcombine.high %v1151_v22, %v1159_v20  ;;  %v936_v62 = vld [vmem:[#allocation6 + $0x1770] sm:$0xff]  ;;  %v1207_v42 = vld [vmem:[#allocation6 + $0x1fe8] sm:$0xff] }
 0x664   :  { %14539 = vmatpush1.bf16.msra.mxu0 %v17575_v38  ;;  %14253 = vmatprep.subr.bf16.mxu1 %v17846_v18  ;;  %v17656_v38 = vcombine.high %v896_v52, %v904_v48  ;;  %v1167_v18 = vld [vmem:[#allocation6 + $0x1ea8] sm:$0xff]  ;;  %v17688_v47 = vcombine.high %v928_v51, %v936_v62  ;;  %v17958_v22 = vcombine.high %v1199_v1, %v1207_v42 }
 0x665   :  { %14540 = vmatprep.subr.bf16.mxu0 %v17592_v45  ;;  %v1175_v45 = vld [vmem:[#allocation6 + $0x1ee8] sm:$0xff] }
 0x666   :  { %v1471_v52 = vld [vmem:[#allocation6 + $0x2828] sm:$0xff] }
 0x667   :  { %14254 = vmatpush1.bf16.msra.mxu1 %v17845_v6  ;;  %v17926_v6 = vcombine.high %v1167_v18, %v1175_v45  ;;  %v1479_v48 = vld [vmem:[#allocation6 + $0x2868] sm:$0xff] }
 0x668   :  { %14541 = vmatpush1.bf16.msra.mxu0 %v17591_v35  ;;  %14255 = vmatprep.subr.bf16.mxu1 %v17862_v8  ;;  %v20253_v35 = vpop.f32.mrb[76].mxu0  ;;  %v17672_v8 = vcombine.high %v912_v58, %v920_v12 }
 0x669   :  { %14542 = vmatprep.subr.bf16.mxu0 %v17608_v11  ;;  %v1183_v11 = vld [vmem:[#allocation6 + $0x1f28] sm:$0xff]  ;;  %v20255_v43 = vpop.f32.mrb[77].mxu0 }
 0x66a   :  { %v17942_v7 = vcombine.high %v1183_v11, %v1191_v40 }
 0x66b   :  { %14256 = vmatpush1.bf16.msra.mxu1 %v17861_v27  ;;  %v14234_v27 = vpop.f32.mrb[78].mxu0 }
 0x66c   :  { %14543 = vmatpush1.bf16.msra.mxu0 %v17607_v29  ;;  %14257 = vmatprep.subr.bf16.mxu1 %v17878_v33  ;;  %v17925_v29 = vcombine.low %v1167_v18, %v1175_v45  ;;  %v14235_v33 = vpop.f32.mrb[79].mxu0  ;;  %v18230_v18 = vcombine.high %v1471_v52, %v1479_v48  ;;  %v1248_v27 = vld [vmem:[#allocation6 + $0x2130] sm:$0xff] }
 0x66d   :  { %14544 = vmatprep.subr.bf16.mxu0 %v17624_v46  ;;  %v17671_v46 = vcombine.low %v912_v58, %v920_v12  ;;  %v1487_v58 = vld [vmem:[#allocation6 + $0x28a8] sm:$0xff] }
 0x66e   :  { %v1495_v12 = vld [vmem:[#allocation6 + $0x28e8] sm:$0xff] }
 0x66f   :  { %14258 = vmatpush1.bf16.msra.mxu1 %v17877_v50  ;;  %v944_v50 = vld [vmem:[#allocation6 + $0x17b0] sm:$0xff]  ;;  %v18245_v33 = vcombine.low %v1487_v58, %v1495_v12 }
 0x670   :  { %14545 = vmatpush1.bf16.msra.mxu0 %v17623_v26  ;;  %14259 = vmatprep.subr.bf16.mxu1 %v17894_v17  ;;  %v952_v26 = vld [vmem:[#allocation6 + $0x17f0] sm:$0xff]  ;;  %v17941_v17 = vcombine.low %v1183_v11, %v1191_v40  ;;  %v18246_v11 = vcombine.high %v1487_v58, %v1495_v12  ;;  %v1551_v58 = vld [vmem:[#allocation6 + $0x2aa8] sm:$0xff] }
 0x671   :  { %14546 = vmatprep.subr.bf16.mxu0 %v17640_v63  ;;  %v17687_v63 = vcombine.low %v928_v51, %v936_v62  ;;  %v17704_v20 = vcombine.high %v944_v50, %v952_v26  ;;  %v1503_v51 = vld [vmem:[#allocation6 + $0x2928] sm:$0xff] }
 0x672   :  { %v1511_v62 = vld [vmem:[#allocation6 + $0x2968] sm:$0xff] }
 0x673   :  { %14260 = vmatpush1.bf16.msra.mxu1 %v17893_v30  ;;  %v1216_v30 = vld [vmem:[#allocation6 + $0x2030] sm:$0xff]  ;;  %v1559_v12 = vld [vmem:[#allocation6 + $0x2ae8] sm:$0xff] }
 0x674   :  { %14547 = vmatpush1.bf16.msra.mxu0 %v17639_v60  ;;  %14261 = vmatprep.subr.bf16.mxu1 %v17910_v56  ;;  %v1224_v60 = vld [vmem:[#allocation6 + $0x2070] sm:$0xff]  ;;  %v17957_v56 = vcombine.low %v1199_v1, %v1207_v42  ;;  %v1519_v1 = vld [vmem:[#allocation6 + $0x29a8] sm:$0xff] }
 0x675   :  { %14548 = vmatprep.subr.bf16.mxu0 %v17656_v38  ;;  %v17703_v38 = vcombine.low %v944_v50, %v952_v26  ;;  %v17976_v45 = vcombine.high %v1216_v30, %v1224_v60  ;;  %v1527_v42 = vld [vmem:[#allocation6 + $0x29e8] sm:$0xff]  ;;  %v1264_v50 = vld [vmem:[#allocation6 + $0x21b0] sm:$0xff] }
 0x676   :  { %v1272_v26 = vld [vmem:[#allocation6 + $0x21f0] sm:$0xff] }
 0x677   :  { %14262 = vmatpush1.bf16.msra.mxu1 %v17909_v13  ;;  %v1232_v13 = vld [vmem:[#allocation6 + $0x20b0] sm:$0xff] }
 0x678   :  { %14549 = vmatpush1.bf16.msra.mxu0 %v17655_v19  ;;  %14263 = vmatprep.subr.bf16.mxu1 %v17926_v6  ;;  %v1240_v19 = vld [vmem:[#allocation6 + $0x20f0] sm:$0xff]  ;;  %v18229_v6 = vcombine.low %v1471_v52, %v1479_v48  ;;  %v1535_v52 = vld [vmem:[#allocation6 + $0x2a28] sm:$0xff] }
 0x679   :  { %14550 = vmatprep.subr.bf16.mxu0 %v17672_v8  ;;  %v17975_v8 = vcombine.low %v1216_v30, %v1224_v60  ;;  %v17992_v40 = vcombine.high %v1232_v13, %v1240_v19  ;;  %v1543_v48 = vld [vmem:[#allocation6 + $0x2a68] sm:$0xff]  ;;  %v1280_v30 = vld [vmem:[#allocation6 + $0x2230] sm:$0xff] }
 0x67a   :  { %v1288_v60 = vld [vmem:[#allocation6 + $0x2270] sm:$0xff] }
 0x67b   :  { %14264 = vmatpush1.bf16.msra.mxu1 %v17925_v29  ;;  %v1256_v29 = vld [vmem:[#allocation6 + $0x2170] sm:$0xff] }
 0x67c   :  { %14551 = vmatpush1.bf16.msra.mxu0 %v17671_v46  ;;  %14265 = vmatprep.subr.bf16.mxu1 %v17942_v7  ;;  %v17991_v46 = vcombine.low %v1232_v13, %v1240_v19  ;;  %v18262_v7 = vcombine.high %v1503_v51, %v1511_v62  ;;  %v1296_v13 = vld [vmem:[#allocation6 + $0x22b0] sm:$0xff] }
 0x67d   :  { %14552 = vmatprep.subr.bf16.mxu0 %v17688_v47  ;;  %v18008_v47 = vcombine.high %v1248_v27, %v1256_v29  ;;  %v1304_v19 = vld [vmem:[#allocation6 + $0x22f0] sm:$0xff] }
 0x67f   :  { %14266 = vmatpush1.bf16.msra.mxu1 %v17941_v17  ;;  %v18261_v17 = vcombine.low %v1503_v51, %v1511_v62  ;;  %v1567_v51 = vld [vmem:[#allocation6 + $0x2b28] sm:$0xff] }
 0x680   :  { %14553 = vmatpush1.bf16.msra.mxu0 %v17687_v63  ;;  %14267 = vmatprep.subr.bf16.mxu1 %v17958_v22  ;;  %v18007_v63 = vcombine.low %v1248_v27, %v1256_v29  ;;  %v18278_v22 = vcombine.high %v1519_v1, %v1527_v42  ;;  %v1575_v62 = vld [vmem:[#allocation6 + $0x2b68] sm:$0xff]  ;;  %v1312_v27 = vld [vmem:[#allocation6 + $0x2330] sm:$0xff] }
 0x681   :  { %14554 = vmatprep.subr.bf16.mxu0 %v17704_v20  ;;  %v18024_v20 = vcombine.high %v1264_v50, %v1272_v26  ;;  %v1320_v29 = vld [vmem:[#allocation6 + $0x2370] sm:$0xff] }
 0x683   :  { %14268 = vmatpush1.bf16.msra.mxu1 %v17957_v56  ;;  %v18277_v56 = vcombine.low %v1519_v1, %v1527_v42  ;;  %v18072_v1 = vcombine.high %v1312_v27, %v1320_v29  ;;  %v1583_v42 = vld [vmem:[#allocation6 + $0x2ba8] sm:$0xff] }
 0x684   :  { %14555 = vmatpush1.bf16.msra.mxu0 %v17703_v38  ;;  %14319 = vmatprep.subr.bf16.mxu1 %v18230_v18  ;;  %v18023_v38 = vcombine.low %v1264_v50, %v1272_v26  ;;  %v18294_v18 = vcombine.high %v1535_v52, %v1543_v48  ;;  %v1591_v50 = vld [vmem:[#allocation6 + $0x2be8] sm:$0xff] }
 0x685   :  { %14606 = vmatprep.subr.bf16.mxu0 %v17976_v45  ;;  %v18040_v45 = vcombine.high %v1280_v30, %v1288_v60 }
 0x686   :  { %14270 = vmatmul.mubr.bf16.vlgmr.msra.gmra.mrb[92].mxu1 %v19943_v25 }
 0x687   :  { %14320 = vmatpush1.bf16.msra.mxu1 %v18229_v6  ;;  %14557 = vmatmul.mubr.bf16.vlgmr.msra.gmra.mrb[92].mxu0 %v19935_v0  ;;  %v18293_v6 = vcombine.low %v1535_v52, %v1543_v48  ;;  %v18325_v48 = vcombine.low %v1567_v51, %v1575_v62 }
 0x688   :  { %14607 = vmatpush1.bf16.msra.mxu0 %v17975_v8  ;;  %14321 = vmatprep.subr.bf16.mxu1 %v18246_v11  ;;  %v18039_v8 = vcombine.low %v1280_v30, %v1288_v60  ;;  %v18310_v11 = vcombine.high %v1551_v58, %v1559_v12  ;;  %v18071_v60 = vcombine.low %v1312_v27, %v1320_v29 }
 0x689   :  { %14608 = vmatprep.subr.bf16.mxu0 %v17992_v40  ;;  %14351 = vmatprep.mubr.bf16.mxu1 %v19945_v37  ;;  %v18056_v40 = vcombine.high %v1296_v13, %v1304_v19 }
 0x68a   :  { %14638 = vmatprep.mubr.bf16.mxu0 %v19909_v61 }
 0x68b   :  { %14322 = vmatpush1.bf16.msra.mxu1 %v18245_v33  ;;  %v18309_v33 = vcombine.low %v1551_v58, %v1559_v12  ;;  %v1344_v12 = vld [vmem:[#allocation6 + $0x2430] sm:$0xff] }
 0x68c   :  { %14609 = vmatpush1.bf16.msra.mxu0 %v17991_v46  ;;  %14323 = vmatprep.subr.bf16.mxu1 %v18262_v7  ;;  %v18055_v46 = vcombine.low %v1296_v13, %v1304_v19  ;;  %v18326_v7 = vcombine.high %v1567_v51, %v1575_v62  ;;  %v18341_v13 = vcombine.low %v1583_v42, %v1591_v50  ;;  %v1368_v51 = vld [vmem:[#allocation6 + $0x24f0] sm:$0xff] }
 0x68d   :  { %14610 = vmatprep.subr.bf16.mxu0 %v18008_v47 }
 0x68f   :  { %14324 = vmatpush1.bf16.msra.mxu1 %v18261_v17 }
 0x690   :  { %14611 = vmatpush1.bf16.msra.mxu0 %v18007_v63  ;;  %14325 = vmatprep.subr.bf16.mxu1 %v18278_v22  ;;  %v1328_v63 = vld [vmem:[#allocation6 + $0x23b0] sm:$0xff] }
 0x691   :  { %14612 = vmatprep.subr.bf16.mxu0 %v18024_v20  ;;  %v1336_v22 = vld [vmem:[#allocation6 + $0x23f0] sm:$0xff] }
 0x692   :  { %v18087_v19 = vcombine.low %v1328_v63, %v1336_v22 }
 0x693   :  { %14326 = vmatpush1.bf16.msra.mxu1 %v18277_v56  ;;  %v18342_v56 = vcombine.high %v1583_v42, %v1591_v50 }
 0x694   :  { %14613 = vmatpush1.bf16.msra.mxu0 %v18023_v38  ;;  %14327 = vmatprep.subr.bf16.mxu1 %v18294_v18  ;;  %v18088_v18 = vcombine.high %v1328_v63, %v1336_v22  ;;  %v1655_v63 = vld [vmem:[#allocation6 + $0x2de8] sm:$0xff]  ;;  %v1392_v22 = vld [vmem:[#allocation6 + $0x25b0] sm:$0xff] }
 0x695   :  { %14614 = vmatprep.subr.bf16.mxu0 %v18040_v45  ;;  %v1599_v45 = vld [vmem:[#allocation6 + $0x2c28] sm:$0xff] }
 0x697   :  { %14328 = vmatpush1.bf16.msra.mxu1 %v18293_v6 }
 0x698   :  { %14615 = vmatpush1.bf16.msra.mxu0 %v18039_v8  ;;  %14329 = vmatprep.subr.bf16.mxu1 %v18310_v11  ;;  %v1615_v11 = vld [vmem:[#allocation6 + $0x2ca8] sm:$0xff] }
 0x699   :  { %v14025_v47 = vpop.f32.mrb[80].mxu1  ;;  %14616 = vmatprep.subr.bf16.mxu0 %v18056_v40  ;;  %v1360_v40 = vld [vmem:[#allocation6 + $0x24b0] sm:$0xff] }
 0x69a   :  { %v14026_v26 = vadd.f32 %v14025_v47, %v20248_v3  ;;  %v14027_v17 = vpop.f32.mrb[81].mxu1  ;;  %v1607_v3 = vld [vmem:[#allocation6 + $0x2c68] sm:$0xff]  ;;  %v18120_v29 = vcombine.high %v1360_v40, %v1368_v51  ;;  %v1384_v47 = vld [vmem:[#allocation6 + $0x2570] sm:$0xff]  ;;  %v18119_v42 = vcombine.low %v1360_v40, %v1368_v51 }
 0x69b   :  { %v14028_v20 = vadd.f32 %v14027_v17, %v20251_v2  ;;  %v14029_v52 = vpop.f32.mrb[82].mxu1  ;;  %14330 = vmatpush1.bf16.msra.mxu1 %v18309_v33  ;;  %v1352_v2 = vld [vmem:[#allocation6 + $0x2470] sm:$0xff]  ;;  %v18358_v6 = vcombine.high %v1599_v45, %v1607_v3  ;;  %v18357_v62 = vcombine.low %v1599_v45, %v1607_v3  ;;  %v1631_v33 = vld [vmem:[#allocation6 + $0x2d28] sm:$0xff] }
 0x69c   :  { %14617 = vmatpush1.bf16.msra.mxu0 %v18055_v46  ;;  %v14030_v30 = vpop.f32.mrb[83].mxu1  ;;  %14331 = vmatprep.subr.bf16.mxu1 %v18326_v7  ;;  %v20264_v38 = vadd.f32 %v20221_v59, %v14026_v26  ;;  %v18104_v8 = vcombine.high %v1344_v12, %v1352_v2  ;;  %v1623_v59 = vld [vmem:[#allocation6 + $0x2ce8] sm:$0xff]  ;;  %v1376_v7 = vld [vmem:[#allocation6 + $0x2530] sm:$0xff] }
 0x69d   :  { %14618 = vmatprep.subr.bf16.mxu0 %v18072_v1  ;;  %v20267_v58 = vadd.f32 %v20223_v36, %v14028_v20  ;;  %v18103_v36 = vcombine.low %v1344_v12, %v1352_v2  ;;  %v18374_v27 = vcombine.high %v1615_v11, %v1623_v59  ;;  %v1639_v46 = vld [vmem:[#allocation6 + $0x2d68] sm:$0xff]  ;;  %v18373_v1 = vcombine.low %v1615_v11, %v1623_v59  ;;  %v1400_v20 = vld [vmem:[#allocation6 + $0x25f0] sm:$0xff] }
 0x69e   :  { %v18390_v50 = vcombine.high %v1631_v33, %v1639_v46  ;;  %v18136_v26 = vcombine.high %v1376_v7, %v1384_v47  ;;  %v1647_v17 = vld [vmem:[#allocation6 + $0x2da8] sm:$0xff]  ;;  %v18389_v52 = vcombine.low %v1631_v33, %v1639_v46  ;;  %v1408_v45 = vld [vmem:[#allocation6 + $0x2630] sm:$0xff]  ;;  %v18151_v2 = vcombine.low %v1392_v22, %v1400_v20 }
 0x69f   :  { %14332 = vmatpush1.bf16.msra.mxu1 %v18325_v48  ;;  %v18135_v48 = vcombine.low %v1376_v7, %v1384_v47  ;;  %v18406_v30 = vcombine.high %v1647_v17, %v1655_v63  ;;  %v1416_v3 = vld [vmem:[#allocation6 + $0x2670] sm:$0xff]  ;;  %v18405_v12 = vcombine.low %v1647_v17, %v1655_v63  ;;  %v1703_v33 = vld [vmem:[#allocation6 + $0x2f68] sm:$0xff] }
 0x6a0   :  { %14619 = vmatpush1.bf16.msra.mxu0 %v18071_v60  ;;  %14333 = vmatprep.subr.bf16.mxu1 %v18342_v56  ;;  %v18152_v60 = vcombine.high %v1392_v22, %v1400_v20  ;;  %v1663_v56 = vld [vmem:[#allocation6 + $0x2e28] sm:$0xff]  ;;  %v1424_v11 = vld [vmem:[#allocation6 + $0x26b0] sm:$0xff]  ;;  %v18167_v51 = vcombine.low %v1408_v45, %v1416_v3 }
 0x6a1   :  { %14620 = vmatprep.subr.bf16.mxu0 %v18088_v18  ;;  %v1671_v18 = vld [vmem:[#allocation6 + $0x2e68] sm:$0xff]  ;;  %v1432_v59 = vld [vmem:[#allocation6 + $0x26f0] sm:$0xff] }
 0x6a2   :  { %v18421_v40 = vcombine.low %v1663_v56, %v1671_v18  ;;  %v1440_v7 = vld [vmem:[#allocation6 + $0x2730] sm:$0xff]  ;;  %v1711_v22 = vld [vmem:[#allocation6 + $0x2fa8] sm:$0xff] }
 0x6a3   :  { %14334 = vmatpush1.bf16.msra.mxu1 %v18341_v13  ;;  %v18422_v13 = vcombine.high %v1663_v56, %v1671_v18  ;;  %v1448_v47 = vld [vmem:[#allocation6 + $0x2770] sm:$0xff]  ;;  %v1719_v20 = vld [vmem:[#allocation6 + $0x2fe8] sm:$0xff] }
 0x6a4   :  { %14621 = vmatpush1.bf16.msra.mxu0 %v18087_v19  ;;  %14335 = vmatprep.subr.bf16.mxu1 %v18358_v6  ;;  %v18168_v19 = vcombine.high %v1408_v45, %v1416_v3  ;;  %v1679_v6 = vld [vmem:[#allocation6 + $0x2ea8] sm:$0xff]  ;;  %v18200_v63 = vcombine.high %v1440_v7, %v1448_v47  ;;  %v18470_v56 = vcombine.high %v1711_v22, %v1719_v20 }
 0x6a5   :  { %14622 = vmatprep.subr.bf16.mxu0 %v18104_v8  ;;  %v1687_v8 = vld [vmem:[#allocation6 + $0x2ee8] sm:$0xff] }
 0x6a6   :  { %v1983_v45 = vld [vmem:[#allocation6 + $0x3828] sm:$0xff] }
 0x6a7   :  { %14336 = vmatpush1.bf16.msra.mxu1 %v18357_v62  ;;  %v18438_v62 = vcombine.high %v1679_v6, %v1687_v8  ;;  %v1991_v3 = vld [vmem:[#allocation6 + $0x3868] sm:$0xff] }
 0x6a8   :  { %14623 = vmatpush1.bf16.msra.mxu0 %v18103_v36  ;;  %14337 = vmatprep.subr.bf16.mxu1 %v18374_v27  ;;  %v20269_v36 = vpop.f32.mrb[80].mxu0  ;;  %v18184_v27 = vcombine.high %v1424_v11, %v1432_v59 }
 0x6a9   :  { %14624 = vmatprep.subr.bf16.mxu0 %v18120_v29  ;;  %v1695_v29 = vld [vmem:[#allocation6 + $0x2f28] sm:$0xff]  ;;  %v20271_v46 = vpop.f32.mrb[81].mxu0 }
 0x6aa   :  { %v18454_v17 = vcombine.high %v1695_v29, %v1703_v33 }
 0x6ab   :  { %14338 = vmatpush1.bf16.msra.mxu1 %v18373_v1  ;;  %v14316_v1 = vpop.f32.mrb[82].mxu0 }
 0x6ac   :  { %14625 = vmatpush1.bf16.msra.mxu0 %v18119_v42  ;;  %14339 = vmatprep.subr.bf16.mxu1 %v18390_v50  ;;  %v18437_v42 = vcombine.low %v1679_v6, %v1687_v8  ;;  %v14317_v50 = vpop.f32.mrb[83].mxu0  ;;  %v18742_v6 = vcombine.high %v1983_v45, %v1991_v3  ;;  %v1760_v1 = vld [vmem:[#allocation6 + $0x3130] sm:$0xff] }
 0x6ad   :  { %14626 = vmatprep.subr.bf16.mxu0 %v18136_v26  ;;  %v18183_v26 = vcombine.low %v1424_v11, %v1432_v59  ;;  %v1999_v11 = vld [vmem:[#allocation6 + $0x38a8] sm:$0xff] }
 0x6ae   :  { %v2007_v59 = vld [vmem:[#allocation6 + $0x38e8] sm:$0xff] }
 0x6af   :  { %14340 = vmatpush1.bf16.msra.mxu1 %v18389_v52  ;;  %v1456_v52 = vld [vmem:[#allocation6 + $0x27b0] sm:$0xff]  ;;  %v18757_v50 = vcombine.low %v1999_v11, %v2007_v59 }
 0x6b0   :  { %14627 = vmatpush1.bf16.msra.mxu0 %v18135_v48  ;;  %14341 = vmatprep.subr.bf16.mxu1 %v18406_v30  ;;  %v1464_v48 = vld [vmem:[#allocation6 + $0x27f0] sm:$0xff]  ;;  %v18453_v30 = vcombine.low %v1695_v29, %v1703_v33  ;;  %v18758_v29 = vcombine.high %v1999_v11, %v2007_v59  ;;  %v2063_v11 = vld [vmem:[#allocation6 + $0x3aa8] sm:$0xff] }
 0x6b1   :  { %14628 = vmatprep.subr.bf16.mxu0 %v18152_v60  ;;  %v18199_v60 = vcombine.low %v1440_v7, %v1448_v47  ;;  %v18216_v18 = vcombine.high %v1456_v52, %v1464_v48  ;;  %v2015_v7 = vld [vmem:[#allocation6 + $0x3928] sm:$0xff] }
 0x6b2   :  { %v2023_v47 = vld [vmem:[#allocation6 + $0x3968] sm:$0xff] }
 0x6b3   :  { %14342 = vmatpush1.bf16.msra.mxu1 %v18405_v12  ;;  %v1728_v12 = vld [vmem:[#allocation6 + $0x3030] sm:$0xff]  ;;  %v2071_v59 = vld [vmem:[#allocation6 + $0x3ae8] sm:$0xff] }
 0x6b4   :  { %14629 = vmatpush1.bf16.msra.mxu0 %v18151_v2  ;;  %14343 = vmatprep.subr.bf16.mxu1 %v18422_v13  ;;  %v1736_v2 = vld [vmem:[#allocation6 + $0x3070] sm:$0xff]  ;;  %v18469_v13 = vcombine.low %v1711_v22, %v1719_v20  ;;  %v2031_v22 = vld [vmem:[#allocation6 + $0x39a8] sm:$0xff] }
 0x6b5   :  { %14630 = vmatprep.subr.bf16.mxu0 %v18168_v19  ;;  %v18215_v19 = vcombine.low %v1456_v52, %v1464_v48  ;;  %v18488_v8 = vcombine.high %v1728_v12, %v1736_v2  ;;  %v2039_v20 = vld [vmem:[#allocation6 + $0x39e8] sm:$0xff]  ;;  %v1776_v52 = vld [vmem:[#allocation6 + $0x31b0] sm:$0xff] }
 0x6b6   :  { %v1784_v48 = vld [vmem:[#allocation6 + $0x31f0] sm:$0xff] }
 0x6b7   :  { %14344 = vmatpush1.bf16.msra.mxu1 %v18421_v40  ;;  %v1744_v40 = vld [vmem:[#allocation6 + $0x30b0] sm:$0xff] }
 0x6b8   :  { %14631 = vmatpush1.bf16.msra.mxu0 %v18167_v51  ;;  %14345 = vmatprep.subr.bf16.mxu1 %v18438_v62  ;;  %v1752_v51 = vld [vmem:[#allocation6 + $0x30f0] sm:$0xff]  ;;  %v18741_v62 = vcombine.low %v1983_v45, %v1991_v3  ;;  %v2047_v45 = vld [vmem:[#allocation6 + $0x3a28] sm:$0xff] }
 0x6b9   :  { %14632 = vmatprep.subr.bf16.mxu0 %v18184_v27  ;;  %v18487_v27 = vcombine.low %v1728_v12, %v1736_v2  ;;  %v18504_v33 = vcombine.high %v1744_v40, %v1752_v51  ;;  %v2055_v3 = vld [vmem:[#allocation6 + $0x3a68] sm:$0xff]  ;;  %v1792_v12 = vld [vmem:[#allocation6 + $0x3230] sm:$0xff] }
 0x6ba   :  { %v1800_v2 = vld [vmem:[#allocation6 + $0x3270] sm:$0xff] }
 0x6bb   :  { %14346 = vmatpush1.bf16.msra.mxu1 %v18437_v42  ;;  %v1768_v42 = vld [vmem:[#allocation6 + $0x3170] sm:$0xff] }
 0x6bc   :  { %14633 = vmatpush1.bf16.msra.mxu0 %v18183_v26  ;;  %14347 = vmatprep.subr.bf16.mxu1 %v18454_v17  ;;  %v18503_v26 = vcombine.low %v1744_v40, %v1752_v51  ;;  %v18774_v17 = vcombine.high %v2015_v7, %v2023_v47  ;;  %v1808_v40 = vld [vmem:[#allocation6 + $0x32b0] sm:$0xff] }
 0x6bd   :  { %14634 = vmatprep.subr.bf16.mxu0 %v18200_v63  ;;  %v18520_v63 = vcombine.high %v1760_v1, %v1768_v42  ;;  %v1816_v51 = vld [vmem:[#allocation6 + $0x32f0] sm:$0xff] }
 0x6bf   :  { %14348 = vmatpush1.bf16.msra.mxu1 %v18453_v30  ;;  %v18773_v30 = vcombine.low %v2015_v7, %v2023_v47  ;;  %v2079_v7 = vld [vmem:[#allocation6 + $0x3b28] sm:$0xff] }
 0x6c0   :  { %14635 = vmatpush1.bf16.msra.mxu0 %v18199_v60  ;;  %14349 = vmatprep.subr.bf16.mxu1 %v18470_v56  ;;  %v18519_v60 = vcombine.low %v1760_v1, %v1768_v42  ;;  %v18790_v56 = vcombine.high %v2031_v22, %v2039_v20  ;;  %v2087_v47 = vld [vmem:[#allocation6 + $0x3b68] sm:$0xff]  ;;  %v1824_v1 = vld [vmem:[#allocation6 + $0x3330] sm:$0xff] }
 0x6c1   :  { %14636 = vmatprep.subr.bf16.mxu0 %v18216_v18  ;;  %v18536_v18 = vcombine.high %v1776_v52, %v1784_v48  ;;  %v1832_v42 = vld [vmem:[#allocation6 + $0x3370] sm:$0xff] }
 0x6c3   :  { %14350 = vmatpush1.bf16.msra.mxu1 %v18469_v13  ;;  %v18789_v13 = vcombine.low %v2031_v22, %v2039_v20  ;;  %v18584_v22 = vcombine.high %v1824_v1, %v1832_v42  ;;  %v2095_v20 = vld [vmem:[#allocation6 + $0x3ba8] sm:$0xff] }
 0x6c4   :  { %14637 = vmatpush1.bf16.msra.mxu0 %v18215_v19  ;;  %14401 = vmatprep.subr.bf16.mxu1 %v18742_v6  ;;  %v18535_v19 = vcombine.low %v1776_v52, %v1784_v48  ;;  %v18806_v6 = vcombine.high %v2047_v45, %v2055_v3  ;;  %v2103_v52 = vld [vmem:[#allocation6 + $0x3be8] sm:$0xff] }
 0x6c5   :  { %14688 = vmatprep.subr.bf16.mxu0 %v18488_v8  ;;  %v18552_v8 = vcombine.high %v1792_v12, %v1800_v2 }
 0x6c6   :  { %14352 = vmatmul.mubr.bf16.vlgmr.msra.gmra.mrb[96].mxu1 %v19959_v10 }
 0x6c7   :  { %14402 = vmatpush1.bf16.msra.mxu1 %v18741_v62  ;;  %14639 = vmatmul.mubr.bf16.vlgmr.msra.gmra.mrb[96].mxu0 %v19915_v21  ;;  %v18805_v62 = vcombine.low %v2047_v45, %v2055_v3  ;;  %v18837_v3 = vcombine.low %v2079_v7, %v2087_v47 }
 0x6c8   :  { %14689 = vmatpush1.bf16.msra.mxu0 %v18487_v27  ;;  %14403 = vmatprep.subr.bf16.mxu1 %v18758_v29  ;;  %v18551_v27 = vcombine.low %v1792_v12, %v1800_v2  ;;  %v18822_v29 = vcombine.high %v2063_v11, %v2071_v59  ;;  %v18583_v2 = vcombine.low %v1824_v1, %v1832_v42 }
 0x6c9   :  { %14690 = vmatprep.subr.bf16.mxu0 %v18504_v33  ;;  %14433 = vmatprep.mubr.bf16.mxu1 %v19961_v23  ;;  %v18568_v33 = vcombine.high %v1808_v40, %v1816_v51 }
 0x6ca   :  { %14720 = vmatprep.mubr.bf16.mxu0 %v19920_v31 }
 0x6cb   :  { %14404 = vmatpush1.bf16.msra.mxu1 %v18757_v50  ;;  %v18821_v50 = vcombine.low %v2063_v11, %v2071_v59  ;;  %v1864_v11 = vld [vmem:[#allocation6 + $0x3470] sm:$0xff]  ;;  %v18853_v59 = vcombine.low %v2095_v20, %v2103_v52 }
 0x6cc   :  { %14691 = vmatpush1.bf16.msra.mxu0 %v18503_v26  ;;  %14405 = vmatprep.subr.bf16.mxu1 %v18774_v17  ;;  %v18567_v26 = vcombine.low %v1808_v40, %v1816_v51  ;;  %v18838_v17 = vcombine.high %v2079_v7, %v2087_v47 }
 0x6cd   :  { %14692 = vmatprep.subr.bf16.mxu0 %v18520_v63 }
 0x6cf   :  { %14406 = vmatpush1.bf16.msra.mxu1 %v18773_v30 }
 0x6d0   :  { %14693 = vmatpush1.bf16.msra.mxu0 %v18519_v60  ;;  %14407 = vmatprep.subr.bf16.mxu1 %v18790_v56  ;;  %v1840_v60 = vld [vmem:[#allocation6 + $0x33b0] sm:$0xff] }
 0x6d1   :  { %14694 = vmatprep.subr.bf16.mxu0 %v18536_v18  ;;  %v1848_v56 = vld [vmem:[#allocation6 + $0x33f0] sm:$0xff] }
 0x6d3   :  { %14408 = vmatpush1.bf16.msra.mxu1 %v18789_v13  ;;  %v18854_v13 = vcombine.high %v2095_v20, %v2103_v52 }
 0x6d4   :  { %14695 = vmatpush1.bf16.msra.mxu0 %v18535_v19  ;;  %14409 = vmatprep.subr.bf16.mxu1 %v18806_v6  ;;  %v18600_v19 = vcombine.high %v1840_v60, %v1848_v56  ;;  %v2111_v6 = vld [vmem:[#allocation6 + $0x3c28] sm:$0xff] }
 0x6d5   :  { %14696 = vmatprep.subr.bf16.mxu0 %v18552_v8  ;;  %v2119_v8 = vld [vmem:[#allocation6 + $0x3c68] sm:$0xff] }
 0x6d6   :  { %v18870_v40 = vcombine.high %v2111_v6, %v2119_v8  ;;  %v18869_v7 = vcombine.low %v2111_v6, %v2119_v8  ;;  %v2175_v6 = vld [vmem:[#allocation6 + $0x3e28] sm:$0xff] }
 0x6d7   :  { %14410 = vmatpush1.bf16.msra.mxu1 %v18805_v62  ;;  %v2127_v62 = vld [vmem:[#allocation6 + $0x3ca8] sm:$0xff] }
 0x6d8   :  { %14697 = vmatpush1.bf16.msra.mxu0 %v18551_v27  ;;  %14411 = vmatprep.subr.bf16.mxu1 %v18822_v29  ;;  %v2135_v27 = vld [vmem:[#allocation6 + $0x3ce8] sm:$0xff]  ;;  %v1872_v29 = vld [vmem:[#allocation6 + $0x34b0] sm:$0xff] }
 0x6d9   :  { %v14107_v63 = vpop.f32.mrb[84].mxu1  ;;  %14698 = vmatprep.subr.bf16.mxu0 %v18568_v33  ;;  %v1880_v33 = vld [vmem:[#allocation6 + $0x34f0] sm:$0xff]  ;;  %v18886_v1 = vcombine.high %v2127_v62, %v2135_v27  ;;  %v2183_v8 = vld [vmem:[#allocation6 + $0x3e68] sm:$0xff] }
 0x6da   :  { %v20278_v48 = vadd.f32 %v14107_v63, %v20264_v38  ;;  %v14109_v30 = vpop.f32.mrb[85].mxu1  ;;  %v1856_v38 = vld [vmem:[#allocation6 + $0x3430] sm:$0xff]  ;;  %v18632_v42 = vcombine.high %v1872_v29, %v1880_v33  ;;  %v18631_v20 = vcombine.low %v1872_v29, %v1880_v33 }
 0x6db   :  { %v20281_v18 = vadd.f32 %v14109_v30, %v20267_v58  ;;  %v14111_v45 = vpop.f32.mrb[86].mxu1  ;;  %14412 = vmatpush1.bf16.msra.mxu1 %v18821_v50  ;;  %v18599_v58 = vcombine.low %v1840_v60, %v1848_v56  ;;  %v18616_v51 = vcombine.high %v1856_v38, %v1864_v11  ;;  %v18615_v47 = vcombine.low %v1856_v38, %v1864_v11  ;;  %v2143_v50 = vld [vmem:[#allocation6 + $0x3d28] sm:$0xff]  ;;  %v1896_v63 = vld [vmem:[#allocation6 + $0x3570] sm:$0xff] }
 0x6dc   :  { %14699 = vmatpush1.bf16.msra.mxu0 %v18567_v26  ;;  %v14112_v12 = vpop.f32.mrb[87].mxu1  ;;  %14413 = vmatprep.subr.bf16.mxu1 %v18838_v17  ;;  %v2151_v26 = vld [vmem:[#allocation6 + $0x3d68] sm:$0xff]  ;;  %v1888_v17 = vld [vmem:[#allocation6 + $0x3530] sm:$0xff] }
 0x6dd   :  { %14700 = vmatprep.subr.bf16.mxu0 %v18584_v22  ;;  %v18885_v22 = vcombine.low %v2127_v62, %v2135_v27  ;;  %v18902_v52 = vcombine.high %v2143_v50, %v2151_v26  ;;  %v18648_v30 = vcombine.high %v1888_v17, %v1896_v63  ;;  %v2159_v60 = vld [vmem:[#allocation6 + $0x3da8] sm:$0xff]  ;;  %v1904_v45 = vld [vmem:[#allocation6 + $0x35b0] sm:$0xff]  ;;  %v18901_v12 = vcombine.low %v2143_v50, %v2151_v26 }
 0x6de   :  { %v2167_v56 = vld [vmem:[#allocation6 + $0x3de8] sm:$0xff]  ;;  %v1920_v38 = vld [vmem:[#allocation6 + $0x3630] sm:$0xff] }
 0x6df   :  { %14414 = vmatpush1.bf16.msra.mxu1 %v18837_v3  ;;  %v1912_v3 = vld [vmem:[#allocation6 + $0x35f0] sm:$0xff]  ;;  %v2191_v62 = vld [vmem:[#allocation6 + $0x3ea8] sm:$0xff] }
 0x6e0   :  { %14701 = vmatpush1.bf16.msra.mxu0 %v18583_v2  ;;  %14415 = vmatprep.subr.bf16.mxu1 %v18854_v13  ;;  %v18647_v2 = vcombine.low %v1888_v17, %v1896_v63  ;;  %v18918_v13 = vcombine.high %v2159_v60, %v2167_v56  ;;  %v1928_v11 = vld [vmem:[#allocation6 + $0x3670] sm:$0xff]  ;;  %v2199_v27 = vld [vmem:[#allocation6 + $0x3ee8] sm:$0xff] }
 0x6e1   :  { %14702 = vmatprep.subr.bf16.mxu0 %v18600_v19  ;;  %v18664_v19 = vcombine.high %v1904_v45, %v1912_v3  ;;  %v1936_v29 = vld [vmem:[#allocation6 + $0x36b0] sm:$0xff]  ;;  %v2207_v26 = vld [vmem:[#allocation6 + $0x3f28] sm:$0xff] }
 0x6e2   :  { %v1944_v33 = vld [vmem:[#allocation6 + $0x36f0] sm:$0xff]  ;;  %v2215_v17 = vld [vmem:[#allocation6 + $0x3f68] sm:$0xff] }
 0x6e3   :  { %14416 = vmatpush1.bf16.msra.mxu1 %v18853_v59  ;;  %v18917_v59 = vcombine.low %v2159_v60, %v2167_v56  ;;  %v18696_v50 = vcombine.high %v1936_v29, %v1944_v33  ;;  %v18695_v56 = vcombine.low %v1936_v29, %v1944_v33 }
 0x6e4   :  { %14703 = vmatpush1.bf16.msra.mxu0 %v18599_v58  ;;  %14417 = vmatprep.subr.bf16.mxu1 %v18870_v40  ;;  %v18663_v58 = vcombine.low %v1904_v45, %v1912_v3  ;;  %v18934_v40 = vcombine.high %v2175_v6, %v2183_v8  ;;  %v18966_v45 = vcombine.high %v2207_v26, %v2215_v17 }
 0x6e5   :  { %14704 = vmatprep.subr.bf16.mxu0 %v18616_v51  ;;  %v18680_v51 = vcombine.high %v1920_v38, %v1928_v11 }
 0x6e7   :  { %14418 = vmatpush1.bf16.msra.mxu1 %v18869_v7  ;;  %v18933_v7 = vcombine.low %v2175_v6, %v2183_v8  ;;  %v18965_v6 = vcombine.low %v2207_v26, %v2215_v17 }
 0x6e8   :  { %14705 = vmatpush1.bf16.msra.mxu0 %v18615_v47  ;;  %14419 = vmatprep.subr.bf16.mxu1 %v18886_v1  ;;  %v18679_v47 = vcombine.low %v1920_v38, %v1928_v11  ;;  %v18950_v1 = vcombine.high %v2191_v62, %v2199_v27 }
 0x6e9   :  { %14706 = vmatprep.subr.bf16.mxu0 %v18632_v42  ;;  %v20283_v42 = vpop.f32.mrb[84].mxu0 }
 0x6ea   :  { %v20285_v63 = vpop.f32.mrb[85].mxu0 }
 0x6eb   :  { %14420 = vmatpush1.bf16.msra.mxu1 %v18885_v22  ;;  %v1952_v22 = vld [vmem:[#allocation6 + $0x3730] sm:$0xff] }
 0x6ec   :  { %14707 = vmatpush1.bf16.msra.mxu0 %v18631_v20  ;;  %14421 = vmatprep.subr.bf16.mxu1 %v18902_v52  ;;  %v1960_v20 = vld [vmem:[#allocation6 + $0x3770] sm:$0xff]  ;;  %v14398_v52 = vpop.f32.mrb[86].mxu0 }
 0x6ed   :  { %14708 = vmatprep.subr.bf16.mxu0 %v18648_v30  ;;  %v18949_v30 = vcombine.low %v2191_v62, %v2199_v27  ;;  %v14399_v60 = vpop.f32.mrb[87].mxu0  ;;  %v18712_v3 = vcombine.high %v1952_v22, %v1960_v20  ;;  %v18711_v8 = vcombine.low %v1952_v22, %v1960_v20  ;;  %v480_v52 = vld [vmem:[#allocation6 + $0x930] sm:$0xff] }
 0x6ee   :  { %v225_v60 = vld [vmem:[#allocation6 + $0x138] sm:$0xff] }
 0x6ef   :  { %14422 = vmatpush1.bf16.msra.mxu1 %v18901_v12  ;;  %v2223_v12 = vld [vmem:[#allocation6 + $0x3fa8] sm:$0xff] }
 0x6f0   :  { %14709 = vmatpush1.bf16.msra.mxu0 %v18647_v2  ;;  %14423 = vmatprep.subr.bf16.mxu1 %v18918_v13  ;;  %v2231_v2 = vld [vmem:[#allocation6 + $0x3fe8] sm:$0xff]  ;;  %v1968_v13 = vld [vmem:[#allocation6 + $0x37b0] sm:$0xff] }
 0x6f1   :  { %14710 = vmatprep.subr.bf16.mxu0 %v18664_v19  ;;  %v1976_v19 = vld [vmem:[#allocation6 + $0x37f0] sm:$0xff]  ;;  %v18982_v38 = vcombine.high %v2223_v12, %v2231_v2  ;;  %v18981_v62 = vcombine.low %v2223_v12, %v2231_v2 }
 0x6f2   :  { %v18728_v11 = vcombine.high %v1968_v13, %v1976_v19  ;;  %v18727_v27 = vcombine.low %v1968_v13, %v1976_v19  ;;  %v496_v13 = vld [vmem:[#allocation6 + $0x9b0] sm:$0xff] }
 0x6f3   :  { %14424 = vmatpush1.bf16.msra.mxu1 %v18917_v59  ;;  %v448_v59 = vld [vmem:[#allocation6 + $0x830] sm:$0xff] }
 0x6f4   :  { %14711 = vmatpush1.bf16.msra.mxu0 %v18663_v58  ;;  %14425 = vmatprep.subr.bf16.mxu1 %v18934_v40  ;;  %v456_v58 = vld [vmem:[#allocation6 + $0x870] sm:$0xff]  ;;  %v193_v40 = vld [vmem:[#allocation6 + $0x38] sm:$0xff] }
 0x6f5   :  { %14712 = vmatprep.subr.bf16.mxu0 %v18680_v51  ;;  %v201_v51 = vld [vmem:[#allocation6 + $0x78] sm:$0xff]  ;;  %v17208_v29 = vcombine.high %v448_v59, %v456_v58  ;;  %v17207_v26 = vcombine.low %v448_v59, %v456_v58  ;;  %v504_v19 = vld [vmem:[#allocation6 + $0x9f0] sm:$0xff] }
 0x6f6   :  { %v16954_v33 = vcombine.high %v193_v40, %v201_v51  ;;  %v16953_v17 = vcombine.low %v193_v40, %v201_v51  ;;  %v17256_v59 = vcombine.high %v496_v13, %v504_v19  ;;  %v512_v40 = vld [vmem:[#allocation6 + $0xa30] sm:$0xff] }
 0x6f7   :  { %14426 = vmatpush1.bf16.msra.mxu1 %v18933_v7  ;;  %v464_v7 = vld [vmem:[#allocation6 + $0x8b0] sm:$0xff] }
 0x6f8   :  { %14713 = vmatpush1.bf16.msra.mxu0 %v18679_v47  ;;  %14427 = vmatprep.subr.bf16.mxu1 %v18950_v1  ;;  %v472_v47 = vld [vmem:[#allocation6 + $0x8f0] sm:$0xff]  ;;  %v209_v1 = vld [vmem:[#allocation6 + $0xb8] sm:$0xff] }
 0x6f9   :  { %14714 = vmatprep.subr.bf16.mxu0 %v18696_v50  ;;  %v217_v50 = vld [vmem:[#allocation6 + $0xf8] sm:$0xff]  ;;  %v17224_v22 = vcombine.high %v464_v7, %v472_v47  ;;  %v520_v51 = vld [vmem:[#allocation6 + $0xa70] sm:$0xff] }
 0x6fa   :  { %v16970_v20 = vcombine.high %v209_v1, %v217_v50 }
 0x6fb   :  { %14428 = vmatpush1.bf16.msra.mxu1 %v18949_v30  ;;  %v488_v30 = vld [vmem:[#allocation6 + $0x970] sm:$0xff] }
 0x6fc   :  { %14715 = vmatpush1.bf16.msra.mxu0 %v18695_v56  ;;  %14429 = vmatprep.subr.bf16.mxu1 %v18966_v45  ;;  %v233_v56 = vld [vmem:[#allocation6 + $0x178] sm:$0xff]  ;;  %v17223_v45 = vcombine.low %v464_v7, %v472_v47  ;;  %v17240_v12 = vcombine.high %v480_v52, %v488_v30  ;;  %v17272_v7 = vcombine.high %v512_v40, %v520_v51  ;;  %v528_v47 = vld [vmem:[#allocation6 + $0xab0] sm:$0xff] }
 0x6fd   :  { %14716 = vmatprep.subr.bf16.mxu0 %v18712_v3  ;;  %v16969_v3 = vcombine.low %v209_v1, %v217_v50  ;;  %v16986_v2 = vcombine.high %v225_v60, %v233_v56  ;;  %v536_v1 = vld [vmem:[#allocation6 + $0xaf0] sm:$0xff]  ;;  %v273_v50 = vld [vmem:[#allocation6 + $0x2b8] sm:$0xff] }
 0x6ff   :  { %14430 = vmatpush1.bf16.msra.mxu1 %v18965_v6  ;;  %v241_v6 = vld [vmem:[#allocation6 + $0x1b8] sm:$0xff] }
 0x700   :  { %14717 = vmatpush1.bf16.msra.mxu0 %v18711_v8  ;;  %14431 = vmatprep.subr.bf16.mxu1 %v18982_v38  ;;  %v249_v8 = vld [vmem:[#allocation6 + $0x1f8] sm:$0xff]  ;;  %v17239_v38 = vcombine.low %v480_v52, %v488_v30  ;;  %v544_v30 = vld [vmem:[#allocation6 + $0xb30] sm:$0xff] }
 0x701   :  { %14718 = vmatprep.subr.bf16.mxu0 %v18728_v11  ;;  %v16985_v11 = vcombine.low %v225_v60, %v233_v56  ;;  %v17002_v58 = vcombine.high %v241_v6, %v249_v8  ;;  %v552_v60 = vld [vmem:[#allocation6 + $0xb70] sm:$0xff]  ;;  %v289_v56 = vld [vmem:[#allocation6 + $0x338] sm:$0xff] }
 0x703   :  { %14432 = vmatpush1.bf16.msra.mxu1 %v18981_v62  ;;  %v257_v62 = vld [vmem:[#allocation6 + $0x238] sm:$0xff] }
 0x704   :  { %14719 = vmatpush1.bf16.msra.mxu0 %v18727_v27  ;;  %14483 = vmatprep.subr.bf16.mxu1 %v17208_v29  ;;  %v265_v27 = vld [vmem:[#allocation6 + $0x278] sm:$0xff]  ;;  %v17255_v29 = vcombine.low %v496_v13, %v504_v19 }
 0x705   :  { %14770 = vmatprep.subr.bf16.mxu0 %v16954_v33  ;;  %v17001_v33 = vcombine.low %v241_v6, %v249_v8  ;;  %v560_v6 = vld [vmem:[#allocation6 + $0xbb0] sm:$0xff] }
 0x706   :  { %14434 = vmatmul.mubr.bf16.vlgmr.msra.gmra.mrb[100].mxu1 %v19977_v14  ;;  %v568_v8 = vld [vmem:[#allocation6 + $0xbf0] sm:$0xff] }
 0x707   :  { %14484 = vmatpush1.bf16.msra.mxu1 %v17207_v26  ;;  %14721 = vmatmul.mubr.bf16.vlgmr.msra.gmra.mrb[100].mxu0 %v19927_v41  ;;  %v281_v26 = vld [vmem:[#allocation6 + $0x2f8] sm:$0xff] }
 0x708   :  { %14771 = vmatpush1.bf16.msra.mxu0 %v16953_v17  ;;  %14485 = vmatprep.subr.bf16.mxu1 %v17224_v22  ;;  %v17271_v17 = vcombine.low %v512_v40, %v520_v51  ;;  %v17017_v22 = vcombine.low %v257_v62, %v265_v27  ;;  %v17034_v52 = vcombine.high %v273_v50, %v281_v26 }
 0x709   :  { %14772 = vmatprep.subr.bf16.mxu0 %v16970_v20  ;;  %14515 = vmatprep.mubr.bf16.mxu1 %v19917_v28  ;;  %v17288_v20 = vcombine.high %v528_v47, %v536_v1 }
 0x70a   :  { %14802 = vmatprep.mubr.bf16.mxu0 %v19907_v57  ;;  %v17018_v57 = vcombine.high %v257_v62, %v265_v27  ;;  %v17303_v62 = vcombine.low %v544_v30, %v552_v60 }
 0x70b   :  { %14486 = vmatpush1.bf16.msra.mxu1 %v17223_v45  ;;  %v297_v45 = vld [vmem:[#allocation6 + $0x378] sm:$0xff] }
 0x70c   :  { %14773 = vmatpush1.bf16.msra.mxu0 %v16969_v3  ;;  %14487 = vmatprep.subr.bf16.mxu1 %v17240_v12  ;;  %v17287_v3 = vcombine.low %v528_v47, %v536_v1  ;;  %v17033_v12 = vcombine.low %v273_v50, %v281_v26  ;;  %v17050_v19 = vcombine.high %v289_v56, %v297_v45  ;;  %v576_v47 = vld [vmem:[#allocation6 + $0xc30] sm:$0xff]  ;;  %v321_v50 = vld [vmem:[#allocation6 + $0x438] sm:$0xff] }
 0x70d   :  { %14774 = vmatprep.subr.bf16.mxu0 %v16986_v2  ;;  %v17304_v2 = vcombine.high %v544_v30, %v552_v60  ;;  %v17319_v26 = vcombine.low %v560_v6, %v568_v8  ;;  %v337_v30 = vld [vmem:[#allocation6 + $0x4b8] sm:$0xff] }
 0x70e   :  { %v345_v60 = vld [vmem:[#allocation6 + $0x4f8] sm:$0xff] }
 0x70f   :  { %14488 = vmatpush1.bf16.msra.mxu1 %v17239_v38 }
 0x710   :  { %14775 = vmatpush1.bf16.msra.mxu0 %v16985_v11  ;;  %14489 = vmatprep.subr.bf16.mxu1 %v17256_v59  ;;  %v305_v59 = vld [vmem:[#allocation6 + $0x3b8] sm:$0xff] }
 0x711   :  { %14776 = vmatprep.subr.bf16.mxu0 %v17002_v58  ;;  %v313_v58 = vld [vmem:[#allocation6 + $0x3f8] sm:$0xff] }
 0x713   :  { %14490 = vmatpush1.bf16.msra.mxu1 %v17255_v29  ;;  %v17049_v29 = vcombine.low %v289_v56, %v297_v45 }
 0x714   :  { %14777 = vmatpush1.bf16.msra.mxu0 %v17001_v33  ;;  %14491 = vmatprep.subr.bf16.mxu1 %v17272_v7  ;;  %v17320_v33 = vcombine.high %v560_v6, %v568_v8  ;;  %v17097_v8 = vcombine.low %v337_v30, %v345_v60 }
 0x715   :  { %14778 = vmatprep.subr.bf16.mxu0 %v17018_v57  ;;  %v17066_v57 = vcombine.high %v305_v59, %v313_v58 }
 0x717   :  { %14492 = vmatpush1.bf16.msra.mxu1 %v17271_v17  ;;  %v17065_v17 = vcombine.low %v305_v59, %v313_v58  ;;  %v624_v59 = vld [vmem:[#allocation6 + $0xdb0] sm:$0xff] }
 0x718   :  { %14779 = vmatpush1.bf16.msra.mxu0 %v17017_v22  ;;  %14493 = vmatprep.subr.bf16.mxu1 %v17288_v20  ;;  %v632_v58 = vld [vmem:[#allocation6 + $0xdf0] sm:$0xff] }
 0x719   :  { %v14189_v13 = vpop.f32.mrb[88].mxu1  ;;  %14780 = vmatprep.subr.bf16.mxu0 %v17034_v52  ;;  %v592_v52 = vld [vmem:[#allocation6 + $0xcb0] sm:$0xff] }
 0x71a   :  { %v14190_v38 = vadd.f32 %v14189_v13, %v20237_v54  ;;  %v14191_v11 = vpop.f32.mrb[89].mxu1  ;;  %v584_v54 = vld [vmem:[#allocation6 + $0xc70] sm:$0xff]  ;;  %v353_v13 = vld [vmem:[#allocation6 + $0x538] sm:$0xff] }
 0x71b   :  { %v14192_v40 = vadd.f32 %v14191_v11, %v20239_v32  ;;  %v14193_v51 = vpop.f32.mrb[90].mxu1  ;;  %14494 = vmatpush1.bf16.msra.mxu1 %v17287_v3  ;;  %v329_v32 = vld [vmem:[#allocation6 + $0x478] sm:$0xff]  ;;  %v17336_v22 = vcombine.high %v576_v47, %v584_v54  ;;  %v17335_v56 = vcombine.low %v576_v47, %v584_v54  ;;  %v17098_v3 = vcombine.high %v337_v30, %v345_v60  ;;  %v648_v47 = vld [vmem:[#allocation6 + $0xe70] sm:$0xff] }
 0x71c   :  { %14781 = vmatpush1.bf16.msra.mxu0 %v17033_v12  ;;  %v14194_v27 = vpop.f32.mrb[91].mxu1  ;;  %14495 = vmatprep.subr.bf16.mxu1 %v17304_v2  ;;  %v20294_v7 = vadd.f32 %v20253_v35, %v14190_v38  ;;  %v17082_v20 = vcombine.high %v321_v50, %v329_v32  ;;  %v600_v35 = vld [vmem:[#allocation6 + $0xcf0] sm:$0xff]  ;;  %v377_v51 = vld [vmem:[#allocation6 + $0x5f8] sm:$0xff] }
 0x71d   :  { %14782 = vmatprep.subr.bf16.mxu0 %v17050_v19  ;;  %v20297_v1 = vadd.f32 %v20255_v43, %v14192_v40  ;;  %v17081_v43 = vcombine.low %v321_v50, %v329_v32  ;;  %v17352_v45 = vcombine.high %v592_v52, %v600_v35  ;;  %v608_v12 = vld [vmem:[#allocation6 + $0xd30] sm:$0xff]  ;;  %v361_v19 = vld [vmem:[#allocation6 + $0x578] sm:$0xff]  ;;  %v17351_v6 = vcombine.low %v592_v52, %v600_v35 }
 0x71e   :  { %v616_v2 = vld [vmem:[#allocation6 + $0xd70] sm:$0xff]  ;;  %v17114_v11 = vcombine.high %v353_v13, %v361_v19  ;;  %v369_v40 = vld [vmem:[#allocation6 + $0x5b8] sm:$0xff]  ;;  %v17113_v27 = vcombine.low %v353_v13, %v361_v19  ;;  %v17383_v32 = vcombine.low %v624_v59, %v632_v58 }
 0x71f   :  { %14496 = vmatpush1.bf16.msra.mxu1 %v17303_v62  ;;  %v17368_v38 = vcombine.high %v608_v12, %v616_v2  ;;  %v17367_v62 = vcombine.low %v608_v12, %v616_v2  ;;  %v385_v54 = vld [vmem:[#allocation6 + $0x638] sm:$0xff]  ;;  %v664_v52 = vld [vmem:[#allocation6 + $0xef0] sm:$0xff] }
 0x720   :  { %14783 = vmatpush1.bf16.msra.mxu0 %v17049_v29  ;;  %14497 = vmatprep.subr.bf16.mxu1 %v17320_v33  ;;  %v17384_v29 = vcombine.high %v624_v59, %v632_v58  ;;  %v17130_v33 = vcombine.high %v369_v40, %v377_v51  ;;  %v393_v50 = vld [vmem:[#allocation6 + $0x678] sm:$0xff]  ;;  %v672_v12 = vld [vmem:[#allocation6 + $0xf30] sm:$0xff] }
 0x721   :  { %14784 = vmatprep.subr.bf16.mxu0 %v17066_v57  ;;  %v640_v57 = vld [vmem:[#allocation6 + $0xe30] sm:$0xff]  ;;  %v401_v35 = vld [vmem:[#allocation6 + $0x6b8] sm:$0xff] }
 0x722   :  { %v409_v30 = vld [vmem:[#allocation6 + $0x6f8] sm:$0xff]  ;;  %v17399_v60 = vcombine.low %v640_v57, %v648_v47  ;;  %v680_v2 = vld [vmem:[#allocation6 + $0xf70] sm:$0xff] }
 0x723   :  { %14498 = vmatpush1.bf16.msra.mxu1 %v17319_v26  ;;  %v17129_v26 = vcombine.low %v369_v40, %v377_v51  ;;  %v417_v19 = vld [vmem:[#allocation6 + $0x738] sm:$0xff]  ;;  %v17161_v59 = vcombine.low %v401_v35, %v409_v30  ;;  %v17432_v58 = vcombine.high %v672_v12, %v680_v2  ;;  %v688_v51 = vld [vmem:[#allocation6 + $0xfb0] sm:$0xff] }
 0x724   :  { %14785 = vmatpush1.bf16.msra.mxu0 %v17065_v17  ;;  %14499 = vmatprep.subr.bf16.mxu1 %v17336_v22  ;;  %v17400_v17 = vcombine.high %v640_v57, %v648_v47  ;;  %v17146_v22 = vcombine.high %v385_v54, %v393_v50 }
 0x725   :  { %14786 = vmatprep.subr.bf16.mxu0 %v17082_v20  ;;  %v656_v20 = vld [vmem:[#allocation6 + $0xeb0] sm:$0xff] }
 0x727   :  { %14500 = vmatpush1.bf16.msra.mxu1 %v17335_v56  ;;  %v17145_v56 = vcombine.low %v385_v54, %v393_v50  ;;  %v960_v50 = vld [vmem:[#allocation6 + $0x1830] sm:$0xff] }
 0x728   :  { %14787 = vmatpush1.bf16.msra.mxu0 %v17081_v43  ;;  %14501 = vmatprep.subr.bf16.mxu1 %v17352_v45  ;;  %v17416_v43 = vcombine.high %v656_v20, %v664_v52  ;;  %v20299_v45 = vpop.f32.mrb[88].mxu0 }
 0x729   :  { %14788 = vmatprep.subr.bf16.mxu0 %v17098_v3  ;;  %v17162_v3 = vcombine.high %v401_v35, %v409_v30  ;;  %v20301_v13 = vpop.f32.mrb[89].mxu0  ;;  %v976_v30 = vld [vmem:[#allocation6 + $0x18b0] sm:$0xff] }
 0x72b   :  { %14502 = vmatpush1.bf16.msra.mxu1 %v17351_v6  ;;  %v425_v6 = vld [vmem:[#allocation6 + $0x778] sm:$0xff] }
 0x72c   :  { %14789 = vmatpush1.bf16.msra.mxu0 %v17097_v8  ;;  %14503 = vmatprep.subr.bf16.mxu1 %v17368_v38  ;;  %v14480_v8 = vpop.f32.mrb[90].mxu0  ;;  %v17415_v38 = vcombine.low %v656_v20, %v664_v52  ;;  %v17178_v40 = vcombine.high %v417_v19, %v425_v6  ;;  %v17177_v57 = vcombine.low %v417_v19, %v425_v6  ;;  %v992_v6 = vld [vmem:[#allocation6 + $0x1930] sm:$0xff] }
 0x72d   :  { %14790 = vmatprep.subr.bf16.mxu0 %v17114_v11  ;;  %v14481_v11 = vpop.f32.mrb[91].mxu0  ;;  %v1000_v8 = vld [vmem:[#allocation6 + $0x1970] sm:$0xff] }
 0x72e   :  { %v745_v11 = vld [vmem:[#allocation6 + $0x1178] sm:$0xff] }
 0x72f   :  { %14504 = vmatpush1.bf16.msra.mxu1 %v17367_v62  ;;  %v696_v62 = vld [vmem:[#allocation6 + $0xff0] sm:$0xff] }
 0x730   :  { %14791 = vmatpush1.bf16.msra.mxu0 %v17113_v27  ;;  %14505 = vmatprep.subr.bf16.mxu1 %v17384_v29  ;;  %v433_v27 = vld [vmem:[#allocation6 + $0x7b8] sm:$0xff]  ;;  %v17448_v47 = vcombine.high %v688_v51, %v696_v62 }
 0x731   :  { %14792 = vmatprep.subr.bf16.mxu0 %v17130_v33  ;;  %v441_v29 = vld [vmem:[#allocation6 + $0x7f8] sm:$0xff]  ;;  %v17431_v33 = vcombine.low %v672_v12, %v680_v2 }
 0x732   :  { %v17194_v54 = vcombine.high %v433_v27, %v441_v29  ;;  %v17193_v20 = vcombine.low %v433_v27, %v441_v29  ;;  %v1016_v27 = vld [vmem:[#allocation6 + $0x19f0] sm:$0xff]  ;;  %v753_v29 = vld [vmem:[#allocation6 + $0x11b8] sm:$0xff] }
 0x733   :  { %14506 = vmatpush1.bf16.msra.mxu1 %v17383_v32  ;;  %v968_v32 = vld [vmem:[#allocation6 + $0x1870] sm:$0xff] }
 0x734   :  { %14793 = vmatpush1.bf16.msra.mxu0 %v17129_v26  ;;  %14507 = vmatprep.subr.bf16.mxu1 %v17400_v17  ;;  %v705_v26 = vld [vmem:[#allocation6 + $0x1038] sm:$0xff]  ;;  %v17720_v52 = vcombine.high %v960_v50, %v968_v32 }
 0x735   :  { %14794 = vmatprep.subr.bf16.mxu0 %v17146_v22  ;;  %v713_v17 = vld [vmem:[#allocation6 + $0x1078] sm:$0xff]  ;;  %v17447_v22 = vcombine.low %v688_v51, %v696_v62  ;;  %v1008_v62 = vld [vmem:[#allocation6 + $0x19b0] sm:$0xff] }
 0x736   :  { %v17466_v35 = vcombine.high %v705_v26, %v713_v17  ;;  %v17465_v12 = vcombine.low %v705_v26, %v713_v17  ;;  %v769_v26 = vld [vmem:[#allocation6 + $0x1238] sm:$0xff] }
 0x737   :  { %14508 = vmatpush1.bf16.msra.mxu1 %v17399_v60  ;;  %v984_v60 = vld [vmem:[#allocation6 + $0x18f0] sm:$0xff]  ;;  %v777_v17 = vld [vmem:[#allocation6 + $0x1278] sm:$0xff] }
 0x738   :  { %14795 = vmatpush1.bf16.msra.mxu0 %v17145_v56  ;;  %14509 = vmatprep.subr.bf16.mxu1 %v17416_v43  ;;  %v721_v56 = vld [vmem:[#allocation6 + $0x10b8] sm:$0xff]  ;;  %v17736_v2 = vcombine.high %v976_v30, %v984_v60 }
 0x739   :  { %14796 = vmatprep.subr.bf16.mxu0 %v17162_v3  ;;  %v729_v43 = vld [vmem:[#allocation6 + $0x10f8] sm:$0xff]  ;;  %v17719_v3 = vcombine.low %v960_v50, %v968_v32  ;;  %v1024_v50 = vld [vmem:[#allocation6 + $0x1a30] sm:$0xff] }
 0x73a   :  { %v17482_v19 = vcombine.high %v721_v56, %v729_v43  ;;  %v1032_v32 = vld [vmem:[#allocation6 + $0x1a70] sm:$0xff] }
 0x73b   :  { %14510 = vmatpush1.bf16.msra.mxu1 %v17415_v38  ;;  %v737_v38 = vld [vmem:[#allocation6 + $0x1138] sm:$0xff] }
 0x73c   :  { %14797 = vmatpush1.bf16.msra.mxu0 %v17161_v59  ;;  %14511 = vmatprep.subr.bf16.mxu1 %v17432_v58  ;;  %v17735_v59 = vcombine.low %v976_v30, %v984_v60  ;;  %v17481_v58 = vcombine.low %v721_v56, %v729_v43  ;;  %v17498_v51 = vcombine.high %v737_v38, %v745_v11  ;;  %v1048_v30 = vld [vmem:[#allocation6 + $0x1af0] sm:$0xff]  ;;  %v785_v60 = vld [vmem:[#allocation6 + $0x12b8] sm:$0xff] }
 0x73d   :  { %14798 = vmatprep.subr.bf16.mxu0 %v17178_v40  ;;  %v17752_v40 = vcombine.high %v992_v6, %v1000_v8  ;;  %v793_v56 = vld [vmem:[#allocation6 + $0x12f8] sm:$0xff]  ;;  %v17783_v43 = vcombine.low %v1024_v50, %v1032_v32 }
 0x73f   :  { %14512 = vmatpush1.bf16.msra.mxu1 %v17431_v33  ;;  %v761_v33 = vld [vmem:[#allocation6 + $0x11f8] sm:$0xff] }
 0x740   :  { %14799 = vmatpush1.bf16.msra.mxu0 %v17177_v57  ;;  %14513 = vmatprep.subr.bf16.mxu1 %v17448_v47  ;;  %v17751_v57 = vcombine.low %v992_v6, %v1000_v8  ;;  %v17768_v47 = vcombine.high %v1008_v62, %v1016_v27  ;;  %v1064_v6 = vld [vmem:[#allocation6 + $0x1b70] sm:$0xff]  ;;  %v801_v8 = vld [vmem:[#allocation6 + $0x1338] sm:$0xff] }
 0x741   :  { %14800 = vmatprep.subr.bf16.mxu0 %v17194_v54  ;;  %v17514_v54 = vcombine.high %v753_v29, %v761_v33 }
 0x743   :  { %14514 = vmatpush1.bf16.msra.mxu1 %v17447_v22  ;;  %v17767_v22 = vcombine.low %v1008_v62, %v1016_v27  ;;  %v1072_v62 = vld [vmem:[#allocation6 + $0x1bb0] sm:$0xff] }
 0x744   :  { %14801 = vmatpush1.bf16.msra.mxu0 %v17193_v20  ;;  %14565 = vmatprep.subr.bf16.mxu1 %v17720_v52  ;;  %v17513_v20 = vcombine.low %v753_v29, %v761_v33  ;;  %v17784_v52 = vcombine.high %v1024_v50, %v1032_v32  ;;  %v1080_v27 = vld [vmem:[#allocation6 + $0x1bf0] sm:$0xff] }
 0x745   :  { %14852 = vmatprep.subr.bf16.mxu0 %v17466_v35  ;;  %v1040_v35 = vld [vmem:[#allocation6 + $0x1ab0] sm:$0xff] }
 0x746   :  { %14516 = vmatmul.mubr.bf16.vlgmr.msra.gmra.mrb[104].mxu1 %v19925_v39 }
 0x747   :  { %14566 = vmatpush1.bf16.msra.mxu1 %v17719_v3  ;;  %14803 = vmatmul.mubr.bf16.vlgmr.msra.gmra.mrb[104].mxu0 %v19913_v16  ;;  %v17497_v16 = vcombine.low %v737_v38, %v745_v11  ;;  %v17529_v3 = vcombine.low %v769_v26, %v777_v17  ;;  %v809_v38 = vld [vmem:[#allocation6 + $0x1378] sm:$0xff]  ;;  %v17799_v11 = vcombine.low %v1040_v35, %v1048_v30 }
 0x748   :  { %14853 = vmatpush1.bf16.msra.mxu0 %v17465_v12  ;;  %14567 = vmatprep.subr.bf16.mxu1 %v17736_v2  ;;  %v17800_v12 = vcombine.high %v1040_v35, %v1048_v30  ;;  %v17546_v2 = vcombine.high %v785_v60, %v793_v56  ;;  %v833_v35 = vld [vmem:[#allocation6 + $0x1438] sm:$0xff]  ;;  %v17831_v30 = vcombine.low %v1072_v62, %v1080_v27 }
 0x749   :  { %14854 = vmatprep.subr.bf16.mxu0 %v17482_v19  ;;  %14597 = vmatprep.mubr.bf16.mxu1 %v19937_v9  ;;  %v1056_v19 = vld [vmem:[#allocation6 + $0x1b30] sm:$0xff] }
 0x74a   :  { %14884 = vmatprep.mubr.bf16.mxu0 %v19929_v49  ;;  %v17530_v49 = vcombine.high %v769_v26, %v777_v17  ;;  %v17815_v50 = vcombine.low %v1056_v19, %v1064_v6  ;;  %v17561_v26 = vcombine.low %v801_v8, %v809_v38  ;;  %v17832_v17 = vcombine.high %v1072_v62, %v1080_v27 }
 0x74b   :  { %14568 = vmatpush1.bf16.msra.mxu1 %v17735_v59  ;;  %v17545_v59 = vcombine.low %v785_v60, %v793_v56 }
 0x74c   :  { %14855 = vmatpush1.bf16.msra.mxu0 %v17481_v58  ;;  %14569 = vmatprep.subr.bf16.mxu1 %v17752_v40  ;;  %v17816_v58 = vcombine.high %v1056_v19, %v1064_v6 }
 0x74d   :  { %14856 = vmatprep.subr.bf16.mxu0 %v17498_v51  ;;  %v17562_v51 = vcombine.high %v801_v8, %v809_v38  ;;  %v1120_v38 = vld [vmem:[#allocation6 + $0x1d30] sm:$0xff] }
 0x74f   :  { %14570 = vmatpush1.bf16.msra.mxu1 %v17751_v57  ;;  %v817_v57 = vld [vmem:[#allocation6 + $0x13b8] sm:$0xff] }
 0x750   :  { %14857 = vmatpush1.bf16.msra.mxu0 %v17497_v16  ;;  %14571 = vmatprep.subr.bf16.mxu1 %v17768_v47  ;;  %v825_v16 = vld [vmem:[#allocation6 + $0x13f8] sm:$0xff] }
 0x751   :  { %14858 = vmatprep.subr.bf16.mxu0 %v17514_v54  ;;  %v17577_v60 = vcombine.low %v817_v57, %v825_v16 }
 0x753   :  { %14572 = vmatpush1.bf16.msra.mxu1 %v17767_v22 }
 0x754   :  { %14859 = vmatpush1.bf16.msra.mxu0 %v17513_v20  ;;  %14573 = vmatprep.subr.bf16.mxu1 %v17784_v52  ;;  %v17578_v20 = vcombine.high %v817_v57, %v825_v16  ;;  %v1088_v52 = vld [vmem:[#allocation6 + $0x1c30] sm:$0xff]  ;;  %v881_v57 = vld [vmem:[#allocation6 + $0x15b8] sm:$0xff] }
 0x755   :  { %14860 = vmatprep.subr.bf16.mxu0 %v17530_v49  ;;  %v889_v16 = vld [vmem:[#allocation6 + $0x15f8] sm:$0xff] }
 0x757   :  { %14574 = vmatpush1.bf16.msra.mxu1 %v17783_v43 }
 0x758   :  { %14861 = vmatpush1.bf16.msra.mxu0 %v17529_v3  ;;  %14575 = vmatprep.subr.bf16.mxu1 %v17800_v12  ;;  %v1104_v3 = vld [vmem:[#allocation6 + $0x1cb0] sm:$0xff]  ;;  %v849_v12 = vld [vmem:[#allocation6 + $0x14b8] sm:$0xff] }
 0x759   :  { %v14271_v40 = vpop.f32.mrb[92].mxu1  ;;  %14862 = vmatprep.subr.bf16.mxu0 %v17546_v2  ;;  %v857_v2 = vld [vmem:[#allocation6 + $0x14f8] sm:$0xff] }
 0x75a   :  { %v14272_v29 = vadd.f32 %v14271_v40, %v20294_v7  ;;  %v14273_v33 = vpop.f32.mrb[93].mxu1  ;;  %v1096_v7 = vld [vmem:[#allocation6 + $0x1c70] sm:$0xff]  ;;  %v17610_v8 = vcombine.high %v849_v12, %v857_v2 }
 0x75b   :  { %v14274_v47 = vadd.f32 %v14273_v33, %v20297_v1  ;;  %v14275_v54 = vpop.f32.mrb[94].mxu1  ;;  %14576 = vmatpush1.bf16.msra.mxu1 %v17799_v11  ;;  %v841_v1 = vld [vmem:[#allocation6 + $0x1478] sm:$0xff]  ;;  %v17848_v56 = vcombine.high %v1088_v52, %v1096_v7  ;;  %v17847_v19 = vcombine.low %v1088_v52, %v1096_v7  ;;  %v1128_v11 = vld [vmem:[#allocation6 + $0x1d70] sm:$0xff] }
 0x75c   :  { %14863 = vmatpush1.bf16.msra.mxu0 %v17545_v59  ;;  %v14276_v32 = vpop.f32.mrb[95].mxu1  ;;  %14577 = vmatprep.subr.bf16.mxu1 %v17816_v58  ;;  %v20310_v22 = vadd.f32 %v20269_v36, %v14272_v29  ;;  %v17594_v43 = vcombine.high %v833_v35, %v841_v1  ;;  %v1112_v36 = vld [vmem:[#allocation6 + $0x1cf0] sm:$0xff]  ;;  %v865_v59 = vld [vmem:[#allocation6 + $0x1538] sm:$0xff]  ;;  %v17880_v62 = vcombine.high %v1120_v38, %v1128_v11 }
 0x75d   :  { %14864 = vmatprep.subr.bf16.mxu0 %v17562_v51  ;;  %v20313_v49 = vadd.f32 %v20271_v46, %v14274_v47  ;;  %v17593_v46 = vcombine.low %v833_v35, %v841_v1  ;;  %v17864_v6 = vcombine.high %v1104_v3, %v1112_v36  ;;  %v873_v58 = vld [vmem:[#allocation6 + $0x1578] sm:$0xff]  ;;  %v17863_v40 = vcombine.low %v1104_v3, %v1112_v36  ;;  %v1136_v29 = vld [vmem:[#allocation6 + $0x1db0] sm:$0xff] }
 0x75e   :  { %v17609_v51 = vcombine.low %v849_v12, %v857_v2  ;;  %v17626_v27 = vcombine.high %v865_v59, %v873_v58  ;;  %v1144_v33 = vld [vmem:[#allocation6 + $0x1df0] sm:$0xff]  ;;  %v17879_v47 = vcombine.low %v1120_v38, %v1128_v11  ;;  %v17625_v54 = vcombine.low %v865_v59, %v873_v58  ;;  %v905_v52 = vld [vmem:[#allocation6 + $0x1678] sm:$0xff] }
 0x75f   :  { %14578 = vmatpush1.bf16.msra.mxu1 %v17815_v50  ;;  %v17896_v50 = vcombine.high %v1136_v29, %v1144_v33  ;;  %v17642_v32 = vcombine.high %v881_v57, %v889_v16  ;;  %v17895_v7 = vcombine.low %v1136_v29, %v1144_v33  ;;  %v17641_v35 = vcombine.low %v881_v57, %v889_v16  ;;  %v921_v3 = vld [vmem:[#allocation6 + $0x16f8] sm:$0xff]  ;;  %v1200_v33 = vld [vmem:[#allocation6 + $0x1fb0] sm:$0xff] }
 0x760   :  { %14865 = vmatpush1.bf16.msra.mxu0 %v17561_v26  ;;  %14579 = vmatprep.subr.bf16.mxu1 %v17832_v17  ;;  %v1152_v26 = vld [vmem:[#allocation6 + $0x1e30] sm:$0xff]  ;;  %v929_v11 = vld [vmem:[#allocation6 + $0x1738] sm:$0xff] }
 0x761   :  { %14866 = vmatprep.subr.bf16.mxu0 %v17578_v20  ;;  %v1160_v17 = vld [vmem:[#allocation6 + $0x1e70] sm:$0xff]  ;;  %v897_v20 = vld [vmem:[#allocation6 + $0x1638] sm:$0xff] }
 0x762   :  { %v17912_v1 = vcombine.high %v1152_v26, %v1160_v17  ;;  %v17911_v36 = vcombine.low %v1152_v26, %v1160_v17  ;;  %v17657_v12 = vcombine.low %v897_v20, %v905_v52  ;;  %v937_v59 = vld [vmem:[#allocation6 + $0x1778] sm:$0xff]  ;;  %v1208_v57 = vld [vmem:[#allocation6 + $0x1ff0] sm:$0xff] }
 0x763   :  { %14580 = vmatpush1.bf16.msra.mxu1 %v17831_v30  ;;  %v17658_v30 = vcombine.high %v897_v20, %v905_v52  ;;  %v17690_v29 = vcombine.high %v929_v11, %v937_v59  ;;  %v945_v16 = vld [vmem:[#allocation6 + $0x17b8] sm:$0xff]  ;;  %v1472_v17 = vld [vmem:[#allocation6 + $0x2830] sm:$0xff] }
 0x764   :  { %14867 = vmatpush1.bf16.msra.mxu0 %v17577_v60  ;;  %14581 = vmatprep.subr.bf16.mxu1 %v17848_v56  ;;  %v1168_v60 = vld [vmem:[#allocation6 + $0x1eb0] sm:$0xff]  ;;  %v1217_v52 = vld [vmem:[#allocation6 + $0x2038] sm:$0xff] }
 0x765   :  { %14868 = vmatprep.subr.bf16.mxu0 %v17594_v43  ;;  %v1176_v56 = vld [vmem:[#allocation6 + $0x1ef0] sm:$0xff]  ;;  %v913_v43 = vld [vmem:[#allocation6 + $0x16b8] sm:$0xff] }
 0x766   :  { %v17928_v2 = vcombine.high %v1168_v60, %v1176_v56  ;;  %v1480_v20 = vld [vmem:[#allocation6 + $0x2870] sm:$0xff] }
 0x767   :  { %14582 = vmatpush1.bf16.msra.mxu1 %v17847_v19  ;;  %v20315_v19 = vpop.f32.mrb[92].mxu0 }
 0x768   :  { %14869 = vmatpush1.bf16.msra.mxu0 %v17593_v46  ;;  %14583 = vmatprep.subr.bf16.mxu1 %v17864_v6  ;;  %v17674_v46 = vcombine.high %v913_v43, %v921_v3  ;;  %v1184_v6 = vld [vmem:[#allocation6 + $0x1f30] sm:$0xff]  ;;  %v20317_v38 = vpop.f32.mrb[93].mxu0 }
 0x769   :  { %14870 = vmatprep.subr.bf16.mxu0 %v17610_v8  ;;  %v1192_v8 = vld [vmem:[#allocation6 + $0x1f70] sm:$0xff]  ;;  %v14562_v58 = vpop.f32.mrb[94].mxu0 }
 0x76a   :  { %v1257_v58 = vld [vmem:[#allocation6 + $0x2178] sm:$0xff] }
 0x76b   :  { %14584 = vmatpush1.bf16.msra.mxu1 %v17863_v40  ;;  %v17927_v40 = vcombine.low %v1168_v60, %v1176_v56  ;;  %v1488_v56 = vld [vmem:[#allocation6 + $0x28b0] sm:$0xff] }
 0x76c   :  { %14871 = vmatpush1.bf16.msra.mxu0 %v17609_v51  ;;  %14585 = vmatprep.subr.bf16.mxu1 %v17880_v62  ;;  %v14563_v51 = vpop.f32.mrb[95].mxu0  ;;  %v17673_v62 = vcombine.low %v913_v43, %v921_v3  ;;  %v1496_v43 = vld [vmem:[#allocation6 + $0x28f0] sm:$0xff]  ;;  %v1233_v3 = vld [vmem:[#allocation6 + $0x20b8] sm:$0xff] }
 0x76d   :  { %14872 = vmatprep.subr.bf16.mxu0 %v17626_v27  ;;  %v17944_v27 = vcombine.high %v1184_v6, %v1192_v8 }
 0x76f   :  { %14586 = vmatpush1.bf16.msra.mxu1 %v17879_v47  ;;  %v953_v47 = vld [vmem:[#allocation6 + $0x17f8] sm:$0xff] }
 0x770   :  { %14873 = vmatpush1.bf16.msra.mxu0 %v17625_v54  ;;  %14587 = vmatprep.subr.bf16.mxu1 %v17896_v50  ;;  %v17943_v54 = vcombine.low %v1184_v6, %v1192_v8  ;;  %v17689_v50 = vcombine.low %v929_v11, %v937_v59  ;;  %v17706_v26 = vcombine.high %v945_v16, %v953_v47  ;;  %v1504_v8 = vld [vmem:[#allocation6 + $0x2930] sm:$0xff]  ;;  %v1249_v59 = vld [vmem:[#allocation6 + $0x2138] sm:$0xff] }
 0x771   :  { %14874 = vmatprep.subr.bf16.mxu0 %v17642_v32  ;;  %v17960_v32 = vcombine.high %v1200_v33, %v1208_v57  ;;  %v1512_v11 = vld [vmem:[#allocation6 + $0x2970] sm:$0xff] }
 0x773   :  { %14588 = vmatpush1.bf16.msra.mxu1 %v17895_v7  ;;  %v1225_v7 = vld [vmem:[#allocation6 + $0x2078] sm:$0xff] }
 0x774   :  { %14875 = vmatpush1.bf16.msra.mxu0 %v17641_v35  ;;  %14589 = vmatprep.subr.bf16.mxu1 %v17912_v1  ;;  %v17959_v35 = vcombine.low %v1200_v33, %v1208_v57  ;;  %v17705_v1 = vcombine.low %v945_v16, %v953_v47  ;;  %v17978_v60 = vcombine.high %v1217_v52, %v1225_v7  ;;  %v1528_v33 = vld [vmem:[#allocation6 + $0x29f0] sm:$0xff]  ;;  %v1265_v57 = vld [vmem:[#allocation6 + $0x21b8] sm:$0xff] }
 0x775   :  { %14876 = vmatprep.subr.bf16.mxu0 %v17658_v30  ;;  %v18232_v30 = vcombine.high %v1472_v17, %v1480_v20  ;;  %v1273_v16 = vld [vmem:[#allocation6 + $0x21f8] sm:$0xff]  ;;  %v18263_v47 = vcombine.low %v1504_v8, %v1512_v11 }
 0x777   :  { %14590 = vmatpush1.bf16.msra.mxu1 %v17911_v36  ;;  %v1241_v36 = vld [vmem:[#allocation6 + $0x20f8] sm:$0xff] }
 0x778   :  { %14877 = vmatpush1.bf16.msra.mxu0 %v17657_v12  ;;  %14591 = vmatprep.subr.bf16.mxu1 %v17928_v2  ;;  %v18231_v12 = vcombine.low %v1472_v17, %v1480_v20  ;;  %v17977_v2 = vcombine.low %v1217_v52, %v1225_v7  ;;  %v17994_v6 = vcombine.high %v1233_v3, %v1241_v36  ;;  %v1281_v17 = vld [vmem:[#allocation6 + $0x2238] sm:$0xff] }
 0x779   :  { %14878 = vmatprep.subr.bf16.mxu0 %v17674_v46  ;;  %v18248_v46 = vcombine.high %v1488_v56, %v1496_v43  ;;  %v17993_v51 = vcombine.low %v1233_v3, %v1241_v36  ;;  %v1289_v20 = vld [vmem:[#allocation6 + $0x2278] sm:$0xff]  ;;  %v18025_v7 = vcombine.low %v1265_v57, %v1273_v16 }
 0x77a   :  { %v18041_v3 = vcombine.low %v1281_v17, %v1289_v20 }
 0x77b   :  { %14592 = vmatpush1.bf16.msra.mxu1 %v17927_v40  ;;  %v18247_v40 = vcombine.low %v1488_v56, %v1496_v43  ;;  %v1305_v56 = vld [vmem:[#allocation6 + $0x22f8] sm:$0xff] }
 0x77c   :  { %14879 = vmatpush1.bf16.msra.mxu0 %v17673_v62  ;;  %14593 = vmatprep.subr.bf16.mxu1 %v17944_v27  ;;  %v18264_v62 = vcombine.high %v1504_v8, %v1512_v11  ;;  %v18010_v27 = vcombine.high %v1249_v59, %v1257_v58  ;;  %v1321_v8 = vld [vmem:[#allocation6 + $0x2378] sm:$0xff] }
 0x77d   :  { %14880 = vmatprep.subr.bf16.mxu0 %v17690_v29  ;;  %v1520_v29 = vld [vmem:[#allocation6 + $0x29b0] sm:$0xff] }
 0x77e   :  { %v18279_v52 = vcombine.low %v1520_v29, %v1528_v33 }
 0x77f   :  { %14594 = vmatpush1.bf16.msra.mxu1 %v17943_v54  ;;  %v18280_v54 = vcombine.high %v1520_v29, %v1528_v33 }
 0x780   :  { %14881 = vmatpush1.bf16.msra.mxu0 %v17689_v50  ;;  %14595 = vmatprep.subr.bf16.mxu1 %v17960_v32  ;;  %v18026_v50 = vcombine.high %v1265_v57, %v1273_v16  ;;  %v1536_v32 = vld [vmem:[#allocation6 + $0x2a30] sm:$0xff]  ;;  %v1329_v57 = vld [vmem:[#allocation6 + $0x23b8] sm:$0xff] }
 0x781   :  { %14882 = vmatprep.subr.bf16.mxu0 %v17706_v26  ;;  %v1544_v26 = vld [vmem:[#allocation6 + $0x2a70] sm:$0xff]  ;;  %v1337_v16 = vld [vmem:[#allocation6 + $0x23f8] sm:$0xff] }
 0x782   :  { %v18295_v43 = vcombine.low %v1536_v32, %v1544_v26 }
 0x783   :  { %14596 = vmatpush1.bf16.msra.mxu1 %v17959_v35  ;;  %v18296_v35 = vcombine.high %v1536_v32, %v1544_v26 }
 0x784   :  { %14883 = vmatpush1.bf16.msra.mxu0 %v17705_v1  ;;  %14647 = vmatprep.subr.bf16.mxu1 %v18232_v30  ;;  %v1552_v1 = vld [vmem:[#allocation6 + $0x2ab0] sm:$0xff] }
 0x785   :  { %14934 = vmatprep.subr.bf16.mxu0 %v17978_v60  ;;  %v1560_v30 = vld [vmem:[#allocation6 + $0x2af0] sm:$0xff]  ;;  %v1297_v60 = vld [vmem:[#allocation6 + $0x22b8] sm:$0xff] }
 0x786   :  { %14598 = vmatmul.mubr.bf16.vlgmr.msra.gmra.mrb[108].mxu1 %v19943_v25  ;;  %v18312_v36 = vcombine.high %v1552_v1, %v1560_v30  ;;  %v18311_v11 = vcombine.low %v1552_v1, %v1560_v30  ;;  %v18089_v1 = vcombine.low %v1329_v57, %v1337_v16 }
 0x787   :  { %14648 = vmatpush1.bf16.msra.mxu1 %v18231_v12  ;;  %14885 = vmatmul.mubr.bf16.vlgmr.msra.gmra.mrb[108].mxu0 %v19935_v0  ;;  %v18009_v0 = vcombine.low %v1249_v59, %v1257_v58  ;;  %v18058_v12 = vcombine.high %v1297_v60, %v1305_v56  ;;  %v18057_v59 = vcombine.low %v1297_v60, %v1305_v56  ;;  %v1616_v56 = vld [vmem:[#allocation6 + $0x2cb0] sm:$0xff] }
 0x788   :  { %14935 = vmatpush1.bf16.msra.mxu0 %v17977_v2  ;;  %14649 = vmatprep.subr.bf16.mxu1 %v18248_v46  ;;  %v1568_v2 = vld [vmem:[#allocation6 + $0x2b30] sm:$0xff] }
 0x789   :  { %14936 = vmatprep.subr.bf16.mxu0 %v17994_v6  ;;  %14679 = vmatprep.mubr.bf16.mxu1 %v19945_v37  ;;  %v1576_v46 = vld [vmem:[#allocation6 + $0x2b70] sm:$0xff]  ;;  %v1313_v6 = vld [vmem:[#allocation6 + $0x2338] sm:$0xff] }
 0x78a   :  { %14966 = vmatprep.mubr.bf16.mxu0 %v19909_v61  ;;  %v18042_v61 = vcombine.high %v1281_v17, %v1289_v20  ;;  %v18328_v58 = vcombine.high %v1568_v2, %v1576_v46  ;;  %v18073_v32 = vcombine.low %v1313_v6, %v1321_v8  ;;  %v18090_v20 = vcombine.high %v1329_v57, %v1337_v16 }
 0x78b   :  { %14650 = vmatpush1.bf16.msra.mxu1 %v18247_v40 }
 0x78c   :  { %14937 = vmatpush1.bf16.msra.mxu0 %v17993_v51  ;;  %14651 = vmatprep.subr.bf16.mxu1 %v18264_v62  ;;  %v18074_v51 = vcombine.high %v1313_v6, %v1321_v8  ;;  %v1584_v62 = vld [vmem:[#allocation6 + $0x2bb0] sm:$0xff]  ;;  %v1377_v8 = vld [vmem:[#allocation6 + $0x2538] sm:$0xff] }
 0x78d   :  { %14938 = vmatprep.subr.bf16.mxu0 %v18010_v27  ;;  %v1592_v27 = vld [vmem:[#allocation6 + $0x2bf0] sm:$0xff] }
 0x78e   :  { %v18344_v26 = vcombine.high %v1584_v62, %v1592_v27  ;;  %v1640_v6 = vld [vmem:[#allocation6 + $0x2d70] sm:$0xff] }
 0x78f   :  { %14652 = vmatpush1.bf16.msra.mxu1 %v18263_v47 }
 0x790   :  { %14939 = vmatpush1.bf16.msra.mxu0 %v18009_v0  ;;  %14653 = vmatprep.subr.bf16.mxu1 %v18280_v54  ;;  %v18327_v54 = vcombine.low %v1568_v2, %v1576_v46  ;;  %v1632_v46 = vld [vmem:[#allocation6 + $0x2d30] sm:$0xff] }
 0x791   :  { %14940 = vmatprep.subr.bf16.mxu0 %v18026_v50  ;;  %v18391_v57 = vcombine.low %v1632_v46, %v1640_v6 }
 0x793   :  { %14654 = vmatpush1.bf16.msra.mxu1 %v18279_v52  ;;  %v1600_v52 = vld [vmem:[#allocation6 + $0x2c30] sm:$0xff] }
 0x794   :  { %14941 = vmatpush1.bf16.msra.mxu0 %v18025_v7  ;;  %14655 = vmatprep.subr.bf16.mxu1 %v18296_v35  ;;  %v1345_v35 = vld [vmem:[#allocation6 + $0x2438] sm:$0xff] }
 0x795   :  { %14942 = vmatprep.subr.bf16.mxu0 %v18042_v61  ;;  %v18343_v61 = vcombine.low %v1584_v62, %v1592_v27  ;;  %v1648_v62 = vld [vmem:[#allocation6 + $0x2db0] sm:$0xff] }
 0x796   :  { %v1656_v27 = vld [vmem:[#allocation6 + $0x2df0] sm:$0xff] }
 0x797   :  { %14656 = vmatpush1.bf16.msra.mxu1 %v18295_v43  ;;  %v1361_v43 = vld [vmem:[#allocation6 + $0x24b8] sm:$0xff] }
 0x798   :  { %14943 = vmatpush1.bf16.msra.mxu0 %v18041_v3  ;;  %14657 = vmatprep.subr.bf16.mxu1 %v18312_v36  ;;  %v1369_v3 = vld [vmem:[#allocation6 + $0x24f8] sm:$0xff] }
 0x799   :  { %v14353_v40 = vpop.f32.mrb[96].mxu1  ;;  %14944 = vmatprep.subr.bf16.mxu0 %v18058_v12  ;;  %v18122_v2 = vcombine.high %v1361_v43, %v1369_v3 }
 0x79a   :  { %v14354_v29 = vadd.f32 %v14353_v40, %v20310_v22  ;;  %v14355_v33 = vpop.f32.mrb[97].mxu1  ;;  %v1608_v22 = vld [vmem:[#allocation6 + $0x2c70] sm:$0xff]  ;;  %v18392_v40 = vcombine.high %v1632_v46, %v1640_v6  ;;  %v1449_v46 = vld [vmem:[#allocation6 + $0x2778] sm:$0xff] }
 0x79b   :  { %v14356_v47 = vadd.f32 %v14355_v33, %v20313_v49  ;;  %v14357_v0 = vpop.f32.mrb[98].mxu1  ;;  %14658 = vmatpush1.bf16.msra.mxu1 %v18311_v11  ;;  %v1353_v49 = vld [vmem:[#allocation6 + $0x2478] sm:$0xff]  ;;  %v18360_v30 = vcombine.high %v1600_v52, %v1608_v22  ;;  %v18359_v36 = vcombine.low %v1600_v52, %v1608_v22 }
 0x79c   :  { %14945 = vmatpush1.bf16.msra.mxu0 %v18057_v59  ;;  %v14358_v50 = vpop.f32.mrb[99].mxu1  ;;  %14659 = vmatprep.subr.bf16.mxu1 %v18328_v58  ;;  %v20326_v17 = vadd.f32 %v20283_v42, %v14354_v29  ;;  %v18106_v60 = vcombine.high %v1345_v35, %v1353_v49  ;;  %v1624_v42 = vld [vmem:[#allocation6 + $0x2cf0] sm:$0xff]  ;;  %v1385_v11 = vld [vmem:[#allocation6 + $0x2578] sm:$0xff]  ;;  %v18121_v58 = vcombine.low %v1361_v43, %v1369_v3  ;;  %v20331_v43 = vpop.f32.mrb[96].mxu0 }
 0x79d   :  { %14946 = vmatprep.subr.bf16.mxu0 %v18074_v51  ;;  %v20329_v7 = vadd.f32 %v20285_v63, %v14356_v47  ;;  %v18105_v63 = vcombine.low %v1345_v35, %v1353_v49  ;;  %v18376_v12 = vcombine.high %v1616_v56, %v1624_v42  ;;  %v18375_v59 = vcombine.low %v1616_v56, %v1624_v42  ;;  %v1393_v29 = vld [vmem:[#allocation6 + $0x25b8] sm:$0xff]  ;;  %v1672_v50 = vld [vmem:[#allocation6 + $0x2e70] sm:$0xff] }
 0x79e   :  { %v18138_v51 = vcombine.high %v1377_v8, %v1385_v11  ;;  %v1401_v33 = vld [vmem:[#allocation6 + $0x25f8] sm:$0xff]  ;;  %v18137_v16 = vcombine.low %v1377_v8, %v1385_v11  ;;  %v18408_v47 = vcombine.high %v1648_v62, %v1656_v27  ;;  %v1680_v49 = vld [vmem:[#allocation6 + $0x2eb0] sm:$0xff] }
 0x79f   :  { %14660 = vmatpush1.bf16.msra.mxu1 %v18327_v54  ;;  %v18154_v0 = vcombine.high %v1393_v29, %v1401_v33  ;;  %v1664_v54 = vld [vmem:[#allocation6 + $0x2e30] sm:$0xff]  ;;  %v18153_v52 = vcombine.low %v1393_v29, %v1401_v33  ;;  %v1465_v29 = vld [vmem:[#allocation6 + $0x27f8] sm:$0xff] }
 0x7a0   :  { %14947 = vmatpush1.bf16.msra.mxu0 %v18073_v32  ;;  %14661 = vmatprep.subr.bf16.mxu1 %v18344_v26  ;;  %v1409_v32 = vld [vmem:[#allocation6 + $0x2638] sm:$0xff]  ;;  %v18424_v22 = vcombine.high %v1664_v54, %v1672_v50 }
 0x7a1   :  { %14948 = vmatprep.subr.bf16.mxu0 %v18090_v20  ;;  %v1417_v26 = vld [vmem:[#allocation6 + $0x2678] sm:$0xff]  ;;  %v18407_v20 = vcombine.low %v1648_v62, %v1656_v27  ;;  %v1720_v62 = vld [vmem:[#allocation6 + $0x2ff0] sm:$0xff] }
 0x7a2   :  { %v18170_v35 = vcombine.high %v1409_v32, %v1417_v26  ;;  %v18169_v56 = vcombine.low %v1409_v32, %v1417_v26  ;;  %v1457_v27 = vld [vmem:[#allocation6 + $0x27b8] sm:$0xff] }
 0x7a3   :  { %14662 = vmatpush1.bf16.msra.mxu1 %v18343_v61  ;;  %v1688_v61 = vld [vmem:[#allocation6 + $0x2ef0] sm:$0xff]  ;;  %v1737_v32 = vld [vmem:[#allocation6 + $0x3078] sm:$0xff] }
 0x7a4   :  { %14949 = vmatpush1.bf16.msra.mxu0 %v18089_v1  ;;  %14663 = vmatprep.subr.bf16.mxu1 %v18360_v30  ;;  %v1425_v1 = vld [vmem:[#allocation6 + $0x26b8] sm:$0xff]  ;;  %v18440_v42 = vcombine.high %v1680_v49, %v1688_v61  ;;  %v18439_v8 = vcombine.low %v1680_v49, %v1688_v61  ;;  %v2008_v49 = vld [vmem:[#allocation6 + $0x38f0] sm:$0xff] }
 0x7a5   :  { %14950 = vmatprep.subr.bf16.mxu0 %v18106_v60  ;;  %v1433_v30 = vld [vmem:[#allocation6 + $0x26f8] sm:$0xff]  ;;  %v18423_v60 = vcombine.low %v1664_v54, %v1672_v50  ;;  %v1992_v54 = vld [vmem:[#allocation6 + $0x3870] sm:$0xff] }
 0x7a6   :  { %v18186_v3 = vcombine.high %v1425_v1, %v1433_v30  ;;  %v1729_v50 = vld [vmem:[#allocation6 + $0x3038] sm:$0xff] }
 0x7a7   :  { %14664 = vmatpush1.bf16.msra.mxu1 %v18359_v36  ;;  %v1696_v36 = vld [vmem:[#allocation6 + $0x2f30] sm:$0xff]  ;;  %v1745_v61 = vld [vmem:[#allocation6 + $0x30b8] sm:$0xff] }
 0x7a8   :  { %14951 = vmatpush1.bf16.msra.mxu0 %v18105_v63  ;;  %14665 = vmatprep.subr.bf16.mxu1 %v18376_v12  ;;  %v1704_v63 = vld [vmem:[#allocation6 + $0x2f70] sm:$0xff]  ;;  %v20333_v12 = vpop.f32.mrb[97].mxu0 }
 0x7a9   :  { %14952 = vmatprep.subr.bf16.mxu0 %v18122_v2  ;;  %v1441_v2 = vld [vmem:[#allocation6 + $0x2738] sm:$0xff]  ;;  %v14644_v6 = vpop.f32.mrb[98].mxu0  ;;  %v18455_v33 = vcombine.low %v1696_v36, %v1704_v63 }
 0x7aa   :  { %v14645_v11 = vpop.f32.mrb[99].mxu0 }
 0x7ab   :  { %14666 = vmatpush1.bf16.msra.mxu1 %v18375_v59  ;;  %v18185_v59 = vcombine.low %v1425_v1, %v1433_v30  ;;  %v1753_v1 = vld [vmem:[#allocation6 + $0x30f8] sm:$0xff] }
 0x7ac   :  { %14953 = vmatpush1.bf16.msra.mxu0 %v18121_v58  ;;  %14667 = vmatprep.subr.bf16.mxu1 %v18392_v40  ;;  %v18456_v58 = vcombine.high %v1696_v36, %v1704_v63  ;;  %v18202_v40 = vcombine.high %v1441_v2, %v1449_v46  ;;  %v2024_v36 = vld [vmem:[#allocation6 + $0x3970] sm:$0xff]  ;;  %v1761_v63 = vld [vmem:[#allocation6 + $0x3138] sm:$0xff]  ;;  %v18505_v6 = vcombine.low %v1745_v61, %v1753_v1 }
 0x7ad   :  { %14954 = vmatprep.subr.bf16.mxu0 %v18138_v51  ;;  %v1712_v51 = vld [vmem:[#allocation6 + $0x2fb0] sm:$0xff] }
 0x7ae   :  { %v18471_v26 = vcombine.low %v1712_v51, %v1720_v62 }
 0x7af   :  { %14668 = vmatpush1.bf16.msra.mxu1 %v18391_v57  ;;  %v18201_v57 = vcombine.low %v1441_v2, %v1449_v46  ;;  %v1769_v2 = vld [vmem:[#allocation6 + $0x3178] sm:$0xff] }
 0x7b0   :  { %14955 = vmatpush1.bf16.msra.mxu0 %v18137_v16  ;;  %14669 = vmatprep.subr.bf16.mxu1 %v18408_v47  ;;  %v18472_v16 = vcombine.high %v1712_v51, %v1720_v62  ;;  %v18218_v47 = vcombine.high %v1457_v27, %v1465_v29  ;;  %v18522_v11 = vcombine.high %v1761_v63, %v1769_v2  ;;  %v1785_v51 = vld [vmem:[#allocation6 + $0x31f8] sm:$0xff] }
 0x7b1   :  { %14956 = vmatprep.subr.bf16.mxu0 %v18154_v0  ;;  %v1984_v0 = vld [vmem:[#allocation6 + $0x3830] sm:$0xff] }
 0x7b2   :  { %v18743_v30 = vcombine.low %v1984_v0, %v1992_v54 }
 0x7b3   :  { %14670 = vmatpush1.bf16.msra.mxu1 %v18407_v20  ;;  %v18217_v20 = vcombine.low %v1457_v27, %v1465_v29 }
 0x7b4   :  { %14957 = vmatpush1.bf16.msra.mxu0 %v18153_v52  ;;  %14671 = vmatprep.subr.bf16.mxu1 %v18424_v22  ;;  %v18744_v52 = vcombine.high %v1984_v0, %v1992_v54  ;;  %v18490_v22 = vcombine.high %v1729_v50, %v1737_v32 }
 0x7b5   :  { %14958 = vmatprep.subr.bf16.mxu0 %v18170_v35  ;;  %v2000_v35 = vld [vmem:[#allocation6 + $0x38b0] sm:$0xff] }
 0x7b6   :  { %v18759_v46 = vcombine.low %v2000_v35, %v2008_v49 }
 0x7b7   :  { %14672 = vmatpush1.bf16.msra.mxu1 %v18423_v60  ;;  %v18489_v60 = vcombine.low %v1729_v50, %v1737_v32  ;;  %v2064_v32 = vld [vmem:[#allocation6 + $0x3ab0] sm:$0xff] }
 0x7b8   :  { %14959 = vmatpush1.bf16.msra.mxu0 %v18169_v56  ;;  %14673 = vmatprep.subr.bf16.mxu1 %v18440_v42  ;;  %v18760_v56 = vcombine.high %v2000_v35, %v2008_v49  ;;  %v18506_v42 = vcombine.high %v1745_v61, %v1753_v1  ;;  %v2080_v1 = vld [vmem:[#allocation6 + $0x3b30] sm:$0xff] }
 0x7b9   :  { %14960 = vmatprep.subr.bf16.mxu0 %v18186_v3  ;;  %v2016_v3 = vld [vmem:[#allocation6 + $0x3930] sm:$0xff] }
 0x7ba   :  { %v18775_v62 = vcombine.low %v2016_v3, %v2024_v36 }
 0x7bb   :  { %14674 = vmatpush1.bf16.msra.mxu1 %v18439_v8  ;;  %v18776_v8 = vcombine.high %v2016_v3, %v2024_v36 }
 0x7bc   :  { %14961 = vmatpush1.bf16.msra.mxu0 %v18185_v59  ;;  %14675 = vmatprep.subr.bf16.mxu1 %v18456_v58  ;;  %v2032_v59 = vld [vmem:[#allocation6 + $0x39b0] sm:$0xff] }
 0x7bd   :  { %14962 = vmatprep.subr.bf16.mxu0 %v18202_v40  ;;  %v2040_v58 = vld [vmem:[#allocation6 + $0x39f0] sm:$0xff]  ;;  %v1777_v40 = vld [vmem:[#allocation6 + $0x31b8] sm:$0xff] }
 0x7be   :  { %v18792_v27 = vcombine.high %v2032_v59, %v2040_v58  ;;  %v18538_v29 = vcombine.high %v1777_v40, %v1785_v51  ;;  %v18791_v0 = vcombine.low %v2032_v59, %v2040_v58  ;;  %v18537_v54 = vcombine.low %v1777_v40, %v1785_v51  ;;  %v1841_v59 = vld [vmem:[#allocation6 + $0x33b8] sm:$0xff] }
 0x7bf   :  { %14676 = vmatpush1.bf16.msra.mxu1 %v18455_v33  ;;  %v2048_v33 = vld [vmem:[#allocation6 + $0x3a30] sm:$0xff]  ;;  %v1849_v58 = vld [vmem:[#allocation6 + $0x33f8] sm:$0xff] }
 0x7c0   :  { %14963 = vmatpush1.bf16.msra.mxu0 %v18201_v57  ;;  %14677 = vmatprep.subr.bf16.mxu1 %v18472_v16  ;;  %v2056_v57 = vld [vmem:[#allocation6 + $0x3a70] sm:$0xff]  ;;  %v1793_v16 = vld [vmem:[#allocation6 + $0x3238] sm:$0xff] }
 0x7c1   :  { %14964 = vmatprep.subr.bf16.mxu0 %v18218_v47  ;;  %v1801_v47 = vld [vmem:[#allocation6 + $0x3278] sm:$0xff]  ;;  %v18808_v50 = vcombine.high %v2048_v33, %v2056_v57 }
 0x7c2   :  { %v18553_v35 = vcombine.low %v1793_v16, %v1801_v47 }
 0x7c3   :  { %14678 = vmatpush1.bf16.msra.mxu1 %v18471_v26  ;;  %v2072_v26 = vld [vmem:[#allocation6 + $0x3af0] sm:$0xff] }
 0x7c4   :  { %14965 = vmatpush1.bf16.msra.mxu0 %v18217_v20  ;;  %14729 = vmatprep.subr.bf16.mxu1 %v18744_v52  ;;  %v1809_v20 = vld [vmem:[#allocation6 + $0x32b8] sm:$0xff]  ;;  %v18824_v49 = vcombine.high %v2064_v32, %v2072_v26 }
 0x7c5   :  { %15016 = vmatprep.subr.bf16.mxu0 %v18490_v22  ;;  %v1817_v52 = vld [vmem:[#allocation6 + $0x32f8] sm:$0xff]  ;;  %v18807_v22 = vcombine.low %v2048_v33, %v2056_v57  ;;  %v18602_v33 = vcombine.high %v1841_v59, %v1849_v58  ;;  %v2112_v57 = vld [vmem:[#allocation6 + $0x3c30] sm:$0xff] }
 0x7c6   :  { %14680 = vmatmul.mubr.bf16.vlgmr.msra.gmra.mrb[112].mxu1 %v19959_v10  ;;  %v18570_v61 = vcombine.high %v1809_v20, %v1817_v52  ;;  %v18569_v3 = vcombine.low %v1809_v20, %v1817_v52  ;;  %v1881_v20 = vld [vmem:[#allocation6 + $0x34f8] sm:$0xff] }
 0x7c7   :  { %14730 = vmatpush1.bf16.msra.mxu1 %v18743_v30  ;;  %14967 = vmatmul.mubr.bf16.vlgmr.msra.gmra.mrb[112].mxu0 %v19915_v21  ;;  %v18521_v21 = vcombine.low %v1761_v63, %v1769_v2  ;;  %v2088_v30 = vld [vmem:[#allocation6 + $0x3b70] sm:$0xff] }
 0x7c8   :  { %15017 = vmatpush1.bf16.msra.mxu0 %v18489_v60  ;;  %14731 = vmatprep.subr.bf16.mxu1 %v18760_v56  ;;  %v1825_v60 = vld [vmem:[#allocation6 + $0x3338] sm:$0xff]  ;;  %v18840_v36 = vcombine.high %v2080_v1, %v2088_v30 }
 0x7c9   :  { %15018 = vmatprep.subr.bf16.mxu0 %v18506_v42  ;;  %14761 = vmatprep.mubr.bf16.mxu1 %v19961_v23  ;;  %v1833_v56 = vld [vmem:[#allocation6 + $0x3378] sm:$0xff]  ;;  %v18823_v42 = vcombine.low %v2064_v32, %v2072_v26  ;;  %v2136_v32 = vld [vmem:[#allocation6 + $0x3cf0] sm:$0xff] }
 0x7ca   :  { %15048 = vmatprep.mubr.bf16.mxu0 %v19920_v31  ;;  %v18554_v31 = vcombine.high %v1793_v16, %v1801_v47  ;;  %v18586_v2 = vcombine.high %v1825_v60, %v1833_v56  ;;  %v2120_v16 = vld [vmem:[#allocation6 + $0x3c70] sm:$0xff]  ;;  %v1865_v47 = vld [vmem:[#allocation6 + $0x3478] sm:$0xff] }
 0x7cb   :  { %14732 = vmatpush1.bf16.msra.mxu1 %v18759_v46  ;;  %v2096_v46 = vld [vmem:[#allocation6 + $0x3bb0] sm:$0xff]  ;;  %v1873_v26 = vld [vmem:[#allocation6 + $0x34b8] sm:$0xff]  ;;  %v18871_v52 = vcombine.low %v2112_v57, %v2120_v16 }
 0x7cc   :  { %15019 = vmatpush1.bf16.msra.mxu0 %v18505_v6  ;;  %14733 = vmatprep.subr.bf16.mxu1 %v18776_v8  ;;  %v2104_v6 = vld [vmem:[#allocation6 + $0x3bf0] sm:$0xff] }
 0x7cd   :  { %15020 = vmatprep.subr.bf16.mxu0 %v18522_v11 }
 0x7cf   :  { %14734 = vmatpush1.bf16.msra.mxu1 %v18775_v62  ;;  %v18839_v62 = vcombine.low %v2080_v1, %v2088_v30  ;;  %v2152_v1 = vld [vmem:[#allocation6 + $0x3d70] sm:$0xff]  ;;  %v1889_v30 = vld [vmem:[#allocation6 + $0x3538] sm:$0xff] }
 0x7d0   :  { %15021 = vmatpush1.bf16.msra.mxu0 %v18521_v21  ;;  %14735 = vmatprep.subr.bf16.mxu1 %v18792_v27  ;;  %v18585_v27 = vcombine.low %v1825_v60, %v1833_v56  ;;  %v1897_v60 = vld [vmem:[#allocation6 + $0x3578] sm:$0xff] }
 0x7d1   :  { %15022 = vmatprep.subr.bf16.mxu0 %v18538_v29  ;;  %v18856_v29 = vcombine.high %v2096_v46, %v2104_v6 }
 0x7d3   :  { %14736 = vmatpush1.bf16.msra.mxu1 %v18791_v0  ;;  %v18855_v0 = vcombine.low %v2096_v46, %v2104_v6  ;;  %v1905_v46 = vld [vmem:[#allocation6 + $0x35b8] sm:$0xff] }
 0x7d4   :  { %15023 = vmatpush1.bf16.msra.mxu0 %v18537_v54  ;;  %14737 = vmatprep.subr.bf16.mxu1 %v18808_v50  ;;  %v18872_v54 = vcombine.high %v2112_v57, %v2120_v16  ;;  %v1913_v6 = vld [vmem:[#allocation6 + $0x35f8] sm:$0xff] }
 0x7d5   :  { %15024 = vmatprep.subr.bf16.mxu0 %v18554_v31  ;;  %v2128_v31 = vld [vmem:[#allocation6 + $0x3cb0] sm:$0xff]  ;;  %v18665_v16 = vcombine.low %v1905_v46, %v1913_v6 }
 0x7d6   :  { %v18887_v56 = vcombine.low %v2128_v31, %v2136_v32 }
 0x7d7   :  { %14738 = vmatpush1.bf16.msra.mxu1 %v18807_v22 }
 0x7d8   :  { %15025 = vmatpush1.bf16.msra.mxu0 %v18553_v35  ;;  %14739 = vmatprep.subr.bf16.mxu1 %v18824_v49  ;;  %v18888_v35 = vcombine.high %v2128_v31, %v2136_v32  ;;  %v18634_v49 = vcombine.high %v1873_v26, %v1881_v20  ;;  %v1945_v31 = vld [vmem:[#allocation6 + $0x36f8] sm:$0xff] }
 0x7d9   :  { %v14435_v63 = vpop.f32.mrb[100].mxu1  ;;  %15026 = vmatprep.subr.bf16.mxu0 %v18570_v61  ;;  %v2144_v61 = vld [vmem:[#allocation6 + $0x3d30] sm:$0xff] }
 0x7da   :  { %v20340_v8 = vadd.f32 %v14435_v63, %v20326_v17  ;;  %v14437_v11 = vpop.f32.mrb[101].mxu1  ;;  %v1857_v17 = vld [vmem:[#allocation6 + $0x3438] sm:$0xff]  ;;  %v2160_v63 = vld [vmem:[#allocation6 + $0x3db0] sm:$0xff] }
 0x7db   :  { %v20343_v40 = vadd.f32 %v14437_v11, %v20329_v7  ;;  %v14439_v51 = vpop.f32.mrb[102].mxu1  ;;  %14740 = vmatpush1.bf16.msra.mxu1 %v18823_v42  ;;  %v18601_v7 = vcombine.low %v1841_v59, %v1849_v58  ;;  %v18618_v50 = vcombine.high %v1857_v17, %v1865_v47  ;;  %v18617_v22 = vcombine.low %v1857_v17, %v1865_v47 }
 0x7dc   :  { %15027 = vmatpush1.bf16.msra.mxu0 %v18569_v3  ;;  %v14440_v21 = vpop.f32.mrb[103].mxu1  ;;  %14741 = vmatprep.subr.bf16.mxu1 %v18840_v36  ;;  %v18633_v42 = vcombine.low %v1873_v26, %v1881_v20  ;;  %v18904_v3 = vcombine.high %v2144_v61, %v2152_v1  ;;  %v18650_v36 = vcombine.high %v1889_v30, %v1897_v60 }
 0x7dd   :  { %15028 = vmatprep.subr.bf16.mxu0 %v18586_v2  ;;  %v2168_v2 = vld [vmem:[#allocation6 + $0x3df0] sm:$0xff]  ;;  %v18903_v11 = vcombine.low %v2144_v61, %v2152_v1  ;;  %v18649_v59 = vcombine.low %v1889_v30, %v1897_v60  ;;  %v18666_v51 = vcombine.high %v1905_v46, %v1913_v6  ;;  %v1953_v30 = vld [vmem:[#allocation6 + $0x3738] sm:$0xff] }
 0x7de   :  { %v18920_v58 = vcombine.high %v2160_v63, %v2168_v2  ;;  %v2184_v21 = vld [vmem:[#allocation6 + $0x3e70] sm:$0xff]  ;;  %v18919_v57 = vcombine.low %v2160_v63, %v2168_v2  ;;  %v1961_v60 = vld [vmem:[#allocation6 + $0x3778] sm:$0xff] }
 0x7df   :  { %14742 = vmatpush1.bf16.msra.mxu1 %v18839_v62  ;;  %v2176_v62 = vld [vmem:[#allocation6 + $0x3e30] sm:$0xff]  ;;  %v18714_v46 = vcombine.high %v1953_v30, %v1961_v60 }
 0x7e0   :  { %15029 = vmatpush1.bf16.msra.mxu0 %v18585_v27  ;;  %14743 = vmatprep.subr.bf16.mxu1 %v18856_v29  ;;  %v15153_v27 = vlaneseq  ;;  %v1921_v29 = vld [vmem:[#allocation6 + $0x3638] sm:$0xff]  ;;  %v18936_v17 = vcombine.high %v2176_v62, %v2184_v21  ;;  %v18935_v32 = vcombine.low %v2176_v62, %v2184_v21  ;;  %v2224_v6 = vld [vmem:[#allocation6 + $0x3fb0] sm:$0xff]  ;;  %v18713_v21 = vcombine.low %v1953_v30, %v1961_v60 }
 0x7e1   :  { %15030 = vmatprep.subr.bf16.mxu0 %v18602_v33  ;;  %v1929_v33 = vld [vmem:[#allocation6 + $0x3678] sm:$0xff] }
 0x7e2   :  { %v18682_v47 = vcombine.high %v1921_v29, %v1929_v33  ;;  %v18681_v26 = vcombine.low %v1921_v29, %v1929_v33  ;;  %v449_v33 = vld [vmem:[#allocation6 + $0x838] sm:$0xff] }
 0x7e3   :  { %14744 = vmatpush1.bf16.msra.mxu1 %v18855_v0  ;;  %v2192_v0 = vld [vmem:[#allocation6 + $0x3eb0] sm:$0xff] }
 0x7e4   :  { %15031 = vmatpush1.bf16.msra.mxu0 %v18601_v7  ;;  %14745 = vmatprep.subr.bf16.mxu1 %v18872_v54  ;;  %v2200_v7 = vld [vmem:[#allocation6 + $0x3ef0] sm:$0xff]  ;;  %v20345_v54 = vshrl.u32 %v15153_v27, 7 }
 0x7e5   :  { %15032 = vmatprep.subr.bf16.mxu0 %v18618_v50  ;;  %v1937_v50 = vld [vmem:[#allocation6 + $0x36b8] sm:$0xff]  ;;  %v18952_v20 = vcombine.high %v2192_v0, %v2200_v7 }
 0x7e6   :  { %v20352_v1 = vsub.s32 1, %v20345_v54  ;;  %v18697_v63 = vcombine.low %v1937_v50, %v1945_v31 }
 0x7e7   :  { %14746 = vmatpush1.bf16.msra.mxu1 %v18871_v52  ;;  %v20347_v52 = vpop.f32.mrb[100].mxu0 }
 0x7e8   :  { %15033 = vmatpush1.bf16.msra.mxu0 %v18617_v22  ;;  %14747 = vmatprep.subr.bf16.mxu1 %v18888_v35  ;;  %v18698_v22 = vcombine.high %v1937_v50, %v1945_v31  ;;  %v2208_v35 = vld [vmem:[#allocation6 + $0x3f30] sm:$0xff]  ;;  %v20349_v61 = vpop.f32.mrb[101].mxu0  ;;  %v465_v31 = vld [vmem:[#allocation6 + $0x8b8] sm:$0xff] }
 0x7e9   :  { %15034 = vmatprep.subr.bf16.mxu0 %v18634_v49  ;;  %v2216_v49 = vld [vmem:[#allocation6 + $0x3f70] sm:$0xff] }
 0x7ea   :  { %v18968_v2 = vcombine.high %v2208_v35, %v2216_v49  ;;  %v18967_v62 = vcombine.low %v2208_v35, %v2216_v49  ;;  %v19298_v35 = vld [vmem:[#allocation9 + $0x48] sm:$0xff]  }
 0x7eb   :  { %14748 = vmatpush1.bf16.msra.mxu1 %v18887_v56  ;;  %v14726_v56 = vpop.f32.mrb[102].mxu0  ;;  %v489_v49 = vld [vmem:[#allocation6 + $0x978] sm:$0xff] }
 0x7ec   :  { %15035 = vmatpush1.bf16.msra.mxu0 %v18633_v42  ;;  %14749 = vmatprep.subr.bf16.mxu1 %v18904_v3  ;;  %v20354_v42 = vld [vmem:[#allocation8] sm:$0xff]  ;;  %v18951_v3 = vcombine.low %v2192_v0, %v2200_v7  ;;  %v19296_v7 = vld [vmem:[#allocation9 + $0x40] sm:$0xff]   ;;  %v19299_v56 = vld [vmem:[#allocation9 + $0x8] sm:$0xff]  }
 0x7ed   :  { %15036 = vmatprep.subr.bf16.mxu0 %v18650_v36  ;;  %v14727_v36 = vpop.f32.mrb[103].mxu0 }
 0x7ee   :  { %v19300_v36 = vld [vmem:[#allocation9 + $0x50] sm:$0xff]  }
 0x7ef   :  { %14750 = vmatpush1.bf16.msra.mxu1 %v18903_v11  ;;  %v2232_v11 = vld [vmem:[#allocation6 + $0x3ff0] sm:$0xff] }
 0x7f0   :  { %15037 = vmatpush1.bf16.msra.mxu0 %v18649_v59  ;;  %14751 = vmatprep.subr.bf16.mxu1 %v18920_v58  ;;  %v15160_v59 = vrot.slane %v20354_v42, %v20352_v1  ;;  %v1969_v58 = vld [vmem:[#allocation6 + $0x37b8] sm:$0xff]  ;;  %v18984_v27 = vcombine.high %v2224_v6, %v2232_v11 }
 0x7f1   :  { %15038 = vmatprep.subr.bf16.mxu0 %v18666_v51  ;;  %v1977_v51 = vld [vmem:[#allocation6 + $0x37f8] sm:$0xff] }
 0x7f2   :  { %v18730_v29 = vcombine.high %v1969_v58, %v1977_v51 }
 0x7f3   :  { %14752 = vmatpush1.bf16.msra.mxu1 %v18919_v57  ;;  %v457_v57 = vld [vmem:[#allocation6 + $0x878] sm:$0xff] }
 0x7f4   :  { %15039 = vmatpush1.bf16.msra.mxu0 %v18665_v16  ;;  %14753 = vmatprep.subr.bf16.mxu1 %v18936_v17  ;;  %v15234_v16 = vadd.f32 %v15160_v59, %v20033_v24  ;;  %v18983_v17 = vcombine.low %v2224_v6, %v2232_v11  ;;  %v17210_v0 = vcombine.high %v449_v33, %v457_v57  ;;  %v481_v24 = vld [vmem:[#allocation6 + $0x938] sm:$0xff]  ;;  %v19301_v6 = vld [vmem:[#allocation9 + $0x10] sm:$0xff]  }
 0x7f5   :  { %15040 = vmatprep.subr.bf16.mxu0 %v18682_v47  ;;  %v18729_v47 = vcombine.low %v1969_v58, %v1977_v51  ;;  %v513_v59 = vld [vmem:[#allocation6 + $0xa38] sm:$0xff] }
 0x7f6   :  { %v15250_v50 = vmax.f32 %v15234_v16, 0.0  ;;  %v521_v58 = vld [vmem:[#allocation6 + $0xa78] sm:$0xff] }
 0x7f7   :  { %14754 = vmatpush1.bf16.msra.mxu1 %v18935_v32  ;;  %v473_v32 = vld [vmem:[#allocation6 + $0x8f8] sm:$0xff] }
 0x7f8   :  { %15041 = vmatpush1.bf16.msra.mxu0 %v18681_v26  ;;  %14755 = vmatprep.subr.bf16.mxu1 %v18952_v20  ;;  %v17209_v26 = vcombine.low %v449_v33, %v457_v57  ;;  %v19297_v20 = vld [vmem:[#allocation9] sm:$0xff]   ;;  %v15266_v30 = vpack.c.bf16 %v15250_v50, %v15250_v50  ;;  %v17225_v60 = vcombine.low %v465_v31, %v473_v32  ;;  %v15175_v50 = vsub.s32 5, %v20345_v54 }
 0x7f9   :  { %15042 = vmatprep.subr.bf16.mxu0 %v18698_v22  ;;  %v17226_v22 = vcombine.high %v465_v31, %v473_v32  ;;  %v17273_v33 = vcombine.low %v513_v59, %v521_v58  ;;  %v19305_v57 = vld [vmem:[#allocation9 + $0x20] sm:$0xff]   ;;  %v19307_v32 = vld [vmem:[#allocation9 + $0x28] sm:$0xff]  }
 0x7fb   :  { %14756 = vmatpush1.bf16.msra.mxu1 %v18951_v3  ;;  %v17242_v3 = vcombine.high %v481_v24, %v489_v49 }
 0x7fc   :  { %15043 = vmatpush1.bf16.msra.mxu0 %v18697_v63  ;;  %14757 = vmatprep.subr.bf16.mxu1 %v18968_v2  ;;  %v497_v63 = vld [vmem:[#allocation6 + $0x9b8] sm:$0xff] }
 0x7fd   :  { %15044 = vmatprep.subr.bf16.mxu0 %v18714_v46  ;;  %v505_v2 = vld [vmem:[#allocation6 + $0x9f8] sm:$0xff]  ;;  %v17241_v46 = vcombine.low %v481_v24, %v489_v49 }
 0x7fe   :  { %v17258_v11 = vcombine.high %v497_v63, %v505_v2  ;;  %v17257_v51 = vcombine.low %v497_v63, %v505_v2  ;;  %v561_v24 = vld [vmem:[#allocation6 + $0xbb8] sm:$0xff] }
 0x7ff   :  { %14758 = vmatpush1.bf16.msra.mxu1 %v18967_v62  ;;  %v19303_v62 = vld [vmem:[#allocation9 + $0x18] sm:$0xff]   ;;  %v569_v49 = vld [vmem:[#allocation6 + $0xbf8] sm:$0xff] }
 0x800   :  { %15045 = vmatpush1.bf16.msra.mxu0 %v18713_v21  ;;  %14759 = vmatprep.subr.bf16.mxu1 %v18984_v27  ;;  %v17274_v21 = vcombine.high %v513_v59, %v521_v58  ;;  %v19304_v27 = vld [vmem:[#allocation9 + $0x60] sm:$0xff]   ;;  %v19310_v59 = vld [vmem:[#allocation9 + $0x78] sm:$0xff]   ;;  %v577_v58 = vld [vmem:[#allocation6 + $0xc38] sm:$0xff] }
 0x801   :  { %15046 = vmatprep.subr.bf16.mxu0 %v18730_v29  ;;  %v529_v29 = vld [vmem:[#allocation6 + $0xab8] sm:$0xff] }
 0x803   :  { %14760 = vmatpush1.bf16.msra.mxu1 %v18983_v17  ;;  %v20363_v17 = vsub.s32 0, %v20345_v54 }
 0x804   :  { %15047 = vmatpush1.bf16.msra.mxu0 %v18729_v47  ;;  %14811 = vmatprep.subr.bf16.mxu1 %v17210_v0  ;;  %v19306_v47 = vld [vmem:[#allocation9 + $0x68] sm:$0xff]  }
 0x805   :  { %19180 = vmatprep.subr.bf16.mxu0 %v19296_v7  ;;  %v545_v0 = vld [vmem:[#allocation6 + $0xb38] sm:$0xff] }
 0x806   :  { %14762 = vmatmul.mubr.bf16.vlgmr.msra.gmra.mrb[116].mxu1 %v19977_v14  ;;  %v553_v7 = vld [vmem:[#allocation6 + $0xb78] sm:$0xff] }
 0x807   :  { %15049 = vmatmul.mubr.bf16.vlgmr.msra.gmra.mrb[116].mxu0 %v19927_v41  ;;  %14812 = vmatpush1.bf16.msra.mxu1 %v17209_v26  ;;  %v19302_v41 = vld [vmem:[#allocation9 + $0x58] sm:$0xff]   ;;  %v17306_v26 = vcombine.high %v545_v0, %v553_v7  ;;  %v17305_v63 = vcombine.low %v545_v0, %v553_v7  ;;  %v609_v0 = vld [vmem:[#allocation6 + $0xd38] sm:$0xff] }
 0x808   :  { %19181 = vmatpush3.bf16.msra.mxu0 %v19297_v20  ;;  %15832 = vmatprep.mubr.bf16.mxu0 %v15266_v30  ;;  %v15156_v20 = vrot.slane %v20354_v42, %v20363_v17  ;;  %v15176_v30 = vrot.slane %v20354_v42, %v15175_v50  ;;  %v617_v7 = vld [vmem:[#allocation6 + $0xd78] sm:$0xff] }
 0x809   :  { %14813 = vmatprep.subr.bf16.mxu1 %v17226_v22  ;;  %19182 = vmatprep.subr.bf16.mxu0 %v19298_v35  ;;  %v19308_v35 = vld [vmem:[#allocation9 + $0x70] sm:$0xff]  }
 0x80a   :  { %14843 = vmatprep.mubr.bf16.mxu1 %v19917_v28  ;;  %v537_v28 = vld [vmem:[#allocation6 + $0xaf8] sm:$0xff] }
 0x80b   :  { %14814 = vmatpush1.bf16.msra.mxu1 %v17225_v60  ;;  %v17290_v16 = vcombine.high %v529_v29, %v537_v28  ;;  %v17289_v31 = vcombine.low %v529_v29, %v537_v28 }
 0x80c   :  { %19183 = vmatpush3.bf16.msra.mxu0 %v19299_v56  ;;  %14815 = vmatprep.subr.bf16.mxu1 %v17242_v3 }
 0x80d   :  { %19184 = vmatprep.subr.bf16.mxu0 %v19300_v36 }
 0x80f   :  { %14816 = vmatpush1.bf16.msra.mxu1 %v17241_v46  ;;  %v19309_v46 = vld [vmem:[#allocation9 + $0x30] sm:$0xff]  }
 0x810   :  { %19185 = vmatpush3.bf16.msra.mxu0 %v19301_v6  ;;  %14817 = vmatprep.subr.bf16.mxu1 %v17258_v11  ;;  %v17322_v6 = vcombine.high %v561_v24, %v569_v49 }
 0x811   :  { %19186 = vmatprep.subr.bf16.mxu0 %v19302_v41  ;;  %v15233_v41 = vadd.f32 %v15156_v20, %v20030_v4  ;;  %v593_v4 = vld [vmem:[#allocation6 + $0xcb8] sm:$0xff]  ;;  %v17370_v20 = vcombine.high %v609_v0, %v617_v7 }
 0x813   :  { %14818 = vmatpush1.bf16.msra.mxu1 %v17257_v51  ;;  %v15249_v29 = vmax.f32 %v15233_v41, 0.0  ;;  %v657_v41 = vld [vmem:[#allocation6 + $0xeb8] sm:$0xff] }
 0x814   :  { %19187 = vmatpush3.bf16.msra.mxu0 %v19303_v62  ;;  %14819 = vmatprep.subr.bf16.mxu1 %v17274_v21  ;;  %v17321_v62 = vcombine.low %v561_v24, %v569_v49  ;;  %v19311_v21 = vld [vmem:[#allocation9 + $0x38] sm:$0xff]   ;;  %v633_v24 = vld [vmem:[#allocation6 + $0xdf8] sm:$0xff]  ;;  %v17369_v49 = vcombine.low %v609_v0, %v617_v7  ;;  %v19324_v0 = vld [vmem:[#allocation9 + $0x170] sm:$0xff]  }
 0x815   :  { %19188 = vmatprep.subr.bf16.mxu0 %v19304_v27  ;;  %v689_v7 = vld [vmem:[#allocation6 + $0xfb8] sm:$0xff] }
 0x817   :  { %14820 = vmatpush1.bf16.msra.mxu1 %v17273_v33  ;;  %v601_v33 = vld [vmem:[#allocation6 + $0xcf8] sm:$0xff] }
 0x818   :  { %19189 = vmatpush3.bf16.msra.mxu0 %v19305_v57  ;;  %14821 = vmatprep.subr.bf16.mxu1 %v17290_v16  ;;  %v15265_v16 = vpack.c.bf16 %v15249_v29, %v15249_v29  ;;  %v673_v29 = vld [vmem:[#allocation6 + $0xf38] sm:$0xff] }
 0x819   :  { %v14517_v22 = vpop.f32.mrb[104].mxu1  ;;  %19190 = vmatprep.subr.bf16.mxu0 %v19306_v47  ;;  %v19314_v47 = vld [vmem:[#allocation9 + $0x148] sm:$0xff]  }
 0x81a   :  { %v14518_v60 = vadd.f32 %v14517_v22, %v20299_v45  ;;  %v14519_v56 = vpop.f32.mrb[105].mxu1  ;;  %v585_v45 = vld [vmem:[#allocation6 + $0xc78] sm:$0xff]  ;;  %v19316_v22 = vld [vmem:[#allocation9 + $0x150] sm:$0xff]  }
 0x81b   :  { %v14520_v3 = vadd.f32 %v14519_v56, %v20301_v13  ;;  %v14521_v36 = vpop.f32.mrb[106].mxu1  ;;  %14822 = vmatpush1.bf16.msra.mxu1 %v17289_v31  ;;  %v15238_v13 = vadd.f32 %v15176_v30, %v20157_v55  ;;  %v17338_v27 = vcombine.high %v577_v58, %v585_v45  ;;  %v17337_v57 = vcombine.low %v577_v58, %v585_v45  ;;  %v19317_v30 = vld [vmem:[#allocation9 + $0x110] sm:$0xff]   ;;  %v19318_v56 = vld [vmem:[#allocation9 + $0x158] sm:$0xff]   ;;  %v19321_v45 = vld [vmem:[#allocation9 + $0x120] sm:$0xff]  }
 0x81c   :  { %19191 = vmatpush3.bf16.msra.mxu0 %v19307_v32  ;;  %v14522_v2 = vpop.f32.mrb[107].mxu1  ;;  %14823 = vmatprep.subr.bf16.mxu1 %v17306_v26  ;;  %v20374_v11 = vadd.f32 %v20315_v19, %v14518_v60  ;;  %v19312_v19 = vld [vmem:[#allocation9 + $0x140] sm:$0xff]   ;;  %v17354_v55 = vcombine.high %v593_v4, %v601_v33  ;;  %v17353_v32 = vcombine.low %v593_v4, %v601_v33  ;;  %v19315_v26 = vld [vmem:[#allocation9 + $0x108] sm:$0xff]   ;;  %v20386_v33 = vld [vmem:[#allocation8 + $0x8] sm:$0xff] }
 0x81d   :  { %19192 = vmatprep.subr.bf16.mxu0 %v19308_v35  ;;  %v20378_v51 = vadd.f32 %v20317_v38, %v14520_v3  ;;  %v15254_v28 = vmax.f32 %v15238_v13, 0.0  ;;  %v19313_v38 = vld [vmem:[#allocation9 + $0x100] sm:$0xff]   ;;  %v625_v35 = vld [vmem:[#allocation6 + $0xdb8] sm:$0xff]  ;;  %v19319_v2 = vld [vmem:[#allocation9 + $0x118] sm:$0xff]  }
 0x81e   :  { %v17386_v60 = vcombine.high %v625_v35, %v633_v24  ;;  %v641_v3 = vld [vmem:[#allocation6 + $0xe38] sm:$0xff] }
 0x81f   :  { %14824 = vmatpush1.bf16.msra.mxu1 %v17305_v63  ;;  %v15270_v31 = vpack.c.bf16 %v15254_v28, %v15254_v28  ;;  %v649_v36 = vld [vmem:[#allocation6 + $0xe78] sm:$0xff]  ;;  %v17385_v63 = vcombine.low %v625_v35, %v633_v24  ;;  %v19326_v24 = vld [vmem:[#allocation9 + $0x178] sm:$0xff]  }
 0x820   :  { %19193 = vmatpush3.bf16.msra.mxu0 %v19309_v46  ;;  %14825 = vmatprep.subr.bf16.mxu1 %v17322_v6  ;;  %v17402_v46 = vcombine.high %v641_v3, %v649_v36  ;;  %v19320_v6 = vld [vmem:[#allocation9 + $0x160] sm:$0xff]   ;;  %v17401_v58 = vcombine.low %v641_v3, %v649_v36 }
 0x821   :  { %19194 = vmatprep.subr.bf16.mxu0 %v19310_v59  ;;  %v665_v59 = vld [vmem:[#allocation6 + $0xef8] sm:$0xff] }
 0x822   :  { %v17418_v13 = vcombine.high %v657_v41, %v665_v59 }
 0x823   :  { %14826 = vmatpush1.bf16.msra.mxu1 %v17321_v62  ;;  %v20381_v62 = vpop.f32.mrb[104].mxu0 }
 0x824   :  { %19195 = vmatpush3.bf16.msra.mxu0 %v19311_v21  ;;  %14827 = vmatprep.subr.bf16.mxu1 %v17338_v27  ;;  %v15171_v21 = vsub.s32 4, %v20345_v54  ;;  %v19322_v27 = vld [vmem:[#allocation9 + $0x168] sm:$0xff]   ;;  %v20384_v28 = vpop.f32.mrb[105].mxu0 }
 0x825   :  { %19224 = vmatprep.subr.bf16.mxu0 %v19312_v19  ;;  %v681_v19 = vld [vmem:[#allocation6 + $0xf78] sm:$0xff]  ;;  %v14808_v4 = vpop.f32.mrb[106].mxu0 }
 0x827   :  { %15833 = vmatmul.mubr.bf16.vlgmr.msra.gmra.mrb[120].mxu0 %v15265_v16  ;;  %14828 = vmatpush1.bf16.msra.mxu1 %v17337_v57  ;;  %v17417_v57 = vcombine.low %v657_v41, %v665_v59  ;;  %v19323_v16 = vld [vmem:[#allocation9 + $0x128] sm:$0xff]  }
 0x828   :  { %19225 = vmatpush3.bf16.msra.mxu0 %v19313_v38  ;;  %15912 = vmatprep.mubr.bf16.mxu0 %v15270_v31  ;;  %v14809_v38 = vpop.f32.mrb[107].mxu0  ;;  %v697_v31 = vld [vmem:[#allocation6 + $0xff8] sm:$0xff] }
 0x829   :  { %14829 = vmatprep.subr.bf16.mxu1 %v17354_v55  ;;  %19226 = vmatprep.subr.bf16.mxu0 %v19314_v47  ;;  %v17434_v55 = vcombine.high %v673_v29, %v681_v19  ;;  %v15172_v47 = vrot.slane %v20354_v42, %v15171_v21  ;;  %v19328_v41 = vld [vmem:[#allocation11] ss:$8 sps:$4 sm:$0xff]  }
 0x82a   :  { %v1009_v38 = vld [vmem:[#allocation6 + $0x19b8] sm:$0xff] }
 0x82b   :  { %14830 = vmatpush1.bf16.msra.mxu1 %v17353_v32  ;;  %v15192_v32 = vrot.slane %v20386_v33, %v20352_v1  ;;  %v15237_v35 = vadd.f32 %v15172_v47, %v20154_v53  ;;  %v19334_v47 = vld [vmem:[#allocation11 + $0x20] ss:$8 sps:$4 sm:$0xff]  }
 0x82c   :  { %19227 = vmatpush3.bf16.msra.mxu0 %v19315_v26  ;;  %14831 = vmatprep.subr.bf16.mxu1 %v17370_v20  ;;  %v17433_v26 = vcombine.low %v673_v29, %v681_v19  ;;  %v19325_v20 = vld [vmem:[#allocation9 + $0x130] sm:$0xff]  }
 0x82d   :  { %19228 = vmatprep.subr.bf16.mxu0 %v19316_v22  ;;  %v17450_v22 = vcombine.high %v689_v7, %v697_v31  ;;  %v15242_v42 = vadd.f32 %v15192_v32, %v20281_v18  ;;  %v15253_v36 = vmax.f32 %v15237_v35, 0.0  ;;  %v19331_v19 = vld [vmem:[#allocation11 + $0x10] ss:$8 sps:$4 sm:$0xff]   ;;  %v1041_v35 = vld [vmem:[#allocation6 + $0x1ab8] sm:$0xff] }
 0x82f   :  { %14832 = vmatpush1.bf16.msra.mxu1 %v17369_v49  ;;  %v961_v49 = vld [vmem:[#allocation6 + $0x1838] sm:$0xff]  ;;  %v15269_v59 = vpack.c.bf16 %v15253_v36, %v15253_v36  ;;  %v19343_v36 = vld [vmem:[#allocation11 + $0x50] ss:$8 sps:$4 sm:$0xff]  }
 0x830   :  { %19229 = vmatpush3.bf16.msra.mxu0 %v19317_v30  ;;  %14833 = vmatprep.subr.bf16.mxu1 %v17386_v60  ;;  %v969_v30 = vld [vmem:[#allocation6 + $0x1878] sm:$0xff]  ;;  %v17449_v60 = vcombine.low %v689_v7, %v697_v31 }
 0x831   :  { %19230 = vmatprep.subr.bf16.mxu0 %v19318_v56  ;;  %v19327_v56 = vld [vmem:[#allocation9 + $0x138] sm:$0xff]   ;;  %v17722_v3 = vcombine.high %v961_v49, %v969_v30  ;;  %v17721_v53 = vcombine.low %v961_v49, %v969_v30  ;;  %v1025_v7 = vld [vmem:[#allocation6 + $0x1a38] sm:$0xff] }
 0x832   :  { %v1033_v31 = vld [vmem:[#allocation6 + $0x1a78] sm:$0xff] }
 0x833   :  { %14834 = vmatpush1.bf16.msra.mxu1 %v17385_v63  ;;  %v19330_v63 = vld [vmem:[#allocation11 + $0x4] ss:$8 sps:$4 sm:$0xff]   ;;  %v19340_v49 = vld [vmem:[#allocation11 + $0x40] ss:$8 sps:$4 sm:$0xff]  }
 0x834   :  { %19231 = vmatpush3.bf16.msra.mxu0 %v19319_v2  ;;  %14835 = vmatprep.subr.bf16.mxu1 %v17402_v46  ;;  %v15258_v2 = vmax.f32 %v15242_v42, 0.0  ;;  %v977_v46 = vld [vmem:[#allocation6 + $0x18b8] sm:$0xff]  ;;  %v19345_v42 = vld [vmem:[#allocation11 + $0x54] ss:$8 sps:$4 sm:$0xff]  }
 0x835   :  { %19232 = vmatprep.subr.bf16.mxu0 %v19320_v6  ;;  %v985_v6 = vld [vmem:[#allocation6 + $0x18f8] sm:$0xff] }
 0x836   :  { %v17738_v18 = vcombine.high %v977_v46, %v985_v6  ;;  %v17737_v29 = vcombine.low %v977_v46, %v985_v6  ;;  %v19348_v46 = vld [vmem:[#allocation11 + $0x64] ss:$8 sps:$4 sm:$0xff]  }
 0x837   :  { %14836 = vmatpush1.bf16.msra.mxu1 %v17401_v58  ;;  %v19333_v58 = vld [vmem:[#allocation11 + $0x14] ss:$8 sps:$4 sm:$0xff]   ;;  %v1073_v6 = vld [vmem:[#allocation6 + $0x1bb8] sm:$0xff] }
 0x838   :  { %19233 = vmatpush3.bf16.msra.mxu0 %v19321_v45  ;;  %14837 = vmatprep.subr.bf16.mxu1 %v17418_v13  ;;  %v993_v45 = vld [vmem:[#allocation6 + $0x1938] sm:$0xff] }
 0x839   :  { %19234 = vmatprep.subr.bf16.mxu0 %v19322_v27  ;;  %v1001_v13 = vld [vmem:[#allocation6 + $0x1978] sm:$0xff]  ;;  %v15274_v27 = vpack.c.bf16 %v15258_v2, %v15258_v2 }
 0x83a   :  { %v17754_v4 = vcombine.high %v993_v45, %v1001_v13 }
 0x83b   :  { %14838 = vmatpush1.bf16.msra.mxu1 %v17417_v57  ;;  %v19336_v57 = vld [vmem:[#allocation11 + $0x24] ss:$8 sps:$4 sm:$0xff]  }
 0x83c   :  { %19235 = vmatpush3.bf16.msra.mxu0 %v19323_v16  ;;  %14839 = vmatprep.subr.bf16.mxu1 %v17434_v55  ;;  %v1017_v16 = vld [vmem:[#allocation6 + $0x19f8] sm:$0xff]  ;;  %v17753_v55 = vcombine.low %v993_v45, %v1001_v13 }
 0x83d   :  { %19236 = vmatprep.subr.bf16.mxu0 %v19324_v0  ;;  %v19339_v0 = vld [vmem:[#allocation11 + $0x34] ss:$8 sps:$4 sm:$0xff]   ;;  %v17769_v32 = vcombine.low %v1009_v38, %v1017_v16 }
 0x83f   :  { %14840 = vmatpush1.bf16.msra.mxu1 %v17433_v26  ;;  %v19337_v26 = vld [vmem:[#allocation11 + $0x30] ss:$8 sps:$4 sm:$0xff]  }
 0x840   :  { %19237 = vmatpush3.bf16.msra.mxu0 %v19325_v20  ;;  %14841 = vmatprep.subr.bf16.mxu1 %v17450_v22  ;;  %v17786_v20 = vcombine.high %v1025_v7, %v1033_v31  ;;  %v19342_v22 = vld [vmem:[#allocation11 + $0x44] ss:$8 sps:$4 sm:$0xff]  }
 0x841   :  { %19238 = vmatprep.subr.bf16.mxu0 %v19326_v24  ;;  %v17785_v24 = vcombine.low %v1025_v7, %v1033_v31  ;;  %v19352_v7 = vld [vmem:[#allocation11 + $0x80] ss:$8 sps:$4 sm:$0xff]  }
 0x843   :  { %14842 = vmatpush1.bf16.msra.mxu1 %v17449_v60  ;;  %v1057_v60 = vld [vmem:[#allocation6 + $0x1b38] sm:$0xff] }
 0x844   :  { %19239 = vmatpush3.bf16.msra.mxu0 %v19327_v56  ;;  %14893 = vmatprep.subr.bf16.mxu1 %v17722_v3  ;;  %v1065_v56 = vld [vmem:[#allocation6 + $0x1b78] sm:$0xff] }
 0x845   :  { %16741 = vmatprep.subr.bf16.mxu0 %v19330_v63  ;;  %v17818_v63 = vcombine.high %v1057_v60, %v1065_v56  ;;  %v17817_v45 = vcombine.low %v1057_v60, %v1065_v56 }
 0x846   :  { %14844 = vmatmul.mubr.bf16.vlgmr.msra.gmra.mrb[120].mxu1 %v19925_v39  ;;  %v17770_v39 = vcombine.high %v1009_v38, %v1017_v16  ;;  %v1097_v38 = vld [vmem:[#allocation6 + $0x1c78] sm:$0xff]  ;;  %v19349_v16 = vld [vmem:[#allocation11 + $0x70] ss:$8 sps:$4 sm:$0xff]  }
 0x847   :  { %15913 = vmatmul.mubr.bf16.vlgmr.msra.gmra.mrb[124].mxu0 %v15269_v59  ;;  %14894 = vmatpush1.bf16.msra.mxu1 %v17721_v53  ;;  %v1081_v53 = vld [vmem:[#allocation6 + $0x1bf8] sm:$0xff] }
 0x848   :  { %16742 = vmatpush1.bf16.msra.mxu0 %v19328_v41  ;;  %16773 = vmatprep.mubr.bf16.mxu0 %v15274_v27  ;;  %v19346_v27 = vld [vmem:[#allocation11 + $0x60] ss:$8 sps:$4 sm:$0xff]  }
 0x849   :  { %14895 = vmatprep.subr.bf16.mxu1 %v17738_v18  ;;  %16743 = vmatprep.subr.bf16.mxu0 %v19333_v58 }
 0x84a   :  { %14925 = vmatprep.mubr.bf16.mxu1 %v19937_v9  ;;  %v1049_v9 = vld [vmem:[#allocation6 + $0x1af8] sm:$0xff] }
 0x84b   :  { %14896 = vmatpush1.bf16.msra.mxu1 %v17737_v29  ;;  %v17802_v30 = vcombine.high %v1041_v35, %v1049_v9  ;;  %v17801_v3 = vcombine.low %v1041_v35, %v1049_v9  ;;  %v17834_v29 = vcombine.high %v1073_v6, %v1081_v53  ;;  %v19360_v9 = vld [vmem:[#allocation11 + $0xa4] ss:$8 sps:$4 sm:$0xff]  }
 0x84c   :  { %16744 = vmatpush1.bf16.msra.mxu0 %v19331_v19  ;;  %14897 = vmatprep.subr.bf16.mxu1 %v17754_v4  ;;  %v19351_v4 = vld [vmem:[#allocation11 + $0x74] ss:$8 sps:$4 sm:$0xff]  }
 0x84d   :  { %16745 = vmatprep.subr.bf16.mxu0 %v19336_v57  ;;  %v1089_v57 = vld [vmem:[#allocation6 + $0x1c38] sm:$0xff] }
 0x84f   :  { %14898 = vmatpush1.bf16.msra.mxu1 %v17753_v55  ;;  %v17850_v55 = vcombine.high %v1089_v57, %v1097_v38 }
 0x850   :  { %16746 = vmatpush1.bf16.msra.mxu0 %v19334_v47  ;;  %14899 = vmatprep.subr.bf16.mxu1 %v17770_v39  ;;  %v19354_v47 = vld [vmem:[#allocation11 + $0x84] ss:$8 sps:$4 sm:$0xff]  }
 0x851   :  { %16747 = vmatprep.subr.bf16.mxu0 %v19339_v0  ;;  %v1105_v39 = vld [vmem:[#allocation6 + $0x1cb8] sm:$0xff] }
 0x852   :  { %v1113_v0 = vld [vmem:[#allocation6 + $0x1cf8] sm:$0xff] }
 0x853   :  { %14900 = vmatpush1.bf16.msra.mxu1 %v17769_v32  ;;  %v17866_v31 = vcombine.high %v1105_v39, %v1113_v0  ;;  %v19357_v32 = vld [vmem:[#allocation11 + $0x94] ss:$8 sps:$4 sm:$0xff]  }
 0x854   :  { %16748 = vmatpush1.bf16.msra.mxu0 %v19337_v26  ;;  %14901 = vmatprep.subr.bf16.mxu1 %v17786_v20  ;;  %v1129_v26 = vld [vmem:[#allocation6 + $0x1d78] sm:$0xff]  ;;  %v17865_v20 = vcombine.low %v1105_v39, %v1113_v0  ;;  %v15188_v39 = vrot.slane %v20386_v33, %v20363_v17 }
 0x855   :  { %16749 = vmatprep.subr.bf16.mxu0 %v19342_v22  ;;  %v19355_v22 = vld [vmem:[#allocation11 + $0x90] ss:$8 sps:$4 sm:$0xff]   ;;  %v19372_v0 = vld [vmem:[#allocation11 + $0xe4] ss:$8 sps:$4 sm:$0xff]  }
 0x857   :  { %14902 = vmatpush1.bf16.msra.mxu1 %v17785_v24  ;;  %v1137_v24 = vld [vmem:[#allocation6 + $0x1db8] sm:$0xff] }
 0x858   :  { %16750 = vmatpush1.bf16.msra.mxu0 %v19340_v49  ;;  %14903 = vmatprep.subr.bf16.mxu1 %v17802_v30  ;;  %v1145_v49 = vld [vmem:[#allocation6 + $0x1df8] sm:$0xff] }
 0x859   :  { %v14599_v2 = vpop.f32.mrb[108].mxu1  ;;  %16751 = vmatprep.subr.bf16.mxu0 %v19345_v42  ;;  %v19358_v42 = vld [vmem:[#allocation11 + $0xa0] ss:$8 sps:$4 sm:$0xff]   ;;  %v17898_v60 = vcombine.high %v1137_v24, %v1145_v49 }
 0x85a   :  { %v14600_v41 = vadd.f32 %v14599_v2, %v20374_v11  ;;  %v14601_v59 = vpop.f32.mrb[109].mxu1  ;;  %v20405_v56 = vpop.f32.mrb[108].mxu0 }
 0x85b   :  { %v14602_v18 = vadd.f32 %v14601_v59, %v20378_v51  ;;  %v14603_v58 = vpop.f32.mrb[110].mxu1  ;;  %14904 = vmatpush1.bf16.msra.mxu1 %v17801_v3  ;;  %v17833_v51 = vcombine.low %v1073_v6, %v1081_v53  ;;  %v19363_v3 = vld [vmem:[#allocation11 + $0xb4] ss:$8 sps:$4 sm:$0xff]   ;;  %v20407_v2 = vpop.f32.mrb[109].mxu0  ;;  %v17897_v6 = vcombine.low %v1137_v24, %v1145_v49 }
 0x85c   :  { %16752 = vmatpush1.bf16.msra.mxu0 %v19343_v36  ;;  %v14604_v13 = vpop.f32.mrb[111].mxu1  ;;  %14905 = vmatprep.subr.bf16.mxu1 %v17818_v63  ;;  %v20400_v19 = vadd.f32 %v20331_v43, %v14600_v41  ;;  %v17849_v43 = vcombine.low %v1089_v57, %v1097_v38  ;;  %v1153_v36 = vld [vmem:[#allocation6 + $0x1e38] sm:$0xff]  ;;  %v19361_v41 = vld [vmem:[#allocation11 + $0xb0] ss:$8 sps:$4 sm:$0xff]  }
 0x85d   :  { %16753 = vmatprep.subr.bf16.mxu0 %v19348_v46  ;;  %v20403_v11 = vadd.f32 %v20333_v12, %v14602_v18  ;;  %v1121_v12 = vld [vmem:[#allocation6 + $0x1d38] sm:$0xff]  ;;  %v14890_v46 = vpop.f32.mrb[110].mxu0 }
 0x85e   :  { %v17882_v35 = vcombine.high %v1121_v12, %v1129_v26  ;;  %v17881_v30 = vcombine.low %v1121_v12, %v1129_v26  ;;  %v1161_v63 = vld [vmem:[#allocation6 + $0x1e78] sm:$0xff]  ;;  %v14891_v53 = vpop.f32.mrb[111].mxu0 }
 0x85f   :  { %14906 = vmatpush1.bf16.msra.mxu1 %v17817_v45  ;;  %v17914_v59 = vcombine.high %v1153_v36, %v1161_v63  ;;  %v19366_v18 = vld [vmem:[#allocation11 + $0xc4] ss:$8 sps:$4 sm:$0xff]   ;;  %v17913_v13 = vcombine.low %v1153_v36, %v1161_v63  ;;  %v19370_v12 = vld [vmem:[#allocation11 + $0xe0] ss:$8 sps:$4 sm:$0xff]  }
 0x860   :  { %16754 = vmatpush1.bf16.msra.mxu0 %v19346_v27  ;;  %14907 = vmatprep.subr.bf16.mxu1 %v17834_v29  ;;  %v1169_v58 = vld [vmem:[#allocation6 + $0x1eb8] sm:$0xff] }
 0x861   :  { %16755 = vmatprep.subr.bf16.mxu0 %v19351_v4  ;;  %v1177_v45 = vld [vmem:[#allocation6 + $0x1ef8] sm:$0xff]  ;;  %v19369_v4 = vld [vmem:[#allocation11 + $0xd4] ss:$8 sps:$4 sm:$0xff]  }
 0x862   :  { %v19364_v27 = vld [vmem:[#allocation11 + $0xc0] ss:$8 sps:$4 sm:$0xff]   ;;  %v17930_v29 = vcombine.high %v1169_v58, %v1177_v45 }
 0x863   :  { %14908 = vmatpush1.bf16.msra.mxu1 %v17833_v51  ;;  %v1185_v57 = vld [vmem:[#allocation6 + $0x1f38] sm:$0xff]  ;;  %v17929_v51 = vcombine.low %v1169_v58, %v1177_v45 }
 0x864   :  { %16756 = vmatpush1.bf16.msra.mxu0 %v19349_v16  ;;  %14909 = vmatprep.subr.bf16.mxu1 %v17850_v55  ;;  %v1193_v38 = vld [vmem:[#allocation6 + $0x1f78] sm:$0xff]  ;;  %v15167_v16 = vsub.s32 3, %v20345_v54  ;;  %v19367_v55 = vld [vmem:[#allocation11 + $0xd0] ss:$8 sps:$4 sm:$0xff]  }
 0x865   :  { %16757 = vmatprep.subr.bf16.mxu0 %v19354_v47  ;;  %v17946_v47 = vcombine.high %v1185_v57, %v1193_v38  ;;  %v1489_v63 = vld [vmem:[#allocation6 + $0x28b8] sm:$0xff] }
 0x866   :  { %v1497_v46 = vld [vmem:[#allocation6 + $0x28f8] sm:$0xff] }
 0x867   :  { %14910 = vmatpush1.bf16.msra.mxu1 %v17849_v43  ;;  %v1201_v43 = vld [vmem:[#allocation6 + $0x1fb8] sm:$0xff]  ;;  %v18249_v45 = vcombine.low %v1489_v63, %v1497_v46 }
 0x868   :  { %16758 = vmatpush1.bf16.msra.mxu0 %v19352_v7  ;;  %14911 = vmatprep.subr.bf16.mxu1 %v17866_v31  ;;  %v1209_v7 = vld [vmem:[#allocation6 + $0x1ff8] sm:$0xff]  ;;  %v15200_v31 = vrot.slane %v20386_v33, %v15167_v16 }
 0x869   :  { %16759 = vmatprep.subr.bf16.mxu0 %v19357_v32  ;;  %v17945_v32 = vcombine.low %v1185_v57, %v1193_v38  ;;  %v17962_v26 = vcombine.high %v1201_v43, %v1209_v7  ;;  %v17961_v49 = vcombine.low %v1201_v43, %v1209_v7  ;;  %v1529_v57 = vld [vmem:[#allocation6 + $0x29f8] sm:$0xff]  ;;  %v19385_v43 = vld [vmem:[#allocation11 + $0x130] ss:$8 sps:$4 sm:$0xff]  }
 0x86a   :  { %v15244_v24 = vadd.f32 %v15200_v31, %v20343_v40  ;;  %v18250_v40 = vcombine.high %v1489_v63, %v1497_v46  ;;  %v19390_v31 = vld [vmem:[#allocation11 + $0x144] ss:$8 sps:$4 sm:$0xff]  }
 0x86b   :  { %14912 = vmatpush1.bf16.msra.mxu1 %v17865_v20  ;;  %v15241_v20 = vadd.f32 %v15188_v39, %v20278_v48  ;;  %v1545_v39 = vld [vmem:[#allocation6 + $0x2a78] sm:$0xff] }
 0x86c   :  { %16760 = vmatpush1.bf16.msra.mxu0 %v19355_v22  ;;  %14913 = vmatprep.subr.bf16.mxu1 %v17882_v35  ;;  %v19375_v22 = vld [vmem:[#allocation11 + $0xf4] ss:$8 sps:$4 sm:$0xff]   ;;  %v1473_v35 = vld [vmem:[#allocation6 + $0x2838] sm:$0xff]  ;;  %v15260_v36 = vmax.f32 %v15244_v24, 0.0 }
 0x86d   :  { %16761 = vmatprep.subr.bf16.mxu0 %v19360_v9  ;;  %v1481_v9 = vld [vmem:[#allocation6 + $0x2878] sm:$0xff] }
 0x86e   :  { %v18233_v48 = vcombine.low %v1473_v35, %v1481_v9  ;;  %v15276_v58 = vpack.c.bf16 %v15260_v36, %v15260_v36  ;;  %v1593_v36 = vld [vmem:[#allocation6 + $0x2bf8] sm:$0xff] }
 0x86f   :  { %14914 = vmatpush1.bf16.msra.mxu1 %v17881_v30  ;;  %v19373_v30 = vld [vmem:[#allocation11 + $0xf0] ss:$8 sps:$4 sm:$0xff]  }
 0x870   :  { %16762 = vmatpush1.bf16.msra.mxu0 %v19358_v42  ;;  %14915 = vmatprep.subr.bf16.mxu1 %v17898_v60  ;;  %v18234_v42 = vcombine.high %v1473_v35, %v1481_v9  ;;  %v15257_v60 = vmax.f32 %v15241_v20, 0.0  ;;  %v1569_v35 = vld [vmem:[#allocation6 + $0x2b38] sm:$0xff] }
 0x871   :  { %16763 = vmatprep.subr.bf16.mxu0 %v19363_v3  ;;  %v19378_v3 = vld [vmem:[#allocation11 + $0x104] ss:$8 sps:$4 sm:$0xff]  }
 0x872   :  { %v15273_v53 = vpack.c.bf16 %v15257_v60, %v15257_v60  ;;  %v1577_v9 = vld [vmem:[#allocation6 + $0x2b78] sm:$0xff] }
 0x873   :  { %14916 = vmatpush1.bf16.msra.mxu1 %v17897_v6  ;;  %v19376_v6 = vld [vmem:[#allocation11 + $0x100] ss:$8 sps:$4 sm:$0xff]   ;;  %v19396_v60 = vld [vmem:[#allocation11 + $0x164] ss:$8 sps:$4 sm:$0xff]  }
 0x874   :  { %16764 = vmatpush1.bf16.msra.mxu0 %v19361_v41  ;;  %14917 = vmatprep.subr.bf16.mxu1 %v17914_v59  ;;  %v19381_v41 = vld [vmem:[#allocation11 + $0x114] ss:$8 sps:$4 sm:$0xff]   ;;  %v1505_v59 = vld [vmem:[#allocation6 + $0x2938] sm:$0xff] }
 0x875   :  { %16765 = vmatprep.subr.bf16.mxu0 %v19366_v18  ;;  %v1513_v18 = vld [vmem:[#allocation6 + $0x2978] sm:$0xff] }
 0x876   :  { %v18265_v38 = vcombine.low %v1505_v59, %v1513_v18 }
 0x877   :  { %14918 = vmatpush1.bf16.msra.mxu1 %v17913_v13  ;;  %v19379_v13 = vld [vmem:[#allocation11 + $0x110] ss:$8 sps:$4 sm:$0xff]  }
 0x878   :  { %16766 = vmatpush1.bf16.msra.mxu0 %v19364_v27  ;;  %14919 = vmatprep.subr.bf16.mxu1 %v17930_v29  ;;  %v18266_v27 = vcombine.high %v1505_v59, %v1513_v18  ;;  %v19384_v29 = vld [vmem:[#allocation11 + $0x124] ss:$8 sps:$4 sm:$0xff]   ;;  %v19394_v18 = vld [vmem:[#allocation11 + $0x160] ss:$8 sps:$4 sm:$0xff]  }
 0x879   :  { %16767 = vmatprep.subr.bf16.mxu0 %v19369_v4  ;;  %v1521_v4 = vld [vmem:[#allocation6 + $0x29b8] sm:$0xff] }
 0x87b   :  { %14920 = vmatpush1.bf16.msra.mxu1 %v17929_v51  ;;  %v19382_v51 = vld [vmem:[#allocation11 + $0x120] ss:$8 sps:$4 sm:$0xff]  }
 0x87c   :  { %16768 = vmatpush1.bf16.msra.mxu0 %v19367_v55  ;;  %14921 = vmatprep.subr.bf16.mxu1 %v17946_v47  ;;  %v19387_v55 = vld [vmem:[#allocation11 + $0x134] ss:$8 sps:$4 sm:$0xff]   ;;  %v1537_v47 = vld [vmem:[#allocation6 + $0x2a38] sm:$0xff] }
 0x87d   :  { %16769 = vmatprep.subr.bf16.mxu0 %v19372_v0  ;;  %v18281_v0 = vcombine.low %v1521_v4, %v1529_v57  ;;  %v18298_v7 = vcombine.high %v1537_v47, %v1545_v39 }
 0x87f   :  { %14922 = vmatpush1.bf16.msra.mxu1 %v17945_v32  ;;  %v1553_v32 = vld [vmem:[#allocation6 + $0x2ab8] sm:$0xff] }
 0x880   :  { %16770 = vmatpush1.bf16.msra.mxu0 %v19370_v12  ;;  %14923 = vmatprep.subr.bf16.mxu1 %v17962_v26  ;;  %v18297_v12 = vcombine.low %v1537_v47, %v1545_v39  ;;  %v19388_v26 = vld [vmem:[#allocation11 + $0x140] ss:$8 sps:$4 sm:$0xff]  }
 0x881   :  { %16771 = vmatprep.subr.bf16.mxu0 %v19375_v22  ;;  %v19393_v22 = vld [vmem:[#allocation11 + $0x154] ss:$8 sps:$4 sm:$0xff]   ;;  %v19400_v39 = vld [vmem:[#allocation11 + $0x180] ss:$8 sps:$4 sm:$0xff]  }
 0x883   :  { %14924 = vmatpush1.bf16.msra.mxu1 %v17961_v49  ;;  %v19391_v49 = vld [vmem:[#allocation11 + $0x150] ss:$8 sps:$4 sm:$0xff]  }
 0x884   :  { %16772 = vmatpush1.bf16.msra.mxu0 %v19373_v30  ;;  %14975 = vmatprep.subr.bf16.mxu1 %v18234_v42  ;;  %v18330_v30 = vcombine.high %v1569_v35, %v1577_v9 }
 0x885   :  { %16782 = vmatprep.subr.bf16.mxu0 %v19378_v3  ;;  %v1585_v3 = vld [vmem:[#allocation6 + $0x2bb8] sm:$0xff] }
 0x886   :  { %14926 = vmatmul.mubr.bf16.vlgmr.msra.gmra.mrb[124].mxu1 %v19943_v25  ;;  %v18282_v25 = vcombine.high %v1521_v4, %v1529_v57  ;;  %v18345_v57 = vcombine.low %v1585_v3, %v1593_v36 }
 0x887   :  { %16774 = vmatmul.mubr.bf16.vlgmr.msra.gmra.mrb[128].mxu0 %v15273_v53  ;;  %14976 = vmatpush1.bf16.msra.mxu1 %v18233_v48 }
 0x888   :  { %16783 = vmatpush1.bf16.msra.mxu0 %v19376_v6  ;;  %16814 = vmatprep.mubr.bf16.mxu0 %v15276_v58  ;;  %v18346_v58 = vcombine.high %v1585_v3, %v1593_v36  ;;  %v19414_v36 = vld [vmem:[#allocation11 + $0x1c4] ss:$8 sps:$4 sm:$0xff]  }
 0x889   :  { %14977 = vmatprep.subr.bf16.mxu1 %v18250_v40  ;;  %16784 = vmatprep.subr.bf16.mxu0 %v19381_v41  ;;  %v18329_v40 = vcombine.low %v1569_v35, %v1577_v9  ;;  %v19406_v35 = vld [vmem:[#allocation11 + $0x1a0] ss:$8 sps:$4 sm:$0xff]  }
 0x88a   :  { %15007 = vmatprep.mubr.bf16.mxu1 %v19945_v37  ;;  %v1561_v37 = vld [vmem:[#allocation6 + $0x2af8] sm:$0xff] }
 0x88b   :  { %14978 = vmatpush1.bf16.msra.mxu1 %v18249_v45  ;;  %v18314_v20 = vcombine.high %v1553_v32, %v1561_v37  ;;  %v18313_v24 = vcombine.low %v1553_v32, %v1561_v37  ;;  %v19403_v32 = vld [vmem:[#allocation11 + $0x190] ss:$8 sps:$4 sm:$0xff]  }
 0x88c   :  { %16785 = vmatpush1.bf16.msra.mxu0 %v19379_v13  ;;  %14979 = vmatprep.subr.bf16.mxu1 %v18266_v27  ;;  %v1601_v27 = vld [vmem:[#allocation6 + $0x2c38] sm:$0xff] }
 0x88d   :  { %16786 = vmatprep.subr.bf16.mxu0 %v19384_v29  ;;  %v1609_v29 = vld [vmem:[#allocation6 + $0x2c78] sm:$0xff] }
 0x88e   :  { %v18361_v47 = vcombine.low %v1601_v27, %v1609_v29 }
 0x88f   :  { %14980 = vmatpush1.bf16.msra.mxu1 %v18265_v38  ;;  %v19397_v38 = vld [vmem:[#allocation11 + $0x170] ss:$8 sps:$4 sm:$0xff]  }
 0x890   :  { %16787 = vmatpush1.bf16.msra.mxu0 %v19382_v51  ;;  %14981 = vmatprep.subr.bf16.mxu1 %v18282_v25  ;;  %v18362_v51 = vcombine.high %v1601_v27, %v1609_v29  ;;  %v19402_v25 = vld [vmem:[#allocation11 + $0x184] ss:$8 sps:$4 sm:$0xff]   ;;  %v19415_v27 = vld [vmem:[#allocation11 + $0x1d0] ss:$8 sps:$4 sm:$0xff]  }
 0x891   :  { %16788 = vmatprep.subr.bf16.mxu0 %v19387_v55  ;;  %v1617_v55 = vld [vmem:[#allocation6 + $0x2cb8] sm:$0xff] }
 0x893   :  { %14982 = vmatpush1.bf16.msra.mxu1 %v18281_v0 }
 0x894   :  { %16789 = vmatpush1.bf16.msra.mxu0 %v19385_v43  ;;  %14983 = vmatprep.subr.bf16.mxu1 %v18298_v7  ;;  %v1633_v43 = vld [vmem:[#allocation6 + $0x2d38] sm:$0xff] }
 0x895   :  { %16790 = vmatprep.subr.bf16.mxu0 %v19390_v31  ;;  %v1641_v7 = vld [vmem:[#allocation6 + $0x2d78] sm:$0xff] }
 0x896   :  { %v18394_v37 = vcombine.high %v1633_v43, %v1641_v7 }
 0x897   :  { %14984 = vmatpush1.bf16.msra.mxu1 %v18297_v12  ;;  %v19408_v12 = vld [vmem:[#allocation11 + $0x1a4] ss:$8 sps:$4 sm:$0xff]  }
 0x898   :  { %16791 = vmatpush1.bf16.msra.mxu0 %v19388_v26  ;;  %14985 = vmatprep.subr.bf16.mxu1 %v18314_v20  ;;  %v1649_v26 = vld [vmem:[#allocation6 + $0x2db8] sm:$0xff] }
 0x899   :  { %v14681_v42 = vpop.f32.mrb[112].mxu1  ;;  %16792 = vmatprep.subr.bf16.mxu0 %v19393_v22  ;;  %v1657_v20 = vld [vmem:[#allocation6 + $0x2df8] sm:$0xff]  ;;  %v18393_v22 = vcombine.low %v1633_v43, %v1641_v7  ;;  %v19421_v7 = vld [vmem:[#allocation11 + $0x1f0] ss:$8 sps:$4 sm:$0xff]  }
 0x89a   :  { %v14682_v63 = vadd.f32 %v14681_v42, %v20400_v19  ;;  %v14683_v46 = vpop.f32.mrb[113].mxu1  ;;  %v20420_v48 = vpop.f32.mrb[112].mxu0  ;;  %v19399_v19 = vld [vmem:[#allocation11 + $0x174] ss:$8 sps:$4 sm:$0xff]   ;;  %v18410_v9 = vcombine.high %v1649_v26, %v1657_v20  ;;  %v18409_v42 = vcombine.low %v1649_v26, %v1657_v20  ;;  %v2009_v26 = vld [vmem:[#allocation6 + $0x38f8] sm:$0xff] }
 0x89b   :  { %v14684_v6 = vadd.f32 %v14683_v46, %v20403_v11  ;;  %v14685_v53 = vpop.f32.mrb[114].mxu1  ;;  %14986 = vmatpush1.bf16.msra.mxu1 %v18313_v24  ;;  %v20423_v41 = vpop.f32.mrb[113].mxu0  ;;  %v19411_v24 = vld [vmem:[#allocation11 + $0x1b4] ss:$8 sps:$4 sm:$0xff]   ;;  %v1689_v46 = vld [vmem:[#allocation6 + $0x2ef8] sm:$0xff] }
 0x89c   :  { %16793 = vmatpush1.bf16.msra.mxu0 %v19391_v49  ;;  %v14686_v59 = vpop.f32.mrb[115].mxu1  ;;  %14987 = vmatprep.subr.bf16.mxu1 %v18330_v30  ;;  %v20426_v45 = vadd.f32 %v20347_v52, %v14682_v63  ;;  %v14972_v13 = vpop.f32.mrb[114].mxu0  ;;  %v1625_v52 = vld [vmem:[#allocation6 + $0x2cf8] sm:$0xff] }
 0x89d   :  { %16794 = vmatprep.subr.bf16.mxu0 %v19396_v60  ;;  %v20429_v11 = vadd.f32 %v20349_v61, %v14684_v6  ;;  %v14973_v4 = vpop.f32.mrb[115].mxu0  ;;  %v18378_v0 = vcombine.high %v1617_v55, %v1625_v52  ;;  %v19405_v61 = vld [vmem:[#allocation11 + $0x194] ss:$8 sps:$4 sm:$0xff]   ;;  %v18377_v31 = vcombine.low %v1617_v55, %v1625_v52  ;;  %v1665_v49 = vld [vmem:[#allocation6 + $0x2e38] sm:$0xff]  ;;  %v19409_v60 = vld [vmem:[#allocation11 + $0x1b0] ss:$8 sps:$4 sm:$0xff]  }
 0x89e   :  { %v1673_v30 = vld [vmem:[#allocation6 + $0x2e78] sm:$0xff]  ;;  %v19417_v59 = vld [vmem:[#allocation11 + $0x1d4] ss:$8 sps:$4 sm:$0xff]   ;;  %v15163_v13 = vsub.s32 2, %v20345_v54 }
 0x89f   :  { %14988 = vmatpush1.bf16.msra.mxu1 %v18329_v40  ;;  %v18426_v3 = vcombine.high %v1665_v49, %v1673_v30  ;;  %v1681_v63 = vld [vmem:[#allocation6 + $0x2eb8] sm:$0xff]  ;;  %v18425_v6 = vcombine.low %v1665_v49, %v1673_v30 }
 0x8a0   :  { %16795 = vmatpush1.bf16.msra.mxu0 %v19394_v18  ;;  %14989 = vmatprep.subr.bf16.mxu1 %v18346_v58  ;;  %v19412_v53 = vld [vmem:[#allocation11 + $0x1c0] ss:$8 sps:$4 sm:$0xff]   ;;  %v18442_v40 = vcombine.high %v1681_v63, %v1689_v46  ;;  %v15196_v4 = vrot.slane %v20386_v33, %v15163_v13 }
 0x8a1   :  { %16796 = vmatprep.subr.bf16.mxu0 %v19399_v19  ;;  %v1697_v18 = vld [vmem:[#allocation6 + $0x2f38] sm:$0xff]  ;;  %v18441_v19 = vcombine.low %v1681_v63, %v1689_v46 }
 0x8a2   :  { %v1705_v58 = vld [vmem:[#allocation6 + $0x2f78] sm:$0xff] }
 0x8a3   :  { %14990 = vmatpush1.bf16.msra.mxu1 %v18345_v57  ;;  %v18458_v29 = vcombine.high %v1697_v18, %v1705_v58  ;;  %v19420_v57 = vld [vmem:[#allocation11 + $0x1e4] ss:$8 sps:$4 sm:$0xff]   ;;  %v19418_v55 = vld [vmem:[#allocation11 + $0x1e0] ss:$8 sps:$4 sm:$0xff]  }
 0x8a4   :  { %16797 = vmatpush1.bf16.msra.mxu0 %v19397_v38  ;;  %14991 = vmatprep.subr.bf16.mxu1 %v18362_v51  ;;  %v1713_v38 = vld [vmem:[#allocation6 + $0x2fb8] sm:$0xff] }
 0x8a5   :  { %16798 = vmatprep.subr.bf16.mxu0 %v19402_v25  ;;  %v1721_v51 = vld [vmem:[#allocation6 + $0x2ff8] sm:$0xff]  ;;  %v18457_v25 = vcombine.low %v1697_v18, %v1705_v58  ;;  %v19433_v58 = vld [vmem:[#allocation11 + $0x230] ss:$8 sps:$4 sm:$0xff]  }
 0x8a6   :  { %v18474_v52 = vcombine.high %v1713_v38, %v1721_v51  ;;  %v18473_v43 = vcombine.low %v1713_v38, %v1721_v51  ;;  %v2025_v49 = vld [vmem:[#allocation6 + $0x3978] sm:$0xff]  ;;  %v19441_v51 = vld [vmem:[#allocation11 + $0x254] ss:$8 sps:$4 sm:$0xff]  }
 0x8a7   :  { %14992 = vmatpush1.bf16.msra.mxu1 %v18361_v47  ;;  %v15243_v47 = vadd.f32 %v15196_v4, %v20340_v8  ;;  %v19424_v8 = vld [vmem:[#allocation11 + $0x200] ss:$8 sps:$4 sm:$0xff]  }
 0x8a8   :  { %16799 = vmatpush1.bf16.msra.mxu0 %v19400_v39  ;;  %14993 = vmatprep.subr.bf16.mxu1 %v18378_v0  ;;  %v19423_v39 = vld [vmem:[#allocation11 + $0x1f4] ss:$8 sps:$4 sm:$0xff]   ;;  %v1985_v0 = vld [vmem:[#allocation6 + $0x3838] sm:$0xff] }
 0x8a9   :  { %16800 = vmatprep.subr.bf16.mxu0 %v19405_v61  ;;  %v1993_v61 = vld [vmem:[#allocation6 + $0x3878] sm:$0xff] }
 0x8aa   :  { %v18745_v20 = vcombine.low %v1985_v0, %v1993_v61  ;;  %v2041_v63 = vld [vmem:[#allocation6 + $0x39f8] sm:$0xff] }
 0x8ab   :  { %14994 = vmatpush1.bf16.msra.mxu1 %v18377_v31  ;;  %v18746_v31 = vcombine.high %v1985_v0, %v1993_v61  ;;  %v15208_v61 = vrot.slane %v20386_v33, %v15175_v50  ;;  %v19442_v50 = vld [vmem:[#allocation11 + $0x260] ss:$8 sps:$4 sm:$0xff]  }
 0x8ac   :  { %16801 = vmatpush1.bf16.msra.mxu0 %v19403_v32  ;;  %14995 = vmatprep.subr.bf16.mxu1 %v18394_v37  ;;  %v15259_v32 = vmax.f32 %v15243_v47, 0.0  ;;  %v19426_v37 = vld [vmem:[#allocation11 + $0x204] ss:$8 sps:$4 sm:$0xff]   ;;  %v19439_v47 = vld [vmem:[#allocation11 + $0x250] ss:$8 sps:$4 sm:$0xff]  }
 0x8ad   :  { %16802 = vmatprep.subr.bf16.mxu0 %v19408_v12  ;;  %v2001_v12 = vld [vmem:[#allocation6 + $0x38b8] sm:$0xff] }
 0x8ae   :  { %v18761_v30 = vcombine.low %v2001_v12, %v2009_v26 }
 0x8af   :  { %14996 = vmatpush1.bf16.msra.mxu1 %v18393_v22  ;;  %v18762_v22 = vcombine.high %v2001_v12, %v2009_v26 }
 0x8b0   :  { %16803 = vmatpush1.bf16.msra.mxu0 %v19406_v35  ;;  %14997 = vmatprep.subr.bf16.mxu1 %v18410_v9  ;;  %v15275_v35 = vpack.c.bf16 %v15259_v32, %v15259_v32  ;;  %v19429_v9 = vld [vmem:[#allocation11 + $0x214] ss:$8 sps:$4 sm:$0xff]  }
 0x8b1   :  { %16804 = vmatprep.subr.bf16.mxu0 %v19411_v24  ;;  %v2017_v24 = vld [vmem:[#allocation6 + $0x3938] sm:$0xff] }
 0x8b2   :  { %v18777_v46 = vcombine.low %v2017_v24, %v2025_v49 }
 0x8b3   :  { %14998 = vmatpush1.bf16.msra.mxu1 %v18409_v42  ;;  %v19427_v42 = vld [vmem:[#allocation11 + $0x210] ss:$8 sps:$4 sm:$0xff]  }
 0x8b4   :  { %16805 = vmatpush1.bf16.msra.mxu0 %v19409_v60  ;;  %14999 = vmatprep.subr.bf16.mxu1 %v18426_v3  ;;  %v18778_v60 = vcombine.high %v2017_v24, %v2025_v49  ;;  %v19432_v3 = vld [vmem:[#allocation11 + $0x224] ss:$8 sps:$4 sm:$0xff]  }
 0x8b5   :  { %16806 = vmatprep.subr.bf16.mxu0 %v19414_v36  ;;  %v2033_v36 = vld [vmem:[#allocation6 + $0x39b8] sm:$0xff] }
 0x8b6   :  { %v18793_v18 = vcombine.low %v2033_v36, %v2041_v63  ;;  %v2113_v49 = vld [vmem:[#allocation6 + $0x3c38] sm:$0xff] }
 0x8b7   :  { %15000 = vmatpush1.bf16.msra.mxu1 %v18425_v6  ;;  %v19430_v6 = vld [vmem:[#allocation11 + $0x220] ss:$8 sps:$4 sm:$0xff]  }
 0x8b8   :  { %16807 = vmatpush1.bf16.msra.mxu0 %v19412_v53  ;;  %15001 = vmatprep.subr.bf16.mxu1 %v18442_v40  ;;  %v18794_v53 = vcombine.high %v2033_v36, %v2041_v63  ;;  %v2049_v40 = vld [vmem:[#allocation6 + $0x3a38] sm:$0xff] }
 0x8b9   :  { %16808 = vmatprep.subr.bf16.mxu0 %v19417_v59  ;;  %v2057_v59 = vld [vmem:[#allocation6 + $0x3a78] sm:$0xff] }
 0x8ba   :  { %v18809_v4 = vcombine.low %v2049_v40, %v2057_v59 }
 0x8bb   :  { %15002 = vmatpush1.bf16.msra.mxu1 %v18441_v19  ;;  %v18810_v19 = vcombine.high %v2049_v40, %v2057_v59  ;;  %v19448_v40 = vld [vmem:[#allocation11 + $0x280] ss:$8 sps:$4 sm:$0xff]  }
 0x8bc   :  { %16809 = vmatpush1.bf16.msra.mxu0 %v19415_v27  ;;  %15003 = vmatprep.subr.bf16.mxu1 %v18458_v29  ;;  %v19438_v27 = vld [vmem:[#allocation11 + $0x244] ss:$8 sps:$4 sm:$0xff]  }
 0x8bd   :  { %16810 = vmatprep.subr.bf16.mxu0 %v19420_v57  ;;  %v2065_v29 = vld [vmem:[#allocation6 + $0x3ab8] sm:$0xff] }
 0x8be   :  { %v19436_v57 = vld [vmem:[#allocation11 + $0x240] ss:$8 sps:$4 sm:$0xff]  }
 0x8bf   :  { %15004 = vmatpush1.bf16.msra.mxu1 %v18457_v25  ;;  %v2081_v25 = vld [vmem:[#allocation6 + $0x3b38] sm:$0xff] }
 0x8c0   :  { %16811 = vmatpush1.bf16.msra.mxu0 %v19418_v55  ;;  %15005 = vmatprep.subr.bf16.mxu1 %v18474_v52  ;;  %v2089_v55 = vld [vmem:[#allocation6 + $0x3b78] sm:$0xff] }
 0x8c1   :  { %16812 = vmatprep.subr.bf16.mxu0 %v19423_v39  ;;  %v18842_v39 = vcombine.high %v2081_v25, %v2089_v55 }
 0x8c3   :  { %15006 = vmatpush1.bf16.msra.mxu1 %v18473_v43  ;;  %v19444_v43 = vld [vmem:[#allocation11 + $0x264] ss:$8 sps:$4 sm:$0xff]  }
 0x8c4   :  { %16813 = vmatpush1.bf16.msra.mxu0 %v19421_v7  ;;  %15057 = vmatprep.subr.bf16.mxu1 %v18746_v31  ;;  %v2097_v7 = vld [vmem:[#allocation6 + $0x3bb8] sm:$0xff] }
 0x8c5   :  { %16823 = vmatprep.subr.bf16.mxu0 %v19426_v37  ;;  %v2105_v31 = vld [vmem:[#allocation6 + $0x3bf8] sm:$0xff] }
 0x8c6   :  { %15008 = vmatmul.mubr.bf16.vlgmr.msra.gmra.mrb[128].mxu1 %v19959_v10  ;;  %v19435_v10 = vld [vmem:[#allocation11 + $0x234] ss:$8 sps:$4 sm:$0xff]   ;;  %v18858_v33 = vcombine.high %v2097_v7, %v2105_v31 }
 0x8c7   :  { %16815 = vmatmul.mubr.bf16.vlgmr.msra.gmra.mrb[128].mxu0 %v15275_v35  ;;  %15058 = vmatpush1.bf16.msra.mxu1 %v18745_v20 }
 0x8c8   :  { %16824 = vmatpush1.bf16.msra.mxu0 %v19424_v8  ;;  %15059 = vmatprep.subr.bf16.mxu1 %v18762_v22  ;;  %v18841_v8 = vcombine.low %v2081_v25, %v2089_v55  ;;  %v19454_v25 = vld [vmem:[#allocation11 + $0x2a0] ss:$8 sps:$4 sm:$0xff]  }
 0x8c9   :  { %16825 = vmatprep.subr.bf16.mxu0 %v19429_v9  ;;  %15089 = vmatprep.mubr.bf16.mxu1 %v19961_v23  ;;  %v2073_v23 = vld [vmem:[#allocation6 + $0x3af8] sm:$0xff] }
 0x8ca   :  { %v18826_v38 = vcombine.high %v2065_v29, %v2073_v23  ;;  %v18825_v52 = vcombine.low %v2065_v29, %v2073_v23  ;;  %v19451_v29 = vld [vmem:[#allocation11 + $0x290] ss:$8 sps:$4 sm:$0xff]  }
 0x8cb   :  { %15060 = vmatpush1.bf16.msra.mxu1 %v18761_v30  ;;  %v2121_v30 = vld [vmem:[#allocation6 + $0x3c78] sm:$0xff] }
 0x8cc   :  { %16826 = vmatpush1.bf16.msra.mxu0 %v19427_v42  ;;  %15061 = vmatprep.subr.bf16.mxu1 %v18778_v60  ;;  %v18874_v36 = vcombine.high %v2113_v49, %v2121_v30 }
 0x8cd   :  { %16827 = vmatprep.subr.bf16.mxu0 %v19432_v3  ;;  %v19445_v3 = vld [vmem:[#allocation11 + $0x270] ss:$8 sps:$4 sm:$0xff]  }
 0x8cf   :  { %15062 = vmatpush1.bf16.msra.mxu1 %v18777_v46  ;;  %v19450_v46 = vld [vmem:[#allocation11 + $0x284] ss:$8 sps:$4 sm:$0xff]  }
 0x8d0   :  { %16828 = vmatpush1.bf16.msra.mxu0 %v19430_v6  ;;  %15063 = vmatprep.subr.bf16.mxu1 %v18794_v53  ;;  %v2129_v6 = vld [vmem:[#allocation6 + $0x3cb8] sm:$0xff] }
 0x8d1   :  { %16829 = vmatprep.subr.bf16.mxu0 %v19435_v10  ;;  %v2137_v53 = vld [vmem:[#allocation6 + $0x3cf8] sm:$0xff]  ;;  %v18873_v10 = vcombine.low %v2113_v49, %v2121_v30  ;;  %v20449_v49 = vld [vmem:[#allocation8 + $0x8] sm:$0xff] }
 0x8d2   :  { %v18890_v59 = vcombine.high %v2129_v6, %v2137_v53  ;;  %v15204_v30 = vrot.slane %v20449_v49, %v15171_v21  ;;  %v19466_v21 = vld [vmem:[#allocation11 + $0x2e0] ss:$8 sps:$4 sm:$0xff]  }
 0x8d3   :  { %15064 = vmatpush1.bf16.msra.mxu1 %v18793_v18  ;;  %v19453_v18 = vld [vmem:[#allocation11 + $0x294] ss:$8 sps:$4 sm:$0xff]  }
 0x8d4   :  { %16830 = vmatpush1.bf16.msra.mxu0 %v19433_v58  ;;  %15065 = vmatprep.subr.bf16.mxu1 %v18810_v19  ;;  %v2145_v58 = vld [vmem:[#allocation6 + $0x3d38] sm:$0xff] }
 0x8d5   :  { %16831 = vmatprep.subr.bf16.mxu0 %v19438_v27  ;;  %v2153_v19 = vld [vmem:[#allocation6 + $0x3d78] sm:$0xff]  ;;  %v18889_v27 = vcombine.low %v2129_v6, %v2137_v53 }
 0x8d6   :  { %v18906_v23 = vcombine.high %v2145_v58, %v2153_v19 }
 0x8d7   :  { %15066 = vmatpush1.bf16.msra.mxu1 %v18809_v4  ;;  %v19456_v4 = vld [vmem:[#allocation11 + $0x2a4] ss:$8 sps:$4 sm:$0xff]  }
 0x8d8   :  { %16832 = vmatpush1.bf16.msra.mxu0 %v19436_v57  ;;  %15067 = vmatprep.subr.bf16.mxu1 %v18826_v38  ;;  %v2161_v57 = vld [vmem:[#allocation6 + $0x3db8] sm:$0xff] }
 0x8d9   :  { %v14763_v0 = vpop.f32.mrb[116].mxu1  ;;  %16833 = vmatprep.subr.bf16.mxu0 %v19441_v51  ;;  %v2169_v38 = vld [vmem:[#allocation6 + $0x3df8] sm:$0xff]  ;;  %v18905_v51 = vcombine.low %v2145_v58, %v2153_v19  ;;  %v19471_v58 = vld [vmem:[#allocation11 + $0x2f4] ss:$8 sps:$4 sm:$0xff]  }
 0x8da   :  { %v20442_v32 = vadd.f32 %v14763_v0, %v20426_v45  ;;  %v14765_v37 = vpop.f32.mrb[117].mxu1  ;;  %v20444_v12 = vpop.f32.mrb[116].mxu0  ;;  %v19447_v45 = vld [vmem:[#allocation11 + $0x274] ss:$8 sps:$4 sm:$0xff]   ;;  %v18922_v55 = vcombine.high %v2161_v57, %v2169_v38  ;;  %v18921_v0 = vcombine.low %v2161_v57, %v2169_v38  ;;  %v19473_v57 = vld [vmem:[#allocation9 + $0x80] sm:$0xff]   ;;  %v19474_v38 = vld [vmem:[#allocation9 + $0xc8] sm:$0xff]  }
 0x8db   :  { %v14766_v26 = vadd.f32 %v14765_v37, %v20429_v11  ;;  %v14767_v20 = vpop.f32.mrb[118].mxu1  ;;  %15068 = vmatpush1.bf16.msra.mxu1 %v18825_v52  ;;  %v20447_v22 = vpop.f32.mrb[117].mxu0  ;;  %v18857_v11 = vcombine.low %v2097_v7, %v2105_v31  ;;  %v19459_v52 = vld [vmem:[#allocation11 + $0x2b4] ss:$8 sps:$4 sm:$0xff]   ;;  %v19462_v7 = vld [vmem:[#allocation11 + $0x2c4] ss:$8 sps:$4 sm:$0xff]  }
 0x8dc   :  { %16834 = vmatpush1.bf16.msra.mxu0 %v19439_v47  ;;  %v14768_v35 = vpop.f32.mrb[119].mxu1  ;;  %15069 = vmatprep.subr.bf16.mxu1 %v18842_v39  ;;  %v15054_v9 = vpop.f32.mrb[118].mxu0  ;;  %v2177_v47 = vld [vmem:[#allocation6 + $0x3e38] sm:$0xff] }
 0x8dd   :  { %v15246_v24 = vadd.f32 %v15208_v61, %v14766_v26  ;;  %16835 = vmatprep.subr.bf16.mxu0 %v19444_v43  ;;  %v15055_v42 = vpop.f32.mrb[119].mxu0  ;;  %v2185_v39 = vld [vmem:[#allocation6 + $0x3e78] sm:$0xff]  ;;  %v19457_v61 = vld [vmem:[#allocation11 + $0x2b0] ss:$8 sps:$4 sm:$0xff]   ;;  %v19465_v35 = vld [vmem:[#allocation11 + $0x2d4] ss:$8 sps:$4 sm:$0xff]  }
 0x8de   :  { %v18938_v43 = vcombine.high %v2177_v47, %v2185_v39  ;;  %v2193_v31 = vld [vmem:[#allocation6 + $0x3eb8] sm:$0xff]  ;;  %v18937_v26 = vcombine.low %v2177_v47, %v2185_v39  ;;  %v19479_v47 = vld [vmem:[#allocation9 + $0x98] sm:$0xff]   ;;  %v19480_v39 = vld [vmem:[#allocation9 + $0xe0] sm:$0xff]  }
 0x8df   :  { %v15262_v60 = vmax.f32 %v15246_v24, 0.0  ;;  %15070 = vmatpush1.bf16.msra.mxu1 %v18841_v8  ;;  %v2201_v37 = vld [vmem:[#allocation6 + $0x3ef8] sm:$0xff]  ;;  %v19463_v24 = vld [vmem:[#allocation11 + $0x2d0] ss:$8 sps:$4 sm:$0xff]  }
 0x8e0   :  { %16836 = vmatpush1.bf16.msra.mxu0 %v19442_v50  ;;  %15071 = vmatprep.subr.bf16.mxu1 %v18858_v33  ;;  %v19460_v20 = vld [vmem:[#allocation11 + $0x2c0] ss:$8 sps:$4 sm:$0xff]   ;;  %v18954_v8 = vcombine.high %v2193_v31, %v2201_v37  ;;  %v18953_v9 = vcombine.low %v2193_v31, %v2201_v37  ;;  %v19468_v42 = vld [vmem:[#allocation11 + $0x2e4] ss:$8 sps:$4 sm:$0xff]   ;;  %v19484_v31 = vld [vmem:[#allocation9 + $0xf0] sm:$0xff]  }
 0x8e1   :  { %v15278_v63 = vpack.c.bf16 %v15262_v60, %v15262_v60  ;;  %16837 = vmatprep.subr.bf16.mxu0 %v19447_v45  ;;  %v2209_v50 = vld [vmem:[#allocation6 + $0x3f38] sm:$0xff] }
 0x8e2   :  { %v2217_v33 = vld [vmem:[#allocation6 + $0x3f78] sm:$0xff] }
 0x8e3   :  { %15072 = vmatpush1.bf16.msra.mxu1 %v18857_v11  ;;  %16855 = vmatprep.mubr.bf16.mxu0 %v15278_v63  ;;  %v18970_v45 = vcombine.high %v2209_v50, %v2217_v33  ;;  %v2225_v60 = vld [vmem:[#allocation6 + $0x3fb8] sm:$0xff]  ;;  %v18969_v6 = vcombine.low %v2209_v50, %v2217_v33 }
 0x8e4   :  { %16838 = vmatpush1.bf16.msra.mxu0 %v19445_v3  ;;  %15073 = vmatprep.subr.bf16.mxu1 %v18874_v36  ;;  %v2233_v11 = vld [vmem:[#allocation6 + $0x3ff8] sm:$0xff]  ;;  %v20454_v3 = vld [vmem:[#allocation8] sm:$0xff] }
 0x8e5   :  { %16839 = vmatprep.subr.bf16.mxu0 %v19450_v46  ;;  %v15168_v36 = vrot.slane %v20454_v3, %v15167_v16  ;;  %v18985_v16 = vcombine.low %v2225_v60, %v2233_v11 }
 0x8e7   :  { %15074 = vmatpush1.bf16.msra.mxu1 %v18873_v10  ;;  %v15236_v19 = vadd.f32 %v15168_v36, %v20095_v44  ;;  %v19475_v44 = vld [vmem:[#allocation9 + $0x88] sm:$0xff]  }
 0x8e8   :  { %16840 = vmatpush1.bf16.msra.mxu0 %v19448_v40  ;;  %15075 = vmatprep.subr.bf16.mxu1 %v18890_v59  ;;  %v18986_v40 = vcombine.high %v2225_v60, %v2233_v11  ;;  %v15245_v59 = vadd.f32 %v15204_v30, %v20442_v32  ;;  %v19506_v36 = vld [vmem:[#allocation11 + $0x304] ss:$8 sps:$4 sm:$0xff]  }
 0x8e9   :  { %16841 = vmatprep.subr.bf16.mxu0 %v19453_v18 }
 0x8eb   :  { %15076 = vmatpush1.bf16.msra.mxu1 %v18889_v27  ;;  %v19469_v27 = vld [vmem:[#allocation11 + $0x2f0] ss:$8 sps:$4 sm:$0xff]  }
 0x8ec   :  { %16842 = vmatpush1.bf16.msra.mxu0 %v19451_v29  ;;  %15077 = vmatprep.subr.bf16.mxu1 %v18906_v23  ;;  %v19472_v29 = vld [vmem:[#allocation9 + $0xc0] sm:$0xff]   ;;  %v15261_v23 = vmax.f32 %v15245_v59, 0.0 }
 0x8ed   :  { %16843 = vmatprep.subr.bf16.mxu0 %v19456_v4  ;;  %v15252_v4 = vmax.f32 %v15236_v19, 0.0 }
 0x8ee   :  { %v15277_v32 = vpack.c.bf16 %v15261_v23, %v15261_v23  ;;  %v19513_v23 = vld [vmem:[#allocation11 + $0x330] ss:$8 sps:$4 sm:$0xff]  }
 0x8ef   :  { %15078 = vmatpush1.bf16.msra.mxu1 %v18905_v51  ;;  %v15268_v51 = vpack.c.bf16 %v15252_v4, %v15252_v4  ;;  %v19518_v4 = vld [vmem:[#allocation11 + $0x344] ss:$8 sps:$4 sm:$0xff]  }
 0x8f0   :  { %16844 = vmatpush1.bf16.msra.mxu0 %v19454_v25  ;;  %15079 = vmatprep.subr.bf16.mxu1 %v18922_v55  ;;  %v19476_v25 = vld [vmem:[#allocation9 + $0xd0] sm:$0xff]  }
 0x8f1   :  { %16845 = vmatprep.subr.bf16.mxu0 %v19459_v52  ;;  %v19477_v55 = vld [vmem:[#allocation9 + $0x90] sm:$0xff]   ;;  %v19478_v52 = vld [vmem:[#allocation9 + $0xd8] sm:$0xff]  }
 0x8f3   :  { %15080 = vmatpush1.bf16.msra.mxu1 %v18921_v0  ;;  %v19481_v0 = vld [vmem:[#allocation9 + $0xa0] sm:$0xff]  }
 0x8f4   :  { %16846 = vmatpush1.bf16.msra.mxu0 %v19457_v61  ;;  %15081 = vmatprep.subr.bf16.mxu1 %v18938_v43  ;;  %v19482_v61 = vld [vmem:[#allocation9 + $0xe8] sm:$0xff]  }
 0x8f5   :  { %16847 = vmatprep.subr.bf16.mxu0 %v19462_v7  ;;  %v19483_v43 = vld [vmem:[#allocation9 + $0xa8] sm:$0xff]   ;;  %v15164_v7 = vrot.slane %v20454_v3, %v15163_v13 }
 0x8f7   :  { %15082 = vmatpush1.bf16.msra.mxu1 %v18937_v26  ;;  %v15235_v13 = vadd.f32 %v15164_v7, %v20092_v34  ;;  %v19487_v34 = vld [vmem:[#allocation9 + $0xb8] sm:$0xff]   ;;  %v19499_v7 = vld [vmem:[#allocation9 + $0x1a8] sm:$0xff]  }
 0x8f8   :  { %16848 = vmatpush1.bf16.msra.mxu0 %v19460_v20  ;;  %15083 = vmatprep.subr.bf16.mxu1 %v18954_v8 }
 0x8f9   :  { %16849 = vmatprep.subr.bf16.mxu0 %v19465_v35 }
 0x8fa   :  { %v19196_v63 = vpop.f32.mrb[120].mxu0 }
 0x8fb   :  { %v19197_v46 = vpop.f32.mrb[121].mxu0  ;;  %15084 = vmatpush1.bf16.msra.mxu1 %v18953_v9 }
 0x8fc   :  { %v20459_v53 = vadd.f32 %v19197_v46, %v19196_v63  ;;  %v19199_v10 = vpop.f32.mrb[122].mxu0  ;;  %16850 = vmatpush1.bf16.msra.mxu0 %v19463_v24  ;;  %15085 = vmatprep.subr.bf16.mxu1 %v18970_v45  ;;  %v19485_v24 = vld [vmem:[#allocation9 + $0xb0] sm:$0xff]   ;;  %v19486_v45 = vld [vmem:[#allocation9 + $0xf8] sm:$0xff]  }
 0x8fd   :  { %v19200_v18 = vpop.f32.mrb[123].mxu0  ;;  %16851 = vmatprep.subr.bf16.mxu0 %v19468_v42  ;;  %v19507_v10 = vld [vmem:[#allocation11 + $0x310] ss:$8 sps:$4 sm:$0xff]  }
 0x8fe   :  { %v19489_v18 = vld [vmem:[#allocation9 + $0x180] sm:$0xff]  }
 0x8ff   :  { %15086 = vmatpush1.bf16.msra.mxu1 %v18969_v6  ;;  %v19509_v6 = vld [vmem:[#allocation11 + $0x314] ss:$8 sps:$4 sm:$0xff]  }
 0x900   :  { %16852 = vmatpush1.bf16.msra.mxu0 %v19466_v21  ;;  %15087 = vmatprep.subr.bf16.mxu1 %v18986_v40  ;;  %v15251_v21 = vmax.f32 %v15235_v13, 0.0  ;;  %v19488_v40 = vld [vmem:[#allocation9 + $0x1c0] sm:$0xff]  }
 0x901   :  { %16853 = vmatprep.subr.bf16.mxu0 %v19471_v58  ;;  %v19490_v58 = vld [vmem:[#allocation9 + $0x1c8] sm:$0xff]  }
 0x902   :  { %v19536_v13 = vld [vmem:[#allocation11 + $0x3a4] ss:$8 sps:$4 sm:$0xff]  }
 0x903   :  { %15088 = vmatpush1.bf16.msra.mxu1 %v18985_v16  ;;  %v19515_v16 = vld [vmem:[#allocation11 + $0x334] ss:$8 sps:$4 sm:$0xff]  }
 0x904   :  { %16854 = vmatpush1.bf16.msra.mxu0 %v19469_v27  ;;  %19202 = vmatprep.subr.bf16.mxu1 %v19472_v29  ;;  %v19491_v27 = vld [vmem:[#allocation9 + $0x188] sm:$0xff]   ;;  %v19492_v29 = vld [vmem:[#allocation9 + $0x1d0] sm:$0xff]  }
 0x905   :  { %16864 = vmatprep.subr.bf16.mxu0 %v19506_v36  ;;  %v19542_v36 = vld [vmem:[#allocation11 + $0x3c4] ss:$8 sps:$4 sm:$0xff]  }
 0x906   :  { %15090 = vmatmul.mubr.bf16.vlgmr.msra.gmra.mrb[132].mxu1 %v19977_v14  ;;  %v15183_v14 = vsub.s32 7, %v20345_v54 }
 0x907   :  { %16856 = vmatmul.mubr.bf16.vlgmr.msra.gmra.mrb[128].mxu0 %v15277_v32  ;;  %19203 = vmatpush3.bf16.msra.mxu1 %v19473_v57  ;;  %v19493_v57 = vld [vmem:[#allocation9 + $0x190] sm:$0xff]   ;;  %v19516_v32 = vld [vmem:[#allocation11 + $0x340] ss:$8 sps:$4 sm:$0xff]  }
 0x908   :  { %15872 = vmatprep.mubr.bf16.mxu1 %v15268_v51  ;;  %19204 = vmatprep.subr.bf16.mxu1 %v19474_v38  ;;  %v15184_v37 = vrot.slane %v20454_v3, %v15183_v14  ;;  %v19494_v38 = vld [vmem:[#allocation9 + $0x1d8] sm:$0xff]  }
 0x909   :  { %v19521_v51 = vld [vmem:[#allocation11 + $0x354] ss:$8 sps:$4 sm:$0xff]  }
 0x90a   :  { %v15240_v63 = vadd.f32 %v15184_v37, %v20219_v15  ;;  %v15267_v15 = vpack.c.bf16 %v15251_v21, %v15251_v21  ;;  %v19500_v37 = vld [vmem:[#allocation9 + $0x1f0] sm:$0xff]  }
 0x90b   :  { %19205 = vmatpush3.bf16.msra.mxu1 %v19475_v44  ;;  %v19495_v44 = vld [vmem:[#allocation9 + $0x198] sm:$0xff]  }
 0x90c   :  { %19206 = vmatprep.subr.bf16.mxu1 %v19476_v25  ;;  %v15256_v59 = vmax.f32 %v15240_v63, 0.0  ;;  %v19496_v25 = vld [vmem:[#allocation9 + $0x1e0] sm:$0xff]  }
 0x90d   :  { %v19540_v63 = vld [vmem:[#allocation11 + $0x3c0] ss:$8 sps:$4 sm:$0xff]  }
 0x90e   :  { %v15272_v19 = vpack.c.bf16 %v15256_v59, %v15256_v59  ;;  %v19548_v59 = vld [vmem:[#allocation11 + $0x3e4] ss:$8 sps:$4 sm:$0xff]  }
 0x90f   :  { %19207 = vmatpush3.bf16.msra.mxu1 %v19477_v55  ;;  %v19519_v55 = vld [vmem:[#allocation11 + $0x350] ss:$8 sps:$4 sm:$0xff]  }
 0x910   :  { %19208 = vmatprep.subr.bf16.mxu1 %v19478_v52  ;;  %v19524_v52 = vld [vmem:[#allocation11 + $0x364] ss:$8 sps:$4 sm:$0xff]  }
 0x913   :  { %19209 = vmatpush3.bf16.msra.mxu1 %v19479_v47  ;;  %v19497_v47 = vld [vmem:[#allocation9 + $0x1a0] sm:$0xff]  }
 0x914   :  { %19210 = vmatprep.subr.bf16.mxu1 %v19480_v39  ;;  %v15179_v39 = vsub.s32 6, %v20345_v54 }
 0x917   :  { %19211 = vmatpush3.bf16.msra.mxu1 %v19481_v0  ;;  %v19498_v0 = vld [vmem:[#allocation9 + $0x1e8] sm:$0xff]  }
 0x918   :  { %19212 = vmatprep.subr.bf16.mxu1 %v19482_v61  ;;  %v19522_v61 = vld [vmem:[#allocation11 + $0x360] ss:$8 sps:$4 sm:$0xff]  }
 0x919   :  { %v14845_v26 = vpop.f32.mrb[120].mxu1 }
 0x91a   :  { %v14846_v20 = vadd.f32 %v14845_v26, %v20381_v62  ;;  %v19240_v8 = vpop.f32.mrb[124].mxu0  ;;  %v14847_v35 = vpop.f32.mrb[121].mxu1  ;;  %v19504_v62 = vld [vmem:[#allocation11 + $0x300] ss:$8 sps:$4 sm:$0xff]   ;;  %v19525_v26 = vld [vmem:[#allocation11 + $0x370] ss:$8 sps:$4 sm:$0xff]  }
 0x91b   :  { %v14848_v50 = vadd.f32 %v14847_v35, %v20384_v28  ;;  %v19241_v33 = vpop.f32.mrb[125].mxu0  ;;  %v14849_v9 = vpop.f32.mrb[122].mxu1  ;;  %19213 = vmatpush3.bf16.msra.mxu1 %v19483_v43  ;;  %16865 = vmatpush1.bf16.msra.mxu0 %v19504_v62  ;;  %v19527_v43 = vld [vmem:[#allocation11 + $0x374] ss:$8 sps:$4 sm:$0xff]   ;;  %v19537_v62 = vld [vmem:[#allocation11 + $0x3b0] ss:$8 sps:$4 sm:$0xff]  }
 0x91c   :  { %v20474_v30 = vadd.f32 %v19241_v33, %v19240_v8  ;;  %v19243_v42 = vpop.f32.mrb[126].mxu0  ;;  %v14850_v60 = vpop.f32.mrb[123].mxu1  ;;  %19214 = vmatprep.subr.bf16.mxu1 %v19484_v31  ;;  %v20477_v11 = vadd.f32 %v20405_v56, %v14846_v20  ;;  %16866 = vmatprep.subr.bf16.mxu0 %v19509_v6  ;;  %v19512_v56 = vld [vmem:[#allocation11 + $0x324] ss:$8 sps:$4 sm:$0xff]   ;;  %v15180_v31 = vrot.slane %v20454_v3, %v15179_v39  ;;  %v19501_v8 = vld [vmem:[#allocation9 + $0x1b0] sm:$0xff]  }
 0x91d   :  { %v19244_v28 = vpop.f32.mrb[127].mxu0  ;;  %v20481_v46 = vadd.f32 %v20407_v2, %v14848_v50  ;;  %v19510_v2 = vld [vmem:[#allocation11 + $0x320] ss:$8 sps:$4 sm:$0xff]   ;;  %v19530_v20 = vld [vmem:[#allocation11 + $0x384] ss:$8 sps:$4 sm:$0xff]   ;;  %v19502_v50 = vld [vmem:[#allocation9 + $0x1f8] sm:$0xff]  }
 0x91e   :  { %v15239_v35 = vadd.f32 %v15180_v31, %v20216_v5  ;;  %v19528_v33 = vld [vmem:[#allocation11 + $0x380] ss:$8 sps:$4 sm:$0xff]   ;;  %v19533_v9 = vld [vmem:[#allocation11 + $0x394] ss:$8 sps:$4 sm:$0xff]   ;;  %v19531_v3 = vld [vmem:[#allocation11 + $0x390] ss:$8 sps:$4 sm:$0xff]  }
 0x91f   :  { %19215 = vmatpush3.bf16.msra.mxu1 %v19485_v24  ;;  %16867 = vmatpush1.bf16.msra.mxu0 %v19507_v10  ;;  %v19503_v24 = vld [vmem:[#allocation9 + $0x1b8] sm:$0xff]   ;;  %v19534_v60 = vld [vmem:[#allocation11 + $0x3a0] ss:$8 sps:$4 sm:$0xff]  }
 0x920   :  { %19216 = vmatprep.subr.bf16.mxu1 %v19486_v45  ;;  %16868 = vmatprep.subr.bf16.mxu0 %v19512_v56  ;;  %v15255_v45 = vmax.f32 %v15239_v35, 0.0  ;;  %v19539_v5 = vld [vmem:[#allocation11 + $0x3b4] ss:$8 sps:$4 sm:$0xff]   ;;  %v19543_v6 = vld [vmem:[#allocation11 + $0x3d0] ss:$8 sps:$4 sm:$0xff]  }
 0x921   :  { %v19545_v28 = vld [vmem:[#allocation11 + $0x3d4] ss:$8 sps:$4 sm:$0xff]  }
 0x922   :  { %v15271_v42 = vpack.c.bf16 %v15255_v45, %v15255_v45 }
 0x923   :  { %19217 = vmatpush3.bf16.msra.mxu1 %v19487_v34  ;;  %16869 = vmatpush1.bf16.msra.mxu0 %v19510_v2 }
 0x924   :  { %19246 = vmatprep.subr.bf16.mxu1 %v19488_v40  ;;  %16870 = vmatprep.subr.bf16.mxu0 %v19515_v16  ;;  %v19549_v16 = vld [vmem:[#allocation11 + $0x3f0] ss:$8 sps:$4 sm:$0xff]  }
 0x926   :  { %15873 = vmatmul.mubr.bf16.vlgmr.msra.gmra.mrb[136].mxu1 %v15267_v15 }
 0x927   :  { %19247 = vmatpush3.bf16.msra.mxu1 %v19489_v18  ;;  %15952 = vmatprep.mubr.bf16.mxu1 %v15272_v19  ;;  %v19551_v19 = vld [vmem:[#allocation11 + $0x3f4] ss:$8 sps:$4 sm:$0xff]  }
 0x928   :  { %19248 = vmatprep.subr.bf16.mxu1 %v19490_v58  ;;  %16871 = vmatpush1.bf16.msra.mxu0 %v19513_v23  ;;  %v19546_v58 = vld [vmem:[#allocation11 + $0x3e0] ss:$8 sps:$4 sm:$0xff]  }
 0x929   :  { %16872 = vmatprep.subr.bf16.mxu0 %v19518_v4 }
 0x92b   :  { %19249 = vmatpush3.bf16.msra.mxu1 %v19491_v27 }
 0x92c   :  { %19250 = vmatprep.subr.bf16.mxu1 %v19492_v29  ;;  %16873 = vmatpush1.bf16.msra.mxu0 %v19516_v32  ;;  %v15216_v32 = vrot.slane %v20449_v49, %v15183_v14 }
 0x92d   :  { %16874 = vmatprep.subr.bf16.mxu0 %v19521_v51 }
 0x92f   :  { %19251 = vmatpush3.bf16.msra.mxu1 %v19493_v57 }
 0x930   :  { %19252 = vmatprep.subr.bf16.mxu1 %v19494_v38  ;;  %16875 = vmatpush1.bf16.msra.mxu0 %v19519_v55 }
 0x931   :  { %16876 = vmatprep.subr.bf16.mxu0 %v19524_v52 }
 0x933   :  { %19253 = vmatpush3.bf16.msra.mxu1 %v19495_v44 }
 0x934   :  { %19254 = vmatprep.subr.bf16.mxu1 %v19496_v25  ;;  %16877 = vmatpush1.bf16.msra.mxu0 %v19522_v61 }
 0x935   :  { %16878 = vmatprep.subr.bf16.mxu0 %v19527_v43 }
 0x937   :  { %19255 = vmatpush3.bf16.msra.mxu1 %v19497_v47 }
 0x938   :  { %19256 = vmatprep.subr.bf16.mxu1 %v19498_v0  ;;  %16879 = vmatpush1.bf16.msra.mxu0 %v19525_v26 }
 0x939   :  { %16880 = vmatprep.subr.bf16.mxu0 %v19530_v20 }
 0x93b   :  { %19257 = vmatpush3.bf16.msra.mxu1 %v19499_v7  ;;  %v18987_v7 = vld [vmem:[#allocation12] ss:$0 sm:$0xff] }
 0x93c   :  { %19258 = vmatprep.subr.bf16.mxu1 %v19500_v37  ;;  %16881 = vmatpush1.bf16.msra.mxu0 %v19528_v33  ;;  %v15835_v54 = vadd.f32 %v20459_v53, %v18987_v7 }
 0x93d   :  { %16882 = vmatprep.subr.bf16.mxu0 %v19533_v9 }
 0x93f   :  { %19259 = vmatpush3.bf16.msra.mxu1 %v19501_v8 }
 0x940   :  { %19260 = vmatprep.subr.bf16.mxu1 %v19502_v50  ;;  %16883 = vmatpush1.bf16.msra.mxu0 %v19531_v3 }
 0x941   :  { %16884 = vmatprep.subr.bf16.mxu0 %v19536_v13 }
 0x943   :  { %19261 = vmatpush3.bf16.msra.mxu1 %v19503_v24 }
 0x944   :  { %16885 = vmatpush1.bf16.msra.mxu0 %v19534_v60 }
 0x945   :  { %16886 = vmatprep.subr.bf16.mxu0 %v19539_v5 }
 0x946   :  { %15953 = vmatmul.mubr.bf16.vlgmr.msra.gmra.mrb[140].mxu1 %v15271_v42 }
 0x948   :  { %16887 = vmatpush1.bf16.msra.mxu0 %v19537_v62 }
 0x949   :  { %16888 = vmatprep.subr.bf16.mxu0 %v19542_v36 }
 0x94c   :  { %16889 = vmatpush1.bf16.msra.mxu0 %v19540_v63 }
 0x94d   :  { %16890 = vmatprep.subr.bf16.mxu0 %v19545_v28 }
 0x950   :  { %16891 = vmatpush1.bf16.msra.mxu0 %v19543_v6 }
 0x951   :  { %16892 = vmatprep.subr.bf16.mxu0 %v19548_v59 }
 0x954   :  { %16893 = vmatpush1.bf16.msra.mxu0 %v19546_v58 }
 0x955   :  { %16894 = vmatprep.subr.bf16.mxu0 %v19551_v19 }
 0x958   :  { %16895 = vmatpush1.bf16.msra.mxu0 %v19549_v16 }
 0x959   :  { %v14927_v34 = vpop.f32.mrb[124].mxu1 }
 0x95a   :  { %v14928_v10 = vadd.f32 %v14927_v34, %v20477_v11  ;;  %v14929_v21 = vpop.f32.mrb[125].mxu1 }
 0x95b   :  { %v14930_v40 = vadd.f32 %v14929_v21, %v20481_v46  ;;  %v14931_v56 = vpop.f32.mrb[126].mxu1 }
 0x95c   :  { %v14932_v18 = vpop.f32.mrb[127].mxu1  ;;  %v14969_v15 = vadd.f32 %v20420_v48, %v14928_v10  ;;  %v15212_v48 = vrot.slane %v20449_v49, %v15179_v39 }
 0x95d   :  { %v14971_v2 = vadd.f32 %v20423_v41, %v14930_v40 }
 0x999   :  { %v15009_v27 = vpop.f32.mrb[128].mxu1 }
 0x99a   :  { %v15010_v29 = vadd.f32 %v15009_v27, %v14969_v15  ;;  %v15011_v11 = vpop.f32.mrb[129].mxu1 }
 0x99b   :  { %v15012_v23 = vadd.f32 %v15011_v11, %v14971_v2  ;;  %v15013_v4 = vpop.f32.mrb[130].mxu1 }
 0x99c   :  { %v15014_v46 = vpop.f32.mrb[131].mxu1  ;;  %v15051_v57 = vadd.f32 %v20444_v12, %v15010_v29 }
 0x99d   :  { %v15053_v38 = vadd.f32 %v20447_v22, %v15012_v23 }
 0x9d9   :  { %v15091_v41 = vpop.f32.mrb[132].mxu1 }
 0x9da   :  { %v15092_v51 = vadd.f32 %v15091_v41, %v15051_v57  ;;  %v15093_v44 = vpop.f32.mrb[133].mxu1 }
 0x9db   :  { %v15094_v25 = vadd.f32 %v15093_v44, %v15053_v38  ;;  %v15095_v55 = vpop.f32.mrb[134].mxu1 }
 0x9dc   :  { %v15247_v52 = vadd.f32 %v15212_v48, %v15092_v51  ;;  %v15096_v47 = vpop.f32.mrb[135].mxu1 }
 0x9dd   :  { %v15248_v0 = vadd.f32 %v15216_v32, %v15094_v25 }
 0x9de   :  { %v15263_v61 = vmax.f32 %v15247_v52, 0.0 }
 0x9df   :  { %v15264_v12 = vmax.f32 %v15248_v0, 0.0 }
 0x9e0   :  { %v15279_v22 = vpack.c.bf16 %v15263_v61, %v15263_v61 }
 0x9e1   :  { %v15280_v43 = vpack.c.bf16 %v15264_v12, %v15264_v12 }
 0x9e3   :  { %16896 = vmatprep.mubr.bf16.mxu0 %v15280_v43 }
 0x9e4   :  { %16897 = vmatmul.mubr.bf16.vlgmr.msra.gmra.mrb[128].mxu0 %v15279_v22 }
 0x9f9   :  { %v19218_v39 = vpop.f32.mrb[136].mxu1 }
 0x9fa   :  { %v19219_v31 = vpop.f32.mrb[137].mxu1 }
 0x9fb   :  { %v19220_v37 = vadd.f32 %v19219_v31, %v19218_v39  ;;  %v19221_v49 = vpop.f32.mrb[138].mxu1 }
 0x9fc   :  { %v19222_v14 = vpop.f32.mrb[139].mxu1 }
 0x9fd   :  { %v15875_v26 = vadd.f32 %v19220_v37, %v15835_v54 }
 0x9ff   :  { %v15915_v20 = vadd.f32 %v20474_v30, %v15875_v26 }
 0xa19   :  { %v19262_v8 = vpop.f32.mrb[140].mxu1 }
 0xa1a   :  { %v19263_v35 = vpop.f32.mrb[141].mxu1 }
 0xa1b   :  { %v19264_v50 = vadd.f32 %v19263_v35, %v19262_v8  ;;  %v19265_v33 = vpop.f32.mrb[142].mxu1 }
 0xa1c   :  { %v19266_v9 = vpop.f32.mrb[143].mxu1 }
 0xa1d   :  { %v15955_v24 = vadd.f32 %v19264_v50, %v15915_v20 }
 0xa1f   :  { %15960 = vst [vmem:[#allocation15] sm:$0xff] %v15955_v24 }
 0xa20   :  { %19719 = shalt.err (!%p19716_p4)
}
 0xa21   :  { %s19720_s20 = scalar_lea.hbm %s20535_s7, 128 }
 0xa22   :  { %p19721_p5 = scmp.ne.s32.totalorder %s20535_s7, %s19720_s20  ;;  %p19724_p6 = scmp.lt.u32.totalorder %s19720_s20, %s20535_s7 }
 0xa24   :  { %p19726_p7 = pnand %p19724_p6, %p19721_p5 }
 0xa26   :  { %19729 = shalt.err (!%p19726_p7)
}
 0xa27   :  { %16916 = dma.vmem_to_hbm [thread:$0]  %s16914_s3, 128, %s20535_s7, [#allocation5]   ;;  %v16089_v53 = vld [vmem:[#allocation14] sm:$0x3] }
 0xa28   :  { %v16094_v30 = vrot.slane %v16089_v53, %v20363_v17  ;;  %v16098_v45 = vrot.slane %v16089_v53, %v20352_v1  ;;  %s19777_s29 = smov [#allocation16]  }
 0xa29   :  { %s16923_s2 = sshll.u32 %s19777_s29, 4  ;;  %s16924_s2 = int_to_ptr.vmem [resolvable:$true] %s16923_s2 }
 0xa2a   :  { %s19730_s1 = scalar_lea.vmem %s16924_s2, 256  ;;  %p19735_p9 = scmp.lt.s32.totalorder %s16924_s2, %s16924_s2 }
 0xa2b   :  { %p19731_p8 = scmp.ne.s32.totalorder %s16924_s2, %s19730_s1  ;;  %p19736_p10 = scmp.lt.s32.totalorder %s19730_s1, %s19730_s1 }
 0xa2d   :  { %p19737_p11 = por %p19736_p10, %p19735_p9 }
 0xa2f   :  { %p19738_p12 = pnand %p19737_p11, %p19731_p8 }
 0xab7   :  { %v16898_v3 = vpop.f32.mrb[128].mxu0 }
 0xab8   :  { %v19268_v13 = vadd.f32 %v16898_v3, %v16094_v30  ;;  %v16900_v42 = vpop.f32.mrb[129].mxu0 }
 0xab9   :  { %v19269_v60 = vadd.f32 %v16900_v42, %v16098_v45  ;;  %v16902_v5 = vpop.f32.mrb[130].mxu0 }
 0xaba   :  { %16905 = vst [vmem:[#allocation16] sm:$0xff] %v19268_v13  ;;  %v16903_v62 = vpop.f32.mrb[131].mxu0 }
 0xabb   :  { %16906 = vst [vmem:[#allocation16 + $0x8] sm:$0xff] %v19269_v60 }
 0xabc   :  { %19741 = shalt.err (!%p19738_p12)
}
 0xabd   :  { %s19742_s5 = scalar_lea.hbm %s20536_s8, 256 }
 0xabe   :  { %p19743_p13 = scmp.ne.s32.totalorder %s20536_s8, %s19742_s5  ;;  %p19746_p0 = scmp.lt.u32.totalorder %s19742_s5, %s20536_s8 }
 0xac0   :  { %p19748_p1 = pnand %p19746_p0, %p19743_p13 }
 0xac2   :  { %19751 = shalt.err (!%p19748_p1)
}
 0xac3   :  { %16926 = dma.vmem_to_hbm [thread:$0]  %s16924_s2, 256, %s20536_s8, [#allocation17]  }
 0xac4   :  { %19760 = dma.done.wait [#allocation5], 128  }
 0xac5   :  { %19761 = vsyncadd [#allocation5], 4294967168 }
 0xac6   :  { %19762 = dma.done.wait [#allocation17], 256  }
 0xac7   :  { %19763 = vsyncadd [#allocation17], 4294967040 }
 0xac8   :  { %16933 = vsyncpa [#allocation4], 1 }
 0xac9   :  { %16934 = vsyncpa [#allocation7], 1 }
 0xaca   :  { %16935 = vsyncpa [#allocation10], 1 }
 0xacb   :  { %16936 = vsyncpa [#allocation13], 1 }
 0xacc   :  { %16937 = vsyncpa [#allocation5], 1 }
 0xacd   :  { %16938 = vsyncpa [#allocation17], 1 }

</bundles_post_ra>
